<compile_context>
chip_gen: v7x
topology: tpu7x:2x2x1
jax: 0.10.0
libtpu: 0.0.40
codegen_flags: <defaults>
</compile_context>

<pallas_src>
import math

import jax
import jax.numpy as jnp
from jax import lax
from jax.experimental import pallas as pl
from jax.experimental.pallas import tpu as pltpu

KSIZE = 3  # Conv3d kernel_size=3, padding=1, stride=1


def _interp_matrix(n_in, n_out):
    """(n_out, n_in) linear-interp matrix, align_corners=True (tent weights)."""
    if n_in == 1:
        return jnp.ones((n_out, 1), jnp.float32)
    pos = jnp.arange(n_out, dtype=jnp.float32) * ((n_in - 1) / (n_out - 1))
    idx = jnp.arange(n_in, dtype=jnp.float32)
    return jnp.maximum(0.0, 1.0 - jnp.abs(pos[:, None] - idx[None, :]))


def upsampling_function_forward(x_ncdhw, weight, bias, *, stride=2, d_tile=None):
    """Trilinear upsample (align_corners=True) -> Conv3d(k=3, p=1) -> ReLU."""
    N, Cin, Din, Hin, Win = x_ncdhw.shape
    Cout = weight.shape[0]
    Dup, Hup, Wup = Din * stride, Hin * stride, Win * stride
    HWin, HW = Hin * Win, Hup * Wup

    # ---------------- cheap pre-upsample-sized host-side preprocessing -------------
    # input -> (N, Din, Cin, Hin*Win): channels on sublanes, flat H*W on lanes; bf16
    # halves HBM DMA, accumulation stays f32 in-kernel.
    x_k = jnp.transpose(x_ncdhw, (0, 2, 1, 3, 4)).reshape(N, Din, Cin, HWin)
    x_k = x_k.astype(jnp.bfloat16)

    # D-axis interpolation tables (align_corners=True); frac is prefetched so the
    # kernel matches the reference lerp exactly.
    if Din >= 2:
        pos_d = jnp.arange(Dup, dtype=jnp.float32) * ((Din - 1) / (Dup - 1))
        lo_d = jnp.clip(jnp.floor(pos_d).astype(jnp.int32), 0, Din - 2)
        frac_d = pos_d - lo_d.astype(jnp.float32)
    else:
        lo_d = jnp.zeros((Dup,), jnp.int32)
        frac_d = jnp.zeros((Dup,), jnp.float32)
        x_k = jnp.concatenate([x_k, x_k], axis=1)  # keep lo+1 in-bounds
    Din_k = x_k.shape[1]

    # H/W bilinear upsample as one (Hin*Win, Hup*Wup) matrix (Kronecker of tents)
    mh = _interp_matrix(Hin, Hup)                      # (Hup, Hin)
    mw = _interp_matrix(Win, Wup)                      # (Wup, Win)
    up_mat = jnp.einsum('oi,pj->ijop', mh, mw).reshape(HWin, HW).astype(jnp.bfloat16)

    # conv boundary-validity masks for the 9 (kh, kw) taps, on the upsampled grid
    hh, ww = jnp.meshgrid(jnp.arange(Hup), jnp.arange(Wup), indexing='ij')
    mask_rows = []
    for dh in (-1, 0, 1):
        for dw in (-1, 0, 1):
            ok = ((hh + dh >= 0) & (hh + dh < Hup) &
                  (ww + dw >= 0) & (ww + dw < Wup))
            mask_rows.append(ok.reshape(HW))
    masks = jnp.stack(mask_rows, axis=0).astype(jnp.float32)      # (9, HW)

    # torch Conv3d weight (Cout, Cin, kd, kh, kw) -> (kd, Cout, 9*Cin):
    # columns ordered (kh*3+kw)-major, cin-minor to match the rolled patch rows.
    K9 = 9 * Cin
    w9 = jnp.transpose(weight, (2, 0, 3, 4, 1)).reshape(KSIZE, Cout, K9)
    w9 = w9.astype(jnp.bfloat16)
    b_col = bias.reshape(Cout, 1).astype(jnp.float32)

    # output-depth tile: multiple of 8 (tiling constraint) or the full depth
    if d_tile is None:
        cands = [t for t in range(8, min(Dup, 32) + 1, 8) if Dup % t == 0]
        d_tile = max(cands) if cands else Dup
    td = d_tile
    assert Dup % td == 0 and (td % 8 == 0 or td == Dup)

    # ------------------------------------ kernel -----------------------------------
    def kernel(lo_ref, frac_ref, x_ref, up_ref, w_ref, b_ref, m_ref,
               o_ref, rolled_ref):
        d0 = pl.program_id(1) * td

        # 1) D-lerped slab for upsampled depths d0-1 .. d0+td (zeros where OOB)
        rows = []
        for s in range(td + 2):
            dz = d0 + (s - 1)
            valid = jnp.logical_and(dz >= 0, dz < Dup).astype(jnp.float32)
            dzc = jnp.clip(dz, 0, Dup - 1)
            lo = lo_ref[dzc]
            frac = frac_ref[dzc]
            r0 = x_ref[0, lo].astype(jnp.float32)       # (Cin, HWin)
            r1 = x_ref[0, lo + 1].astype(jnp.float32)
            rows.append((r0 + frac * (r1 - r0)) * valid)
        raw = jnp.concatenate(rows, axis=0)             # ((td+2)*Cin, HWin), f32

        # 2) ONE batched H/W-upsample matmul for the whole slab (M=(td+2)*Cin)
        up_slab = jnp.dot(raw.astype(jnp.bfloat16), up_ref[...],
                          preferred_element_type=jnp.float32)     # ((td+2)*Cin, HW)

        # 3) rolled + masked conv patches, once per slab depth, cached in VMEM
        for s in range(td + 2):
            base = up_slab[s * Cin:(s + 1) * Cin, :]    # (Cin, HW) f32
            pieces = []
            for kh in range(KSIZE):
                for kw in range(KSIZE):
                    if kh == 1 and kw == 1:
                        pieces.append(base)             # center tap: no shift/mask
                    else:
                        off = (kh - 1) * Wup + (kw - 1)
                        k9 = kh * 3 + kw
                        p = pltpu.roll(base, (-off) % HW, 1)   # XLU rotate
                        pieces.append(p * m_ref[k9:k9 + 1, :])
            rolled_ref[s] = jnp.concatenate(pieces, axis=0).astype(jnp.bfloat16)

        # 4) conv: one K=9*Cin MXU dot per (output depth, kd); bias hoisted once
        bias_full = jnp.broadcast_to(b_ref[...], (Cout, HW))
        for j in range(td):
            acc = bias_full
            for kd in range(KSIZE):
                acc = acc + jnp.dot(w_ref[kd], rolled_ref[j + kd],
                                    preferred_element_type=jnp.float32)
            o_ref[0, :, j, :] = jnp.maximum(acc, 0.0).astype(o_ref.dtype)

    grid_spec = pltpu.PrefetchScalarGridSpec(
        num_scalar_prefetch=1,
        grid=(N, Dup // td),
        in_specs=[
            pl.BlockSpec(memory_space=pltpu.MemorySpace.SMEM),             # frac_d
            pl.BlockSpec((1, Din_k, Cin, HWin), lambda n, dt, lo: (n, 0, 0, 0)),
            pl.BlockSpec((HWin, HW), lambda n, dt, lo: (0, 0)),
            pl.BlockSpec((KSIZE, Cout, K9), lambda n, dt, lo: (0, 0, 0)),
            pl.BlockSpec((Cout, 1), lambda n, dt, lo: (0, 0)),
            pl.BlockSpec((9, HW), lambda n, dt, lo: (0, 0)),
        ],
        out_specs=pl.BlockSpec((1, Cout, td, HW), lambda n, dt, lo: (n, 0, dt, 0)),
        scratch_shapes=[pltpu.VMEM((td + 2, K9, HW), jnp.bfloat16)],
    )

    out = pl.pallas_call(
        kernel,
        out_shape=jax.ShapeDtypeStruct((N, Cout, Dup, HW), jnp.float32),
        grid_spec=grid_spec,
        compiler_params=pltpu.CompilerParams(
            dimension_semantics=("parallel", "parallel"),
            vmem_limit_bytes=32 * 1024 * 1024,
        ),
    )(lo_d, frac_d, x_k, up_mat, w9, b_col, masks)

    # (N, Cout, Dup, Hup*Wup) -> NCDHW is a pure (bitcast) reshape: no transpose pass.
    return out.reshape(N, Cout, Dup, Hup, Wup)


# --------------------------------- pure-JAX reference ---------------------------------
def _upsample_axis_trilinear(x, axis, scale):
    in_size = x.shape[axis]
    out_size = in_size * scale
    if in_size == 1:
        return jnp.repeat(x, out_size, axis=axis)
    pos = jnp.arange(out_size, dtype=jnp.float32) * (in_size - 1) / (out_size - 1)
    lo = jnp.clip(jnp.floor(pos).astype(jnp.int32), 0, in_size - 2)
    frac = pos - lo.astype(jnp.float32)
    x_lo = jnp.take(x, lo, axis=axis)
    x_hi = jnp.take(x, lo + 1, axis=axis)
    bshape = [1] * x.ndim
    bshape[axis] = out_size
    frac = frac.reshape(bshape)
    return x_lo * (1.0 - frac) + x_hi * frac


def _reference_forward(x, weight, bias, stride=2):
    xx = x.astype(jnp.float32)
    for ax in (2, 3, 4):
        xx = _upsample_axis_trilinear(xx, ax, stride)
    y = lax.conv_general_dilated(
        xx, weight.astype(jnp.float32),
        window_strides=(1, 1, 1),
        padding=((1, 1), (1, 1), (1, 1)),
        dimension_numbers=('NCDHW', 'OIDHW', 'NCDHW'),
        precision=lax.Precision.HIGHEST)
    y = y + bias.reshape(1, -1, 1, 1, 1)
    return jnp.maximum(y, 0.0)


if __name__ == "__main__":
    key = jax.random.PRNGKey(0)
    k1, k2, k3 = jax.random.split(key, 3)

    # small config: n_filters_in=4, n_filters_out=8, batch=2, spatial 8^3 -> 16^3
    N, Cin, Cout = 2, 4, 8
    D = H = W = 8
    stride = 2

    x = jax.random.normal(k1, (N, Cin, D, H, W), dtype=jnp.float32)
    fan_in = Cin * KSIZE ** 3
    bound = 1.0 / math.sqrt(fan_in)
    weight = jax.random.uniform(k2, (Cout, Cin, KSIZE, KSIZE, KSIZE),
                                minval=-bound, maxval=bound, dtype=jnp.float32)
    bias = jax.random.uniform(k3, (Cout,), minval=-bound, maxval=bound,
                              dtype=jnp.float32)

    y = jax.jit(upsampling_function_forward)(x, weight, bias)
    jax.block_until_ready(y)
    assert y.shape == (N, Cout, D * stride, H * stride, W * stride)
    assert bool(jnp.all(y >= 0.0))  # ReLU

    y_ref = _reference_forward(x, weight, bias, stride)
    err = float(jnp.max(jnp.abs(y - y_ref)))
    assert err < 5e-2, f"max abs err vs reference: {err}"
    print("KERNEL_OK")
</pallas_src>

<mosaic_0001>
module attributes {stable_mosaic.version = 11 : i64} {
  func.func @kernel(%arg0: i32, %arg1: i32, %arg2: memref<16xi32, #tpu.memory_space<smem>>, %arg3: memref<16xf32, #tpu.memory_space<smem>>, %arg4: memref<1x8x4x64xbf16, #tpu.memory_space<vmem>>, %arg5: memref<64x256xbf16, #tpu.memory_space<vmem>>, %arg6: memref<3x8x36xbf16, #tpu.memory_space<vmem>>, %arg7: memref<8x1xf32, #tpu.memory_space<vmem>>, %arg8: memref<9x256xf32, #tpu.memory_space<vmem>>, %arg9: memref<1x8x16x256xf32, #tpu.memory_space<vmem>>, %arg10: memref<18x36x256xbf16, #tpu.memory_space<vmem>>) attributes {dimension_semantics = [#tpu.dimension_semantics<parallel>, #tpu.dimension_semantics<parallel>], iteration_bounds = array<i64: 2, 1>, scalar_prefetch = 1 : i64, scratch_operands = 1 : i64, tpu.core_type = #tpu.core_type<tc>, window_params = [{transform_indices = @transform_0, window_bounds = array<i64: 16>}, {transform_indices = @transform_1, window_bounds = array<i64: 1, 8, 4, 64>}, {pipeline_mode = #tpu.pipeline_mode<synchronous>, transform_indices = @transform_2, window_bounds = array<i64: 64, 256>}, {pipeline_mode = #tpu.pipeline_mode<synchronous>, transform_indices = @transform_3, window_bounds = array<i64: 3, 8, 36>}, {pipeline_mode = #tpu.pipeline_mode<synchronous>, transform_indices = @transform_4, window_bounds = array<i64: 8, 1>}, {pipeline_mode = #tpu.pipeline_mode<synchronous>, transform_indices = @transform_5, window_bounds = array<i64: 9, 256>}, {transform_indices = @transform_6, window_bounds = array<i64: 1, 8, 16, 256>}]} {
    %c16_i32 = arith.constant 16 : i32
    %0 = arith.muli %arg1, %c16_i32 : i32
    %c-1_i32 = arith.constant -1 : i32
    %1 = arith.addi %0, %c-1_i32 : i32
    %c0_i32 = arith.constant 0 : i32
    %2 = arith.cmpi sge, %1, %c0_i32 : i32
    %c16_i32_0 = arith.constant 16 : i32
    %3 = arith.cmpi slt, %1, %c16_i32_0 : i32
    %4 = arith.andi %2, %3 : i1
    %5 = arith.extui %4 : i1 to i32
    %6 = arith.sitofp %5 : i32 to f32
    %c0_i32_1 = arith.constant 0 : i32
    %c15_i32 = arith.constant 15 : i32
    %7 = arith.maxsi %c0_i32_1, %1 : i32
    %8 = arith.minsi %c15_i32, %7 : i32
    %9 = arith.index_cast %8 : i32 to index
    %10 = memref.load %arg2[%9] : memref<16xi32, #tpu.memory_space<smem>>
    %11 = arith.index_cast %8 : i32 to index
    %12 = memref.load %arg3[%11] : memref<16xf32, #tpu.memory_space<smem>>
    %c0 = arith.constant 0 : index
    %13 = arith.index_cast %10 : i32 to index
    %c0_2 = arith.constant 0 : index
    %c0_3 = arith.constant 0 : index
    %14 = vector.load %arg4[%c0, %13, %c0_2, %c0_3] : memref<1x8x4x64xbf16, #tpu.memory_space<vmem>>, vector<1x1x4x64xbf16>
    %15 = vector.shape_cast %14 : vector<1x1x4x64xbf16> to vector<4x64xbf16>
    %16 = arith.extf %15 : vector<4x64xbf16> to vector<4x64xf32>
    %c1_i32 = arith.constant 1 : i32
    %17 = arith.addi %10, %c1_i32 : i32
    %c0_4 = arith.constant 0 : index
    %18 = arith.index_cast %17 : i32 to index
    %c0_5 = arith.constant 0 : index
    %c0_6 = arith.constant 0 : index
    %19 = vector.load %arg4[%c0_4, %18, %c0_5, %c0_6] : memref<1x8x4x64xbf16, #tpu.memory_space<vmem>>, vector<1x1x4x64xbf16>
    %20 = vector.shape_cast %19 : vector<1x1x4x64xbf16> to vector<4x64xbf16>
    %21 = arith.extf %20 : vector<4x64xbf16> to vector<4x64xf32>
    %22 = arith.subf %21, %16 : vector<4x64xf32>
    %23 = vector.broadcast %12 : f32 to vector<4x64xf32>
    %24 = arith.mulf %23, %22 : vector<4x64xf32>
    %25 = arith.addf %16, %24 : vector<4x64xf32>
    %26 = vector.broadcast %6 : f32 to vector<4x64xf32>
    %27 = arith.mulf %25, %26 : vector<4x64xf32>
    %c0_i32_7 = arith.constant 0 : i32
    %28 = arith.addi %0, %c0_i32_7 : i32
    %c0_i32_8 = arith.constant 0 : i32
    %29 = arith.cmpi sge, %28, %c0_i32_8 : i32
    %c16_i32_9 = arith.constant 16 : i32
    %30 = arith.cmpi slt, %28, %c16_i32_9 : i32
    %31 = arith.andi %29, %30 : i1
    %32 = arith.extui %31 : i1 to i32
    %33 = arith.sitofp %32 : i32 to f32
    %c0_i32_10 = arith.constant 0 : i32
    %c15_i32_11 = arith.constant 15 : i32
    %34 = arith.maxsi %c0_i32_10, %28 : i32
    %35 = arith.minsi %c15_i32_11, %34 : i32
    %36 = arith.index_cast %35 : i32 to index
    %37 = memref.load %arg2[%36] : memref<16xi32, #tpu.memory_space<smem>>
    %38 = arith.index_cast %35 : i32 to index
    %39 = memref.load %arg3[%38] : memref<16xf32, #tpu.memory_space<smem>>
    %c0_12 = arith.constant 0 : index
    %40 = arith.index_cast %37 : i32 to index
    %c0_13 = arith.constant 0 : index
    %c0_14 = arith.constant 0 : index
    %41 = vector.load %arg4[%c0_12, %40, %c0_13, %c0_14] : memref<1x8x4x64xbf16, #tpu.memory_space<vmem>>, vector<1x1x4x64xbf16>
    %42 = vector.shape_cast %41 : vector<1x1x4x64xbf16> to vector<4x64xbf16>
    %43 = arith.extf %42 : vector<4x64xbf16> to vector<4x64xf32>
    %c1_i32_15 = arith.constant 1 : i32
    %44 = arith.addi %37, %c1_i32_15 : i32
    %c0_16 = arith.constant 0 : index
    %45 = arith.index_cast %44 : i32 to index
    %c0_17 = arith.constant 0 : index
    %c0_18 = arith.constant 0 : index
    %46 = vector.load %arg4[%c0_16, %45, %c0_17, %c0_18] : memref<1x8x4x64xbf16, #tpu.memory_space<vmem>>, vector<1x1x4x64xbf16>
    %47 = vector.shape_cast %46 : vector<1x1x4x64xbf16> to vector<4x64xbf16>
    %48 = arith.extf %47 : vector<4x64xbf16> to vector<4x64xf32>
    %49 = arith.subf %48, %43 : vector<4x64xf32>
    %50 = vector.broadcast %39 : f32 to vector<4x64xf32>
    %51 = arith.mulf %50, %49 : vector<4x64xf32>
    %52 = arith.addf %43, %51 : vector<4x64xf32>
    %53 = vector.broadcast %33 : f32 to vector<4x64xf32>
    %54 = arith.mulf %52, %53 : vector<4x64xf32>
    %c1_i32_19 = arith.constant 1 : i32
    %55 = arith.addi %0, %c1_i32_19 : i32
    %c0_i32_20 = arith.constant 0 : i32
    %56 = arith.cmpi sge, %55, %c0_i32_20 : i32
    %c16_i32_21 = arith.constant 16 : i32
    %57 = arith.cmpi slt, %55, %c16_i32_21 : i32
    %58 = arith.andi %56, %57 : i1
    %59 = arith.extui %58 : i1 to i32
    %60 = arith.sitofp %59 : i32 to f32
    %c0_i32_22 = arith.constant 0 : i32
    %c15_i32_23 = arith.constant 15 : i32
    %61 = arith.maxsi %c0_i32_22, %55 : i32
    %62 = arith.minsi %c15_i32_23, %61 : i32
    %63 = arith.index_cast %62 : i32 to index
    %64 = memref.load %arg2[%63] : memref<16xi32, #tpu.memory_space<smem>>
    %65 = arith.index_cast %62 : i32 to index
    %66 = memref.load %arg3[%65] : memref<16xf32, #tpu.memory_space<smem>>
    %c0_24 = arith.constant 0 : index
    %67 = arith.index_cast %64 : i32 to index
    %c0_25 = arith.constant 0 : index
    %c0_26 = arith.constant 0 : index
    %68 = vector.load %arg4[%c0_24, %67, %c0_25, %c0_26] : memref<1x8x4x64xbf16, #tpu.memory_space<vmem>>, vector<1x1x4x64xbf16>
    %69 = vector.shape_cast %68 : vector<1x1x4x64xbf16> to vector<4x64xbf16>
    %70 = arith.extf %69 : vector<4x64xbf16> to vector<4x64xf32>
    %c1_i32_27 = arith.constant 1 : i32
    %71 = arith.addi %64, %c1_i32_27 : i32
    %c0_28 = arith.constant 0 : index
    %72 = arith.index_cast %71 : i32 to index
    %c0_29 = arith.constant 0 : index
    %c0_30 = arith.constant 0 : index
    %73 = vector.load %arg4[%c0_28, %72, %c0_29, %c0_30] : memref<1x8x4x64xbf16, #tpu.memory_space<vmem>>, vector<1x1x4x64xbf16>
    %74 = vector.shape_cast %73 : vector<1x1x4x64xbf16> to vector<4x64xbf16>
    %75 = arith.extf %74 : vector<4x64xbf16> to vector<4x64xf32>
    %76 = arith.subf %75, %70 : vector<4x64xf32>
    %77 = vector.broadcast %66 : f32 to vector<4x64xf32>
    %78 = arith.mulf %77, %76 : vector<4x64xf32>
    %79 = arith.addf %70, %78 : vector<4x64xf32>
    %80 = vector.broadcast %60 : f32 to vector<4x64xf32>
    %81 = arith.mulf %79, %80 : vector<4x64xf32>
    %c2_i32 = arith.constant 2 : i32
    %82 = arith.addi %0, %c2_i32 : i32
    %c0_i32_31 = arith.constant 0 : i32
    %83 = arith.cmpi sge, %82, %c0_i32_31 : i32
    %c16_i32_32 = arith.constant 16 : i32
    %84 = arith.cmpi slt, %82, %c16_i32_32 : i32
    %85 = arith.andi %83, %84 : i1
    %86 = arith.extui %85 : i1 to i32
    %87 = arith.sitofp %86 : i32 to f32
    %c0_i32_33 = arith.constant 0 : i32
    %c15_i32_34 = arith.constant 15 : i32
    %88 = arith.maxsi %c0_i32_33, %82 : i32
    %89 = arith.minsi %c15_i32_34, %88 : i32
    %90 = arith.index_cast %89 : i32 to index
    %91 = memref.load %arg2[%90] : memref<16xi32, #tpu.memory_space<smem>>
    %92 = arith.index_cast %89 : i32 to index
    %93 = memref.load %arg3[%92] : memref<16xf32, #tpu.memory_space<smem>>
    %c0_35 = arith.constant 0 : index
    %94 = arith.index_cast %91 : i32 to index
    %c0_36 = arith.constant 0 : index
    %c0_37 = arith.constant 0 : index
    %95 = vector.load %arg4[%c0_35, %94, %c0_36, %c0_37] : memref<1x8x4x64xbf16, #tpu.memory_space<vmem>>, vector<1x1x4x64xbf16>
    %96 = vector.shape_cast %95 : vector<1x1x4x64xbf16> to vector<4x64xbf16>
    %97 = arith.extf %96 : vector<4x64xbf16> to vector<4x64xf32>
    %c1_i32_38 = arith.constant 1 : i32
    %98 = arith.addi %91, %c1_i32_38 : i32
    %c0_39 = arith.constant 0 : index
    %99 = arith.index_cast %98 : i32 to index
    %c0_40 = arith.constant 0 : index
    %c0_41 = arith.constant 0 : index
    %100 = vector.load %arg4[%c0_39, %99, %c0_40, %c0_41] : memref<1x8x4x64xbf16, #tpu.memory_space<vmem>>, vector<1x1x4x64xbf16>
    %101 = vector.shape_cast %100 : vector<1x1x4x64xbf16> to vector<4x64xbf16>
    %102 = arith.extf %101 : vector<4x64xbf16> to vector<4x64xf32>
    %103 = arith.subf %102, %97 : vector<4x64xf32>
    %104 = vector.broadcast %93 : f32 to vector<4x64xf32>
    %105 = arith.mulf %104, %103 : vector<4x64xf32>
    %106 = arith.addf %97, %105 : vector<4x64xf32>
    %107 = vector.broadcast %87 : f32 to vector<4x64xf32>
    %108 = arith.mulf %106, %107 : vector<4x64xf32>
    %c3_i32 = arith.constant 3 : i32
    %109 = arith.addi %0, %c3_i32 : i32
    %c0_i32_42 = arith.constant 0 : i32
    %110 = arith.cmpi sge, %109, %c0_i32_42 : i32
    %c16_i32_43 = arith.constant 16 : i32
    %111 = arith.cmpi slt, %109, %c16_i32_43 : i32
    %112 = arith.andi %110, %111 : i1
    %113 = arith.extui %112 : i1 to i32
    %114 = arith.sitofp %113 : i32 to f32
    %c0_i32_44 = arith.constant 0 : i32
    %c15_i32_45 = arith.constant 15 : i32
    %115 = arith.maxsi %c0_i32_44, %109 : i32
    %116 = arith.minsi %c15_i32_45, %115 : i32
    %117 = arith.index_cast %116 : i32 to index
    %118 = memref.load %arg2[%117] : memref<16xi32, #tpu.memory_space<smem>>
    %119 = arith.index_cast %116 : i32 to index
    %120 = memref.load %arg3[%119] : memref<16xf32, #tpu.memory_space<smem>>
    %c0_46 = arith.constant 0 : index
    %121 = arith.index_cast %118 : i32 to index
    %c0_47 = arith.constant 0 : index
    %c0_48 = arith.constant 0 : index
    %122 = vector.load %arg4[%c0_46, %121, %c0_47, %c0_48] : memref<1x8x4x64xbf16, #tpu.memory_space<vmem>>, vector<1x1x4x64xbf16>
    %123 = vector.shape_cast %122 : vector<1x1x4x64xbf16> to vector<4x64xbf16>
    %124 = arith.extf %123 : vector<4x64xbf16> to vector<4x64xf32>
    %c1_i32_49 = arith.constant 1 : i32
    %125 = arith.addi %118, %c1_i32_49 : i32
    %c0_50 = arith.constant 0 : index
    %126 = arith.index_cast %125 : i32 to index
    %c0_51 = arith.constant 0 : index
    %c0_52 = arith.constant 0 : index
    %127 = vector.load %arg4[%c0_50, %126, %c0_51, %c0_52] : memref<1x8x4x64xbf16, #tpu.memory_space<vmem>>, vector<1x1x4x64xbf16>
    %128 = vector.shape_cast %127 : vector<1x1x4x64xbf16> to vector<4x64xbf16>
    %129 = arith.extf %128 : vector<4x64xbf16> to vector<4x64xf32>
    %130 = arith.subf %129, %124 : vector<4x64xf32>
    %131 = vector.broadcast %120 : f32 to vector<4x64xf32>
    %132 = arith.mulf %131, %130 : vector<4x64xf32>
    %133 = arith.addf %124, %132 : vector<4x64xf32>
    %134 = vector.broadcast %114 : f32 to vector<4x64xf32>
    %135 = arith.mulf %133, %134 : vector<4x64xf32>
    %c4_i32 = arith.constant 4 : i32
    %136 = arith.addi %0, %c4_i32 : i32
    %c0_i32_53 = arith.constant 0 : i32
    %137 = arith.cmpi sge, %136, %c0_i32_53 : i32
    %c16_i32_54 = arith.constant 16 : i32
    %138 = arith.cmpi slt, %136, %c16_i32_54 : i32
    %139 = arith.andi %137, %138 : i1
    %140 = arith.extui %139 : i1 to i32
    %141 = arith.sitofp %140 : i32 to f32
    %c0_i32_55 = arith.constant 0 : i32
    %c15_i32_56 = arith.constant 15 : i32
    %142 = arith.maxsi %c0_i32_55, %136 : i32
    %143 = arith.minsi %c15_i32_56, %142 : i32
    %144 = arith.index_cast %143 : i32 to index
    %145 = memref.load %arg2[%144] : memref<16xi32, #tpu.memory_space<smem>>
    %146 = arith.index_cast %143 : i32 to index
    %147 = memref.load %arg3[%146] : memref<16xf32, #tpu.memory_space<smem>>
    %c0_57 = arith.constant 0 : index
    %148 = arith.index_cast %145 : i32 to index
    %c0_58 = arith.constant 0 : index
    %c0_59 = arith.constant 0 : index
    %149 = vector.load %arg4[%c0_57, %148, %c0_58, %c0_59] : memref<1x8x4x64xbf16, #tpu.memory_space<vmem>>, vector<1x1x4x64xbf16>
    %150 = vector.shape_cast %149 : vector<1x1x4x64xbf16> to vector<4x64xbf16>
    %151 = arith.extf %150 : vector<4x64xbf16> to vector<4x64xf32>
    %c1_i32_60 = arith.constant 1 : i32
    %152 = arith.addi %145, %c1_i32_60 : i32
    %c0_61 = arith.constant 0 : index
    %153 = arith.index_cast %152 : i32 to index
    %c0_62 = arith.constant 0 : index
    %c0_63 = arith.constant 0 : index
    %154 = vector.load %arg4[%c0_61, %153, %c0_62, %c0_63] : memref<1x8x4x64xbf16, #tpu.memory_space<vmem>>, vector<1x1x4x64xbf16>
    %155 = vector.shape_cast %154 : vector<1x1x4x64xbf16> to vector<4x64xbf16>
    %156 = arith.extf %155 : vector<4x64xbf16> to vector<4x64xf32>
    %157 = arith.subf %156, %151 : vector<4x64xf32>
    %158 = vector.broadcast %147 : f32 to vector<4x64xf32>
    %159 = arith.mulf %158, %157 : vector<4x64xf32>
    %160 = arith.addf %151, %159 : vector<4x64xf32>
    %161 = vector.broadcast %141 : f32 to vector<4x64xf32>
    %162 = arith.mulf %160, %161 : vector<4x64xf32>
    %c5_i32 = arith.constant 5 : i32
    %163 = arith.addi %0, %c5_i32 : i32
    %c0_i32_64 = arith.constant 0 : i32
    %164 = arith.cmpi sge, %163, %c0_i32_64 : i32
    %c16_i32_65 = arith.constant 16 : i32
    %165 = arith.cmpi slt, %163, %c16_i32_65 : i32
    %166 = arith.andi %164, %165 : i1
    %167 = arith.extui %166 : i1 to i32
    %168 = arith.sitofp %167 : i32 to f32
    %c0_i32_66 = arith.constant 0 : i32
    %c15_i32_67 = arith.constant 15 : i32
    %169 = arith.maxsi %c0_i32_66, %163 : i32
    %170 = arith.minsi %c15_i32_67, %169 : i32
    %171 = arith.index_cast %170 : i32 to index
    %172 = memref.load %arg2[%171] : memref<16xi32, #tpu.memory_space<smem>>
    %173 = arith.index_cast %170 : i32 to index
    %174 = memref.load %arg3[%173] : memref<16xf32, #tpu.memory_space<smem>>
    %c0_68 = arith.constant 0 : index
    %175 = arith.index_cast %172 : i32 to index
    %c0_69 = arith.constant 0 : index
    %c0_70 = arith.constant 0 : index
    %176 = vector.load %arg4[%c0_68, %175, %c0_69, %c0_70] : memref<1x8x4x64xbf16, #tpu.memory_space<vmem>>, vector<1x1x4x64xbf16>
    %177 = vector.shape_cast %176 : vector<1x1x4x64xbf16> to vector<4x64xbf16>
    %178 = arith.extf %177 : vector<4x64xbf16> to vector<4x64xf32>
    %c1_i32_71 = arith.constant 1 : i32
    %179 = arith.addi %172, %c1_i32_71 : i32
    %c0_72 = arith.constant 0 : index
    %180 = arith.index_cast %179 : i32 to index
    %c0_73 = arith.constant 0 : index
    %c0_74 = arith.constant 0 : index
    %181 = vector.load %arg4[%c0_72, %180, %c0_73, %c0_74] : memref<1x8x4x64xbf16, #tpu.memory_space<vmem>>, vector<1x1x4x64xbf16>
    %182 = vector.shape_cast %181 : vector<1x1x4x64xbf16> to vector<4x64xbf16>
    %183 = arith.extf %182 : vector<4x64xbf16> to vector<4x64xf32>
    %184 = arith.subf %183, %178 : vector<4x64xf32>
    %185 = vector.broadcast %174 : f32 to vector<4x64xf32>
    %186 = arith.mulf %185, %184 : vector<4x64xf32>
    %187 = arith.addf %178, %186 : vector<4x64xf32>
    %188 = vector.broadcast %168 : f32 to vector<4x64xf32>
    %189 = arith.mulf %187, %188 : vector<4x64xf32>
    %c6_i32 = arith.constant 6 : i32
    %190 = arith.addi %0, %c6_i32 : i32
    %c0_i32_75 = arith.constant 0 : i32
    %191 = arith.cmpi sge, %190, %c0_i32_75 : i32
    %c16_i32_76 = arith.constant 16 : i32
    %192 = arith.cmpi slt, %190, %c16_i32_76 : i32
    %193 = arith.andi %191, %192 : i1
    %194 = arith.extui %193 : i1 to i32
    %195 = arith.sitofp %194 : i32 to f32
    %c0_i32_77 = arith.constant 0 : i32
    %c15_i32_78 = arith.constant 15 : i32
    %196 = arith.maxsi %c0_i32_77, %190 : i32
    %197 = arith.minsi %c15_i32_78, %196 : i32
    %198 = arith.index_cast %197 : i32 to index
    %199 = memref.load %arg2[%198] : memref<16xi32, #tpu.memory_space<smem>>
    %200 = arith.index_cast %197 : i32 to index
    %201 = memref.load %arg3[%200] : memref<16xf32, #tpu.memory_space<smem>>
    %c0_79 = arith.constant 0 : index
    %202 = arith.index_cast %199 : i32 to index
    %c0_80 = arith.constant 0 : index
    %c0_81 = arith.constant 0 : index
    %203 = vector.load %arg4[%c0_79, %202, %c0_80, %c0_81] : memref<1x8x4x64xbf16, #tpu.memory_space<vmem>>, vector<1x1x4x64xbf16>
    %204 = vector.shape_cast %203 : vector<1x1x4x64xbf16> to vector<4x64xbf16>
    %205 = arith.extf %204 : vector<4x64xbf16> to vector<4x64xf32>
    %c1_i32_82 = arith.constant 1 : i32
    %206 = arith.addi %199, %c1_i32_82 : i32
    %c0_83 = arith.constant 0 : index
    %207 = arith.index_cast %206 : i32 to index
    %c0_84 = arith.constant 0 : index
    %c0_85 = arith.constant 0 : index
    %208 = vector.load %arg4[%c0_83, %207, %c0_84, %c0_85] : memref<1x8x4x64xbf16, #tpu.memory_space<vmem>>, vector<1x1x4x64xbf16>
    %209 = vector.shape_cast %208 : vector<1x1x4x64xbf16> to vector<4x64xbf16>
    %210 = arith.extf %209 : vector<4x64xbf16> to vector<4x64xf32>
    %211 = arith.subf %210, %205 : vector<4x64xf32>
    %212 = vector.broadcast %201 : f32 to vector<4x64xf32>
    %213 = arith.mulf %212, %211 : vector<4x64xf32>
    %214 = arith.addf %205, %213 : vector<4x64xf32>
    %215 = vector.broadcast %195 : f32 to vector<4x64xf32>
    %216 = arith.mulf %214, %215 : vector<4x64xf32>
    %c7_i32 = arith.constant 7 : i32
    %217 = arith.addi %0, %c7_i32 : i32
    %c0_i32_86 = arith.constant 0 : i32
    %218 = arith.cmpi sge, %217, %c0_i32_86 : i32
    %c16_i32_87 = arith.constant 16 : i32
    %219 = arith.cmpi slt, %217, %c16_i32_87 : i32
    %220 = arith.andi %218, %219 : i1
    %221 = arith.extui %220 : i1 to i32
    %222 = arith.sitofp %221 : i32 to f32
    %c0_i32_88 = arith.constant 0 : i32
    %c15_i32_89 = arith.constant 15 : i32
    %223 = arith.maxsi %c0_i32_88, %217 : i32
    %224 = arith.minsi %c15_i32_89, %223 : i32
    %225 = arith.index_cast %224 : i32 to index
    %226 = memref.load %arg2[%225] : memref<16xi32, #tpu.memory_space<smem>>
    %227 = arith.index_cast %224 : i32 to index
    %228 = memref.load %arg3[%227] : memref<16xf32, #tpu.memory_space<smem>>
    %c0_90 = arith.constant 0 : index
    %229 = arith.index_cast %226 : i32 to index
    %c0_91 = arith.constant 0 : index
    %c0_92 = arith.constant 0 : index
    %230 = vector.load %arg4[%c0_90, %229, %c0_91, %c0_92] : memref<1x8x4x64xbf16, #tpu.memory_space<vmem>>, vector<1x1x4x64xbf16>
    %231 = vector.shape_cast %230 : vector<1x1x4x64xbf16> to vector<4x64xbf16>
    %232 = arith.extf %231 : vector<4x64xbf16> to vector<4x64xf32>
    %c1_i32_93 = arith.constant 1 : i32
    %233 = arith.addi %226, %c1_i32_93 : i32
    %c0_94 = arith.constant 0 : index
    %234 = arith.index_cast %233 : i32 to index
    %c0_95 = arith.constant 0 : index
    %c0_96 = arith.constant 0 : index
    %235 = vector.load %arg4[%c0_94, %234, %c0_95, %c0_96] : memref<1x8x4x64xbf16, #tpu.memory_space<vmem>>, vector<1x1x4x64xbf16>
    %236 = vector.shape_cast %235 : vector<1x1x4x64xbf16> to vector<4x64xbf16>
    %237 = arith.extf %236 : vector<4x64xbf16> to vector<4x64xf32>
    %238 = arith.subf %237, %232 : vector<4x64xf32>
    %239 = vector.broadcast %228 : f32 to vector<4x64xf32>
    %240 = arith.mulf %239, %238 : vector<4x64xf32>
    %241 = arith.addf %232, %240 : vector<4x64xf32>
    %242 = vector.broadcast %222 : f32 to vector<4x64xf32>
    %243 = arith.mulf %241, %242 : vector<4x64xf32>
    %c8_i32 = arith.constant 8 : i32
    %244 = arith.addi %0, %c8_i32 : i32
    %c0_i32_97 = arith.constant 0 : i32
    %245 = arith.cmpi sge, %244, %c0_i32_97 : i32
    %c16_i32_98 = arith.constant 16 : i32
    %246 = arith.cmpi slt, %244, %c16_i32_98 : i32
    %247 = arith.andi %245, %246 : i1
    %248 = arith.extui %247 : i1 to i32
    %249 = arith.sitofp %248 : i32 to f32
    %c0_i32_99 = arith.constant 0 : i32
    %c15_i32_100 = arith.constant 15 : i32
    %250 = arith.maxsi %c0_i32_99, %244 : i32
    %251 = arith.minsi %c15_i32_100, %250 : i32
    %252 = arith.index_cast %251 : i32 to index
    %253 = memref.load %arg2[%252] : memref<16xi32, #tpu.memory_space<smem>>
    %254 = arith.index_cast %251 : i32 to index
    %255 = memref.load %arg3[%254] : memref<16xf32, #tpu.memory_space<smem>>
    %c0_101 = arith.constant 0 : index
    %256 = arith.index_cast %253 : i32 to index
    %c0_102 = arith.constant 0 : index
    %c0_103 = arith.constant 0 : index
    %257 = vector.load %arg4[%c0_101, %256, %c0_102, %c0_103] : memref<1x8x4x64xbf16, #tpu.memory_space<vmem>>, vector<1x1x4x64xbf16>
    %258 = vector.shape_cast %257 : vector<1x1x4x64xbf16> to vector<4x64xbf16>
    %259 = arith.extf %258 : vector<4x64xbf16> to vector<4x64xf32>
    %c1_i32_104 = arith.constant 1 : i32
    %260 = arith.addi %253, %c1_i32_104 : i32
    %c0_105 = arith.constant 0 : index
    %261 = arith.index_cast %260 : i32 to index
    %c0_106 = arith.constant 0 : index
    %c0_107 = arith.constant 0 : index
    %262 = vector.load %arg4[%c0_105, %261, %c0_106, %c0_107] : memref<1x8x4x64xbf16, #tpu.memory_space<vmem>>, vector<1x1x4x64xbf16>
    %263 = vector.shape_cast %262 : vector<1x1x4x64xbf16> to vector<4x64xbf16>
    %264 = arith.extf %263 : vector<4x64xbf16> to vector<4x64xf32>
    %265 = arith.subf %264, %259 : vector<4x64xf32>
    %266 = vector.broadcast %255 : f32 to vector<4x64xf32>
    %267 = arith.mulf %266, %265 : vector<4x64xf32>
    %268 = arith.addf %259, %267 : vector<4x64xf32>
    %269 = vector.broadcast %249 : f32 to vector<4x64xf32>
    %270 = arith.mulf %268, %269 : vector<4x64xf32>
    %c9_i32 = arith.constant 9 : i32
    %271 = arith.addi %0, %c9_i32 : i32
    %c0_i32_108 = arith.constant 0 : i32
    %272 = arith.cmpi sge, %271, %c0_i32_108 : i32
    %c16_i32_109 = arith.constant 16 : i32
    %273 = arith.cmpi slt, %271, %c16_i32_109 : i32
    %274 = arith.andi %272, %273 : i1
    %275 = arith.extui %274 : i1 to i32
    %276 = arith.sitofp %275 : i32 to f32
    %c0_i32_110 = arith.constant 0 : i32
    %c15_i32_111 = arith.constant 15 : i32
    %277 = arith.maxsi %c0_i32_110, %271 : i32
    %278 = arith.minsi %c15_i32_111, %277 : i32
    %279 = arith.index_cast %278 : i32 to index
    %280 = memref.load %arg2[%279] : memref<16xi32, #tpu.memory_space<smem>>
    %281 = arith.index_cast %278 : i32 to index
    %282 = memref.load %arg3[%281] : memref<16xf32, #tpu.memory_space<smem>>
    %c0_112 = arith.constant 0 : index
    %283 = arith.index_cast %280 : i32 to index
    %c0_113 = arith.constant 0 : index
    %c0_114 = arith.constant 0 : index
    %284 = vector.load %arg4[%c0_112, %283, %c0_113, %c0_114] : memref<1x8x4x64xbf16, #tpu.memory_space<vmem>>, vector<1x1x4x64xbf16>
    %285 = vector.shape_cast %284 : vector<1x1x4x64xbf16> to vector<4x64xbf16>
    %286 = arith.extf %285 : vector<4x64xbf16> to vector<4x64xf32>
    %c1_i32_115 = arith.constant 1 : i32
    %287 = arith.addi %280, %c1_i32_115 : i32
    %c0_116 = arith.constant 0 : index
    %288 = arith.index_cast %287 : i32 to index
    %c0_117 = arith.constant 0 : index
    %c0_118 = arith.constant 0 : index
    %289 = vector.load %arg4[%c0_116, %288, %c0_117, %c0_118] : memref<1x8x4x64xbf16, #tpu.memory_space<vmem>>, vector<1x1x4x64xbf16>
    %290 = vector.shape_cast %289 : vector<1x1x4x64xbf16> to vector<4x64xbf16>
    %291 = arith.extf %290 : vector<4x64xbf16> to vector<4x64xf32>
    %292 = arith.subf %291, %286 : vector<4x64xf32>
    %293 = vector.broadcast %282 : f32 to vector<4x64xf32>
    %294 = arith.mulf %293, %292 : vector<4x64xf32>
    %295 = arith.addf %286, %294 : vector<4x64xf32>
    %296 = vector.broadcast %276 : f32 to vector<4x64xf32>
    %297 = arith.mulf %295, %296 : vector<4x64xf32>
    %c10_i32 = arith.constant 10 : i32
    %298 = arith.addi %0, %c10_i32 : i32
    %c0_i32_119 = arith.constant 0 : i32
    %299 = arith.cmpi sge, %298, %c0_i32_119 : i32
    %c16_i32_120 = arith.constant 16 : i32
    %300 = arith.cmpi slt, %298, %c16_i32_120 : i32
    %301 = arith.andi %299, %300 : i1
    %302 = arith.extui %301 : i1 to i32
    %303 = arith.sitofp %302 : i32 to f32
    %c0_i32_121 = arith.constant 0 : i32
    %c15_i32_122 = arith.constant 15 : i32
    %304 = arith.maxsi %c0_i32_121, %298 : i32
    %305 = arith.minsi %c15_i32_122, %304 : i32
    %306 = arith.index_cast %305 : i32 to index
    %307 = memref.load %arg2[%306] : memref<16xi32, #tpu.memory_space<smem>>
    %308 = arith.index_cast %305 : i32 to index
    %309 = memref.load %arg3[%308] : memref<16xf32, #tpu.memory_space<smem>>
    %c0_123 = arith.constant 0 : index
    %310 = arith.index_cast %307 : i32 to index
    %c0_124 = arith.constant 0 : index
    %c0_125 = arith.constant 0 : index
    %311 = vector.load %arg4[%c0_123, %310, %c0_124, %c0_125] : memref<1x8x4x64xbf16, #tpu.memory_space<vmem>>, vector<1x1x4x64xbf16>
    %312 = vector.shape_cast %311 : vector<1x1x4x64xbf16> to vector<4x64xbf16>
    %313 = arith.extf %312 : vector<4x64xbf16> to vector<4x64xf32>
    %c1_i32_126 = arith.constant 1 : i32
    %314 = arith.addi %307, %c1_i32_126 : i32
    %c0_127 = arith.constant 0 : index
    %315 = arith.index_cast %314 : i32 to index
    %c0_128 = arith.constant 0 : index
    %c0_129 = arith.constant 0 : index
    %316 = vector.load %arg4[%c0_127, %315, %c0_128, %c0_129] : memref<1x8x4x64xbf16, #tpu.memory_space<vmem>>, vector<1x1x4x64xbf16>
    %317 = vector.shape_cast %316 : vector<1x1x4x64xbf16> to vector<4x64xbf16>
    %318 = arith.extf %317 : vector<4x64xbf16> to vector<4x64xf32>
    %319 = arith.subf %318, %313 : vector<4x64xf32>
    %320 = vector.broadcast %309 : f32 to vector<4x64xf32>
    %321 = arith.mulf %320, %319 : vector<4x64xf32>
    %322 = arith.addf %313, %321 : vector<4x64xf32>
    %323 = vector.broadcast %303 : f32 to vector<4x64xf32>
    %324 = arith.mulf %322, %323 : vector<4x64xf32>
    %c11_i32 = arith.constant 11 : i32
    %325 = arith.addi %0, %c11_i32 : i32
    %c0_i32_130 = arith.constant 0 : i32
    %326 = arith.cmpi sge, %325, %c0_i32_130 : i32
    %c16_i32_131 = arith.constant 16 : i32
    %327 = arith.cmpi slt, %325, %c16_i32_131 : i32
    %328 = arith.andi %326, %327 : i1
    %329 = arith.extui %328 : i1 to i32
    %330 = arith.sitofp %329 : i32 to f32
    %c0_i32_132 = arith.constant 0 : i32
    %c15_i32_133 = arith.constant 15 : i32
    %331 = arith.maxsi %c0_i32_132, %325 : i32
    %332 = arith.minsi %c15_i32_133, %331 : i32
    %333 = arith.index_cast %332 : i32 to index
    %334 = memref.load %arg2[%333] : memref<16xi32, #tpu.memory_space<smem>>
    %335 = arith.index_cast %332 : i32 to index
    %336 = memref.load %arg3[%335] : memref<16xf32, #tpu.memory_space<smem>>
    %c0_134 = arith.constant 0 : index
    %337 = arith.index_cast %334 : i32 to index
    %c0_135 = arith.constant 0 : index
    %c0_136 = arith.constant 0 : index
    %338 = vector.load %arg4[%c0_134, %337, %c0_135, %c0_136] : memref<1x8x4x64xbf16, #tpu.memory_space<vmem>>, vector<1x1x4x64xbf16>
    %339 = vector.shape_cast %338 : vector<1x1x4x64xbf16> to vector<4x64xbf16>
    %340 = arith.extf %339 : vector<4x64xbf16> to vector<4x64xf32>
    %c1_i32_137 = arith.constant 1 : i32
    %341 = arith.addi %334, %c1_i32_137 : i32
    %c0_138 = arith.constant 0 : index
    %342 = arith.index_cast %341 : i32 to index
    %c0_139 = arith.constant 0 : index
    %c0_140 = arith.constant 0 : index
    %343 = vector.load %arg4[%c0_138, %342, %c0_139, %c0_140] : memref<1x8x4x64xbf16, #tpu.memory_space<vmem>>, vector<1x1x4x64xbf16>
    %344 = vector.shape_cast %343 : vector<1x1x4x64xbf16> to vector<4x64xbf16>
    %345 = arith.extf %344 : vector<4x64xbf16> to vector<4x64xf32>
    %346 = arith.subf %345, %340 : vector<4x64xf32>
    %347 = vector.broadcast %336 : f32 to vector<4x64xf32>
    %348 = arith.mulf %347, %346 : vector<4x64xf32>
    %349 = arith.addf %340, %348 : vector<4x64xf32>
    %350 = vector.broadcast %330 : f32 to vector<4x64xf32>
    %351 = arith.mulf %349, %350 : vector<4x64xf32>
    %c12_i32 = arith.constant 12 : i32
    %352 = arith.addi %0, %c12_i32 : i32
    %c0_i32_141 = arith.constant 0 : i32
    %353 = arith.cmpi sge, %352, %c0_i32_141 : i32
    %c16_i32_142 = arith.constant 16 : i32
    %354 = arith.cmpi slt, %352, %c16_i32_142 : i32
    %355 = arith.andi %353, %354 : i1
    %356 = arith.extui %355 : i1 to i32
    %357 = arith.sitofp %356 : i32 to f32
    %c0_i32_143 = arith.constant 0 : i32
    %c15_i32_144 = arith.constant 15 : i32
    %358 = arith.maxsi %c0_i32_143, %352 : i32
    %359 = arith.minsi %c15_i32_144, %358 : i32
    %360 = arith.index_cast %359 : i32 to index
    %361 = memref.load %arg2[%360] : memref<16xi32, #tpu.memory_space<smem>>
    %362 = arith.index_cast %359 : i32 to index
    %363 = memref.load %arg3[%362] : memref<16xf32, #tpu.memory_space<smem>>
    %c0_145 = arith.constant 0 : index
    %364 = arith.index_cast %361 : i32 to index
    %c0_146 = arith.constant 0 : index
    %c0_147 = arith.constant 0 : index
    %365 = vector.load %arg4[%c0_145, %364, %c0_146, %c0_147] : memref<1x8x4x64xbf16, #tpu.memory_space<vmem>>, vector<1x1x4x64xbf16>
    %366 = vector.shape_cast %365 : vector<1x1x4x64xbf16> to vector<4x64xbf16>
    %367 = arith.extf %366 : vector<4x64xbf16> to vector<4x64xf32>
    %c1_i32_148 = arith.constant 1 : i32
    %368 = arith.addi %361, %c1_i32_148 : i32
    %c0_149 = arith.constant 0 : index
    %369 = arith.index_cast %368 : i32 to index
    %c0_150 = arith.constant 0 : index
    %c0_151 = arith.constant 0 : index
    %370 = vector.load %arg4[%c0_149, %369, %c0_150, %c0_151] : memref<1x8x4x64xbf16, #tpu.memory_space<vmem>>, vector<1x1x4x64xbf16>
    %371 = vector.shape_cast %370 : vector<1x1x4x64xbf16> to vector<4x64xbf16>
    %372 = arith.extf %371 : vector<4x64xbf16> to vector<4x64xf32>
    %373 = arith.subf %372, %367 : vector<4x64xf32>
    %374 = vector.broadcast %363 : f32 to vector<4x64xf32>
    %375 = arith.mulf %374, %373 : vector<4x64xf32>
    %376 = arith.addf %367, %375 : vector<4x64xf32>
    %377 = vector.broadcast %357 : f32 to vector<4x64xf32>
    %378 = arith.mulf %376, %377 : vector<4x64xf32>
    %c13_i32 = arith.constant 13 : i32
    %379 = arith.addi %0, %c13_i32 : i32
    %c0_i32_152 = arith.constant 0 : i32
    %380 = arith.cmpi sge, %379, %c0_i32_152 : i32
    %c16_i32_153 = arith.constant 16 : i32
    %381 = arith.cmpi slt, %379, %c16_i32_153 : i32
    %382 = arith.andi %380, %381 : i1
    %383 = arith.extui %382 : i1 to i32
    %384 = arith.sitofp %383 : i32 to f32
    %c0_i32_154 = arith.constant 0 : i32
    %c15_i32_155 = arith.constant 15 : i32
    %385 = arith.maxsi %c0_i32_154, %379 : i32
    %386 = arith.minsi %c15_i32_155, %385 : i32
    %387 = arith.index_cast %386 : i32 to index
    %388 = memref.load %arg2[%387] : memref<16xi32, #tpu.memory_space<smem>>
    %389 = arith.index_cast %386 : i32 to index
    %390 = memref.load %arg3[%389] : memref<16xf32, #tpu.memory_space<smem>>
    %c0_156 = arith.constant 0 : index
    %391 = arith.index_cast %388 : i32 to index
    %c0_157 = arith.constant 0 : index
    %c0_158 = arith.constant 0 : index
    %392 = vector.load %arg4[%c0_156, %391, %c0_157, %c0_158] : memref<1x8x4x64xbf16, #tpu.memory_space<vmem>>, vector<1x1x4x64xbf16>
    %393 = vector.shape_cast %392 : vector<1x1x4x64xbf16> to vector<4x64xbf16>
    %394 = arith.extf %393 : vector<4x64xbf16> to vector<4x64xf32>
    %c1_i32_159 = arith.constant 1 : i32
    %395 = arith.addi %388, %c1_i32_159 : i32
    %c0_160 = arith.constant 0 : index
    %396 = arith.index_cast %395 : i32 to index
    %c0_161 = arith.constant 0 : index
    %c0_162 = arith.constant 0 : index
    %397 = vector.load %arg4[%c0_160, %396, %c0_161, %c0_162] : memref<1x8x4x64xbf16, #tpu.memory_space<vmem>>, vector<1x1x4x64xbf16>
    %398 = vector.shape_cast %397 : vector<1x1x4x64xbf16> to vector<4x64xbf16>
    %399 = arith.extf %398 : vector<4x64xbf16> to vector<4x64xf32>
    %400 = arith.subf %399, %394 : vector<4x64xf32>
    %401 = vector.broadcast %390 : f32 to vector<4x64xf32>
    %402 = arith.mulf %401, %400 : vector<4x64xf32>
    %403 = arith.addf %394, %402 : vector<4x64xf32>
    %404 = vector.broadcast %384 : f32 to vector<4x64xf32>
    %405 = arith.mulf %403, %404 : vector<4x64xf32>
    %c14_i32 = arith.constant 14 : i32
    %406 = arith.addi %0, %c14_i32 : i32
    %c0_i32_163 = arith.constant 0 : i32
    %407 = arith.cmpi sge, %406, %c0_i32_163 : i32
    %c16_i32_164 = arith.constant 16 : i32
    %408 = arith.cmpi slt, %406, %c16_i32_164 : i32
    %409 = arith.andi %407, %408 : i1
    %410 = arith.extui %409 : i1 to i32
    %411 = arith.sitofp %410 : i32 to f32
    %c0_i32_165 = arith.constant 0 : i32
    %c15_i32_166 = arith.constant 15 : i32
    %412 = arith.maxsi %c0_i32_165, %406 : i32
    %413 = arith.minsi %c15_i32_166, %412 : i32
    %414 = arith.index_cast %413 : i32 to index
    %415 = memref.load %arg2[%414] : memref<16xi32, #tpu.memory_space<smem>>
    %416 = arith.index_cast %413 : i32 to index
    %417 = memref.load %arg3[%416] : memref<16xf32, #tpu.memory_space<smem>>
    %c0_167 = arith.constant 0 : index
    %418 = arith.index_cast %415 : i32 to index
    %c0_168 = arith.constant 0 : index
    %c0_169 = arith.constant 0 : index
    %419 = vector.load %arg4[%c0_167, %418, %c0_168, %c0_169] : memref<1x8x4x64xbf16, #tpu.memory_space<vmem>>, vector<1x1x4x64xbf16>
    %420 = vector.shape_cast %419 : vector<1x1x4x64xbf16> to vector<4x64xbf16>
    %421 = arith.extf %420 : vector<4x64xbf16> to vector<4x64xf32>
    %c1_i32_170 = arith.constant 1 : i32
    %422 = arith.addi %415, %c1_i32_170 : i32
    %c0_171 = arith.constant 0 : index
    %423 = arith.index_cast %422 : i32 to index
    %c0_172 = arith.constant 0 : index
    %c0_173 = arith.constant 0 : index
    %424 = vector.load %arg4[%c0_171, %423, %c0_172, %c0_173] : memref<1x8x4x64xbf16, #tpu.memory_space<vmem>>, vector<1x1x4x64xbf16>
    %425 = vector.shape_cast %424 : vector<1x1x4x64xbf16> to vector<4x64xbf16>
    %426 = arith.extf %425 : vector<4x64xbf16> to vector<4x64xf32>
    %427 = arith.subf %426, %421 : vector<4x64xf32>
    %428 = vector.broadcast %417 : f32 to vector<4x64xf32>
    %429 = arith.mulf %428, %427 : vector<4x64xf32>
    %430 = arith.addf %421, %429 : vector<4x64xf32>
    %431 = vector.broadcast %411 : f32 to vector<4x64xf32>
    %432 = arith.mulf %430, %431 : vector<4x64xf32>
    %c15_i32_174 = arith.constant 15 : i32
    %433 = arith.addi %0, %c15_i32_174 : i32
    %c0_i32_175 = arith.constant 0 : i32
    %434 = arith.cmpi sge, %433, %c0_i32_175 : i32
    %c16_i32_176 = arith.constant 16 : i32
    %435 = arith.cmpi slt, %433, %c16_i32_176 : i32
    %436 = arith.andi %434, %435 : i1
    %437 = arith.extui %436 : i1 to i32
    %438 = arith.sitofp %437 : i32 to f32
    %c0_i32_177 = arith.constant 0 : i32
    %c15_i32_178 = arith.constant 15 : i32
    %439 = arith.maxsi %c0_i32_177, %433 : i32
    %440 = arith.minsi %c15_i32_178, %439 : i32
    %441 = arith.index_cast %440 : i32 to index
    %442 = memref.load %arg2[%441] : memref<16xi32, #tpu.memory_space<smem>>
    %443 = arith.index_cast %440 : i32 to index
    %444 = memref.load %arg3[%443] : memref<16xf32, #tpu.memory_space<smem>>
    %c0_179 = arith.constant 0 : index
    %445 = arith.index_cast %442 : i32 to index
    %c0_180 = arith.constant 0 : index
    %c0_181 = arith.constant 0 : index
    %446 = vector.load %arg4[%c0_179, %445, %c0_180, %c0_181] : memref<1x8x4x64xbf16, #tpu.memory_space<vmem>>, vector<1x1x4x64xbf16>
    %447 = vector.shape_cast %446 : vector<1x1x4x64xbf16> to vector<4x64xbf16>
    %448 = arith.extf %447 : vector<4x64xbf16> to vector<4x64xf32>
    %c1_i32_182 = arith.constant 1 : i32
    %449 = arith.addi %442, %c1_i32_182 : i32
    %c0_183 = arith.constant 0 : index
    %450 = arith.index_cast %449 : i32 to index
    %c0_184 = arith.constant 0 : index
    %c0_185 = arith.constant 0 : index
    %451 = vector.load %arg4[%c0_183, %450, %c0_184, %c0_185] : memref<1x8x4x64xbf16, #tpu.memory_space<vmem>>, vector<1x1x4x64xbf16>
    %452 = vector.shape_cast %451 : vector<1x1x4x64xbf16> to vector<4x64xbf16>
    %453 = arith.extf %452 : vector<4x64xbf16> to vector<4x64xf32>
    %454 = arith.subf %453, %448 : vector<4x64xf32>
    %455 = vector.broadcast %444 : f32 to vector<4x64xf32>
    %456 = arith.mulf %455, %454 : vector<4x64xf32>
    %457 = arith.addf %448, %456 : vector<4x64xf32>
    %458 = vector.broadcast %438 : f32 to vector<4x64xf32>
    %459 = arith.mulf %457, %458 : vector<4x64xf32>
    %c16_i32_186 = arith.constant 16 : i32
    %460 = arith.addi %0, %c16_i32_186 : i32
    %c0_i32_187 = arith.constant 0 : i32
    %461 = arith.cmpi sge, %460, %c0_i32_187 : i32
    %c16_i32_188 = arith.constant 16 : i32
    %462 = arith.cmpi slt, %460, %c16_i32_188 : i32
    %463 = arith.andi %461, %462 : i1
    %464 = arith.extui %463 : i1 to i32
    %465 = arith.sitofp %464 : i32 to f32
    %c0_i32_189 = arith.constant 0 : i32
    %c15_i32_190 = arith.constant 15 : i32
    %466 = arith.maxsi %c0_i32_189, %460 : i32
    %467 = arith.minsi %c15_i32_190, %466 : i32
    %468 = arith.index_cast %467 : i32 to index
    %469 = memref.load %arg2[%468] : memref<16xi32, #tpu.memory_space<smem>>
    %470 = arith.index_cast %467 : i32 to index
    %471 = memref.load %arg3[%470] : memref<16xf32, #tpu.memory_space<smem>>
    %c0_191 = arith.constant 0 : index
    %472 = arith.index_cast %469 : i32 to index
    %c0_192 = arith.constant 0 : index
    %c0_193 = arith.constant 0 : index
    %473 = vector.load %arg4[%c0_191, %472, %c0_192, %c0_193] : memref<1x8x4x64xbf16, #tpu.memory_space<vmem>>, vector<1x1x4x64xbf16>
    %474 = vector.shape_cast %473 : vector<1x1x4x64xbf16> to vector<4x64xbf16>
    %475 = arith.extf %474 : vector<4x64xbf16> to vector<4x64xf32>
    %c1_i32_194 = arith.constant 1 : i32
    %476 = arith.addi %469, %c1_i32_194 : i32
    %c0_195 = arith.constant 0 : index
    %477 = arith.index_cast %476 : i32 to index
    %c0_196 = arith.constant 0 : index
    %c0_197 = arith.constant 0 : index
    %478 = vector.load %arg4[%c0_195, %477, %c0_196, %c0_197] : memref<1x8x4x64xbf16, #tpu.memory_space<vmem>>, vector<1x1x4x64xbf16>
    %479 = vector.shape_cast %478 : vector<1x1x4x64xbf16> to vector<4x64xbf16>
    %480 = arith.extf %479 : vector<4x64xbf16> to vector<4x64xf32>
    %481 = arith.subf %480, %475 : vector<4x64xf32>
    %482 = vector.broadcast %471 : f32 to vector<4x64xf32>
    %483 = arith.mulf %482, %481 : vector<4x64xf32>
    %484 = arith.addf %475, %483 : vector<4x64xf32>
    %485 = vector.broadcast %465 : f32 to vector<4x64xf32>
    %486 = arith.mulf %484, %485 : vector<4x64xf32>
    %487 = tpu.concatenate %27, %54, %81, %108, %135, %162, %189, %216, %243, %270, %297, %324, %351, %378, %405, %432 in 0 : vector<4x64xf32>, vector<4x64xf32>, vector<4x64xf32>, vector<4x64xf32>, vector<4x64xf32>, vector<4x64xf32>, vector<4x64xf32>, vector<4x64xf32>, vector<4x64xf32>, vector<4x64xf32>, vector<4x64xf32>, vector<4x64xf32>, vector<4x64xf32>, vector<4x64xf32>, vector<4x64xf32>, vector<4x64xf32> -> vector<64x64xf32>
    %488 = tpu.concatenate %459, %486 in 0 : vector<4x64xf32>, vector<4x64xf32> -> vector<8x64xf32>
    %489 = tpu.concatenate %487, %488 in 0 : vector<64x64xf32>, vector<8x64xf32> -> vector<72x64xf32>
    %490 = arith.truncf %489 : vector<72x64xf32> to vector<72x64xbf16>
    %c0_198 = arith.constant 0 : index
    %c0_199 = arith.constant 0 : index
    %491 = vector.load %arg5[%c0_198, %c0_199] : memref<64x256xbf16, #tpu.memory_space<vmem>>, vector<64x256xbf16>
    %cst = arith.constant dense<0.000000e+00> : vector<72x256xf32>
    %492 = tpu.matmul %490, %491, %cst {dimension_numbers = #tpu.dot_dimension_numbers<[1], [0], [0], [1], [0, 0, 1, 1], [], []>} : vector<72x64xbf16>, vector<64x256xbf16>, vector<72x256xf32> -> vector<72x256xf32>
    %493 = vector.extract_strided_slice %492 {offsets = [0, 0], sizes = [4, 256], strides = [1, 1]} : vector<72x256xf32> to vector<4x256xf32>
    %c17_i32 = arith.constant 17 : i32
    %494 = tpu.dynamic_rotate %493 by %c17_i32 dim 1 : vector<4x256xf32>, i32 -> vector<4x256xf32>
    %c0_200 = arith.constant 0 : index
    %c0_201 = arith.constant 0 : index
    %495 = vector.load %arg8[%c0_200, %c0_201] : memref<9x256xf32, #tpu.memory_space<vmem>>, vector<1x256xf32>
    %496 = vector.broadcast %495 : vector<1x256xf32> to vector<4x256xf32>
    %497 = arith.mulf %494, %496 : vector<4x256xf32>
    %c16_i32_202 = arith.constant 16 : i32
    %498 = tpu.dynamic_rotate %493 by %c16_i32_202 dim 1 : vector<4x256xf32>, i32 -> vector<4x256xf32>
    %c1 = arith.constant 1 : index
    %c0_203 = arith.constant 0 : index
    %499 = vector.load %arg8[%c1, %c0_203] : memref<9x256xf32, #tpu.memory_space<vmem>>, vector<1x256xf32>
    %500 = vector.broadcast %499 : vector<1x256xf32> to vector<4x256xf32>
    %501 = arith.mulf %498, %500 : vector<4x256xf32>
    %c15_i32_204 = arith.constant 15 : i32
    %502 = tpu.dynamic_rotate %493 by %c15_i32_204 dim 1 : vector<4x256xf32>, i32 -> vector<4x256xf32>
    %c2 = arith.constant 2 : index
    %c0_205 = arith.constant 0 : index
    %503 = vector.load %arg8[%c2, %c0_205] : memref<9x256xf32, #tpu.memory_space<vmem>>, vector<1x256xf32>
    %504 = vector.broadcast %503 : vector<1x256xf32> to vector<4x256xf32>
    %505 = arith.mulf %502, %504 : vector<4x256xf32>
    %c1_i32_206 = arith.constant 1 : i32
    %506 = tpu.dynamic_rotate %493 by %c1_i32_206 dim 1 : vector<4x256xf32>, i32 -> vector<4x256xf32>
    %c3 = arith.constant 3 : index
    %c0_207 = arith.constant 0 : index
    %507 = vector.load %arg8[%c3, %c0_207] : memref<9x256xf32, #tpu.memory_space<vmem>>, vector<1x256xf32>
    %508 = vector.broadcast %507 : vector<1x256xf32> to vector<4x256xf32>
    %509 = arith.mulf %506, %508 : vector<4x256xf32>
    %c255_i32 = arith.constant 255 : i32
    %510 = tpu.dynamic_rotate %493 by %c255_i32 dim 1 : vector<4x256xf32>, i32 -> vector<4x256xf32>
    %c5 = arith.constant 5 : index
    %c0_208 = arith.constant 0 : index
    %511 = vector.load %arg8[%c5, %c0_208] : memref<9x256xf32, #tpu.memory_space<vmem>>, vector<1x256xf32>
    %512 = vector.broadcast %511 : vector<1x256xf32> to vector<4x256xf32>
    %513 = arith.mulf %510, %512 : vector<4x256xf32>
    %c241_i32 = arith.constant 241 : i32
    %514 = tpu.dynamic_rotate %493 by %c241_i32 dim 1 : vector<4x256xf32>, i32 -> vector<4x256xf32>
    %c6 = arith.constant 6 : index
    %c0_209 = arith.constant 0 : index
    %515 = vector.load %arg8[%c6, %c0_209] : memref<9x256xf32, #tpu.memory_space<vmem>>, vector<1x256xf32>
    %516 = vector.broadcast %515 : vector<1x256xf32> to vector<4x256xf32>
    %517 = arith.mulf %514, %516 : vector<4x256xf32>
    %c240_i32 = arith.constant 240 : i32
    %518 = tpu.dynamic_rotate %493 by %c240_i32 dim 1 : vector<4x256xf32>, i32 -> vector<4x256xf32>
    %c7 = arith.constant 7 : index
    %c0_210 = arith.constant 0 : index
    %519 = vector.load %arg8[%c7, %c0_210] : memref<9x256xf32, #tpu.memory_space<vmem>>, vector<1x256xf32>
    %520 = vector.broadcast %519 : vector<1x256xf32> to vector<4x256xf32>
    %521 = arith.mulf %518, %520 : vector<4x256xf32>
    %c239_i32 = arith.constant 239 : i32
    %522 = tpu.dynamic_rotate %493 by %c239_i32 dim 1 : vector<4x256xf32>, i32 -> vector<4x256xf32>
    %c8 = arith.constant 8 : index
    %c0_211 = arith.constant 0 : index
    %523 = vector.load %arg8[%c8, %c0_211] : memref<9x256xf32, #tpu.memory_space<vmem>>, vector<1x256xf32>
    %524 = vector.broadcast %523 : vector<1x256xf32> to vector<4x256xf32>
    %525 = arith.mulf %522, %524 : vector<4x256xf32>
    %526 = tpu.concatenate %497, %501, %505, %509, %493, %513, %517, %521, %525 in 0 : vector<4x256xf32>, vector<4x256xf32>, vector<4x256xf32>, vector<4x256xf32>, vector<4x256xf32>, vector<4x256xf32>, vector<4x256xf32>, vector<4x256xf32>, vector<4x256xf32> -> vector<36x256xf32>
    %527 = arith.truncf %526 : vector<36x256xf32> to vector<36x256xbf16>
    %c0_212 = arith.constant 0 : index
    %c0_213 = arith.constant 0 : index
    %c0_214 = arith.constant 0 : index
    %528 = vector.load %arg10[%c0_212, %c0_213, %c0_214] : memref<18x36x256xbf16, #tpu.memory_space<vmem>>, vector<1x36x256xbf16>
    %529 = vector.shape_cast %528 : vector<1x36x256xbf16> to vector<36x256xbf16>
    %530 = vector.shape_cast %527 : vector<36x256xbf16> to vector<1x36x256xbf16>
    tpu.vector_store %arg10[%c0_212, %c0_213, %c0_214], %530 {strides = array<i32>} : memref<18x36x256xbf16, #tpu.memory_space<vmem>>, vector<1x36x256xbf16>,
    %531 = vector.extract_strided_slice %492 {offsets = [4, 0], sizes = [4, 256], strides = [1, 1]} : vector<72x256xf32> to vector<4x256xf32>
    %c17_i32_215 = arith.constant 17 : i32
    %532 = tpu.dynamic_rotate %531 by %c17_i32_215 dim 1 : vector<4x256xf32>, i32 -> vector<4x256xf32>
    %c0_216 = arith.constant 0 : index
    %c0_217 = arith.constant 0 : index
    %533 = vector.load %arg8[%c0_216, %c0_217] : memref<9x256xf32, #tpu.memory_space<vmem>>, vector<1x256xf32>
    %534 = vector.broadcast %533 : vector<1x256xf32> to vector<4x256xf32>
    %535 = arith.mulf %532, %534 : vector<4x256xf32>
    %c16_i32_218 = arith.constant 16 : i32
    %536 = tpu.dynamic_rotate %531 by %c16_i32_218 dim 1 : vector<4x256xf32>, i32 -> vector<4x256xf32>
    %c1_219 = arith.constant 1 : index
    %c0_220 = arith.constant 0 : index
    %537 = vector.load %arg8[%c1_219, %c0_220] : memref<9x256xf32, #tpu.memory_space<vmem>>, vector<1x256xf32>
    %538 = vector.broadcast %537 : vector<1x256xf32> to vector<4x256xf32>
    %539 = arith.mulf %536, %538 : vector<4x256xf32>
    %c15_i32_221 = arith.constant 15 : i32
    %540 = tpu.dynamic_rotate %531 by %c15_i32_221 dim 1 : vector<4x256xf32>, i32 -> vector<4x256xf32>
    %c2_222 = arith.constant 2 : index
    %c0_223 = arith.constant 0 : index
    %541 = vector.load %arg8[%c2_222, %c0_223] : memref<9x256xf32, #tpu.memory_space<vmem>>, vector<1x256xf32>
    %542 = vector.broadcast %541 : vector<1x256xf32> to vector<4x256xf32>
    %543 = arith.mulf %540, %542 : vector<4x256xf32>
    %c1_i32_224 = arith.constant 1 : i32
    %544 = tpu.dynamic_rotate %531 by %c1_i32_224 dim 1 : vector<4x256xf32>, i32 -> vector<4x256xf32>
    %c3_225 = arith.constant 3 : index
    %c0_226 = arith.constant 0 : index
    %545 = vector.load %arg8[%c3_225, %c0_226] : memref<9x256xf32, #tpu.memory_space<vmem>>, vector<1x256xf32>
    %546 = vector.broadcast %545 : vector<1x256xf32> to vector<4x256xf32>
    %547 = arith.mulf %544, %546 : vector<4x256xf32>
    %c255_i32_227 = arith.constant 255 : i32
    %548 = tpu.dynamic_rotate %531 by %c255_i32_227 dim 1 : vector<4x256xf32>, i32 -> vector<4x256xf32>
    %c5_228 = arith.constant 5 : index
    %c0_229 = arith.constant 0 : index
    %549 = vector.load %arg8[%c5_228, %c0_229] : memref<9x256xf32, #tpu.memory_space<vmem>>, vector<1x256xf32>
    %550 = vector.broadcast %549 : vector<1x256xf32> to vector<4x256xf32>
    %551 = arith.mulf %548, %550 : vector<4x256xf32>
    %c241_i32_230 = arith.constant 241 : i32
    %552 = tpu.dynamic_rotate %531 by %c241_i32_230 dim 1 : vector<4x256xf32>, i32 -> vector<4x256xf32>
    %c6_231 = arith.constant 6 : index
    %c0_232 = arith.constant 0 : index
    %553 = vector.load %arg8[%c6_231, %c0_232] : memref<9x256xf32, #tpu.memory_space<vmem>>, vector<1x256xf32>
    %554 = vector.broadcast %553 : vector<1x256xf32> to vector<4x256xf32>
    %555 = arith.mulf %552, %554 : vector<4x256xf32>
    %c240_i32_233 = arith.constant 240 : i32
    %556 = tpu.dynamic_rotate %531 by %c240_i32_233 dim 1 : vector<4x256xf32>, i32 -> vector<4x256xf32>
    %c7_234 = arith.constant 7 : index
    %c0_235 = arith.constant 0 : index
    %557 = vector.load %arg8[%c7_234, %c0_235] : memref<9x256xf32, #tpu.memory_space<vmem>>, vector<1x256xf32>
    %558 = vector.broadcast %557 : vector<1x256xf32> to vector<4x256xf32>
    %559 = arith.mulf %556, %558 : vector<4x256xf32>
    %c239_i32_236 = arith.constant 239 : i32
    %560 = tpu.dynamic_rotate %531 by %c239_i32_236 dim 1 : vector<4x256xf32>, i32 -> vector<4x256xf32>
    %c8_237 = arith.constant 8 : index
    %c0_238 = arith.constant 0 : index
    %561 = vector.load %arg8[%c8_237, %c0_238] : memref<9x256xf32, #tpu.memory_space<vmem>>, vector<1x256xf32>
    %562 = vector.broadcast %561 : vector<1x256xf32> to vector<4x256xf32>
    %563 = arith.mulf %560, %562 : vector<4x256xf32>
    %564 = tpu.concatenate %535, %539, %543, %547, %531, %551, %555, %559, %563 in 0 : vector<4x256xf32>, vector<4x256xf32>, vector<4x256xf32>, vector<4x256xf32>, vector<4x256xf32>, vector<4x256xf32>, vector<4x256xf32>, vector<4x256xf32>, vector<4x256xf32> -> vector<36x256xf32>
    %565 = arith.truncf %564 : vector<36x256xf32> to vector<36x256xbf16>
    %c1_239 = arith.constant 1 : index
    %c0_240 = arith.constant 0 : index
    %c0_241 = arith.constant 0 : index
    %566 = vector.load %arg10[%c1_239, %c0_240, %c0_241] : memref<18x36x256xbf16, #tpu.memory_space<vmem>>, vector<1x36x256xbf16>
    %567 = vector.shape_cast %566 : vector<1x36x256xbf16> to vector<36x256xbf16>
    %568 = vector.shape_cast %565 : vector<36x256xbf16> to vector<1x36x256xbf16>
    tpu.vector_store %arg10[%c1_239, %c0_240, %c0_241], %568 {strides = array<i32>} : memref<18x36x256xbf16, #tpu.memory_space<vmem>>, vector<1x36x256xbf16>,
    %569 = vector.extract_strided_slice %492 {offsets = [8, 0], sizes = [4, 256], strides = [1, 1]} : vector<72x256xf32> to vector<4x256xf32>
    %c17_i32_242 = arith.constant 17 : i32
    %570 = tpu.dynamic_rotate %569 by %c17_i32_242 dim 1 : vector<4x256xf32>, i32 -> vector<4x256xf32>
    %c0_243 = arith.constant 0 : index
    %c0_244 = arith.constant 0 : index
    %571 = vector.load %arg8[%c0_243, %c0_244] : memref<9x256xf32, #tpu.memory_space<vmem>>, vector<1x256xf32>
    %572 = vector.broadcast %571 : vector<1x256xf32> to vector<4x256xf32>
    %573 = arith.mulf %570, %572 : vector<4x256xf32>
    %c16_i32_245 = arith.constant 16 : i32
    %574 = tpu.dynamic_rotate %569 by %c16_i32_245 dim 1 : vector<4x256xf32>, i32 -> vector<4x256xf32>
    %c1_246 = arith.constant 1 : index
    %c0_247 = arith.constant 0 : index
    %575 = vector.load %arg8[%c1_246, %c0_247] : memref<9x256xf32, #tpu.memory_space<vmem>>, vector<1x256xf32>
    %576 = vector.broadcast %575 : vector<1x256xf32> to vector<4x256xf32>
    %577 = arith.mulf %574, %576 : vector<4x256xf32>
    %c15_i32_248 = arith.constant 15 : i32
    %578 = tpu.dynamic_rotate %569 by %c15_i32_248 dim 1 : vector<4x256xf32>, i32 -> vector<4x256xf32>
    %c2_249 = arith.constant 2 : index
    %c0_250 = arith.constant 0 : index
    %579 = vector.load %arg8[%c2_249, %c0_250] : memref<9x256xf32, #tpu.memory_space<vmem>>, vector<1x256xf32>
    %580 = vector.broadcast %579 : vector<1x256xf32> to vector<4x256xf32>
    %581 = arith.mulf %578, %580 : vector<4x256xf32>
    %c1_i32_251 = arith.constant 1 : i32
    %582 = tpu.dynamic_rotate %569 by %c1_i32_251 dim 1 : vector<4x256xf32>, i32 -> vector<4x256xf32>
    %c3_252 = arith.constant 3 : index
    %c0_253 = arith.constant 0 : index
    %583 = vector.load %arg8[%c3_252, %c0_253] : memref<9x256xf32, #tpu.memory_space<vmem>>, vector<1x256xf32>
    %584 = vector.broadcast %583 : vector<1x256xf32> to vector<4x256xf32>
    %585 = arith.mulf %582, %584 : vector<4x256xf32>
    %c255_i32_254 = arith.constant 255 : i32
    %586 = tpu.dynamic_rotate %569 by %c255_i32_254 dim 1 : vector<4x256xf32>, i32 -> vector<4x256xf32>
    %c5_255 = arith.constant 5 : index
    %c0_256 = arith.constant 0 : index
    %587 = vector.load %arg8[%c5_255, %c0_256] : memref<9x256xf32, #tpu.memory_space<vmem>>, vector<1x256xf32>
    %588 = vector.broadcast %587 : vector<1x256xf32> to vector<4x256xf32>
    %589 = arith.mulf %586, %588 : vector<4x256xf32>
    %c241_i32_257 = arith.constant 241 : i32
    %590 = tpu.dynamic_rotate %569 by %c241_i32_257 dim 1 : vector<4x256xf32>, i32 -> vector<4x256xf32>
    %c6_258 = arith.constant 6 : index
    %c0_259 = arith.constant 0 : index
    %591 = vector.load %arg8[%c6_258, %c0_259] : memref<9x256xf32, #tpu.memory_space<vmem>>, vector<1x256xf32>
    %592 = vector.broadcast %591 : vector<1x256xf32> to vector<4x256xf32>
    %593 = arith.mulf %590, %592 : vector<4x256xf32>
    %c240_i32_260 = arith.constant 240 : i32
    %594 = tpu.dynamic_rotate %569 by %c240_i32_260 dim 1 : vector<4x256xf32>, i32 -> vector<4x256xf32>
    %c7_261 = arith.constant 7 : index
    %c0_262 = arith.constant 0 : index
    %595 = vector.load %arg8[%c7_261, %c0_262] : memref<9x256xf32, #tpu.memory_space<vmem>>, vector<1x256xf32>
    %596 = vector.broadcast %595 : vector<1x256xf32> to vector<4x256xf32>
    %597 = arith.mulf %594, %596 : vector<4x256xf32>
    %c239_i32_263 = arith.constant 239 : i32
    %598 = tpu.dynamic_rotate %569 by %c239_i32_263 dim 1 : vector<4x256xf32>, i32 -> vector<4x256xf32>
    %c8_264 = arith.constant 8 : index
    %c0_265 = arith.constant 0 : index
    %599 = vector.load %arg8[%c8_264, %c0_265] : memref<9x256xf32, #tpu.memory_space<vmem>>, vector<1x256xf32>
    %600 = vector.broadcast %599 : vector<1x256xf32> to vector<4x256xf32>
    %601 = arith.mulf %598, %600 : vector<4x256xf32>
    %602 = tpu.concatenate %573, %577, %581, %585, %569, %589, %593, %597, %601 in 0 : vector<4x256xf32>, vector<4x256xf32>, vector<4x256xf32>, vector<4x256xf32>, vector<4x256xf32>, vector<4x256xf32>, vector<4x256xf32>, vector<4x256xf32>, vector<4x256xf32> -> vector<36x256xf32>
    %603 = arith.truncf %602 : vector<36x256xf32> to vector<36x256xbf16>
    %c2_266 = arith.constant 2 : index
    %c0_267 = arith.constant 0 : index
    %c0_268 = arith.constant 0 : index
    %604 = vector.load %arg10[%c2_266, %c0_267, %c0_268] : memref<18x36x256xbf16, #tpu.memory_space<vmem>>, vector<1x36x256xbf16>
    %605 = vector.shape_cast %604 : vector<1x36x256xbf16> to vector<36x256xbf16>
    %606 = vector.shape_cast %603 : vector<36x256xbf16> to vector<1x36x256xbf16>
    tpu.vector_store %arg10[%c2_266, %c0_267, %c0_268], %606 {strides = array<i32>} : memref<18x36x256xbf16, #tpu.memory_space<vmem>>, vector<1x36x256xbf16>,
    %607 = vector.extract_strided_slice %492 {offsets = [12, 0], sizes = [4, 256], strides = [1, 1]} : vector<72x256xf32> to vector<4x256xf32>
    %c17_i32_269 = arith.constant 17 : i32
    %608 = tpu.dynamic_rotate %607 by %c17_i32_269 dim 1 : vector<4x256xf32>, i32 -> vector<4x256xf32>
    %c0_270 = arith.constant 0 : index
    %c0_271 = arith.constant 0 : index
    %609 = vector.load %arg8[%c0_270, %c0_271] : memref<9x256xf32, #tpu.memory_space<vmem>>, vector<1x256xf32>
    %610 = vector.broadcast %609 : vector<1x256xf32> to vector<4x256xf32>
    %611 = arith.mulf %608, %610 : vector<4x256xf32>
    %c16_i32_272 = arith.constant 16 : i32
    %612 = tpu.dynamic_rotate %607 by %c16_i32_272 dim 1 : vector<4x256xf32>, i32 -> vector<4x256xf32>
    %c1_273 = arith.constant 1 : index
    %c0_274 = arith.constant 0 : index
    %613 = vector.load %arg8[%c1_273, %c0_274] : memref<9x256xf32, #tpu.memory_space<vmem>>, vector<1x256xf32>
    %614 = vector.broadcast %613 : vector<1x256xf32> to vector<4x256xf32>
    %615 = arith.mulf %612, %614 : vector<4x256xf32>
    %c15_i32_275 = arith.constant 15 : i32
    %616 = tpu.dynamic_rotate %607 by %c15_i32_275 dim 1 : vector<4x256xf32>, i32 -> vector<4x256xf32>
    %c2_276 = arith.constant 2 : index
    %c0_277 = arith.constant 0 : index
    %617 = vector.load %arg8[%c2_276, %c0_277] : memref<9x256xf32, #tpu.memory_space<vmem>>, vector<1x256xf32>
    %618 = vector.broadcast %617 : vector<1x256xf32> to vector<4x256xf32>
    %619 = arith.mulf %616, %618 : vector<4x256xf32>
    %c1_i32_278 = arith.constant 1 : i32
    %620 = tpu.dynamic_rotate %607 by %c1_i32_278 dim 1 : vector<4x256xf32>, i32 -> vector<4x256xf32>
    %c3_279 = arith.constant 3 : index
    %c0_280 = arith.constant 0 : index
    %621 = vector.load %arg8[%c3_279, %c0_280] : memref<9x256xf32, #tpu.memory_space<vmem>>, vector<1x256xf32>
    %622 = vector.broadcast %621 : vector<1x256xf32> to vector<4x256xf32>
    %623 = arith.mulf %620, %622 : vector<4x256xf32>
    %c255_i32_281 = arith.constant 255 : i32
    %624 = tpu.dynamic_rotate %607 by %c255_i32_281 dim 1 : vector<4x256xf32>, i32 -> vector<4x256xf32>
    %c5_282 = arith.constant 5 : index
    %c0_283 = arith.constant 0 : index
    %625 = vector.load %arg8[%c5_282, %c0_283] : memref<9x256xf32, #tpu.memory_space<vmem>>, vector<1x256xf32>
    %626 = vector.broadcast %625 : vector<1x256xf32> to vector<4x256xf32>
    %627 = arith.mulf %624, %626 : vector<4x256xf32>
    %c241_i32_284 = arith.constant 241 : i32
    %628 = tpu.dynamic_rotate %607 by %c241_i32_284 dim 1 : vector<4x256xf32>, i32 -> vector<4x256xf32>
    %c6_285 = arith.constant 6 : index
    %c0_286 = arith.constant 0 : index
    %629 = vector.load %arg8[%c6_285, %c0_286] : memref<9x256xf32, #tpu.memory_space<vmem>>, vector<1x256xf32>
    %630 = vector.broadcast %629 : vector<1x256xf32> to vector<4x256xf32>
    %631 = arith.mulf %628, %630 : vector<4x256xf32>
    %c240_i32_287 = arith.constant 240 : i32
    %632 = tpu.dynamic_rotate %607 by %c240_i32_287 dim 1 : vector<4x256xf32>, i32 -> vector<4x256xf32>
    %c7_288 = arith.constant 7 : index
    %c0_289 = arith.constant 0 : index
    %633 = vector.load %arg8[%c7_288, %c0_289] : memref<9x256xf32, #tpu.memory_space<vmem>>, vector<1x256xf32>
    %634 = vector.broadcast %633 : vector<1x256xf32> to vector<4x256xf32>
    %635 = arith.mulf %632, %634 : vector<4x256xf32>
    %c239_i32_290 = arith.constant 239 : i32
    %636 = tpu.dynamic_rotate %607 by %c239_i32_290 dim 1 : vector<4x256xf32>, i32 -> vector<4x256xf32>
    %c8_291 = arith.constant 8 : index
    %c0_292 = arith.constant 0 : index
    %637 = vector.load %arg8[%c8_291, %c0_292] : memref<9x256xf32, #tpu.memory_space<vmem>>, vector<1x256xf32>
    %638 = vector.broadcast %637 : vector<1x256xf32> to vector<4x256xf32>
    %639 = arith.mulf %636, %638 : vector<4x256xf32>
    %640 = tpu.concatenate %611, %615, %619, %623, %607, %627, %631, %635, %639 in 0 : vector<4x256xf32>, vector<4x256xf32>, vector<4x256xf32>, vector<4x256xf32>, vector<4x256xf32>, vector<4x256xf32>, vector<4x256xf32>, vector<4x256xf32>, vector<4x256xf32> -> vector<36x256xf32>
    %641 = arith.truncf %640 : vector<36x256xf32> to vector<36x256xbf16>
    %c3_293 = arith.constant 3 : index
    %c0_294 = arith.constant 0 : index
    %c0_295 = arith.constant 0 : index
    %642 = vector.load %arg10[%c3_293, %c0_294, %c0_295] : memref<18x36x256xbf16, #tpu.memory_space<vmem>>, vector<1x36x256xbf16>
    %643 = vector.shape_cast %642 : vector<1x36x256xbf16> to vector<36x256xbf16>
    %644 = vector.shape_cast %641 : vector<36x256xbf16> to vector<1x36x256xbf16>
    tpu.vector_store %arg10[%c3_293, %c0_294, %c0_295], %644 {strides = array<i32>} : memref<18x36x256xbf16, #tpu.memory_space<vmem>>, vector<1x36x256xbf16>,
    %645 = vector.extract_strided_slice %492 {offsets = [16, 0], sizes = [4, 256], strides = [1, 1]} : vector<72x256xf32> to vector<4x256xf32>
    %c17_i32_296 = arith.constant 17 : i32
    %646 = tpu.dynamic_rotate %645 by %c17_i32_296 dim 1 : vector<4x256xf32>, i32 -> vector<4x256xf32>
    %c0_297 = arith.constant 0 : index
    %c0_298 = arith.constant 0 : index
    %647 = vector.load %arg8[%c0_297, %c0_298] : memref<9x256xf32, #tpu.memory_space<vmem>>, vector<1x256xf32>
    %648 = vector.broadcast %647 : vector<1x256xf32> to vector<4x256xf32>
    %649 = arith.mulf %646, %648 : vector<4x256xf32>
    %c16_i32_299 = arith.constant 16 : i32
    %650 = tpu.dynamic_rotate %645 by %c16_i32_299 dim 1 : vector<4x256xf32>, i32 -> vector<4x256xf32>
    %c1_300 = arith.constant 1 : index
    %c0_301 = arith.constant 0 : index
    %651 = vector.load %arg8[%c1_300, %c0_301] : memref<9x256xf32, #tpu.memory_space<vmem>>, vector<1x256xf32>
    %652 = vector.broadcast %651 : vector<1x256xf32> to vector<4x256xf32>
    %653 = arith.mulf %650, %652 : vector<4x256xf32>
    %c15_i32_302 = arith.constant 15 : i32
    %654 = tpu.dynamic_rotate %645 by %c15_i32_302 dim 1 : vector<4x256xf32>, i32 -> vector<4x256xf32>
    %c2_303 = arith.constant 2 : index
    %c0_304 = arith.constant 0 : index
    %655 = vector.load %arg8[%c2_303, %c0_304] : memref<9x256xf32, #tpu.memory_space<vmem>>, vector<1x256xf32>
    %656 = vector.broadcast %655 : vector<1x256xf32> to vector<4x256xf32>
    %657 = arith.mulf %654, %656 : vector<4x256xf32>
    %c1_i32_305 = arith.constant 1 : i32
    %658 = tpu.dynamic_rotate %645 by %c1_i32_305 dim 1 : vector<4x256xf32>, i32 -> vector<4x256xf32>
    %c3_306 = arith.constant 3 : index
    %c0_307 = arith.constant 0 : index
    %659 = vector.load %arg8[%c3_306, %c0_307] : memref<9x256xf32, #tpu.memory_space<vmem>>, vector<1x256xf32>
    %660 = vector.broadcast %659 : vector<1x256xf32> to vector<4x256xf32>
    %661 = arith.mulf %658, %660 : vector<4x256xf32>
    %c255_i32_308 = arith.constant 255 : i32
    %662 = tpu.dynamic_rotate %645 by %c255_i32_308 dim 1 : vector<4x256xf32>, i32 -> vector<4x256xf32>
    %c5_309 = arith.constant 5 : index
    %c0_310 = arith.constant 0 : index
    %663 = vector.load %arg8[%c5_309, %c0_310] : memref<9x256xf32, #tpu.memory_space<vmem>>, vector<1x256xf32>
    %664 = vector.broadcast %663 : vector<1x256xf32> to vector<4x256xf32>
    %665 = arith.mulf %662, %664 : vector<4x256xf32>
    %c241_i32_311 = arith.constant 241 : i32
    %666 = tpu.dynamic_rotate %645 by %c241_i32_311 dim 1 : vector<4x256xf32>, i32 -> vector<4x256xf32>
    %c6_312 = arith.constant 6 : index
    %c0_313 = arith.constant 0 : index
    %667 = vector.load %arg8[%c6_312, %c0_313] : memref<9x256xf32, #tpu.memory_space<vmem>>, vector<1x256xf32>
    %668 = vector.broadcast %667 : vector<1x256xf32> to vector<4x256xf32>
    %669 = arith.mulf %666, %668 : vector<4x256xf32>
    %c240_i32_314 = arith.constant 240 : i32
    %670 = tpu.dynamic_rotate %645 by %c240_i32_314 dim 1 : vector<4x256xf32>, i32 -> vector<4x256xf32>
    %c7_315 = arith.constant 7 : index
    %c0_316 = arith.constant 0 : index
    %671 = vector.load %arg8[%c7_315, %c0_316] : memref<9x256xf32, #tpu.memory_space<vmem>>, vector<1x256xf32>
    %672 = vector.broadcast %671 : vector<1x256xf32> to vector<4x256xf32>
    %673 = arith.mulf %670, %672 : vector<4x256xf32>
    %c239_i32_317 = arith.constant 239 : i32
    %674 = tpu.dynamic_rotate %645 by %c239_i32_317 dim 1 : vector<4x256xf32>, i32 -> vector<4x256xf32>
    %c8_318 = arith.constant 8 : index
    %c0_319 = arith.constant 0 : index
    %675 = vector.load %arg8[%c8_318, %c0_319] : memref<9x256xf32, #tpu.memory_space<vmem>>, vector<1x256xf32>
    %676 = vector.broadcast %675 : vector<1x256xf32> to vector<4x256xf32>
    %677 = arith.mulf %674, %676 : vector<4x256xf32>
    %678 = tpu.concatenate %649, %653, %657, %661, %645, %665, %669, %673, %677 in 0 : vector<4x256xf32>, vector<4x256xf32>, vector<4x256xf32>, vector<4x256xf32>, vector<4x256xf32>, vector<4x256xf32>, vector<4x256xf32>, vector<4x256xf32>, vector<4x256xf32> -> vector<36x256xf32>
    %679 = arith.truncf %678 : vector<36x256xf32> to vector<36x256xbf16>
    %c4 = arith.constant 4 : index
    %c0_320 = arith.constant 0 : index
    %c0_321 = arith.constant 0 : index
    %680 = vector.load %arg10[%c4, %c0_320, %c0_321] : memref<18x36x256xbf16, #tpu.memory_space<vmem>>, vector<1x36x256xbf16>
    %681 = vector.shape_cast %680 : vector<1x36x256xbf16> to vector<36x256xbf16>
    %682 = vector.shape_cast %679 : vector<36x256xbf16> to vector<1x36x256xbf16>
    tpu.vector_store %arg10[%c4, %c0_320, %c0_321], %682 {strides = array<i32>} : memref<18x36x256xbf16, #tpu.memory_space<vmem>>, vector<1x36x256xbf16>,
    %683 = vector.extract_strided_slice %492 {offsets = [20, 0], sizes = [4, 256], strides = [1, 1]} : vector<72x256xf32> to vector<4x256xf32>
    %c17_i32_322 = arith.constant 17 : i32
    %684 = tpu.dynamic_rotate %683 by %c17_i32_322 dim 1 : vector<4x256xf32>, i32 -> vector<4x256xf32>
    %c0_323 = arith.constant 0 : index
    %c0_324 = arith.constant 0 : index
    %685 = vector.load %arg8[%c0_323, %c0_324] : memref<9x256xf32, #tpu.memory_space<vmem>>, vector<1x256xf32>
    %686 = vector.broadcast %685 : vector<1x256xf32> to vector<4x256xf32>
    %687 = arith.mulf %684, %686 : vector<4x256xf32>
    %c16_i32_325 = arith.constant 16 : i32
    %688 = tpu.dynamic_rotate %683 by %c16_i32_325 dim 1 : vector<4x256xf32>, i32 -> vector<4x256xf32>
    %c1_326 = arith.constant 1 : index
    %c0_327 = arith.constant 0 : index
    %689 = vector.load %arg8[%c1_326, %c0_327] : memref<9x256xf32, #tpu.memory_space<vmem>>, vector<1x256xf32>
    %690 = vector.broadcast %689 : vector<1x256xf32> to vector<4x256xf32>
    %691 = arith.mulf %688, %690 : vector<4x256xf32>
    %c15_i32_328 = arith.constant 15 : i32
    %692 = tpu.dynamic_rotate %683 by %c15_i32_328 dim 1 : vector<4x256xf32>, i32 -> vector<4x256xf32>
    %c2_329 = arith.constant 2 : index
    %c0_330 = arith.constant 0 : index
    %693 = vector.load %arg8[%c2_329, %c0_330] : memref<9x256xf32, #tpu.memory_space<vmem>>, vector<1x256xf32>
    %694 = vector.broadcast %693 : vector<1x256xf32> to vector<4x256xf32>
    %695 = arith.mulf %692, %694 : vector<4x256xf32>
    %c1_i32_331 = arith.constant 1 : i32
    %696 = tpu.dynamic_rotate %683 by %c1_i32_331 dim 1 : vector<4x256xf32>, i32 -> vector<4x256xf32>
    %c3_332 = arith.constant 3 : index
    %c0_333 = arith.constant 0 : index
    %697 = vector.load %arg8[%c3_332, %c0_333] : memref<9x256xf32, #tpu.memory_space<vmem>>, vector<1x256xf32>
    %698 = vector.broadcast %697 : vector<1x256xf32> to vector<4x256xf32>
    %699 = arith.mulf %696, %698 : vector<4x256xf32>
    %c255_i32_334 = arith.constant 255 : i32
    %700 = tpu.dynamic_rotate %683 by %c255_i32_334 dim 1 : vector<4x256xf32>, i32 -> vector<4x256xf32>
    %c5_335 = arith.constant 5 : index
    %c0_336 = arith.constant 0 : index
    %701 = vector.load %arg8[%c5_335, %c0_336] : memref<9x256xf32, #tpu.memory_space<vmem>>, vector<1x256xf32>
    %702 = vector.broadcast %701 : vector<1x256xf32> to vector<4x256xf32>
    %703 = arith.mulf %700, %702 : vector<4x256xf32>
    %c241_i32_337 = arith.constant 241 : i32
    %704 = tpu.dynamic_rotate %683 by %c241_i32_337 dim 1 : vector<4x256xf32>, i32 -> vector<4x256xf32>
    %c6_338 = arith.constant 6 : index
    %c0_339 = arith.constant 0 : index
    %705 = vector.load %arg8[%c6_338, %c0_339] : memref<9x256xf32, #tpu.memory_space<vmem>>, vector<1x256xf32>
    %706 = vector.broadcast %705 : vector<1x256xf32> to vector<4x256xf32>
    %707 = arith.mulf %704, %706 : vector<4x256xf32>
    %c240_i32_340 = arith.constant 240 : i32
    %708 = tpu.dynamic_rotate %683 by %c240_i32_340 dim 1 : vector<4x256xf32>, i32 -> vector<4x256xf32>
    %c7_341 = arith.constant 7 : index
    %c0_342 = arith.constant 0 : index
    %709 = vector.load %arg8[%c7_341, %c0_342] : memref<9x256xf32, #tpu.memory_space<vmem>>, vector<1x256xf32>
    %710 = vector.broadcast %709 : vector<1x256xf32> to vector<4x256xf32>
    %711 = arith.mulf %708, %710 : vector<4x256xf32>
    %c239_i32_343 = arith.constant 239 : i32
    %712 = tpu.dynamic_rotate %683 by %c239_i32_343 dim 1 : vector<4x256xf32>, i32 -> vector<4x256xf32>
    %c8_344 = arith.constant 8 : index
    %c0_345 = arith.constant 0 : index
    %713 = vector.load %arg8[%c8_344, %c0_345] : memref<9x256xf32, #tpu.memory_space<vmem>>, vector<1x256xf32>
    %714 = vector.broadcast %713 : vector<1x256xf32> to vector<4x256xf32>
    %715 = arith.mulf %712, %714 : vector<4x256xf32>
    %716 = tpu.concatenate %687, %691, %695, %699, %683, %703, %707, %711, %715 in 0 : vector<4x256xf32>, vector<4x256xf32>, vector<4x256xf32>, vector<4x256xf32>, vector<4x256xf32>, vector<4x256xf32>, vector<4x256xf32>, vector<4x256xf32>, vector<4x256xf32> -> vector<36x256xf32>
    %717 = arith.truncf %716 : vector<36x256xf32> to vector<36x256xbf16>
    %c5_346 = arith.constant 5 : index
    %c0_347 = arith.constant 0 : index
    %c0_348 = arith.constant 0 : index
    %718 = vector.load %arg10[%c5_346, %c0_347, %c0_348] : memref<18x36x256xbf16, #tpu.memory_space<vmem>>, vector<1x36x256xbf16>
    %719 = vector.shape_cast %718 : vector<1x36x256xbf16> to vector<36x256xbf16>
    %720 = vector.shape_cast %717 : vector<36x256xbf16> to vector<1x36x256xbf16>
    tpu.vector_store %arg10[%c5_346, %c0_347, %c0_348], %720 {strides = array<i32>} : memref<18x36x256xbf16, #tpu.memory_space<vmem>>, vector<1x36x256xbf16>,
    %721 = vector.extract_strided_slice %492 {offsets = [24, 0], sizes = [4, 256], strides = [1, 1]} : vector<72x256xf32> to vector<4x256xf32>
    %c17_i32_349 = arith.constant 17 : i32
    %722 = tpu.dynamic_rotate %721 by %c17_i32_349 dim 1 : vector<4x256xf32>, i32 -> vector<4x256xf32>
    %c0_350 = arith.constant 0 : index
    %c0_351 = arith.constant 0 : index
    %723 = vector.load %arg8[%c0_350, %c0_351] : memref<9x256xf32, #tpu.memory_space<vmem>>, vector<1x256xf32>
    %724 = vector.broadcast %723 : vector<1x256xf32> to vector<4x256xf32>
    %725 = arith.mulf %722, %724 : vector<4x256xf32>
    %c16_i32_352 = arith.constant 16 : i32
    %726 = tpu.dynamic_rotate %721 by %c16_i32_352 dim 1 : vector<4x256xf32>, i32 -> vector<4x256xf32>
    %c1_353 = arith.constant 1 : index
    %c0_354 = arith.constant 0 : index
    %727 = vector.load %arg8[%c1_353, %c0_354] : memref<9x256xf32, #tpu.memory_space<vmem>>, vector<1x256xf32>
    %728 = vector.broadcast %727 : vector<1x256xf32> to vector<4x256xf32>
    %729 = arith.mulf %726, %728 : vector<4x256xf32>
    %c15_i32_355 = arith.constant 15 : i32
    %730 = tpu.dynamic_rotate %721 by %c15_i32_355 dim 1 : vector<4x256xf32>, i32 -> vector<4x256xf32>
    %c2_356 = arith.constant 2 : index
    %c0_357 = arith.constant 0 : index
    %731 = vector.load %arg8[%c2_356, %c0_357] : memref<9x256xf32, #tpu.memory_space<vmem>>, vector<1x256xf32>
    %732 = vector.broadcast %731 : vector<1x256xf32> to vector<4x256xf32>
    %733 = arith.mulf %730, %732 : vector<4x256xf32>
    %c1_i32_358 = arith.constant 1 : i32
    %734 = tpu.dynamic_rotate %721 by %c1_i32_358 dim 1 : vector<4x256xf32>, i32 -> vector<4x256xf32>
    %c3_359 = arith.constant 3 : index
    %c0_360 = arith.constant 0 : index
    %735 = vector.load %arg8[%c3_359, %c0_360] : memref<9x256xf32, #tpu.memory_space<vmem>>, vector<1x256xf32>
    %736 = vector.broadcast %735 : vector<1x256xf32> to vector<4x256xf32>
    %737 = arith.mulf %734, %736 : vector<4x256xf32>
    %c255_i32_361 = arith.constant 255 : i32
    %738 = tpu.dynamic_rotate %721 by %c255_i32_361 dim 1 : vector<4x256xf32>, i32 -> vector<4x256xf32>
    %c5_362 = arith.constant 5 : index
    %c0_363 = arith.constant 0 : index
    %739 = vector.load %arg8[%c5_362, %c0_363] : memref<9x256xf32, #tpu.memory_space<vmem>>, vector<1x256xf32>
    %740 = vector.broadcast %739 : vector<1x256xf32> to vector<4x256xf32>
    %741 = arith.mulf %738, %740 : vector<4x256xf32>
    %c241_i32_364 = arith.constant 241 : i32
    %742 = tpu.dynamic_rotate %721 by %c241_i32_364 dim 1 : vector<4x256xf32>, i32 -> vector<4x256xf32>
    %c6_365 = arith.constant 6 : index
    %c0_366 = arith.constant 0 : index
    %743 = vector.load %arg8[%c6_365, %c0_366] : memref<9x256xf32, #tpu.memory_space<vmem>>, vector<1x256xf32>
    %744 = vector.broadcast %743 : vector<1x256xf32> to vector<4x256xf32>
    %745 = arith.mulf %742, %744 : vector<4x256xf32>
    %c240_i32_367 = arith.constant 240 : i32
    %746 = tpu.dynamic_rotate %721 by %c240_i32_367 dim 1 : vector<4x256xf32>, i32 -> vector<4x256xf32>
    %c7_368 = arith.constant 7 : index
    %c0_369 = arith.constant 0 : index
    %747 = vector.load %arg8[%c7_368, %c0_369] : memref<9x256xf32, #tpu.memory_space<vmem>>, vector<1x256xf32>
    %748 = vector.broadcast %747 : vector<1x256xf32> to vector<4x256xf32>
    %749 = arith.mulf %746, %748 : vector<4x256xf32>
    %c239_i32_370 = arith.constant 239 : i32
    %750 = tpu.dynamic_rotate %721 by %c239_i32_370 dim 1 : vector<4x256xf32>, i32 -> vector<4x256xf32>
    %c8_371 = arith.constant 8 : index
    %c0_372 = arith.constant 0 : index
    %751 = vector.load %arg8[%c8_371, %c0_372] : memref<9x256xf32, #tpu.memory_space<vmem>>, vector<1x256xf32>
    %752 = vector.broadcast %751 : vector<1x256xf32> to vector<4x256xf32>
    %753 = arith.mulf %750, %752 : vector<4x256xf32>
    %754 = tpu.concatenate %725, %729, %733, %737, %721, %741, %745, %749, %753 in 0 : vector<4x256xf32>, vector<4x256xf32>, vector<4x256xf32>, vector<4x256xf32>, vector<4x256xf32>, vector<4x256xf32>, vector<4x256xf32>, vector<4x256xf32>, vector<4x256xf32> -> vector<36x256xf32>
    %755 = arith.truncf %754 : vector<36x256xf32> to vector<36x256xbf16>
    %c6_373 = arith.constant 6 : index
    %c0_374 = arith.constant 0 : index
    %c0_375 = arith.constant 0 : index
    %756 = vector.load %arg10[%c6_373, %c0_374, %c0_375] : memref<18x36x256xbf16, #tpu.memory_space<vmem>>, vector<1x36x256xbf16>
    %757 = vector.shape_cast %756 : vector<1x36x256xbf16> to vector<36x256xbf16>
    %758 = vector.shape_cast %755 : vector<36x256xbf16> to vector<1x36x256xbf16>
    tpu.vector_store %arg10[%c6_373, %c0_374, %c0_375], %758 {strides = array<i32>} : memref<18x36x256xbf16, #tpu.memory_space<vmem>>, vector<1x36x256xbf16>,
    %759 = vector.extract_strided_slice %492 {offsets = [28, 0], sizes = [4, 256], strides = [1, 1]} : vector<72x256xf32> to vector<4x256xf32>
    %c17_i32_376 = arith.constant 17 : i32
    %760 = tpu.dynamic_rotate %759 by %c17_i32_376 dim 1 : vector<4x256xf32>, i32 -> vector<4x256xf32>
    %c0_377 = arith.constant 0 : index
    %c0_378 = arith.constant 0 : index
    %761 = vector.load %arg8[%c0_377, %c0_378] : memref<9x256xf32, #tpu.memory_space<vmem>>, vector<1x256xf32>
    %762 = vector.broadcast %761 : vector<1x256xf32> to vector<4x256xf32>
    %763 = arith.mulf %760, %762 : vector<4x256xf32>
    %c16_i32_379 = arith.constant 16 : i32
    %764 = tpu.dynamic_rotate %759 by %c16_i32_379 dim 1 : vector<4x256xf32>, i32 -> vector<4x256xf32>
    %c1_380 = arith.constant 1 : index
    %c0_381 = arith.constant 0 : index
    %765 = vector.load %arg8[%c1_380, %c0_381] : memref<9x256xf32, #tpu.memory_space<vmem>>, vector<1x256xf32>
    %766 = vector.broadcast %765 : vector<1x256xf32> to vector<4x256xf32>
    %767 = arith.mulf %764, %766 : vector<4x256xf32>
    %c15_i32_382 = arith.constant 15 : i32
    %768 = tpu.dynamic_rotate %759 by %c15_i32_382 dim 1 : vector<4x256xf32>, i32 -> vector<4x256xf32>
    %c2_383 = arith.constant 2 : index
    %c0_384 = arith.constant 0 : index
    %769 = vector.load %arg8[%c2_383, %c0_384] : memref<9x256xf32, #tpu.memory_space<vmem>>, vector<1x256xf32>
    %770 = vector.broadcast %769 : vector<1x256xf32> to vector<4x256xf32>
    %771 = arith.mulf %768, %770 : vector<4x256xf32>
    %c1_i32_385 = arith.constant 1 : i32
    %772 = tpu.dynamic_rotate %759 by %c1_i32_385 dim 1 : vector<4x256xf32>, i32 -> vector<4x256xf32>
    %c3_386 = arith.constant 3 : index
    %c0_387 = arith.constant 0 : index
    %773 = vector.load %arg8[%c3_386, %c0_387] : memref<9x256xf32, #tpu.memory_space<vmem>>, vector<1x256xf32>
    %774 = vector.broadcast %773 : vector<1x256xf32> to vector<4x256xf32>
    %775 = arith.mulf %772, %774 : vector<4x256xf32>
    %c255_i32_388 = arith.constant 255 : i32
    %776 = tpu.dynamic_rotate %759 by %c255_i32_388 dim 1 : vector<4x256xf32>, i32 -> vector<4x256xf32>
    %c5_389 = arith.constant 5 : index
    %c0_390 = arith.constant 0 : index
    %777 = vector.load %arg8[%c5_389, %c0_390] : memref<9x256xf32, #tpu.memory_space<vmem>>, vector<1x256xf32>
    %778 = vector.broadcast %777 : vector<1x256xf32> to vector<4x256xf32>
    %779 = arith.mulf %776, %778 : vector<4x256xf32>
    %c241_i32_391 = arith.constant 241 : i32
    %780 = tpu.dynamic_rotate %759 by %c241_i32_391 dim 1 : vector<4x256xf32>, i32 -> vector<4x256xf32>
    %c6_392 = arith.constant 6 : index
    %c0_393 = arith.constant 0 : index
    %781 = vector.load %arg8[%c6_392, %c0_393] : memref<9x256xf32, #tpu.memory_space<vmem>>, vector<1x256xf32>
    %782 = vector.broadcast %781 : vector<1x256xf32> to vector<4x256xf32>
    %783 = arith.mulf %780, %782 : vector<4x256xf32>
    %c240_i32_394 = arith.constant 240 : i32
    %784 = tpu.dynamic_rotate %759 by %c240_i32_394 dim 1 : vector<4x256xf32>, i32 -> vector<4x256xf32>
    %c7_395 = arith.constant 7 : index
    %c0_396 = arith.constant 0 : index
    %785 = vector.load %arg8[%c7_395, %c0_396] : memref<9x256xf32, #tpu.memory_space<vmem>>, vector<1x256xf32>
    %786 = vector.broadcast %785 : vector<1x256xf32> to vector<4x256xf32>
    %787 = arith.mulf %784, %786 : vector<4x256xf32>
    %c239_i32_397 = arith.constant 239 : i32
    %788 = tpu.dynamic_rotate %759 by %c239_i32_397 dim 1 : vector<4x256xf32>, i32 -> vector<4x256xf32>
    %c8_398 = arith.constant 8 : index
    %c0_399 = arith.constant 0 : index
    %789 = vector.load %arg8[%c8_398, %c0_399] : memref<9x256xf32, #tpu.memory_space<vmem>>, vector<1x256xf32>
    %790 = vector.broadcast %789 : vector<1x256xf32> to vector<4x256xf32>
    %791 = arith.mulf %788, %790 : vector<4x256xf32>
    %792 = tpu.concatenate %763, %767, %771, %775, %759, %779, %783, %787, %791 in 0 : vector<4x256xf32>, vector<4x256xf32>, vector<4x256xf32>, vector<4x256xf32>, vector<4x256xf32>, vector<4x256xf32>, vector<4x256xf32>, vector<4x256xf32>, vector<4x256xf32> -> vector<36x256xf32>
    %793 = arith.truncf %792 : vector<36x256xf32> to vector<36x256xbf16>
    %c7_400 = arith.constant 7 : index
    %c0_401 = arith.constant 0 : index
    %c0_402 = arith.constant 0 : index
    %794 = vector.load %arg10[%c7_400, %c0_401, %c0_402] : memref<18x36x256xbf16, #tpu.memory_space<vmem>>, vector<1x36x256xbf16>
    %795 = vector.shape_cast %794 : vector<1x36x256xbf16> to vector<36x256xbf16>
    %796 = vector.shape_cast %793 : vector<36x256xbf16> to vector<1x36x256xbf16>
    tpu.vector_store %arg10[%c7_400, %c0_401, %c0_402], %796 {strides = array<i32>} : memref<18x36x256xbf16, #tpu.memory_space<vmem>>, vector<1x36x256xbf16>,
    %797 = vector.extract_strided_slice %492 {offsets = [32, 0], sizes = [4, 256], strides = [1, 1]} : vector<72x256xf32> to vector<4x256xf32>
    %c17_i32_403 = arith.constant 17 : i32
    %798 = tpu.dynamic_rotate %797 by %c17_i32_403 dim 1 : vector<4x256xf32>, i32 -> vector<4x256xf32>
    %c0_404 = arith.constant 0 : index
    %c0_405 = arith.constant 0 : index
    %799 = vector.load %arg8[%c0_404, %c0_405] : memref<9x256xf32, #tpu.memory_space<vmem>>, vector<1x256xf32>
    %800 = vector.broadcast %799 : vector<1x256xf32> to vector<4x256xf32>
    %801 = arith.mulf %798, %800 : vector<4x256xf32>
    %c16_i32_406 = arith.constant 16 : i32
    %802 = tpu.dynamic_rotate %797 by %c16_i32_406 dim 1 : vector<4x256xf32>, i32 -> vector<4x256xf32>
    %c1_407 = arith.constant 1 : index
    %c0_408 = arith.constant 0 : index
    %803 = vector.load %arg8[%c1_407, %c0_408] : memref<9x256xf32, #tpu.memory_space<vmem>>, vector<1x256xf32>
    %804 = vector.broadcast %803 : vector<1x256xf32> to vector<4x256xf32>
    %805 = arith.mulf %802, %804 : vector<4x256xf32>
    %c15_i32_409 = arith.constant 15 : i32
    %806 = tpu.dynamic_rotate %797 by %c15_i32_409 dim 1 : vector<4x256xf32>, i32 -> vector<4x256xf32>
    %c2_410 = arith.constant 2 : index
    %c0_411 = arith.constant 0 : index
    %807 = vector.load %arg8[%c2_410, %c0_411] : memref<9x256xf32, #tpu.memory_space<vmem>>, vector<1x256xf32>
    %808 = vector.broadcast %807 : vector<1x256xf32> to vector<4x256xf32>
    %809 = arith.mulf %806, %808 : vector<4x256xf32>
    %c1_i32_412 = arith.constant 1 : i32
    %810 = tpu.dynamic_rotate %797 by %c1_i32_412 dim 1 : vector<4x256xf32>, i32 -> vector<4x256xf32>
    %c3_413 = arith.constant 3 : index
    %c0_414 = arith.constant 0 : index
    %811 = vector.load %arg8[%c3_413, %c0_414] : memref<9x256xf32, #tpu.memory_space<vmem>>, vector<1x256xf32>
    %812 = vector.broadcast %811 : vector<1x256xf32> to vector<4x256xf32>
    %813 = arith.mulf %810, %812 : vector<4x256xf32>
    %c255_i32_415 = arith.constant 255 : i32
    %814 = tpu.dynamic_rotate %797 by %c255_i32_415 dim 1 : vector<4x256xf32>, i32 -> vector<4x256xf32>
    %c5_416 = arith.constant 5 : index
    %c0_417 = arith.constant 0 : index
    %815 = vector.load %arg8[%c5_416, %c0_417] : memref<9x256xf32, #tpu.memory_space<vmem>>, vector<1x256xf32>
    %816 = vector.broadcast %815 : vector<1x256xf32> to vector<4x256xf32>
    %817 = arith.mulf %814, %816 : vector<4x256xf32>
    %c241_i32_418 = arith.constant 241 : i32
    %818 = tpu.dynamic_rotate %797 by %c241_i32_418 dim 1 : vector<4x256xf32>, i32 -> vector<4x256xf32>
    %c6_419 = arith.constant 6 : index
    %c0_420 = arith.constant 0 : index
    %819 = vector.load %arg8[%c6_419, %c0_420] : memref<9x256xf32, #tpu.memory_space<vmem>>, vector<1x256xf32>
    %820 = vector.broadcast %819 : vector<1x256xf32> to vector<4x256xf32>
    %821 = arith.mulf %818, %820 : vector<4x256xf32>
    %c240_i32_421 = arith.constant 240 : i32
    %822 = tpu.dynamic_rotate %797 by %c240_i32_421 dim 1 : vector<4x256xf32>, i32 -> vector<4x256xf32>
    %c7_422 = arith.constant 7 : index
    %c0_423 = arith.constant 0 : index
    %823 = vector.load %arg8[%c7_422, %c0_423] : memref<9x256xf32, #tpu.memory_space<vmem>>, vector<1x256xf32>
    %824 = vector.broadcast %823 : vector<1x256xf32> to vector<4x256xf32>
    %825 = arith.mulf %822, %824 : vector<4x256xf32>
    %c239_i32_424 = arith.constant 239 : i32
    %826 = tpu.dynamic_rotate %797 by %c239_i32_424 dim 1 : vector<4x256xf32>, i32 -> vector<4x256xf32>
    %c8_425 = arith.constant 8 : index
    %c0_426 = arith.constant 0 : index
    %827 = vector.load %arg8[%c8_425, %c0_426] : memref<9x256xf32, #tpu.memory_space<vmem>>, vector<1x256xf32>
    %828 = vector.broadcast %827 : vector<1x256xf32> to vector<4x256xf32>
    %829 = arith.mulf %826, %828 : vector<4x256xf32>
    %830 = tpu.concatenate %801, %805, %809, %813, %797, %817, %821, %825, %829 in 0 : vector<4x256xf32>, vector<4x256xf32>, vector<4x256xf32>, vector<4x256xf32>, vector<4x256xf32>, vector<4x256xf32>, vector<4x256xf32>, vector<4x256xf32>, vector<4x256xf32> -> vector<36x256xf32>
    %831 = arith.truncf %830 : vector<36x256xf32> to vector<36x256xbf16>
    %c8_427 = arith.constant 8 : index
    %c0_428 = arith.constant 0 : index
    %c0_429 = arith.constant 0 : index
    %832 = vector.load %arg10[%c8_427, %c0_428, %c0_429] : memref<18x36x256xbf16, #tpu.memory_space<vmem>>, vector<1x36x256xbf16>
    %833 = vector.shape_cast %832 : vector<1x36x256xbf16> to vector<36x256xbf16>
    %834 = vector.shape_cast %831 : vector<36x256xbf16> to vector<1x36x256xbf16>
    tpu.vector_store %arg10[%c8_427, %c0_428, %c0_429], %834 {strides = array<i32>} : memref<18x36x256xbf16, #tpu.memory_space<vmem>>, vector<1x36x256xbf16>,
    %835 = vector.extract_strided_slice %492 {offsets = [36, 0], sizes = [4, 256], strides = [1, 1]} : vector<72x256xf32> to vector<4x256xf32>
    %c17_i32_430 = arith.constant 17 : i32
    %836 = tpu.dynamic_rotate %835 by %c17_i32_430 dim 1 : vector<4x256xf32>, i32 -> vector<4x256xf32>
    %c0_431 = arith.constant 0 : index
    %c0_432 = arith.constant 0 : index
    %837 = vector.load %arg8[%c0_431, %c0_432] : memref<9x256xf32, #tpu.memory_space<vmem>>, vector<1x256xf32>
    %838 = vector.broadcast %837 : vector<1x256xf32> to vector<4x256xf32>
    %839 = arith.mulf %836, %838 : vector<4x256xf32>
    %c16_i32_433 = arith.constant 16 : i32
    %840 = tpu.dynamic_rotate %835 by %c16_i32_433 dim 1 : vector<4x256xf32>, i32 -> vector<4x256xf32>
    %c1_434 = arith.constant 1 : index
    %c0_435 = arith.constant 0 : index
    %841 = vector.load %arg8[%c1_434, %c0_435] : memref<9x256xf32, #tpu.memory_space<vmem>>, vector<1x256xf32>
    %842 = vector.broadcast %841 : vector<1x256xf32> to vector<4x256xf32>
    %843 = arith.mulf %840, %842 : vector<4x256xf32>
    %c15_i32_436 = arith.constant 15 : i32
    %844 = tpu.dynamic_rotate %835 by %c15_i32_436 dim 1 : vector<4x256xf32>, i32 -> vector<4x256xf32>
    %c2_437 = arith.constant 2 : index
    %c0_438 = arith.constant 0 : index
    %845 = vector.load %arg8[%c2_437, %c0_438] : memref<9x256xf32, #tpu.memory_space<vmem>>, vector<1x256xf32>
    %846 = vector.broadcast %845 : vector<1x256xf32> to vector<4x256xf32>
    %847 = arith.mulf %844, %846 : vector<4x256xf32>
    %c1_i32_439 = arith.constant 1 : i32
    %848 = tpu.dynamic_rotate %835 by %c1_i32_439 dim 1 : vector<4x256xf32>, i32 -> vector<4x256xf32>
    %c3_440 = arith.constant 3 : index
    %c0_441 = arith.constant 0 : index
    %849 = vector.load %arg8[%c3_440, %c0_441] : memref<9x256xf32, #tpu.memory_space<vmem>>, vector<1x256xf32>
    %850 = vector.broadcast %849 : vector<1x256xf32> to vector<4x256xf32>
    %851 = arith.mulf %848, %850 : vector<4x256xf32>
    %c255_i32_442 = arith.constant 255 : i32
    %852 = tpu.dynamic_rotate %835 by %c255_i32_442 dim 1 : vector<4x256xf32>, i32 -> vector<4x256xf32>
    %c5_443 = arith.constant 5 : index
    %c0_444 = arith.constant 0 : index
    %853 = vector.load %arg8[%c5_443, %c0_444] : memref<9x256xf32, #tpu.memory_space<vmem>>, vector<1x256xf32>
    %854 = vector.broadcast %853 : vector<1x256xf32> to vector<4x256xf32>
    %855 = arith.mulf %852, %854 : vector<4x256xf32>
    %c241_i32_445 = arith.constant 241 : i32
    %856 = tpu.dynamic_rotate %835 by %c241_i32_445 dim 1 : vector<4x256xf32>, i32 -> vector<4x256xf32>
    %c6_446 = arith.constant 6 : index
    %c0_447 = arith.constant 0 : index
    %857 = vector.load %arg8[%c6_446, %c0_447] : memref<9x256xf32, #tpu.memory_space<vmem>>, vector<1x256xf32>
    %858 = vector.broadcast %857 : vector<1x256xf32> to vector<4x256xf32>
    %859 = arith.mulf %856, %858 : vector<4x256xf32>
    %c240_i32_448 = arith.constant 240 : i32
    %860 = tpu.dynamic_rotate %835 by %c240_i32_448 dim 1 : vector<4x256xf32>, i32 -> vector<4x256xf32>
    %c7_449 = arith.constant 7 : index
    %c0_450 = arith.constant 0 : index
    %861 = vector.load %arg8[%c7_449, %c0_450] : memref<9x256xf32, #tpu.memory_space<vmem>>, vector<1x256xf32>
    %862 = vector.broadcast %861 : vector<1x256xf32> to vector<4x256xf32>
    %863 = arith.mulf %860, %862 : vector<4x256xf32>
    %c239_i32_451 = arith.constant 239 : i32
    %864 = tpu.dynamic_rotate %835 by %c239_i32_451 dim 1 : vector<4x256xf32>, i32 -> vector<4x256xf32>
    %c8_452 = arith.constant 8 : index
    %c0_453 = arith.constant 0 : index
    %865 = vector.load %arg8[%c8_452, %c0_453] : memref<9x256xf32, #tpu.memory_space<vmem>>, vector<1x256xf32>
    %866 = vector.broadcast %865 : vector<1x256xf32> to vector<4x256xf32>
    %867 = arith.mulf %864, %866 : vector<4x256xf32>
    %868 = tpu.concatenate %839, %843, %847, %851, %835, %855, %859, %863, %867 in 0 : vector<4x256xf32>, vector<4x256xf32>, vector<4x256xf32>, vector<4x256xf32>, vector<4x256xf32>, vector<4x256xf32>, vector<4x256xf32>, vector<4x256xf32>, vector<4x256xf32> -> vector<36x256xf32>
    %869 = arith.truncf %868 : vector<36x256xf32> to vector<36x256xbf16>
    %c9 = arith.constant 9 : index
    %c0_454 = arith.constant 0 : index
    %c0_455 = arith.constant 0 : index
    %870 = vector.load %arg10[%c9, %c0_454, %c0_455] : memref<18x36x256xbf16, #tpu.memory_space<vmem>>, vector<1x36x256xbf16>
    %871 = vector.shape_cast %870 : vector<1x36x256xbf16> to vector<36x256xbf16>
    %872 = vector.shape_cast %869 : vector<36x256xbf16> to vector<1x36x256xbf16>
    tpu.vector_store %arg10[%c9, %c0_454, %c0_455], %872 {strides = array<i32>} : memref<18x36x256xbf16, #tpu.memory_space<vmem>>, vector<1x36x256xbf16>,
    %873 = vector.extract_strided_slice %492 {offsets = [40, 0], sizes = [4, 256], strides = [1, 1]} : vector<72x256xf32> to vector<4x256xf32>
    %c17_i32_456 = arith.constant 17 : i32
    %874 = tpu.dynamic_rotate %873 by %c17_i32_456 dim 1 : vector<4x256xf32>, i32 -> vector<4x256xf32>
    %c0_457 = arith.constant 0 : index
    %c0_458 = arith.constant 0 : index
    %875 = vector.load %arg8[%c0_457, %c0_458] : memref<9x256xf32, #tpu.memory_space<vmem>>, vector<1x256xf32>
    %876 = vector.broadcast %875 : vector<1x256xf32> to vector<4x256xf32>
    %877 = arith.mulf %874, %876 : vector<4x256xf32>
    %c16_i32_459 = arith.constant 16 : i32
    %878 = tpu.dynamic_rotate %873 by %c16_i32_459 dim 1 : vector<4x256xf32>, i32 -> vector<4x256xf32>
    %c1_460 = arith.constant 1 : index
    %c0_461 = arith.constant 0 : index
    %879 = vector.load %arg8[%c1_460, %c0_461] : memref<9x256xf32, #tpu.memory_space<vmem>>, vector<1x256xf32>
    %880 = vector.broadcast %879 : vector<1x256xf32> to vector<4x256xf32>
    %881 = arith.mulf %878, %880 : vector<4x256xf32>
    %c15_i32_462 = arith.constant 15 : i32
    %882 = tpu.dynamic_rotate %873 by %c15_i32_462 dim 1 : vector<4x256xf32>, i32 -> vector<4x256xf32>
    %c2_463 = arith.constant 2 : index
    %c0_464 = arith.constant 0 : index
    %883 = vector.load %arg8[%c2_463, %c0_464] : memref<9x256xf32, #tpu.memory_space<vmem>>, vector<1x256xf32>
    %884 = vector.broadcast %883 : vector<1x256xf32> to vector<4x256xf32>
    %885 = arith.mulf %882, %884 : vector<4x256xf32>
    %c1_i32_465 = arith.constant 1 : i32
    %886 = tpu.dynamic_rotate %873 by %c1_i32_465 dim 1 : vector<4x256xf32>, i32 -> vector<4x256xf32>
    %c3_466 = arith.constant 3 : index
    %c0_467 = arith.constant 0 : index
    %887 = vector.load %arg8[%c3_466, %c0_467] : memref<9x256xf32, #tpu.memory_space<vmem>>, vector<1x256xf32>
    %888 = vector.broadcast %887 : vector<1x256xf32> to vector<4x256xf32>
    %889 = arith.mulf %886, %888 : vector<4x256xf32>
    %c255_i32_468 = arith.constant 255 : i32
    %890 = tpu.dynamic_rotate %873 by %c255_i32_468 dim 1 : vector<4x256xf32>, i32 -> vector<4x256xf32>
    %c5_469 = arith.constant 5 : index
    %c0_470 = arith.constant 0 : index
    %891 = vector.load %arg8[%c5_469, %c0_470] : memref<9x256xf32, #tpu.memory_space<vmem>>, vector<1x256xf32>
    %892 = vector.broadcast %891 : vector<1x256xf32> to vector<4x256xf32>
    %893 = arith.mulf %890, %892 : vector<4x256xf32>
    %c241_i32_471 = arith.constant 241 : i32
    %894 = tpu.dynamic_rotate %873 by %c241_i32_471 dim 1 : vector<4x256xf32>, i32 -> vector<4x256xf32>
    %c6_472 = arith.constant 6 : index
    %c0_473 = arith.constant 0 : index
    %895 = vector.load %arg8[%c6_472, %c0_473] : memref<9x256xf32, #tpu.memory_space<vmem>>, vector<1x256xf32>
    %896 = vector.broadcast %895 : vector<1x256xf32> to vector<4x256xf32>
    %897 = arith.mulf %894, %896 : vector<4x256xf32>
    %c240_i32_474 = arith.constant 240 : i32
    %898 = tpu.dynamic_rotate %873 by %c240_i32_474 dim 1 : vector<4x256xf32>, i32 -> vector<4x256xf32>
    %c7_475 = arith.constant 7 : index
    %c0_476 = arith.constant 0 : index
    %899 = vector.load %arg8[%c7_475, %c0_476] : memref<9x256xf32, #tpu.memory_space<vmem>>, vector<1x256xf32>
    %900 = vector.broadcast %899 : vector<1x256xf32> to vector<4x256xf32>
    %901 = arith.mulf %898, %900 : vector<4x256xf32>
    %c239_i32_477 = arith.constant 239 : i32
    %902 = tpu.dynamic_rotate %873 by %c239_i32_477 dim 1 : vector<4x256xf32>, i32 -> vector<4x256xf32>
    %c8_478 = arith.constant 8 : index
    %c0_479 = arith.constant 0 : index
    %903 = vector.load %arg8[%c8_478, %c0_479] : memref<9x256xf32, #tpu.memory_space<vmem>>, vector<1x256xf32>
    %904 = vector.broadcast %903 : vector<1x256xf32> to vector<4x256xf32>
    %905 = arith.mulf %902, %904 : vector<4x256xf32>
    %906 = tpu.concatenate %877, %881, %885, %889, %873, %893, %897, %901, %905 in 0 : vector<4x256xf32>, vector<4x256xf32>, vector<4x256xf32>, vector<4x256xf32>, vector<4x256xf32>, vector<4x256xf32>, vector<4x256xf32>, vector<4x256xf32>, vector<4x256xf32> -> vector<36x256xf32>
    %907 = arith.truncf %906 : vector<36x256xf32> to vector<36x256xbf16>
    %c10 = arith.constant 10 : index
    %c0_480 = arith.constant 0 : index
    %c0_481 = arith.constant 0 : index
    %908 = vector.load %arg10[%c10, %c0_480, %c0_481] : memref<18x36x256xbf16, #tpu.memory_space<vmem>>, vector<1x36x256xbf16>
    %909 = vector.shape_cast %908 : vector<1x36x256xbf16> to vector<36x256xbf16>
    %910 = vector.shape_cast %907 : vector<36x256xbf16> to vector<1x36x256xbf16>
    tpu.vector_store %arg10[%c10, %c0_480, %c0_481], %910 {strides = array<i32>} : memref<18x36x256xbf16, #tpu.memory_space<vmem>>, vector<1x36x256xbf16>,
    %911 = vector.extract_strided_slice %492 {offsets = [44, 0], sizes = [4, 256], strides = [1, 1]} : vector<72x256xf32> to vector<4x256xf32>
    %c17_i32_482 = arith.constant 17 : i32
    %912 = tpu.dynamic_rotate %911 by %c17_i32_482 dim 1 : vector<4x256xf32>, i32 -> vector<4x256xf32>
    %c0_483 = arith.constant 0 : index
    %c0_484 = arith.constant 0 : index
    %913 = vector.load %arg8[%c0_483, %c0_484] : memref<9x256xf32, #tpu.memory_space<vmem>>, vector<1x256xf32>
    %914 = vector.broadcast %913 : vector<1x256xf32> to vector<4x256xf32>
    %915 = arith.mulf %912, %914 : vector<4x256xf32>
    %c16_i32_485 = arith.constant 16 : i32
    %916 = tpu.dynamic_rotate %911 by %c16_i32_485 dim 1 : vector<4x256xf32>, i32 -> vector<4x256xf32>
    %c1_486 = arith.constant 1 : index
    %c0_487 = arith.constant 0 : index
    %917 = vector.load %arg8[%c1_486, %c0_487] : memref<9x256xf32, #tpu.memory_space<vmem>>, vector<1x256xf32>
    %918 = vector.broadcast %917 : vector<1x256xf32> to vector<4x256xf32>
    %919 = arith.mulf %916, %918 : vector<4x256xf32>
    %c15_i32_488 = arith.constant 15 : i32
    %920 = tpu.dynamic_rotate %911 by %c15_i32_488 dim 1 : vector<4x256xf32>, i32 -> vector<4x256xf32>
    %c2_489 = arith.constant 2 : index
    %c0_490 = arith.constant 0 : index
    %921 = vector.load %arg8[%c2_489, %c0_490] : memref<9x256xf32, #tpu.memory_space<vmem>>, vector<1x256xf32>
    %922 = vector.broadcast %921 : vector<1x256xf32> to vector<4x256xf32>
    %923 = arith.mulf %920, %922 : vector<4x256xf32>
    %c1_i32_491 = arith.constant 1 : i32
    %924 = tpu.dynamic_rotate %911 by %c1_i32_491 dim 1 : vector<4x256xf32>, i32 -> vector<4x256xf32>
    %c3_492 = arith.constant 3 : index
    %c0_493 = arith.constant 0 : index
    %925 = vector.load %arg8[%c3_492, %c0_493] : memref<9x256xf32, #tpu.memory_space<vmem>>, vector<1x256xf32>
    %926 = vector.broadcast %925 : vector<1x256xf32> to vector<4x256xf32>
    %927 = arith.mulf %924, %926 : vector<4x256xf32>
    %c255_i32_494 = arith.constant 255 : i32
    %928 = tpu.dynamic_rotate %911 by %c255_i32_494 dim 1 : vector<4x256xf32>, i32 -> vector<4x256xf32>
    %c5_495 = arith.constant 5 : index
    %c0_496 = arith.constant 0 : index
    %929 = vector.load %arg8[%c5_495, %c0_496] : memref<9x256xf32, #tpu.memory_space<vmem>>, vector<1x256xf32>
    %930 = vector.broadcast %929 : vector<1x256xf32> to vector<4x256xf32>
    %931 = arith.mulf %928, %930 : vector<4x256xf32>
    %c241_i32_497 = arith.constant 241 : i32
    %932 = tpu.dynamic_rotate %911 by %c241_i32_497 dim 1 : vector<4x256xf32>, i32 -> vector<4x256xf32>
    %c6_498 = arith.constant 6 : index
    %c0_499 = arith.constant 0 : index
    %933 = vector.load %arg8[%c6_498, %c0_499] : memref<9x256xf32, #tpu.memory_space<vmem>>, vector<1x256xf32>
    %934 = vector.broadcast %933 : vector<1x256xf32> to vector<4x256xf32>
    %935 = arith.mulf %932, %934 : vector<4x256xf32>
    %c240_i32_500 = arith.constant 240 : i32
    %936 = tpu.dynamic_rotate %911 by %c240_i32_500 dim 1 : vector<4x256xf32>, i32 -> vector<4x256xf32>
    %c7_501 = arith.constant 7 : index
    %c0_502 = arith.constant 0 : index
    %937 = vector.load %arg8[%c7_501, %c0_502] : memref<9x256xf32, #tpu.memory_space<vmem>>, vector<1x256xf32>
    %938 = vector.broadcast %937 : vector<1x256xf32> to vector<4x256xf32>
    %939 = arith.mulf %936, %938 : vector<4x256xf32>
    %c239_i32_503 = arith.constant 239 : i32
    %940 = tpu.dynamic_rotate %911 by %c239_i32_503 dim 1 : vector<4x256xf32>, i32 -> vector<4x256xf32>
    %c8_504 = arith.constant 8 : index
    %c0_505 = arith.constant 0 : index
    %941 = vector.load %arg8[%c8_504, %c0_505] : memref<9x256xf32, #tpu.memory_space<vmem>>, vector<1x256xf32>
    %942 = vector.broadcast %941 : vector<1x256xf32> to vector<4x256xf32>
    %943 = arith.mulf %940, %942 : vector<4x256xf32>
    %944 = tpu.concatenate %915, %919, %923, %927, %911, %931, %935, %939, %943 in 0 : vector<4x256xf32>, vector<4x256xf32>, vector<4x256xf32>, vector<4x256xf32>, vector<4x256xf32>, vector<4x256xf32>, vector<4x256xf32>, vector<4x256xf32>, vector<4x256xf32> -> vector<36x256xf32>
    %945 = arith.truncf %944 : vector<36x256xf32> to vector<36x256xbf16>
    %c11 = arith.constant 11 : index
    %c0_506 = arith.constant 0 : index
    %c0_507 = arith.constant 0 : index
    %946 = vector.load %arg10[%c11, %c0_506, %c0_507] : memref<18x36x256xbf16, #tpu.memory_space<vmem>>, vector<1x36x256xbf16>
    %947 = vector.shape_cast %946 : vector<1x36x256xbf16> to vector<36x256xbf16>
    %948 = vector.shape_cast %945 : vector<36x256xbf16> to vector<1x36x256xbf16>
    tpu.vector_store %arg10[%c11, %c0_506, %c0_507], %948 {strides = array<i32>} : memref<18x36x256xbf16, #tpu.memory_space<vmem>>, vector<1x36x256xbf16>,
    %949 = vector.extract_strided_slice %492 {offsets = [48, 0], sizes = [4, 256], strides = [1, 1]} : vector<72x256xf32> to vector<4x256xf32>
    %c17_i32_508 = arith.constant 17 : i32
    %950 = tpu.dynamic_rotate %949 by %c17_i32_508 dim 1 : vector<4x256xf32>, i32 -> vector<4x256xf32>
    %c0_509 = arith.constant 0 : index
    %c0_510 = arith.constant 0 : index
    %951 = vector.load %arg8[%c0_509, %c0_510] : memref<9x256xf32, #tpu.memory_space<vmem>>, vector<1x256xf32>
    %952 = vector.broadcast %951 : vector<1x256xf32> to vector<4x256xf32>
    %953 = arith.mulf %950, %952 : vector<4x256xf32>
    %c16_i32_511 = arith.constant 16 : i32
    %954 = tpu.dynamic_rotate %949 by %c16_i32_511 dim 1 : vector<4x256xf32>, i32 -> vector<4x256xf32>
    %c1_512 = arith.constant 1 : index
    %c0_513 = arith.constant 0 : index
    %955 = vector.load %arg8[%c1_512, %c0_513] : memref<9x256xf32, #tpu.memory_space<vmem>>, vector<1x256xf32>
    %956 = vector.broadcast %955 : vector<1x256xf32> to vector<4x256xf32>
    %957 = arith.mulf %954, %956 : vector<4x256xf32>
    %c15_i32_514 = arith.constant 15 : i32
    %958 = tpu.dynamic_rotate %949 by %c15_i32_514 dim 1 : vector<4x256xf32>, i32 -> vector<4x256xf32>
    %c2_515 = arith.constant 2 : index
    %c0_516 = arith.constant 0 : index
    %959 = vector.load %arg8[%c2_515, %c0_516] : memref<9x256xf32, #tpu.memory_space<vmem>>, vector<1x256xf32>
    %960 = vector.broadcast %959 : vector<1x256xf32> to vector<4x256xf32>
    %961 = arith.mulf %958, %960 : vector<4x256xf32>
    %c1_i32_517 = arith.constant 1 : i32
    %962 = tpu.dynamic_rotate %949 by %c1_i32_517 dim 1 : vector<4x256xf32>, i32 -> vector<4x256xf32>
    %c3_518 = arith.constant 3 : index
    %c0_519 = arith.constant 0 : index
    %963 = vector.load %arg8[%c3_518, %c0_519] : memref<9x256xf32, #tpu.memory_space<vmem>>, vector<1x256xf32>
    %964 = vector.broadcast %963 : vector<1x256xf32> to vector<4x256xf32>
    %965 = arith.mulf %962, %964 : vector<4x256xf32>
    %c255_i32_520 = arith.constant 255 : i32
    %966 = tpu.dynamic_rotate %949 by %c255_i32_520 dim 1 : vector<4x256xf32>, i32 -> vector<4x256xf32>
    %c5_521 = arith.constant 5 : index
    %c0_522 = arith.constant 0 : index
    %967 = vector.load %arg8[%c5_521, %c0_522] : memref<9x256xf32, #tpu.memory_space<vmem>>, vector<1x256xf32>
    %968 = vector.broadcast %967 : vector<1x256xf32> to vector<4x256xf32>
    %969 = arith.mulf %966, %968 : vector<4x256xf32>
    %c241_i32_523 = arith.constant 241 : i32
    %970 = tpu.dynamic_rotate %949 by %c241_i32_523 dim 1 : vector<4x256xf32>, i32 -> vector<4x256xf32>
    %c6_524 = arith.constant 6 : index
    %c0_525 = arith.constant 0 : index
    %971 = vector.load %arg8[%c6_524, %c0_525] : memref<9x256xf32, #tpu.memory_space<vmem>>, vector<1x256xf32>
    %972 = vector.broadcast %971 : vector<1x256xf32> to vector<4x256xf32>
    %973 = arith.mulf %970, %972 : vector<4x256xf32>
    %c240_i32_526 = arith.constant 240 : i32
    %974 = tpu.dynamic_rotate %949 by %c240_i32_526 dim 1 : vector<4x256xf32>, i32 -> vector<4x256xf32>
    %c7_527 = arith.constant 7 : index
    %c0_528 = arith.constant 0 : index
    %975 = vector.load %arg8[%c7_527, %c0_528] : memref<9x256xf32, #tpu.memory_space<vmem>>, vector<1x256xf32>
    %976 = vector.broadcast %975 : vector<1x256xf32> to vector<4x256xf32>
    %977 = arith.mulf %974, %976 : vector<4x256xf32>
    %c239_i32_529 = arith.constant 239 : i32
    %978 = tpu.dynamic_rotate %949 by %c239_i32_529 dim 1 : vector<4x256xf32>, i32 -> vector<4x256xf32>
    %c8_530 = arith.constant 8 : index
    %c0_531 = arith.constant 0 : index
    %979 = vector.load %arg8[%c8_530, %c0_531] : memref<9x256xf32, #tpu.memory_space<vmem>>, vector<1x256xf32>
    %980 = vector.broadcast %979 : vector<1x256xf32> to vector<4x256xf32>
    %981 = arith.mulf %978, %980 : vector<4x256xf32>
    %982 = tpu.concatenate %953, %957, %961, %965, %949, %969, %973, %977, %981 in 0 : vector<4x256xf32>, vector<4x256xf32>, vector<4x256xf32>, vector<4x256xf32>, vector<4x256xf32>, vector<4x256xf32>, vector<4x256xf32>, vector<4x256xf32>, vector<4x256xf32> -> vector<36x256xf32>
    %983 = arith.truncf %982 : vector<36x256xf32> to vector<36x256xbf16>
    %c12 = arith.constant 12 : index
    %c0_532 = arith.constant 0 : index
    %c0_533 = arith.constant 0 : index
    %984 = vector.load %arg10[%c12, %c0_532, %c0_533] : memref<18x36x256xbf16, #tpu.memory_space<vmem>>, vector<1x36x256xbf16>
    %985 = vector.shape_cast %984 : vector<1x36x256xbf16> to vector<36x256xbf16>
    %986 = vector.shape_cast %983 : vector<36x256xbf16> to vector<1x36x256xbf16>
    tpu.vector_store %arg10[%c12, %c0_532, %c0_533], %986 {strides = array<i32>} : memref<18x36x256xbf16, #tpu.memory_space<vmem>>, vector<1x36x256xbf16>,
    %987 = vector.extract_strided_slice %492 {offsets = [52, 0], sizes = [4, 256], strides = [1, 1]} : vector<72x256xf32> to vector<4x256xf32>
    %c17_i32_534 = arith.constant 17 : i32
    %988 = tpu.dynamic_rotate %987 by %c17_i32_534 dim 1 : vector<4x256xf32>, i32 -> vector<4x256xf32>
    %c0_535 = arith.constant 0 : index
    %c0_536 = arith.constant 0 : index
    %989 = vector.load %arg8[%c0_535, %c0_536] : memref<9x256xf32, #tpu.memory_space<vmem>>, vector<1x256xf32>
    %990 = vector.broadcast %989 : vector<1x256xf32> to vector<4x256xf32>
    %991 = arith.mulf %988, %990 : vector<4x256xf32>
    %c16_i32_537 = arith.constant 16 : i32
    %992 = tpu.dynamic_rotate %987 by %c16_i32_537 dim 1 : vector<4x256xf32>, i32 -> vector<4x256xf32>
    %c1_538 = arith.constant 1 : index
    %c0_539 = arith.constant 0 : index
    %993 = vector.load %arg8[%c1_538, %c0_539] : memref<9x256xf32, #tpu.memory_space<vmem>>, vector<1x256xf32>
    %994 = vector.broadcast %993 : vector<1x256xf32> to vector<4x256xf32>
    %995 = arith.mulf %992, %994 : vector<4x256xf32>
    %c15_i32_540 = arith.constant 15 : i32
    %996 = tpu.dynamic_rotate %987 by %c15_i32_540 dim 1 : vector<4x256xf32>, i32 -> vector<4x256xf32>
    %c2_541 = arith.constant 2 : index
    %c0_542 = arith.constant 0 : index
    %997 = vector.load %arg8[%c2_541, %c0_542] : memref<9x256xf32, #tpu.memory_space<vmem>>, vector<1x256xf32>
    %998 = vector.broadcast %997 : vector<1x256xf32> to vector<4x256xf32>
    %999 = arith.mulf %996, %998 : vector<4x256xf32>
    %c1_i32_543 = arith.constant 1 : i32
    %1000 = tpu.dynamic_rotate %987 by %c1_i32_543 dim 1 : vector<4x256xf32>, i32 -> vector<4x256xf32>
    %c3_544 = arith.constant 3 : index
    %c0_545 = arith.constant 0 : index
    %1001 = vector.load %arg8[%c3_544, %c0_545] : memref<9x256xf32, #tpu.memory_space<vmem>>, vector<1x256xf32>
    %1002 = vector.broadcast %1001 : vector<1x256xf32> to vector<4x256xf32>
    %1003 = arith.mulf %1000, %1002 : vector<4x256xf32>
    %c255_i32_546 = arith.constant 255 : i32
    %1004 = tpu.dynamic_rotate %987 by %c255_i32_546 dim 1 : vector<4x256xf32>, i32 -> vector<4x256xf32>
    %c5_547 = arith.constant 5 : index
    %c0_548 = arith.constant 0 : index
    %1005 = vector.load %arg8[%c5_547, %c0_548] : memref<9x256xf32, #tpu.memory_space<vmem>>, vector<1x256xf32>
    %1006 = vector.broadcast %1005 : vector<1x256xf32> to vector<4x256xf32>
    %1007 = arith.mulf %1004, %1006 : vector<4x256xf32>
    %c241_i32_549 = arith.constant 241 : i32
    %1008 = tpu.dynamic_rotate %987 by %c241_i32_549 dim 1 : vector<4x256xf32>, i32 -> vector<4x256xf32>
    %c6_550 = arith.constant 6 : index
    %c0_551 = arith.constant 0 : index
    %1009 = vector.load %arg8[%c6_550, %c0_551] : memref<9x256xf32, #tpu.memory_space<vmem>>, vector<1x256xf32>
    %1010 = vector.broadcast %1009 : vector<1x256xf32> to vector<4x256xf32>
    %1011 = arith.mulf %1008, %1010 : vector<4x256xf32>
    %c240_i32_552 = arith.constant 240 : i32
    %1012 = tpu.dynamic_rotate %987 by %c240_i32_552 dim 1 : vector<4x256xf32>, i32 -> vector<4x256xf32>
    %c7_553 = arith.constant 7 : index
    %c0_554 = arith.constant 0 : index
    %1013 = vector.load %arg8[%c7_553, %c0_554] : memref<9x256xf32, #tpu.memory_space<vmem>>, vector<1x256xf32>
    %1014 = vector.broadcast %1013 : vector<1x256xf32> to vector<4x256xf32>
    %1015 = arith.mulf %1012, %1014 : vector<4x256xf32>
    %c239_i32_555 = arith.constant 239 : i32
    %1016 = tpu.dynamic_rotate %987 by %c239_i32_555 dim 1 : vector<4x256xf32>, i32 -> vector<4x256xf32>
    %c8_556 = arith.constant 8 : index
    %c0_557 = arith.constant 0 : index
    %1017 = vector.load %arg8[%c8_556, %c0_557] : memref<9x256xf32, #tpu.memory_space<vmem>>, vector<1x256xf32>
    %1018 = vector.broadcast %1017 : vector<1x256xf32> to vector<4x256xf32>
    %1019 = arith.mulf %1016, %1018 : vector<4x256xf32>
    %1020 = tpu.concatenate %991, %995, %999, %1003, %987, %1007, %1011, %1015, %1019 in 0 : vector<4x256xf32>, vector<4x256xf32>, vector<4x256xf32>, vector<4x256xf32>, vector<4x256xf32>, vector<4x256xf32>, vector<4x256xf32>, vector<4x256xf32>, vector<4x256xf32> -> vector<36x256xf32>
    %1021 = arith.truncf %1020 : vector<36x256xf32> to vector<36x256xbf16>
    %c13 = arith.constant 13 : index
    %c0_558 = arith.constant 0 : index
    %c0_559 = arith.constant 0 : index
    %1022 = vector.load %arg10[%c13, %c0_558, %c0_559] : memref<18x36x256xbf16, #tpu.memory_space<vmem>>, vector<1x36x256xbf16>
    %1023 = vector.shape_cast %1022 : vector<1x36x256xbf16> to vector<36x256xbf16>
    %1024 = vector.shape_cast %1021 : vector<36x256xbf16> to vector<1x36x256xbf16>
    tpu.vector_store %arg10[%c13, %c0_558, %c0_559], %1024 {strides = array<i32>} : memref<18x36x256xbf16, #tpu.memory_space<vmem>>, vector<1x36x256xbf16>,
    %1025 = vector.extract_strided_slice %492 {offsets = [56, 0], sizes = [4, 256], strides = [1, 1]} : vector<72x256xf32> to vector<4x256xf32>
    %c17_i32_560 = arith.constant 17 : i32
    %1026 = tpu.dynamic_rotate %1025 by %c17_i32_560 dim 1 : vector<4x256xf32>, i32 -> vector<4x256xf32>
    %c0_561 = arith.constant 0 : index
    %c0_562 = arith.constant 0 : index
    %1027 = vector.load %arg8[%c0_561, %c0_562] : memref<9x256xf32, #tpu.memory_space<vmem>>, vector<1x256xf32>
    %1028 = vector.broadcast %1027 : vector<1x256xf32> to vector<4x256xf32>
    %1029 = arith.mulf %1026, %1028 : vector<4x256xf32>
    %c16_i32_563 = arith.constant 16 : i32
    %1030 = tpu.dynamic_rotate %1025 by %c16_i32_563 dim 1 : vector<4x256xf32>, i32 -> vector<4x256xf32>
    %c1_564 = arith.constant 1 : index
    %c0_565 = arith.constant 0 : index
    %1031 = vector.load %arg8[%c1_564, %c0_565] : memref<9x256xf32, #tpu.memory_space<vmem>>, vector<1x256xf32>
    %1032 = vector.broadcast %1031 : vector<1x256xf32> to vector<4x256xf32>
    %1033 = arith.mulf %1030, %1032 : vector<4x256xf32>
    %c15_i32_566 = arith.constant 15 : i32
    %1034 = tpu.dynamic_rotate %1025 by %c15_i32_566 dim 1 : vector<4x256xf32>, i32 -> vector<4x256xf32>
    %c2_567 = arith.constant 2 : index
    %c0_568 = arith.constant 0 : index
    %1035 = vector.load %arg8[%c2_567, %c0_568] : memref<9x256xf32, #tpu.memory_space<vmem>>, vector<1x256xf32>
    %1036 = vector.broadcast %1035 : vector<1x256xf32> to vector<4x256xf32>
    %1037 = arith.mulf %1034, %1036 : vector<4x256xf32>
    %c1_i32_569 = arith.constant 1 : i32
    %1038 = tpu.dynamic_rotate %1025 by %c1_i32_569 dim 1 : vector<4x256xf32>, i32 -> vector<4x256xf32>
    %c3_570 = arith.constant 3 : index
    %c0_571 = arith.constant 0 : index
    %1039 = vector.load %arg8[%c3_570, %c0_571] : memref<9x256xf32, #tpu.memory_space<vmem>>, vector<1x256xf32>
    %1040 = vector.broadcast %1039 : vector<1x256xf32> to vector<4x256xf32>
    %1041 = arith.mulf %1038, %1040 : vector<4x256xf32>
    %c255_i32_572 = arith.constant 255 : i32
    %1042 = tpu.dynamic_rotate %1025 by %c255_i32_572 dim 1 : vector<4x256xf32>, i32 -> vector<4x256xf32>
    %c5_573 = arith.constant 5 : index
    %c0_574 = arith.constant 0 : index
    %1043 = vector.load %arg8[%c5_573, %c0_574] : memref<9x256xf32, #tpu.memory_space<vmem>>, vector<1x256xf32>
    %1044 = vector.broadcast %1043 : vector<1x256xf32> to vector<4x256xf32>
    %1045 = arith.mulf %1042, %1044 : vector<4x256xf32>
    %c241_i32_575 = arith.constant 241 : i32
    %1046 = tpu.dynamic_rotate %1025 by %c241_i32_575 dim 1 : vector<4x256xf32>, i32 -> vector<4x256xf32>
    %c6_576 = arith.constant 6 : index
    %c0_577 = arith.constant 0 : index
    %1047 = vector.load %arg8[%c6_576, %c0_577] : memref<9x256xf32, #tpu.memory_space<vmem>>, vector<1x256xf32>
    %1048 = vector.broadcast %1047 : vector<1x256xf32> to vector<4x256xf32>
    %1049 = arith.mulf %1046, %1048 : vector<4x256xf32>
    %c240_i32_578 = arith.constant 240 : i32
    %1050 = tpu.dynamic_rotate %1025 by %c240_i32_578 dim 1 : vector<4x256xf32>, i32 -> vector<4x256xf32>
    %c7_579 = arith.constant 7 : index
    %c0_580 = arith.constant 0 : index
    %1051 = vector.load %arg8[%c7_579, %c0_580] : memref<9x256xf32, #tpu.memory_space<vmem>>, vector<1x256xf32>
    %1052 = vector.broadcast %1051 : vector<1x256xf32> to vector<4x256xf32>
    %1053 = arith.mulf %1050, %1052 : vector<4x256xf32>
    %c239_i32_581 = arith.constant 239 : i32
    %1054 = tpu.dynamic_rotate %1025 by %c239_i32_581 dim 1 : vector<4x256xf32>, i32 -> vector<4x256xf32>
    %c8_582 = arith.constant 8 : index
    %c0_583 = arith.constant 0 : index
    %1055 = vector.load %arg8[%c8_582, %c0_583] : memref<9x256xf32, #tpu.memory_space<vmem>>, vector<1x256xf32>
    %1056 = vector.broadcast %1055 : vector<1x256xf32> to vector<4x256xf32>
    %1057 = arith.mulf %1054, %1056 : vector<4x256xf32>
    %1058 = tpu.concatenate %1029, %1033, %1037, %1041, %1025, %1045, %1049, %1053, %1057 in 0 : vector<4x256xf32>, vector<4x256xf32>, vector<4x256xf32>, vector<4x256xf32>, vector<4x256xf32>, vector<4x256xf32>, vector<4x256xf32>, vector<4x256xf32>, vector<4x256xf32> -> vector<36x256xf32>
    %1059 = arith.truncf %1058 : vector<36x256xf32> to vector<36x256xbf16>
    %c14 = arith.constant 14 : index
    %c0_584 = arith.constant 0 : index
    %c0_585 = arith.constant 0 : index
    %1060 = vector.load %arg10[%c14, %c0_584, %c0_585] : memref<18x36x256xbf16, #tpu.memory_space<vmem>>, vector<1x36x256xbf16>
    %1061 = vector.shape_cast %1060 : vector<1x36x256xbf16> to vector<36x256xbf16>
    %1062 = vector.shape_cast %1059 : vector<36x256xbf16> to vector<1x36x256xbf16>
    tpu.vector_store %arg10[%c14, %c0_584, %c0_585], %1062 {strides = array<i32>} : memref<18x36x256xbf16, #tpu.memory_space<vmem>>, vector<1x36x256xbf16>,
    %1063 = vector.extract_strided_slice %492 {offsets = [60, 0], sizes = [4, 256], strides = [1, 1]} : vector<72x256xf32> to vector<4x256xf32>
    %c17_i32_586 = arith.constant 17 : i32
    %1064 = tpu.dynamic_rotate %1063 by %c17_i32_586 dim 1 : vector<4x256xf32>, i32 -> vector<4x256xf32>
    %c0_587 = arith.constant 0 : index
    %c0_588 = arith.constant 0 : index
    %1065 = vector.load %arg8[%c0_587, %c0_588] : memref<9x256xf32, #tpu.memory_space<vmem>>, vector<1x256xf32>
    %1066 = vector.broadcast %1065 : vector<1x256xf32> to vector<4x256xf32>
    %1067 = arith.mulf %1064, %1066 : vector<4x256xf32>
    %c16_i32_589 = arith.constant 16 : i32
    %1068 = tpu.dynamic_rotate %1063 by %c16_i32_589 dim 1 : vector<4x256xf32>, i32 -> vector<4x256xf32>
    %c1_590 = arith.constant 1 : index
    %c0_591 = arith.constant 0 : index
    %1069 = vector.load %arg8[%c1_590, %c0_591] : memref<9x256xf32, #tpu.memory_space<vmem>>, vector<1x256xf32>
    %1070 = vector.broadcast %1069 : vector<1x256xf32> to vector<4x256xf32>
    %1071 = arith.mulf %1068, %1070 : vector<4x256xf32>
    %c15_i32_592 = arith.constant 15 : i32
    %1072 = tpu.dynamic_rotate %1063 by %c15_i32_592 dim 1 : vector<4x256xf32>, i32 -> vector<4x256xf32>
    %c2_593 = arith.constant 2 : index
    %c0_594 = arith.constant 0 : index
    %1073 = vector.load %arg8[%c2_593, %c0_594] : memref<9x256xf32, #tpu.memory_space<vmem>>, vector<1x256xf32>
    %1074 = vector.broadcast %1073 : vector<1x256xf32> to vector<4x256xf32>
    %1075 = arith.mulf %1072, %1074 : vector<4x256xf32>
    %c1_i32_595 = arith.constant 1 : i32
    %1076 = tpu.dynamic_rotate %1063 by %c1_i32_595 dim 1 : vector<4x256xf32>, i32 -> vector<4x256xf32>
    %c3_596 = arith.constant 3 : index
    %c0_597 = arith.constant 0 : index
    %1077 = vector.load %arg8[%c3_596, %c0_597] : memref<9x256xf32, #tpu.memory_space<vmem>>, vector<1x256xf32>
    %1078 = vector.broadcast %1077 : vector<1x256xf32> to vector<4x256xf32>
    %1079 = arith.mulf %1076, %1078 : vector<4x256xf32>
    %c255_i32_598 = arith.constant 255 : i32
    %1080 = tpu.dynamic_rotate %1063 by %c255_i32_598 dim 1 : vector<4x256xf32>, i32 -> vector<4x256xf32>
    %c5_599 = arith.constant 5 : index
    %c0_600 = arith.constant 0 : index
    %1081 = vector.load %arg8[%c5_599, %c0_600] : memref<9x256xf32, #tpu.memory_space<vmem>>, vector<1x256xf32>
    %1082 = vector.broadcast %1081 : vector<1x256xf32> to vector<4x256xf32>
    %1083 = arith.mulf %1080, %1082 : vector<4x256xf32>
    %c241_i32_601 = arith.constant 241 : i32
    %1084 = tpu.dynamic_rotate %1063 by %c241_i32_601 dim 1 : vector<4x256xf32>, i32 -> vector<4x256xf32>
    %c6_602 = arith.constant 6 : index
    %c0_603 = arith.constant 0 : index
    %1085 = vector.load %arg8[%c6_602, %c0_603] : memref<9x256xf32, #tpu.memory_space<vmem>>, vector<1x256xf32>
    %1086 = vector.broadcast %1085 : vector<1x256xf32> to vector<4x256xf32>
    %1087 = arith.mulf %1084, %1086 : vector<4x256xf32>
    %c240_i32_604 = arith.constant 240 : i32
    %1088 = tpu.dynamic_rotate %1063 by %c240_i32_604 dim 1 : vector<4x256xf32>, i32 -> vector<4x256xf32>
    %c7_605 = arith.constant 7 : index
    %c0_606 = arith.constant 0 : index
    %1089 = vector.load %arg8[%c7_605, %c0_606] : memref<9x256xf32, #tpu.memory_space<vmem>>, vector<1x256xf32>
    %1090 = vector.broadcast %1089 : vector<1x256xf32> to vector<4x256xf32>
    %1091 = arith.mulf %1088, %1090 : vector<4x256xf32>
    %c239_i32_607 = arith.constant 239 : i32
    %1092 = tpu.dynamic_rotate %1063 by %c239_i32_607 dim 1 : vector<4x256xf32>, i32 -> vector<4x256xf32>
    %c8_608 = arith.constant 8 : index
    %c0_609 = arith.constant 0 : index
    %1093 = vector.load %arg8[%c8_608, %c0_609] : memref<9x256xf32, #tpu.memory_space<vmem>>, vector<1x256xf32>
    %1094 = vector.broadcast %1093 : vector<1x256xf32> to vector<4x256xf32>
    %1095 = arith.mulf %1092, %1094 : vector<4x256xf32>
    %1096 = tpu.concatenate %1067, %1071, %1075, %1079, %1063, %1083, %1087, %1091, %1095 in 0 : vector<4x256xf32>, vector<4x256xf32>, vector<4x256xf32>, vector<4x256xf32>, vector<4x256xf32>, vector<4x256xf32>, vector<4x256xf32>, vector<4x256xf32>, vector<4x256xf32> -> vector<36x256xf32>
    %1097 = arith.truncf %1096 : vector<36x256xf32> to vector<36x256xbf16>
    %c15 = arith.constant 15 : index
    %c0_610 = arith.constant 0 : index
    %c0_611 = arith.constant 0 : index
    %1098 = vector.load %arg10[%c15, %c0_610, %c0_611] : memref<18x36x256xbf16, #tpu.memory_space<vmem>>, vector<1x36x256xbf16>
    %1099 = vector.shape_cast %1098 : vector<1x36x256xbf16> to vector<36x256xbf16>
    %1100 = vector.shape_cast %1097 : vector<36x256xbf16> to vector<1x36x256xbf16>
    tpu.vector_store %arg10[%c15, %c0_610, %c0_611], %1100 {strides = array<i32>} : memref<18x36x256xbf16, #tpu.memory_space<vmem>>, vector<1x36x256xbf16>,
    %1101 = vector.extract_strided_slice %492 {offsets = [64, 0], sizes = [4, 256], strides = [1, 1]} : vector<72x256xf32> to vector<4x256xf32>
    %c17_i32_612 = arith.constant 17 : i32
    %1102 = tpu.dynamic_rotate %1101 by %c17_i32_612 dim 1 : vector<4x256xf32>, i32 -> vector<4x256xf32>
    %c0_613 = arith.constant 0 : index
    %c0_614 = arith.constant 0 : index
    %1103 = vector.load %arg8[%c0_613, %c0_614] : memref<9x256xf32, #tpu.memory_space<vmem>>, vector<1x256xf32>
    %1104 = vector.broadcast %1103 : vector<1x256xf32> to vector<4x256xf32>
    %1105 = arith.mulf %1102, %1104 : vector<4x256xf32>
    %c16_i32_615 = arith.constant 16 : i32
    %1106 = tpu.dynamic_rotate %1101 by %c16_i32_615 dim 1 : vector<4x256xf32>, i32 -> vector<4x256xf32>
    %c1_616 = arith.constant 1 : index
    %c0_617 = arith.constant 0 : index
    %1107 = vector.load %arg8[%c1_616, %c0_617] : memref<9x256xf32, #tpu.memory_space<vmem>>, vector<1x256xf32>
    %1108 = vector.broadcast %1107 : vector<1x256xf32> to vector<4x256xf32>
    %1109 = arith.mulf %1106, %1108 : vector<4x256xf32>
    %c15_i32_618 = arith.constant 15 : i32
    %1110 = tpu.dynamic_rotate %1101 by %c15_i32_618 dim 1 : vector<4x256xf32>, i32 -> vector<4x256xf32>
    %c2_619 = arith.constant 2 : index
    %c0_620 = arith.constant 0 : index
    %1111 = vector.load %arg8[%c2_619, %c0_620] : memref<9x256xf32, #tpu.memory_space<vmem>>, vector<1x256xf32>
    %1112 = vector.broadcast %1111 : vector<1x256xf32> to vector<4x256xf32>
    %1113 = arith.mulf %1110, %1112 : vector<4x256xf32>
    %c1_i32_621 = arith.constant 1 : i32
    %1114 = tpu.dynamic_rotate %1101 by %c1_i32_621 dim 1 : vector<4x256xf32>, i32 -> vector<4x256xf32>
    %c3_622 = arith.constant 3 : index
    %c0_623 = arith.constant 0 : index
    %1115 = vector.load %arg8[%c3_622, %c0_623] : memref<9x256xf32, #tpu.memory_space<vmem>>, vector<1x256xf32>
    %1116 = vector.broadcast %1115 : vector<1x256xf32> to vector<4x256xf32>
    %1117 = arith.mulf %1114, %1116 : vector<4x256xf32>
    %c255_i32_624 = arith.constant 255 : i32
    %1118 = tpu.dynamic_rotate %1101 by %c255_i32_624 dim 1 : vector<4x256xf32>, i32 -> vector<4x256xf32>
    %c5_625 = arith.constant 5 : index
    %c0_626 = arith.constant 0 : index
    %1119 = vector.load %arg8[%c5_625, %c0_626] : memref<9x256xf32, #tpu.memory_space<vmem>>, vector<1x256xf32>
    %1120 = vector.broadcast %1119 : vector<1x256xf32> to vector<4x256xf32>
    %1121 = arith.mulf %1118, %1120 : vector<4x256xf32>
    %c241_i32_627 = arith.constant 241 : i32
    %1122 = tpu.dynamic_rotate %1101 by %c241_i32_627 dim 1 : vector<4x256xf32>, i32 -> vector<4x256xf32>
    %c6_628 = arith.constant 6 : index
    %c0_629 = arith.constant 0 : index
    %1123 = vector.load %arg8[%c6_628, %c0_629] : memref<9x256xf32, #tpu.memory_space<vmem>>, vector<1x256xf32>
    %1124 = vector.broadcast %1123 : vector<1x256xf32> to vector<4x256xf32>
    %1125 = arith.mulf %1122, %1124 : vector<4x256xf32>
    %c240_i32_630 = arith.constant 240 : i32
    %1126 = tpu.dynamic_rotate %1101 by %c240_i32_630 dim 1 : vector<4x256xf32>, i32 -> vector<4x256xf32>
    %c7_631 = arith.constant 7 : index
    %c0_632 = arith.constant 0 : index
    %1127 = vector.load %arg8[%c7_631, %c0_632] : memref<9x256xf32, #tpu.memory_space<vmem>>, vector<1x256xf32>
    %1128 = vector.broadcast %1127 : vector<1x256xf32> to vector<4x256xf32>
    %1129 = arith.mulf %1126, %1128 : vector<4x256xf32>
    %c239_i32_633 = arith.constant 239 : i32
    %1130 = tpu.dynamic_rotate %1101 by %c239_i32_633 dim 1 : vector<4x256xf32>, i32 -> vector<4x256xf32>
    %c8_634 = arith.constant 8 : index
    %c0_635 = arith.constant 0 : index
    %1131 = vector.load %arg8[%c8_634, %c0_635] : memref<9x256xf32, #tpu.memory_space<vmem>>, vector<1x256xf32>
    %1132 = vector.broadcast %1131 : vector<1x256xf32> to vector<4x256xf32>
    %1133 = arith.mulf %1130, %1132 : vector<4x256xf32>
    %1134 = tpu.concatenate %1105, %1109, %1113, %1117, %1101, %1121, %1125, %1129, %1133 in 0 : vector<4x256xf32>, vector<4x256xf32>, vector<4x256xf32>, vector<4x256xf32>, vector<4x256xf32>, vector<4x256xf32>, vector<4x256xf32>, vector<4x256xf32>, vector<4x256xf32> -> vector<36x256xf32>
    %1135 = arith.truncf %1134 : vector<36x256xf32> to vector<36x256xbf16>
    %c16 = arith.constant 16 : index
    %c0_636 = arith.constant 0 : index
    %c0_637 = arith.constant 0 : index
    %1136 = vector.load %arg10[%c16, %c0_636, %c0_637] : memref<18x36x256xbf16, #tpu.memory_space<vmem>>, vector<1x36x256xbf16>
    %1137 = vector.shape_cast %1136 : vector<1x36x256xbf16> to vector<36x256xbf16>
    %1138 = vector.shape_cast %1135 : vector<36x256xbf16> to vector<1x36x256xbf16>
    tpu.vector_store %arg10[%c16, %c0_636, %c0_637], %1138 {strides = array<i32>} : memref<18x36x256xbf16, #tpu.memory_space<vmem>>, vector<1x36x256xbf16>,
    %1139 = vector.extract_strided_slice %492 {offsets = [68, 0], sizes = [4, 256], strides = [1, 1]} : vector<72x256xf32> to vector<4x256xf32>
    %c17_i32_638 = arith.constant 17 : i32
    %1140 = tpu.dynamic_rotate %1139 by %c17_i32_638 dim 1 : vector<4x256xf32>, i32 -> vector<4x256xf32>
    %c0_639 = arith.constant 0 : index
    %c0_640 = arith.constant 0 : index
    %1141 = vector.load %arg8[%c0_639, %c0_640] : memref<9x256xf32, #tpu.memory_space<vmem>>, vector<1x256xf32>
    %1142 = vector.broadcast %1141 : vector<1x256xf32> to vector<4x256xf32>
    %1143 = arith.mulf %1140, %1142 : vector<4x256xf32>
    %c16_i32_641 = arith.constant 16 : i32
    %1144 = tpu.dynamic_rotate %1139 by %c16_i32_641 dim 1 : vector<4x256xf32>, i32 -> vector<4x256xf32>
    %c1_642 = arith.constant 1 : index
    %c0_643 = arith.constant 0 : index
    %1145 = vector.load %arg8[%c1_642, %c0_643] : memref<9x256xf32, #tpu.memory_space<vmem>>, vector<1x256xf32>
    %1146 = vector.broadcast %1145 : vector<1x256xf32> to vector<4x256xf32>
    %1147 = arith.mulf %1144, %1146 : vector<4x256xf32>
    %c15_i32_644 = arith.constant 15 : i32
    %1148 = tpu.dynamic_rotate %1139 by %c15_i32_644 dim 1 : vector<4x256xf32>, i32 -> vector<4x256xf32>
    %c2_645 = arith.constant 2 : index
    %c0_646 = arith.constant 0 : index
    %1149 = vector.load %arg8[%c2_645, %c0_646] : memref<9x256xf32, #tpu.memory_space<vmem>>, vector<1x256xf32>
    %1150 = vector.broadcast %1149 : vector<1x256xf32> to vector<4x256xf32>
    %1151 = arith.mulf %1148, %1150 : vector<4x256xf32>
    %c1_i32_647 = arith.constant 1 : i32
    %1152 = tpu.dynamic_rotate %1139 by %c1_i32_647 dim 1 : vector<4x256xf32>, i32 -> vector<4x256xf32>
    %c3_648 = arith.constant 3 : index
    %c0_649 = arith.constant 0 : index
    %1153 = vector.load %arg8[%c3_648, %c0_649] : memref<9x256xf32, #tpu.memory_space<vmem>>, vector<1x256xf32>
    %1154 = vector.broadcast %1153 : vector<1x256xf32> to vector<4x256xf32>
    %1155 = arith.mulf %1152, %1154 : vector<4x256xf32>
    %c255_i32_650 = arith.constant 255 : i32
    %1156 = tpu.dynamic_rotate %1139 by %c255_i32_650 dim 1 : vector<4x256xf32>, i32 -> vector<4x256xf32>
    %c5_651 = arith.constant 5 : index
    %c0_652 = arith.constant 0 : index
    %1157 = vector.load %arg8[%c5_651, %c0_652] : memref<9x256xf32, #tpu.memory_space<vmem>>, vector<1x256xf32>
    %1158 = vector.broadcast %1157 : vector<1x256xf32> to vector<4x256xf32>
    %1159 = arith.mulf %1156, %1158 : vector<4x256xf32>
    %c241_i32_653 = arith.constant 241 : i32
    %1160 = tpu.dynamic_rotate %1139 by %c241_i32_653 dim 1 : vector<4x256xf32>, i32 -> vector<4x256xf32>
    %c6_654 = arith.constant 6 : index
    %c0_655 = arith.constant 0 : index
    %1161 = vector.load %arg8[%c6_654, %c0_655] : memref<9x256xf32, #tpu.memory_space<vmem>>, vector<1x256xf32>
    %1162 = vector.broadcast %1161 : vector<1x256xf32> to vector<4x256xf32>
    %1163 = arith.mulf %1160, %1162 : vector<4x256xf32>
    %c240_i32_656 = arith.constant 240 : i32
    %1164 = tpu.dynamic_rotate %1139 by %c240_i32_656 dim 1 : vector<4x256xf32>, i32 -> vector<4x256xf32>
    %c7_657 = arith.constant 7 : index
    %c0_658 = arith.constant 0 : index
    %1165 = vector.load %arg8[%c7_657, %c0_658] : memref<9x256xf32, #tpu.memory_space<vmem>>, vector<1x256xf32>
    %1166 = vector.broadcast %1165 : vector<1x256xf32> to vector<4x256xf32>
    %1167 = arith.mulf %1164, %1166 : vector<4x256xf32>
    %c239_i32_659 = arith.constant 239 : i32
    %1168 = tpu.dynamic_rotate %1139 by %c239_i32_659 dim 1 : vector<4x256xf32>, i32 -> vector<4x256xf32>
    %c8_660 = arith.constant 8 : index
    %c0_661 = arith.constant 0 : index
    %1169 = vector.load %arg8[%c8_660, %c0_661] : memref<9x256xf32, #tpu.memory_space<vmem>>, vector<1x256xf32>
    %1170 = vector.broadcast %1169 : vector<1x256xf32> to vector<4x256xf32>
    %1171 = arith.mulf %1168, %1170 : vector<4x256xf32>
    %1172 = tpu.concatenate %1143, %1147, %1151, %1155, %1139, %1159, %1163, %1167, %1171 in 0 : vector<4x256xf32>, vector<4x256xf32>, vector<4x256xf32>, vector<4x256xf32>, vector<4x256xf32>, vector<4x256xf32>, vector<4x256xf32>, vector<4x256xf32>, vector<4x256xf32> -> vector<36x256xf32>
    %1173 = arith.truncf %1172 : vector<36x256xf32> to vector<36x256xbf16>
    %c17 = arith.constant 17 : index
    %c0_662 = arith.constant 0 : index
    %c0_663 = arith.constant 0 : index
    %1174 = vector.load %arg10[%c17, %c0_662, %c0_663] : memref<18x36x256xbf16, #tpu.memory_space<vmem>>, vector<1x36x256xbf16>
    %1175 = vector.shape_cast %1174 : vector<1x36x256xbf16> to vector<36x256xbf16>
    %1176 = vector.shape_cast %1173 : vector<36x256xbf16> to vector<1x36x256xbf16>
    tpu.vector_store %arg10[%c17, %c0_662, %c0_663], %1176 {strides = array<i32>} : memref<18x36x256xbf16, #tpu.memory_space<vmem>>, vector<1x36x256xbf16>,
    %c0_664 = arith.constant 0 : index
    %c0_665 = arith.constant 0 : index
    %1177 = vector.load %arg7[%c0_664, %c0_665] : memref<8x1xf32, #tpu.memory_space<vmem>>, vector<8x1xf32>
    %1178 = vector.shape_cast %1177 : vector<8x1xf32> to vector<8x1xf32>
    %1179 = vector.broadcast %1178 : vector<8x1xf32> to vector<8x256xf32>
    %c0_666 = arith.constant 0 : index
    %c0_667 = arith.constant 0 : index
    %c0_668 = arith.constant 0 : index
    %1180 = vector.load %arg6[%c0_666, %c0_667, %c0_668] : memref<3x8x36xbf16, #tpu.memory_space<vmem>>, vector<1x8x36xbf16>
    %1181 = vector.shape_cast %1180 : vector<1x8x36xbf16> to vector<8x36xbf16>
    %c0_669 = arith.constant 0 : index
    %c0_670 = arith.constant 0 : index
    %c0_671 = arith.constant 0 : index
    %1182 = vector.load %arg10[%c0_669, %c0_670, %c0_671] : memref<18x36x256xbf16, #tpu.memory_space<vmem>>, vector<1x36x256xbf16>
    %1183 = vector.shape_cast %1182 : vector<1x36x256xbf16> to vector<36x256xbf16>
    %cst_672 = arith.constant dense<0.000000e+00> : vector<8x256xf32>
    %1184 = tpu.matmul %1181, %1183, %cst_672 {dimension_numbers = #tpu.dot_dimension_numbers<[1], [0], [0], [1], [0, 0, 1, 1], [], []>} : vector<8x36xbf16>, vector<36x256xbf16>, vector<8x256xf32> -> vector<8x256xf32>
    %1185 = arith.addf %1179, %1184 : vector<8x256xf32>
    %c1_673 = arith.constant 1 : index
    %c0_674 = arith.constant 0 : index
    %c0_675 = arith.constant 0 : index
    %1186 = vector.load %arg6[%c1_673, %c0_674, %c0_675] : memref<3x8x36xbf16, #tpu.memory_space<vmem>>, vector<1x8x36xbf16>
    %1187 = vector.shape_cast %1186 : vector<1x8x36xbf16> to vector<8x36xbf16>
    %c1_676 = arith.constant 1 : index
    %c0_677 = arith.constant 0 : index
    %c0_678 = arith.constant 0 : index
    %1188 = vector.load %arg10[%c1_676, %c0_677, %c0_678] : memref<18x36x256xbf16, #tpu.memory_space<vmem>>, vector<1x36x256xbf16>
    %1189 = vector.shape_cast %1188 : vector<1x36x256xbf16> to vector<36x256xbf16>
    %cst_679 = arith.constant dense<0.000000e+00> : vector<8x256xf32>
    %1190 = tpu.matmul %1187, %1189, %cst_679 {dimension_numbers = #tpu.dot_dimension_numbers<[1], [0], [0], [1], [0, 0, 1, 1], [], []>} : vector<8x36xbf16>, vector<36x256xbf16>, vector<8x256xf32> -> vector<8x256xf32>
    %1191 = arith.addf %1185, %1190 : vector<8x256xf32>
    %c2_680 = arith.constant 2 : index
    %c0_681 = arith.constant 0 : index
    %c0_682 = arith.constant 0 : index
    %1192 = vector.load %arg6[%c2_680, %c0_681, %c0_682] : memref<3x8x36xbf16, #tpu.memory_space<vmem>>, vector<1x8x36xbf16>
    %1193 = vector.shape_cast %1192 : vector<1x8x36xbf16> to vector<8x36xbf16>
    %c2_683 = arith.constant 2 : index
    %c0_684 = arith.constant 0 : index
    %c0_685 = arith.constant 0 : index
    %1194 = vector.load %arg10[%c2_683, %c0_684, %c0_685] : memref<18x36x256xbf16, #tpu.memory_space<vmem>>, vector<1x36x256xbf16>
    %1195 = vector.shape_cast %1194 : vector<1x36x256xbf16> to vector<36x256xbf16>
    %cst_686 = arith.constant dense<0.000000e+00> : vector<8x256xf32>
    %1196 = tpu.matmul %1193, %1195, %cst_686 {dimension_numbers = #tpu.dot_dimension_numbers<[1], [0], [0], [1], [0, 0, 1, 1], [], []>} : vector<8x36xbf16>, vector<36x256xbf16>, vector<8x256xf32> -> vector<8x256xf32>
    %1197 = arith.addf %1191, %1196 : vector<8x256xf32>
    %cst_687 = arith.constant 0.000000e+00 : f32
    %1198 = vector.broadcast %cst_687 : f32 to vector<8x256xf32>
    %1199 = arith.maximumf %1197, %1198 : vector<8x256xf32>
    %c0_688 = arith.constant 0 : index
    %c0_689 = arith.constant 0 : index
    %c0_690 = arith.constant 0 : index
    %c0_691 = arith.constant 0 : index
    %1200 = vector.load %arg9[%c0_688, %c0_689, %c0_690, %c0_691] : memref<1x8x16x256xf32, #tpu.memory_space<vmem>>, vector<1x8x1x256xf32>
    %1201 = vector.shape_cast %1200 : vector<1x8x1x256xf32> to vector<8x256xf32>
    %1202 = vector.shape_cast %1199 : vector<8x256xf32> to vector<1x8x1x256xf32>
    tpu.vector_store %arg9[%c0_688, %c0_689, %c0_690, %c0_691], %1202 {strides = array<i32>} : memref<1x8x16x256xf32, #tpu.memory_space<vmem>>, vector<1x8x1x256xf32>,
    %c0_692 = arith.constant 0 : index
    %c0_693 = arith.constant 0 : index
    %c0_694 = arith.constant 0 : index
    %1203 = vector.load %arg6[%c0_692, %c0_693, %c0_694] : memref<3x8x36xbf16, #tpu.memory_space<vmem>>, vector<1x8x36xbf16>
    %1204 = vector.shape_cast %1203 : vector<1x8x36xbf16> to vector<8x36xbf16>
    %c1_695 = arith.constant 1 : index
    %c0_696 = arith.constant 0 : index
    %c0_697 = arith.constant 0 : index
    %1205 = vector.load %arg10[%c1_695, %c0_696, %c0_697] : memref<18x36x256xbf16, #tpu.memory_space<vmem>>, vector<1x36x256xbf16>
    %1206 = vector.shape_cast %1205 : vector<1x36x256xbf16> to vector<36x256xbf16>
    %cst_698 = arith.constant dense<0.000000e+00> : vector<8x256xf32>
    %1207 = tpu.matmul %1204, %1206, %cst_698 {dimension_numbers = #tpu.dot_dimension_numbers<[1], [0], [0], [1], [0, 0, 1, 1], [], []>} : vector<8x36xbf16>, vector<36x256xbf16>, vector<8x256xf32> -> vector<8x256xf32>
    %1208 = arith.addf %1179, %1207 : vector<8x256xf32>
    %c1_699 = arith.constant 1 : index
    %c0_700 = arith.constant 0 : index
    %c0_701 = arith.constant 0 : index
    %1209 = vector.load %arg6[%c1_699, %c0_700, %c0_701] : memref<3x8x36xbf16, #tpu.memory_space<vmem>>, vector<1x8x36xbf16>
    %1210 = vector.shape_cast %1209 : vector<1x8x36xbf16> to vector<8x36xbf16>
    %c2_702 = arith.constant 2 : index
    %c0_703 = arith.constant 0 : index
    %c0_704 = arith.constant 0 : index
    %1211 = vector.load %arg10[%c2_702, %c0_703, %c0_704] : memref<18x36x256xbf16, #tpu.memory_space<vmem>>, vector<1x36x256xbf16>
    %1212 = vector.shape_cast %1211 : vector<1x36x256xbf16> to vector<36x256xbf16>
    %cst_705 = arith.constant dense<0.000000e+00> : vector<8x256xf32>
    %1213 = tpu.matmul %1210, %1212, %cst_705 {dimension_numbers = #tpu.dot_dimension_numbers<[1], [0], [0], [1], [0, 0, 1, 1], [], []>} : vector<8x36xbf16>, vector<36x256xbf16>, vector<8x256xf32> -> vector<8x256xf32>
    %1214 = arith.addf %1208, %1213 : vector<8x256xf32>
    %c2_706 = arith.constant 2 : index
    %c0_707 = arith.constant 0 : index
    %c0_708 = arith.constant 0 : index
    %1215 = vector.load %arg6[%c2_706, %c0_707, %c0_708] : memref<3x8x36xbf16, #tpu.memory_space<vmem>>, vector<1x8x36xbf16>
    %1216 = vector.shape_cast %1215 : vector<1x8x36xbf16> to vector<8x36xbf16>
    %c3_709 = arith.constant 3 : index
    %c0_710 = arith.constant 0 : index
    %c0_711 = arith.constant 0 : index
    %1217 = vector.load %arg10[%c3_709, %c0_710, %c0_711] : memref<18x36x256xbf16, #tpu.memory_space<vmem>>, vector<1x36x256xbf16>
    %1218 = vector.shape_cast %1217 : vector<1x36x256xbf16> to vector<36x256xbf16>
    %cst_712 = arith.constant dense<0.000000e+00> : vector<8x256xf32>
    %1219 = tpu.matmul %1216, %1218, %cst_712 {dimension_numbers = #tpu.dot_dimension_numbers<[1], [0], [0], [1], [0, 0, 1, 1], [], []>} : vector<8x36xbf16>, vector<36x256xbf16>, vector<8x256xf32> -> vector<8x256xf32>
    %1220 = arith.addf %1214, %1219 : vector<8x256xf32>
    %cst_713 = arith.constant 0.000000e+00 : f32
    %1221 = vector.broadcast %cst_713 : f32 to vector<8x256xf32>
    %1222 = arith.maximumf %1220, %1221 : vector<8x256xf32>
    %c0_714 = arith.constant 0 : index
    %c0_715 = arith.constant 0 : index
    %c1_716 = arith.constant 1 : index
    %c0_717 = arith.constant 0 : index
    %1223 = vector.load %arg9[%c0_714, %c0_715, %c1_716, %c0_717] : memref<1x8x16x256xf32, #tpu.memory_space<vmem>>, vector<1x8x1x256xf32>
    %1224 = vector.shape_cast %1223 : vector<1x8x1x256xf32> to vector<8x256xf32>
    %1225 = vector.shape_cast %1222 : vector<8x256xf32> to vector<1x8x1x256xf32>
    tpu.vector_store %arg9[%c0_714, %c0_715, %c1_716, %c0_717], %1225 {strides = array<i32>} : memref<1x8x16x256xf32, #tpu.memory_space<vmem>>, vector<1x8x1x256xf32>,
    %c0_718 = arith.constant 0 : index
    %c0_719 = arith.constant 0 : index
    %c0_720 = arith.constant 0 : index
    %1226 = vector.load %arg6[%c0_718, %c0_719, %c0_720] : memref<3x8x36xbf16, #tpu.memory_space<vmem>>, vector<1x8x36xbf16>
    %1227 = vector.shape_cast %1226 : vector<1x8x36xbf16> to vector<8x36xbf16>
    %c2_721 = arith.constant 2 : index
    %c0_722 = arith.constant 0 : index
    %c0_723 = arith.constant 0 : index
    %1228 = vector.load %arg10[%c2_721, %c0_722, %c0_723] : memref<18x36x256xbf16, #tpu.memory_space<vmem>>, vector<1x36x256xbf16>
    %1229 = vector.shape_cast %1228 : vector<1x36x256xbf16> to vector<36x256xbf16>
    %cst_724 = arith.constant dense<0.000000e+00> : vector<8x256xf32>
    %1230 = tpu.matmul %1227, %1229, %cst_724 {dimension_numbers = #tpu.dot_dimension_numbers<[1], [0], [0], [1], [0, 0, 1, 1], [], []>} : vector<8x36xbf16>, vector<36x256xbf16>, vector<8x256xf32> -> vector<8x256xf32>
    %1231 = arith.addf %1179, %1230 : vector<8x256xf32>
    %c1_725 = arith.constant 1 : index
    %c0_726 = arith.constant 0 : index
    %c0_727 = arith.constant 0 : index
    %1232 = vector.load %arg6[%c1_725, %c0_726, %c0_727] : memref<3x8x36xbf16, #tpu.memory_space<vmem>>, vector<1x8x36xbf16>
    %1233 = vector.shape_cast %1232 : vector<1x8x36xbf16> to vector<8x36xbf16>
    %c3_728 = arith.constant 3 : index
    %c0_729 = arith.constant 0 : index
    %c0_730 = arith.constant 0 : index
    %1234 = vector.load %arg10[%c3_728, %c0_729, %c0_730] : memref<18x36x256xbf16, #tpu.memory_space<vmem>>, vector<1x36x256xbf16>
    %1235 = vector.shape_cast %1234 : vector<1x36x256xbf16> to vector<36x256xbf16>
    %cst_731 = arith.constant dense<0.000000e+00> : vector<8x256xf32>
    %1236 = tpu.matmul %1233, %1235, %cst_731 {dimension_numbers = #tpu.dot_dimension_numbers<[1], [0], [0], [1], [0, 0, 1, 1], [], []>} : vector<8x36xbf16>, vector<36x256xbf16>, vector<8x256xf32> -> vector<8x256xf32>
    %1237 = arith.addf %1231, %1236 : vector<8x256xf32>
    %c2_732 = arith.constant 2 : index
    %c0_733 = arith.constant 0 : index
    %c0_734 = arith.constant 0 : index
    %1238 = vector.load %arg6[%c2_732, %c0_733, %c0_734] : memref<3x8x36xbf16, #tpu.memory_space<vmem>>, vector<1x8x36xbf16>
    %1239 = vector.shape_cast %1238 : vector<1x8x36xbf16> to vector<8x36xbf16>
    %c4_735 = arith.constant 4 : index
    %c0_736 = arith.constant 0 : index
    %c0_737 = arith.constant 0 : index
    %1240 = vector.load %arg10[%c4_735, %c0_736, %c0_737] : memref<18x36x256xbf16, #tpu.memory_space<vmem>>, vector<1x36x256xbf16>
    %1241 = vector.shape_cast %1240 : vector<1x36x256xbf16> to vector<36x256xbf16>
    %cst_738 = arith.constant dense<0.000000e+00> : vector<8x256xf32>
    %1242 = tpu.matmul %1239, %1241, %cst_738 {dimension_numbers = #tpu.dot_dimension_numbers<[1], [0], [0], [1], [0, 0, 1, 1], [], []>} : vector<8x36xbf16>, vector<36x256xbf16>, vector<8x256xf32> -> vector<8x256xf32>
    %1243 = arith.addf %1237, %1242 : vector<8x256xf32>
    %cst_739 = arith.constant 0.000000e+00 : f32
    %1244 = vector.broadcast %cst_739 : f32 to vector<8x256xf32>
    %1245 = arith.maximumf %1243, %1244 : vector<8x256xf32>
    %c0_740 = arith.constant 0 : index
    %c0_741 = arith.constant 0 : index
    %c2_742 = arith.constant 2 : index
    %c0_743 = arith.constant 0 : index
    %1246 = vector.load %arg9[%c0_740, %c0_741, %c2_742, %c0_743] : memref<1x8x16x256xf32, #tpu.memory_space<vmem>>, vector<1x8x1x256xf32>
    %1247 = vector.shape_cast %1246 : vector<1x8x1x256xf32> to vector<8x256xf32>
    %1248 = vector.shape_cast %1245 : vector<8x256xf32> to vector<1x8x1x256xf32>
    tpu.vector_store %arg9[%c0_740, %c0_741, %c2_742, %c0_743], %1248 {strides = array<i32>} : memref<1x8x16x256xf32, #tpu.memory_space<vmem>>, vector<1x8x1x256xf32>,
    %c0_744 = arith.constant 0 : index
    %c0_745 = arith.constant 0 : index
    %c0_746 = arith.constant 0 : index
    %1249 = vector.load %arg6[%c0_744, %c0_745, %c0_746] : memref<3x8x36xbf16, #tpu.memory_space<vmem>>, vector<1x8x36xbf16>
    %1250 = vector.shape_cast %1249 : vector<1x8x36xbf16> to vector<8x36xbf16>
    %c3_747 = arith.constant 3 : index
    %c0_748 = arith.constant 0 : index
    %c0_749 = arith.constant 0 : index
    %1251 = vector.load %arg10[%c3_747, %c0_748, %c0_749] : memref<18x36x256xbf16, #tpu.memory_space<vmem>>, vector<1x36x256xbf16>
    %1252 = vector.shape_cast %1251 : vector<1x36x256xbf16> to vector<36x256xbf16>
    %cst_750 = arith.constant dense<0.000000e+00> : vector<8x256xf32>
    %1253 = tpu.matmul %1250, %1252, %cst_750 {dimension_numbers = #tpu.dot_dimension_numbers<[1], [0], [0], [1], [0, 0, 1, 1], [], []>} : vector<8x36xbf16>, vector<36x256xbf16>, vector<8x256xf32> -> vector<8x256xf32>
    %1254 = arith.addf %1179, %1253 : vector<8x256xf32>
    %c1_751 = arith.constant 1 : index
    %c0_752 = arith.constant 0 : index
    %c0_753 = arith.constant 0 : index
    %1255 = vector.load %arg6[%c1_751, %c0_752, %c0_753] : memref<3x8x36xbf16, #tpu.memory_space<vmem>>, vector<1x8x36xbf16>
    %1256 = vector.shape_cast %1255 : vector<1x8x36xbf16> to vector<8x36xbf16>
    %c4_754 = arith.constant 4 : index
    %c0_755 = arith.constant 0 : index
    %c0_756 = arith.constant 0 : index
    %1257 = vector.load %arg10[%c4_754, %c0_755, %c0_756] : memref<18x36x256xbf16, #tpu.memory_space<vmem>>, vector<1x36x256xbf16>
    %1258 = vector.shape_cast %1257 : vector<1x36x256xbf16> to vector<36x256xbf16>
    %cst_757 = arith.constant dense<0.000000e+00> : vector<8x256xf32>
    %1259 = tpu.matmul %1256, %1258, %cst_757 {dimension_numbers = #tpu.dot_dimension_numbers<[1], [0], [0], [1], [0, 0, 1, 1], [], []>} : vector<8x36xbf16>, vector<36x256xbf16>, vector<8x256xf32> -> vector<8x256xf32>
    %1260 = arith.addf %1254, %1259 : vector<8x256xf32>
    %c2_758 = arith.constant 2 : index
    %c0_759 = arith.constant 0 : index
    %c0_760 = arith.constant 0 : index
    %1261 = vector.load %arg6[%c2_758, %c0_759, %c0_760] : memref<3x8x36xbf16, #tpu.memory_space<vmem>>, vector<1x8x36xbf16>
    %1262 = vector.shape_cast %1261 : vector<1x8x36xbf16> to vector<8x36xbf16>
    %c5_761 = arith.constant 5 : index
    %c0_762 = arith.constant 0 : index
    %c0_763 = arith.constant 0 : index
    %1263 = vector.load %arg10[%c5_761, %c0_762, %c0_763] : memref<18x36x256xbf16, #tpu.memory_space<vmem>>, vector<1x36x256xbf16>
    %1264 = vector.shape_cast %1263 : vector<1x36x256xbf16> to vector<36x256xbf16>
    %cst_764 = arith.constant dense<0.000000e+00> : vector<8x256xf32>
    %1265 = tpu.matmul %1262, %1264, %cst_764 {dimension_numbers = #tpu.dot_dimension_numbers<[1], [0], [0], [1], [0, 0, 1, 1], [], []>} : vector<8x36xbf16>, vector<36x256xbf16>, vector<8x256xf32> -> vector<8x256xf32>
    %1266 = arith.addf %1260, %1265 : vector<8x256xf32>
    %cst_765 = arith.constant 0.000000e+00 : f32
    %1267 = vector.broadcast %cst_765 : f32 to vector<8x256xf32>
    %1268 = arith.maximumf %1266, %1267 : vector<8x256xf32>
    %c0_766 = arith.constant 0 : index
    %c0_767 = arith.constant 0 : index
    %c3_768 = arith.constant 3 : index
    %c0_769 = arith.constant 0 : index
    %1269 = vector.load %arg9[%c0_766, %c0_767, %c3_768, %c0_769] : memref<1x8x16x256xf32, #tpu.memory_space<vmem>>, vector<1x8x1x256xf32>
    %1270 = vector.shape_cast %1269 : vector<1x8x1x256xf32> to vector<8x256xf32>
    %1271 = vector.shape_cast %1268 : vector<8x256xf32> to vector<1x8x1x256xf32>
    tpu.vector_store %arg9[%c0_766, %c0_767, %c3_768, %c0_769], %1271 {strides = array<i32>} : memref<1x8x16x256xf32, #tpu.memory_space<vmem>>, vector<1x8x1x256xf32>,
    %c0_770 = arith.constant 0 : index
    %c0_771 = arith.constant 0 : index
    %c0_772 = arith.constant 0 : index
    %1272 = vector.load %arg6[%c0_770, %c0_771, %c0_772] : memref<3x8x36xbf16, #tpu.memory_space<vmem>>, vector<1x8x36xbf16>
    %1273 = vector.shape_cast %1272 : vector<1x8x36xbf16> to vector<8x36xbf16>
    %c4_773 = arith.constant 4 : index
    %c0_774 = arith.constant 0 : index
    %c0_775 = arith.constant 0 : index
    %1274 = vector.load %arg10[%c4_773, %c0_774, %c0_775] : memref<18x36x256xbf16, #tpu.memory_space<vmem>>, vector<1x36x256xbf16>
    %1275 = vector.shape_cast %1274 : vector<1x36x256xbf16> to vector<36x256xbf16>
    %cst_776 = arith.constant dense<0.000000e+00> : vector<8x256xf32>
    %1276 = tpu.matmul %1273, %1275, %cst_776 {dimension_numbers = #tpu.dot_dimension_numbers<[1], [0], [0], [1], [0, 0, 1, 1], [], []>} : vector<8x36xbf16>, vector<36x256xbf16>, vector<8x256xf32> -> vector<8x256xf32>
    %1277 = arith.addf %1179, %1276 : vector<8x256xf32>
    %c1_777 = arith.constant 1 : index
    %c0_778 = arith.constant 0 : index
    %c0_779 = arith.constant 0 : index
    %1278 = vector.load %arg6[%c1_777, %c0_778, %c0_779] : memref<3x8x36xbf16, #tpu.memory_space<vmem>>, vector<1x8x36xbf16>
    %1279 = vector.shape_cast %1278 : vector<1x8x36xbf16> to vector<8x36xbf16>
    %c5_780 = arith.constant 5 : index
    %c0_781 = arith.constant 0 : index
    %c0_782 = arith.constant 0 : index
    %1280 = vector.load %arg10[%c5_780, %c0_781, %c0_782] : memref<18x36x256xbf16, #tpu.memory_space<vmem>>, vector<1x36x256xbf16>
    %1281 = vector.shape_cast %1280 : vector<1x36x256xbf16> to vector<36x256xbf16>
    %cst_783 = arith.constant dense<0.000000e+00> : vector<8x256xf32>
    %1282 = tpu.matmul %1279, %1281, %cst_783 {dimension_numbers = #tpu.dot_dimension_numbers<[1], [0], [0], [1], [0, 0, 1, 1], [], []>} : vector<8x36xbf16>, vector<36x256xbf16>, vector<8x256xf32> -> vector<8x256xf32>
    %1283 = arith.addf %1277, %1282 : vector<8x256xf32>
    %c2_784 = arith.constant 2 : index
    %c0_785 = arith.constant 0 : index
    %c0_786 = arith.constant 0 : index
    %1284 = vector.load %arg6[%c2_784, %c0_785, %c0_786] : memref<3x8x36xbf16, #tpu.memory_space<vmem>>, vector<1x8x36xbf16>
    %1285 = vector.shape_cast %1284 : vector<1x8x36xbf16> to vector<8x36xbf16>
    %c6_787 = arith.constant 6 : index
    %c0_788 = arith.constant 0 : index
    %c0_789 = arith.constant 0 : index
    %1286 = vector.load %arg10[%c6_787, %c0_788, %c0_789] : memref<18x36x256xbf16, #tpu.memory_space<vmem>>, vector<1x36x256xbf16>
    %1287 = vector.shape_cast %1286 : vector<1x36x256xbf16> to vector<36x256xbf16>
    %cst_790 = arith.constant dense<0.000000e+00> : vector<8x256xf32>
    %1288 = tpu.matmul %1285, %1287, %cst_790 {dimension_numbers = #tpu.dot_dimension_numbers<[1], [0], [0], [1], [0, 0, 1, 1], [], []>} : vector<8x36xbf16>, vector<36x256xbf16>, vector<8x256xf32> -> vector<8x256xf32>
    %1289 = arith.addf %1283, %1288 : vector<8x256xf32>
    %cst_791 = arith.constant 0.000000e+00 : f32
    %1290 = vector.broadcast %cst_791 : f32 to vector<8x256xf32>
    %1291 = arith.maximumf %1289, %1290 : vector<8x256xf32>
    %c0_792 = arith.constant 0 : index
    %c0_793 = arith.constant 0 : index
    %c4_794 = arith.constant 4 : index
    %c0_795 = arith.constant 0 : index
    %1292 = vector.load %arg9[%c0_792, %c0_793, %c4_794, %c0_795] : memref<1x8x16x256xf32, #tpu.memory_space<vmem>>, vector<1x8x1x256xf32>
    %1293 = vector.shape_cast %1292 : vector<1x8x1x256xf32> to vector<8x256xf32>
    %1294 = vector.shape_cast %1291 : vector<8x256xf32> to vector<1x8x1x256xf32>
    tpu.vector_store %arg9[%c0_792, %c0_793, %c4_794, %c0_795], %1294 {strides = array<i32>} : memref<1x8x16x256xf32, #tpu.memory_space<vmem>>, vector<1x8x1x256xf32>,
    %c0_796 = arith.constant 0 : index
    %c0_797 = arith.constant 0 : index
    %c0_798 = arith.constant 0 : index
    %1295 = vector.load %arg6[%c0_796, %c0_797, %c0_798] : memref<3x8x36xbf16, #tpu.memory_space<vmem>>, vector<1x8x36xbf16>
    %1296 = vector.shape_cast %1295 : vector<1x8x36xbf16> to vector<8x36xbf16>
    %c5_799 = arith.constant 5 : index
    %c0_800 = arith.constant 0 : index
    %c0_801 = arith.constant 0 : index
    %1297 = vector.load %arg10[%c5_799, %c0_800, %c0_801] : memref<18x36x256xbf16, #tpu.memory_space<vmem>>, vector<1x36x256xbf16>
    %1298 = vector.shape_cast %1297 : vector<1x36x256xbf16> to vector<36x256xbf16>
    %cst_802 = arith.constant dense<0.000000e+00> : vector<8x256xf32>
    %1299 = tpu.matmul %1296, %1298, %cst_802 {dimension_numbers = #tpu.dot_dimension_numbers<[1], [0], [0], [1], [0, 0, 1, 1], [], []>} : vector<8x36xbf16>, vector<36x256xbf16>, vector<8x256xf32> -> vector<8x256xf32>
    %1300 = arith.addf %1179, %1299 : vector<8x256xf32>
    %c1_803 = arith.constant 1 : index
    %c0_804 = arith.constant 0 : index
    %c0_805 = arith.constant 0 : index
    %1301 = vector.load %arg6[%c1_803, %c0_804, %c0_805] : memref<3x8x36xbf16, #tpu.memory_space<vmem>>, vector<1x8x36xbf16>
    %1302 = vector.shape_cast %1301 : vector<1x8x36xbf16> to vector<8x36xbf16>
    %c6_806 = arith.constant 6 : index
    %c0_807 = arith.constant 0 : index
    %c0_808 = arith.constant 0 : index
    %1303 = vector.load %arg10[%c6_806, %c0_807, %c0_808] : memref<18x36x256xbf16, #tpu.memory_space<vmem>>, vector<1x36x256xbf16>
    %1304 = vector.shape_cast %1303 : vector<1x36x256xbf16> to vector<36x256xbf16>
    %cst_809 = arith.constant dense<0.000000e+00> : vector<8x256xf32>
    %1305 = tpu.matmul %1302, %1304, %cst_809 {dimension_numbers = #tpu.dot_dimension_numbers<[1], [0], [0], [1], [0, 0, 1, 1], [], []>} : vector<8x36xbf16>, vector<36x256xbf16>, vector<8x256xf32> -> vector<8x256xf32>
    %1306 = arith.addf %1300, %1305 : vector<8x256xf32>
    %c2_810 = arith.constant 2 : index
    %c0_811 = arith.constant 0 : index
    %c0_812 = arith.constant 0 : index
    %1307 = vector.load %arg6[%c2_810, %c0_811, %c0_812] : memref<3x8x36xbf16, #tpu.memory_space<vmem>>, vector<1x8x36xbf16>
    %1308 = vector.shape_cast %1307 : vector<1x8x36xbf16> to vector<8x36xbf16>
    %c7_813 = arith.constant 7 : index
    %c0_814 = arith.constant 0 : index
    %c0_815 = arith.constant 0 : index
    %1309 = vector.load %arg10[%c7_813, %c0_814, %c0_815] : memref<18x36x256xbf16, #tpu.memory_space<vmem>>, vector<1x36x256xbf16>
    %1310 = vector.shape_cast %1309 : vector<1x36x256xbf16> to vector<36x256xbf16>
    %cst_816 = arith.constant dense<0.000000e+00> : vector<8x256xf32>
    %1311 = tpu.matmul %1308, %1310, %cst_816 {dimension_numbers = #tpu.dot_dimension_numbers<[1], [0], [0], [1], [0, 0, 1, 1], [], []>} : vector<8x36xbf16>, vector<36x256xbf16>, vector<8x256xf32> -> vector<8x256xf32>
    %1312 = arith.addf %1306, %1311 : vector<8x256xf32>
    %cst_817 = arith.constant 0.000000e+00 : f32
    %1313 = vector.broadcast %cst_817 : f32 to vector<8x256xf32>
    %1314 = arith.maximumf %1312, %1313 : vector<8x256xf32>
    %c0_818 = arith.constant 0 : index
    %c0_819 = arith.constant 0 : index
    %c5_820 = arith.constant 5 : index
    %c0_821 = arith.constant 0 : index
    %1315 = vector.load %arg9[%c0_818, %c0_819, %c5_820, %c0_821] : memref<1x8x16x256xf32, #tpu.memory_space<vmem>>, vector<1x8x1x256xf32>
    %1316 = vector.shape_cast %1315 : vector<1x8x1x256xf32> to vector<8x256xf32>
    %1317 = vector.shape_cast %1314 : vector<8x256xf32> to vector<1x8x1x256xf32>
    tpu.vector_store %arg9[%c0_818, %c0_819, %c5_820, %c0_821], %1317 {strides = array<i32>} : memref<1x8x16x256xf32, #tpu.memory_space<vmem>>, vector<1x8x1x256xf32>,
    %c0_822 = arith.constant 0 : index
    %c0_823 = arith.constant 0 : index
    %c0_824 = arith.constant 0 : index
    %1318 = vector.load %arg6[%c0_822, %c0_823, %c0_824] : memref<3x8x36xbf16, #tpu.memory_space<vmem>>, vector<1x8x36xbf16>
    %1319 = vector.shape_cast %1318 : vector<1x8x36xbf16> to vector<8x36xbf16>
    %c6_825 = arith.constant 6 : index
    %c0_826 = arith.constant 0 : index
    %c0_827 = arith.constant 0 : index
    %1320 = vector.load %arg10[%c6_825, %c0_826, %c0_827] : memref<18x36x256xbf16, #tpu.memory_space<vmem>>, vector<1x36x256xbf16>
    %1321 = vector.shape_cast %1320 : vector<1x36x256xbf16> to vector<36x256xbf16>
    %cst_828 = arith.constant dense<0.000000e+00> : vector<8x256xf32>
    %1322 = tpu.matmul %1319, %1321, %cst_828 {dimension_numbers = #tpu.dot_dimension_numbers<[1], [0], [0], [1], [0, 0, 1, 1], [], []>} : vector<8x36xbf16>, vector<36x256xbf16>, vector<8x256xf32> -> vector<8x256xf32>
    %1323 = arith.addf %1179, %1322 : vector<8x256xf32>
    %c1_829 = arith.constant 1 : index
    %c0_830 = arith.constant 0 : index
    %c0_831 = arith.constant 0 : index
    %1324 = vector.load %arg6[%c1_829, %c0_830, %c0_831] : memref<3x8x36xbf16, #tpu.memory_space<vmem>>, vector<1x8x36xbf16>
    %1325 = vector.shape_cast %1324 : vector<1x8x36xbf16> to vector<8x36xbf16>
    %c7_832 = arith.constant 7 : index
    %c0_833 = arith.constant 0 : index
    %c0_834 = arith.constant 0 : index
    %1326 = vector.load %arg10[%c7_832, %c0_833, %c0_834] : memref<18x36x256xbf16, #tpu.memory_space<vmem>>, vector<1x36x256xbf16>
    %1327 = vector.shape_cast %1326 : vector<1x36x256xbf16> to vector<36x256xbf16>
    %cst_835 = arith.constant dense<0.000000e+00> : vector<8x256xf32>
    %1328 = tpu.matmul %1325, %1327, %cst_835 {dimension_numbers = #tpu.dot_dimension_numbers<[1], [0], [0], [1], [0, 0, 1, 1], [], []>} : vector<8x36xbf16>, vector<36x256xbf16>, vector<8x256xf32> -> vector<8x256xf32>
    %1329 = arith.addf %1323, %1328 : vector<8x256xf32>
    %c2_836 = arith.constant 2 : index
    %c0_837 = arith.constant 0 : index
    %c0_838 = arith.constant 0 : index
    %1330 = vector.load %arg6[%c2_836, %c0_837, %c0_838] : memref<3x8x36xbf16, #tpu.memory_space<vmem>>, vector<1x8x36xbf16>
    %1331 = vector.shape_cast %1330 : vector<1x8x36xbf16> to vector<8x36xbf16>
    %c8_839 = arith.constant 8 : index
    %c0_840 = arith.constant 0 : index
    %c0_841 = arith.constant 0 : index
    %1332 = vector.load %arg10[%c8_839, %c0_840, %c0_841] : memref<18x36x256xbf16, #tpu.memory_space<vmem>>, vector<1x36x256xbf16>
    %1333 = vector.shape_cast %1332 : vector<1x36x256xbf16> to vector<36x256xbf16>
    %cst_842 = arith.constant dense<0.000000e+00> : vector<8x256xf32>
    %1334 = tpu.matmul %1331, %1333, %cst_842 {dimension_numbers = #tpu.dot_dimension_numbers<[1], [0], [0], [1], [0, 0, 1, 1], [], []>} : vector<8x36xbf16>, vector<36x256xbf16>, vector<8x256xf32> -> vector<8x256xf32>
    %1335 = arith.addf %1329, %1334 : vector<8x256xf32>
    %cst_843 = arith.constant 0.000000e+00 : f32
    %1336 = vector.broadcast %cst_843 : f32 to vector<8x256xf32>
    %1337 = arith.maximumf %1335, %1336 : vector<8x256xf32>
    %c0_844 = arith.constant 0 : index
    %c0_845 = arith.constant 0 : index
    %c6_846 = arith.constant 6 : index
    %c0_847 = arith.constant 0 : index
    %1338 = vector.load %arg9[%c0_844, %c0_845, %c6_846, %c0_847] : memref<1x8x16x256xf32, #tpu.memory_space<vmem>>, vector<1x8x1x256xf32>
    %1339 = vector.shape_cast %1338 : vector<1x8x1x256xf32> to vector<8x256xf32>
    %1340 = vector.shape_cast %1337 : vector<8x256xf32> to vector<1x8x1x256xf32>
    tpu.vector_store %arg9[%c0_844, %c0_845, %c6_846, %c0_847], %1340 {strides = array<i32>} : memref<1x8x16x256xf32, #tpu.memory_space<vmem>>, vector<1x8x1x256xf32>,
    %c0_848 = arith.constant 0 : index
    %c0_849 = arith.constant 0 : index
    %c0_850 = arith.constant 0 : index
    %1341 = vector.load %arg6[%c0_848, %c0_849, %c0_850] : memref<3x8x36xbf16, #tpu.memory_space<vmem>>, vector<1x8x36xbf16>
    %1342 = vector.shape_cast %1341 : vector<1x8x36xbf16> to vector<8x36xbf16>
    %c7_851 = arith.constant 7 : index
    %c0_852 = arith.constant 0 : index
    %c0_853 = arith.constant 0 : index
    %1343 = vector.load %arg10[%c7_851, %c0_852, %c0_853] : memref<18x36x256xbf16, #tpu.memory_space<vmem>>, vector<1x36x256xbf16>
    %1344 = vector.shape_cast %1343 : vector<1x36x256xbf16> to vector<36x256xbf16>
    %cst_854 = arith.constant dense<0.000000e+00> : vector<8x256xf32>
    %1345 = tpu.matmul %1342, %1344, %cst_854 {dimension_numbers = #tpu.dot_dimension_numbers<[1], [0], [0], [1], [0, 0, 1, 1], [], []>} : vector<8x36xbf16>, vector<36x256xbf16>, vector<8x256xf32> -> vector<8x256xf32>
    %1346 = arith.addf %1179, %1345 : vector<8x256xf32>
    %c1_855 = arith.constant 1 : index
    %c0_856 = arith.constant 0 : index
    %c0_857 = arith.constant 0 : index
    %1347 = vector.load %arg6[%c1_855, %c0_856, %c0_857] : memref<3x8x36xbf16, #tpu.memory_space<vmem>>, vector<1x8x36xbf16>
    %1348 = vector.shape_cast %1347 : vector<1x8x36xbf16> to vector<8x36xbf16>
    %c8_858 = arith.constant 8 : index
    %c0_859 = arith.constant 0 : index
    %c0_860 = arith.constant 0 : index
    %1349 = vector.load %arg10[%c8_858, %c0_859, %c0_860] : memref<18x36x256xbf16, #tpu.memory_space<vmem>>, vector<1x36x256xbf16>
    %1350 = vector.shape_cast %1349 : vector<1x36x256xbf16> to vector<36x256xbf16>
    %cst_861 = arith.constant dense<0.000000e+00> : vector<8x256xf32>
    %1351 = tpu.matmul %1348, %1350, %cst_861 {dimension_numbers = #tpu.dot_dimension_numbers<[1], [0], [0], [1], [0, 0, 1, 1], [], []>} : vector<8x36xbf16>, vector<36x256xbf16>, vector<8x256xf32> -> vector<8x256xf32>
    %1352 = arith.addf %1346, %1351 : vector<8x256xf32>
    %c2_862 = arith.constant 2 : index
    %c0_863 = arith.constant 0 : index
    %c0_864 = arith.constant 0 : index
    %1353 = vector.load %arg6[%c2_862, %c0_863, %c0_864] : memref<3x8x36xbf16, #tpu.memory_space<vmem>>, vector<1x8x36xbf16>
    %1354 = vector.shape_cast %1353 : vector<1x8x36xbf16> to vector<8x36xbf16>
    %c9_865 = arith.constant 9 : index
    %c0_866 = arith.constant 0 : index
    %c0_867 = arith.constant 0 : index
    %1355 = vector.load %arg10[%c9_865, %c0_866, %c0_867] : memref<18x36x256xbf16, #tpu.memory_space<vmem>>, vector<1x36x256xbf16>
    %1356 = vector.shape_cast %1355 : vector<1x36x256xbf16> to vector<36x256xbf16>
    %cst_868 = arith.constant dense<0.000000e+00> : vector<8x256xf32>
    %1357 = tpu.matmul %1354, %1356, %cst_868 {dimension_numbers = #tpu.dot_dimension_numbers<[1], [0], [0], [1], [0, 0, 1, 1], [], []>} : vector<8x36xbf16>, vector<36x256xbf16>, vector<8x256xf32> -> vector<8x256xf32>
    %1358 = arith.addf %1352, %1357 : vector<8x256xf32>
    %cst_869 = arith.constant 0.000000e+00 : f32
    %1359 = vector.broadcast %cst_869 : f32 to vector<8x256xf32>
    %1360 = arith.maximumf %1358, %1359 : vector<8x256xf32>
    %c0_870 = arith.constant 0 : index
    %c0_871 = arith.constant 0 : index
    %c7_872 = arith.constant 7 : index
    %c0_873 = arith.constant 0 : index
    %1361 = vector.load %arg9[%c0_870, %c0_871, %c7_872, %c0_873] : memref<1x8x16x256xf32, #tpu.memory_space<vmem>>, vector<1x8x1x256xf32>
    %1362 = vector.shape_cast %1361 : vector<1x8x1x256xf32> to vector<8x256xf32>
    %1363 = vector.shape_cast %1360 : vector<8x256xf32> to vector<1x8x1x256xf32>
    tpu.vector_store %arg9[%c0_870, %c0_871, %c7_872, %c0_873], %1363 {strides = array<i32>} : memref<1x8x16x256xf32, #tpu.memory_space<vmem>>, vector<1x8x1x256xf32>,
    %c0_874 = arith.constant 0 : index
    %c0_875 = arith.constant 0 : index
    %c0_876 = arith.constant 0 : index
    %1364 = vector.load %arg6[%c0_874, %c0_875, %c0_876] : memref<3x8x36xbf16, #tpu.memory_space<vmem>>, vector<1x8x36xbf16>
    %1365 = vector.shape_cast %1364 : vector<1x8x36xbf16> to vector<8x36xbf16>
    %c8_877 = arith.constant 8 : index
    %c0_878 = arith.constant 0 : index
    %c0_879 = arith.constant 0 : index
    %1366 = vector.load %arg10[%c8_877, %c0_878, %c0_879] : memref<18x36x256xbf16, #tpu.memory_space<vmem>>, vector<1x36x256xbf16>
    %1367 = vector.shape_cast %1366 : vector<1x36x256xbf16> to vector<36x256xbf16>
    %cst_880 = arith.constant dense<0.000000e+00> : vector<8x256xf32>
    %1368 = tpu.matmul %1365, %1367, %cst_880 {dimension_numbers = #tpu.dot_dimension_numbers<[1], [0], [0], [1], [0, 0, 1, 1], [], []>} : vector<8x36xbf16>, vector<36x256xbf16>, vector<8x256xf32> -> vector<8x256xf32>
    %1369 = arith.addf %1179, %1368 : vector<8x256xf32>
    %c1_881 = arith.constant 1 : index
    %c0_882 = arith.constant 0 : index
    %c0_883 = arith.constant 0 : index
    %1370 = vector.load %arg6[%c1_881, %c0_882, %c0_883] : memref<3x8x36xbf16, #tpu.memory_space<vmem>>, vector<1x8x36xbf16>
    %1371 = vector.shape_cast %1370 : vector<1x8x36xbf16> to vector<8x36xbf16>
    %c9_884 = arith.constant 9 : index
    %c0_885 = arith.constant 0 : index
    %c0_886 = arith.constant 0 : index
    %1372 = vector.load %arg10[%c9_884, %c0_885, %c0_886] : memref<18x36x256xbf16, #tpu.memory_space<vmem>>, vector<1x36x256xbf16>
    %1373 = vector.shape_cast %1372 : vector<1x36x256xbf16> to vector<36x256xbf16>
    %cst_887 = arith.constant dense<0.000000e+00> : vector<8x256xf32>
    %1374 = tpu.matmul %1371, %1373, %cst_887 {dimension_numbers = #tpu.dot_dimension_numbers<[1], [0], [0], [1], [0, 0, 1, 1], [], []>} : vector<8x36xbf16>, vector<36x256xbf16>, vector<8x256xf32> -> vector<8x256xf32>
    %1375 = arith.addf %1369, %1374 : vector<8x256xf32>
    %c2_888 = arith.constant 2 : index
    %c0_889 = arith.constant 0 : index
    %c0_890 = arith.constant 0 : index
    %1376 = vector.load %arg6[%c2_888, %c0_889, %c0_890] : memref<3x8x36xbf16, #tpu.memory_space<vmem>>, vector<1x8x36xbf16>
    %1377 = vector.shape_cast %1376 : vector<1x8x36xbf16> to vector<8x36xbf16>
    %c10_891 = arith.constant 10 : index
    %c0_892 = arith.constant 0 : index
    %c0_893 = arith.constant 0 : index
    %1378 = vector.load %arg10[%c10_891, %c0_892, %c0_893] : memref<18x36x256xbf16, #tpu.memory_space<vmem>>, vector<1x36x256xbf16>
    %1379 = vector.shape_cast %1378 : vector<1x36x256xbf16> to vector<36x256xbf16>
    %cst_894 = arith.constant dense<0.000000e+00> : vector<8x256xf32>
    %1380 = tpu.matmul %1377, %1379, %cst_894 {dimension_numbers = #tpu.dot_dimension_numbers<[1], [0], [0], [1], [0, 0, 1, 1], [], []>} : vector<8x36xbf16>, vector<36x256xbf16>, vector<8x256xf32> -> vector<8x256xf32>
    %1381 = arith.addf %1375, %1380 : vector<8x256xf32>
    %cst_895 = arith.constant 0.000000e+00 : f32
    %1382 = vector.broadcast %cst_895 : f32 to vector<8x256xf32>
    %1383 = arith.maximumf %1381, %1382 : vector<8x256xf32>
    %c0_896 = arith.constant 0 : index
    %c0_897 = arith.constant 0 : index
    %c8_898 = arith.constant 8 : index
    %c0_899 = arith.constant 0 : index
    %1384 = vector.load %arg9[%c0_896, %c0_897, %c8_898, %c0_899] : memref<1x8x16x256xf32, #tpu.memory_space<vmem>>, vector<1x8x1x256xf32>
    %1385 = vector.shape_cast %1384 : vector<1x8x1x256xf32> to vector<8x256xf32>
    %1386 = vector.shape_cast %1383 : vector<8x256xf32> to vector<1x8x1x256xf32>
    tpu.vector_store %arg9[%c0_896, %c0_897, %c8_898, %c0_899], %1386 {strides = array<i32>} : memref<1x8x16x256xf32, #tpu.memory_space<vmem>>, vector<1x8x1x256xf32>,
    %c0_900 = arith.constant 0 : index
    %c0_901 = arith.constant 0 : index
    %c0_902 = arith.constant 0 : index
    %1387 = vector.load %arg6[%c0_900, %c0_901, %c0_902] : memref<3x8x36xbf16, #tpu.memory_space<vmem>>, vector<1x8x36xbf16>
    %1388 = vector.shape_cast %1387 : vector<1x8x36xbf16> to vector<8x36xbf16>
    %c9_903 = arith.constant 9 : index
    %c0_904 = arith.constant 0 : index
    %c0_905 = arith.constant 0 : index
    %1389 = vector.load %arg10[%c9_903, %c0_904, %c0_905] : memref<18x36x256xbf16, #tpu.memory_space<vmem>>, vector<1x36x256xbf16>
    %1390 = vector.shape_cast %1389 : vector<1x36x256xbf16> to vector<36x256xbf16>
    %cst_906 = arith.constant dense<0.000000e+00> : vector<8x256xf32>
    %1391 = tpu.matmul %1388, %1390, %cst_906 {dimension_numbers = #tpu.dot_dimension_numbers<[1], [0], [0], [1], [0, 0, 1, 1], [], []>} : vector<8x36xbf16>, vector<36x256xbf16>, vector<8x256xf32> -> vector<8x256xf32>
    %1392 = arith.addf %1179, %1391 : vector<8x256xf32>
    %c1_907 = arith.constant 1 : index
    %c0_908 = arith.constant 0 : index
    %c0_909 = arith.constant 0 : index
    %1393 = vector.load %arg6[%c1_907, %c0_908, %c0_909] : memref<3x8x36xbf16, #tpu.memory_space<vmem>>, vector<1x8x36xbf16>
    %1394 = vector.shape_cast %1393 : vector<1x8x36xbf16> to vector<8x36xbf16>
    %c10_910 = arith.constant 10 : index
    %c0_911 = arith.constant 0 : index
    %c0_912 = arith.constant 0 : index
    %1395 = vector.load %arg10[%c10_910, %c0_911, %c0_912] : memref<18x36x256xbf16, #tpu.memory_space<vmem>>, vector<1x36x256xbf16>
    %1396 = vector.shape_cast %1395 : vector<1x36x256xbf16> to vector<36x256xbf16>
    %cst_913 = arith.constant dense<0.000000e+00> : vector<8x256xf32>
    %1397 = tpu.matmul %1394, %1396, %cst_913 {dimension_numbers = #tpu.dot_dimension_numbers<[1], [0], [0], [1], [0, 0, 1, 1], [], []>} : vector<8x36xbf16>, vector<36x256xbf16>, vector<8x256xf32> -> vector<8x256xf32>
    %1398 = arith.addf %1392, %1397 : vector<8x256xf32>
    %c2_914 = arith.constant 2 : index
    %c0_915 = arith.constant 0 : index
    %c0_916 = arith.constant 0 : index
    %1399 = vector.load %arg6[%c2_914, %c0_915, %c0_916] : memref<3x8x36xbf16, #tpu.memory_space<vmem>>, vector<1x8x36xbf16>
    %1400 = vector.shape_cast %1399 : vector<1x8x36xbf16> to vector<8x36xbf16>
    %c11_917 = arith.constant 11 : index
    %c0_918 = arith.constant 0 : index
    %c0_919 = arith.constant 0 : index
    %1401 = vector.load %arg10[%c11_917, %c0_918, %c0_919] : memref<18x36x256xbf16, #tpu.memory_space<vmem>>, vector<1x36x256xbf16>
    %1402 = vector.shape_cast %1401 : vector<1x36x256xbf16> to vector<36x256xbf16>
    %cst_920 = arith.constant dense<0.000000e+00> : vector<8x256xf32>
    %1403 = tpu.matmul %1400, %1402, %cst_920 {dimension_numbers = #tpu.dot_dimension_numbers<[1], [0], [0], [1], [0, 0, 1, 1], [], []>} : vector<8x36xbf16>, vector<36x256xbf16>, vector<8x256xf32> -> vector<8x256xf32>
    %1404 = arith.addf %1398, %1403 : vector<8x256xf32>
    %cst_921 = arith.constant 0.000000e+00 : f32
    %1405 = vector.broadcast %cst_921 : f32 to vector<8x256xf32>
    %1406 = arith.maximumf %1404, %1405 : vector<8x256xf32>
    %c0_922 = arith.constant 0 : index
    %c0_923 = arith.constant 0 : index
    %c9_924 = arith.constant 9 : index
    %c0_925 = arith.constant 0 : index
    %1407 = vector.load %arg9[%c0_922, %c0_923, %c9_924, %c0_925] : memref<1x8x16x256xf32, #tpu.memory_space<vmem>>, vector<1x8x1x256xf32>
    %1408 = vector.shape_cast %1407 : vector<1x8x1x256xf32> to vector<8x256xf32>
    %1409 = vector.shape_cast %1406 : vector<8x256xf32> to vector<1x8x1x256xf32>
    tpu.vector_store %arg9[%c0_922, %c0_923, %c9_924, %c0_925], %1409 {strides = array<i32>} : memref<1x8x16x256xf32, #tpu.memory_space<vmem>>, vector<1x8x1x256xf32>,
    %c0_926 = arith.constant 0 : index
    %c0_927 = arith.constant 0 : index
    %c0_928 = arith.constant 0 : index
    %1410 = vector.load %arg6[%c0_926, %c0_927, %c0_928] : memref<3x8x36xbf16, #tpu.memory_space<vmem>>, vector<1x8x36xbf16>
    %1411 = vector.shape_cast %1410 : vector<1x8x36xbf16> to vector<8x36xbf16>
    %c10_929 = arith.constant 10 : index
    %c0_930 = arith.constant 0 : index
    %c0_931 = arith.constant 0 : index
    %1412 = vector.load %arg10[%c10_929, %c0_930, %c0_931] : memref<18x36x256xbf16, #tpu.memory_space<vmem>>, vector<1x36x256xbf16>
    %1413 = vector.shape_cast %1412 : vector<1x36x256xbf16> to vector<36x256xbf16>
    %cst_932 = arith.constant dense<0.000000e+00> : vector<8x256xf32>
    %1414 = tpu.matmul %1411, %1413, %cst_932 {dimension_numbers = #tpu.dot_dimension_numbers<[1], [0], [0], [1], [0, 0, 1, 1], [], []>} : vector<8x36xbf16>, vector<36x256xbf16>, vector<8x256xf32> -> vector<8x256xf32>
    %1415 = arith.addf %1179, %1414 : vector<8x256xf32>
    %c1_933 = arith.constant 1 : index
    %c0_934 = arith.constant 0 : index
    %c0_935 = arith.constant 0 : index
    %1416 = vector.load %arg6[%c1_933, %c0_934, %c0_935] : memref<3x8x36xbf16, #tpu.memory_space<vmem>>, vector<1x8x36xbf16>
    %1417 = vector.shape_cast %1416 : vector<1x8x36xbf16> to vector<8x36xbf16>
    %c11_936 = arith.constant 11 : index
    %c0_937 = arith.constant 0 : index
    %c0_938 = arith.constant 0 : index
    %1418 = vector.load %arg10[%c11_936, %c0_937, %c0_938] : memref<18x36x256xbf16, #tpu.memory_space<vmem>>, vector<1x36x256xbf16>
    %1419 = vector.shape_cast %1418 : vector<1x36x256xbf16> to vector<36x256xbf16>
    %cst_939 = arith.constant dense<0.000000e+00> : vector<8x256xf32>
    %1420 = tpu.matmul %1417, %1419, %cst_939 {dimension_numbers = #tpu.dot_dimension_numbers<[1], [0], [0], [1], [0, 0, 1, 1], [], []>} : vector<8x36xbf16>, vector<36x256xbf16>, vector<8x256xf32> -> vector<8x256xf32>
    %1421 = arith.addf %1415, %1420 : vector<8x256xf32>
    %c2_940 = arith.constant 2 : index
    %c0_941 = arith.constant 0 : index
    %c0_942 = arith.constant 0 : index
    %1422 = vector.load %arg6[%c2_940, %c0_941, %c0_942] : memref<3x8x36xbf16, #tpu.memory_space<vmem>>, vector<1x8x36xbf16>
    %1423 = vector.shape_cast %1422 : vector<1x8x36xbf16> to vector<8x36xbf16>
    %c12_943 = arith.constant 12 : index
    %c0_944 = arith.constant 0 : index
    %c0_945 = arith.constant 0 : index
    %1424 = vector.load %arg10[%c12_943, %c0_944, %c0_945] : memref<18x36x256xbf16, #tpu.memory_space<vmem>>, vector<1x36x256xbf16>
    %1425 = vector.shape_cast %1424 : vector<1x36x256xbf16> to vector<36x256xbf16>
    %cst_946 = arith.constant dense<0.000000e+00> : vector<8x256xf32>
    %1426 = tpu.matmul %1423, %1425, %cst_946 {dimension_numbers = #tpu.dot_dimension_numbers<[1], [0], [0], [1], [0, 0, 1, 1], [], []>} : vector<8x36xbf16>, vector<36x256xbf16>, vector<8x256xf32> -> vector<8x256xf32>
    %1427 = arith.addf %1421, %1426 : vector<8x256xf32>
    %cst_947 = arith.constant 0.000000e+00 : f32
    %1428 = vector.broadcast %cst_947 : f32 to vector<8x256xf32>
    %1429 = arith.maximumf %1427, %1428 : vector<8x256xf32>
    %c0_948 = arith.constant 0 : index
    %c0_949 = arith.constant 0 : index
    %c10_950 = arith.constant 10 : index
    %c0_951 = arith.constant 0 : index
    %1430 = vector.load %arg9[%c0_948, %c0_949, %c10_950, %c0_951] : memref<1x8x16x256xf32, #tpu.memory_space<vmem>>, vector<1x8x1x256xf32>
    %1431 = vector.shape_cast %1430 : vector<1x8x1x256xf32> to vector<8x256xf32>
    %1432 = vector.shape_cast %1429 : vector<8x256xf32> to vector<1x8x1x256xf32>
    tpu.vector_store %arg9[%c0_948, %c0_949, %c10_950, %c0_951], %1432 {strides = array<i32>} : memref<1x8x16x256xf32, #tpu.memory_space<vmem>>, vector<1x8x1x256xf32>,
    %c0_952 = arith.constant 0 : index
    %c0_953 = arith.constant 0 : index
    %c0_954 = arith.constant 0 : index
    %1433 = vector.load %arg6[%c0_952, %c0_953, %c0_954] : memref<3x8x36xbf16, #tpu.memory_space<vmem>>, vector<1x8x36xbf16>
    %1434 = vector.shape_cast %1433 : vector<1x8x36xbf16> to vector<8x36xbf16>
    %c11_955 = arith.constant 11 : index
    %c0_956 = arith.constant 0 : index
    %c0_957 = arith.constant 0 : index
    %1435 = vector.load %arg10[%c11_955, %c0_956, %c0_957] : memref<18x36x256xbf16, #tpu.memory_space<vmem>>, vector<1x36x256xbf16>
    %1436 = vector.shape_cast %1435 : vector<1x36x256xbf16> to vector<36x256xbf16>
    %cst_958 = arith.constant dense<0.000000e+00> : vector<8x256xf32>
    %1437 = tpu.matmul %1434, %1436, %cst_958 {dimension_numbers = #tpu.dot_dimension_numbers<[1], [0], [0], [1], [0, 0, 1, 1], [], []>} : vector<8x36xbf16>, vector<36x256xbf16>, vector<8x256xf32> -> vector<8x256xf32>
    %1438 = arith.addf %1179, %1437 : vector<8x256xf32>
    %c1_959 = arith.constant 1 : index
    %c0_960 = arith.constant 0 : index
    %c0_961 = arith.constant 0 : index
    %1439 = vector.load %arg6[%c1_959, %c0_960, %c0_961] : memref<3x8x36xbf16, #tpu.memory_space<vmem>>, vector<1x8x36xbf16>
    %1440 = vector.shape_cast %1439 : vector<1x8x36xbf16> to vector<8x36xbf16>
    %c12_962 = arith.constant 12 : index
    %c0_963 = arith.constant 0 : index
    %c0_964 = arith.constant 0 : index
    %1441 = vector.load %arg10[%c12_962, %c0_963, %c0_964] : memref<18x36x256xbf16, #tpu.memory_space<vmem>>, vector<1x36x256xbf16>
    %1442 = vector.shape_cast %1441 : vector<1x36x256xbf16> to vector<36x256xbf16>
    %cst_965 = arith.constant dense<0.000000e+00> : vector<8x256xf32>
    %1443 = tpu.matmul %1440, %1442, %cst_965 {dimension_numbers = #tpu.dot_dimension_numbers<[1], [0], [0], [1], [0, 0, 1, 1], [], []>} : vector<8x36xbf16>, vector<36x256xbf16>, vector<8x256xf32> -> vector<8x256xf32>
    %1444 = arith.addf %1438, %1443 : vector<8x256xf32>
    %c2_966 = arith.constant 2 : index
    %c0_967 = arith.constant 0 : index
    %c0_968 = arith.constant 0 : index
    %1445 = vector.load %arg6[%c2_966, %c0_967, %c0_968] : memref<3x8x36xbf16, #tpu.memory_space<vmem>>, vector<1x8x36xbf16>
    %1446 = vector.shape_cast %1445 : vector<1x8x36xbf16> to vector<8x36xbf16>
    %c13_969 = arith.constant 13 : index
    %c0_970 = arith.constant 0 : index
    %c0_971 = arith.constant 0 : index
    %1447 = vector.load %arg10[%c13_969, %c0_970, %c0_971] : memref<18x36x256xbf16, #tpu.memory_space<vmem>>, vector<1x36x256xbf16>
    %1448 = vector.shape_cast %1447 : vector<1x36x256xbf16> to vector<36x256xbf16>
    %cst_972 = arith.constant dense<0.000000e+00> : vector<8x256xf32>
    %1449 = tpu.matmul %1446, %1448, %cst_972 {dimension_numbers = #tpu.dot_dimension_numbers<[1], [0], [0], [1], [0, 0, 1, 1], [], []>} : vector<8x36xbf16>, vector<36x256xbf16>, vector<8x256xf32> -> vector<8x256xf32>
    %1450 = arith.addf %1444, %1449 : vector<8x256xf32>
    %cst_973 = arith.constant 0.000000e+00 : f32
    %1451 = vector.broadcast %cst_973 : f32 to vector<8x256xf32>
    %1452 = arith.maximumf %1450, %1451 : vector<8x256xf32>
    %c0_974 = arith.constant 0 : index
    %c0_975 = arith.constant 0 : index
    %c11_976 = arith.constant 11 : index
    %c0_977 = arith.constant 0 : index
    %1453 = vector.load %arg9[%c0_974, %c0_975, %c11_976, %c0_977] : memref<1x8x16x256xf32, #tpu.memory_space<vmem>>, vector<1x8x1x256xf32>
    %1454 = vector.shape_cast %1453 : vector<1x8x1x256xf32> to vector<8x256xf32>
    %1455 = vector.shape_cast %1452 : vector<8x256xf32> to vector<1x8x1x256xf32>
    tpu.vector_store %arg9[%c0_974, %c0_975, %c11_976, %c0_977], %1455 {strides = array<i32>} : memref<1x8x16x256xf32, #tpu.memory_space<vmem>>, vector<1x8x1x256xf32>,
    %c0_978 = arith.constant 0 : index
    %c0_979 = arith.constant 0 : index
    %c0_980 = arith.constant 0 : index
    %1456 = vector.load %arg6[%c0_978, %c0_979, %c0_980] : memref<3x8x36xbf16, #tpu.memory_space<vmem>>, vector<1x8x36xbf16>
    %1457 = vector.shape_cast %1456 : vector<1x8x36xbf16> to vector<8x36xbf16>
    %c12_981 = arith.constant 12 : index
    %c0_982 = arith.constant 0 : index
    %c0_983 = arith.constant 0 : index
    %1458 = vector.load %arg10[%c12_981, %c0_982, %c0_983] : memref<18x36x256xbf16, #tpu.memory_space<vmem>>, vector<1x36x256xbf16>
    %1459 = vector.shape_cast %1458 : vector<1x36x256xbf16> to vector<36x256xbf16>
    %cst_984 = arith.constant dense<0.000000e+00> : vector<8x256xf32>
    %1460 = tpu.matmul %1457, %1459, %cst_984 {dimension_numbers = #tpu.dot_dimension_numbers<[1], [0], [0], [1], [0, 0, 1, 1], [], []>} : vector<8x36xbf16>, vector<36x256xbf16>, vector<8x256xf32> -> vector<8x256xf32>
    %1461 = arith.addf %1179, %1460 : vector<8x256xf32>
    %c1_985 = arith.constant 1 : index
    %c0_986 = arith.constant 0 : index
    %c0_987 = arith.constant 0 : index
    %1462 = vector.load %arg6[%c1_985, %c0_986, %c0_987] : memref<3x8x36xbf16, #tpu.memory_space<vmem>>, vector<1x8x36xbf16>
    %1463 = vector.shape_cast %1462 : vector<1x8x36xbf16> to vector<8x36xbf16>
    %c13_988 = arith.constant 13 : index
    %c0_989 = arith.constant 0 : index
    %c0_990 = arith.constant 0 : index
    %1464 = vector.load %arg10[%c13_988, %c0_989, %c0_990] : memref<18x36x256xbf16, #tpu.memory_space<vmem>>, vector<1x36x256xbf16>
    %1465 = vector.shape_cast %1464 : vector<1x36x256xbf16> to vector<36x256xbf16>
    %cst_991 = arith.constant dense<0.000000e+00> : vector<8x256xf32>
    %1466 = tpu.matmul %1463, %1465, %cst_991 {dimension_numbers = #tpu.dot_dimension_numbers<[1], [0], [0], [1], [0, 0, 1, 1], [], []>} : vector<8x36xbf16>, vector<36x256xbf16>, vector<8x256xf32> -> vector<8x256xf32>
    %1467 = arith.addf %1461, %1466 : vector<8x256xf32>
    %c2_992 = arith.constant 2 : index
    %c0_993 = arith.constant 0 : index
    %c0_994 = arith.constant 0 : index
    %1468 = vector.load %arg6[%c2_992, %c0_993, %c0_994] : memref<3x8x36xbf16, #tpu.memory_space<vmem>>, vector<1x8x36xbf16>
    %1469 = vector.shape_cast %1468 : vector<1x8x36xbf16> to vector<8x36xbf16>
    %c14_995 = arith.constant 14 : index
    %c0_996 = arith.constant 0 : index
    %c0_997 = arith.constant 0 : index
    %1470 = vector.load %arg10[%c14_995, %c0_996, %c0_997] : memref<18x36x256xbf16, #tpu.memory_space<vmem>>, vector<1x36x256xbf16>
    %1471 = vector.shape_cast %1470 : vector<1x36x256xbf16> to vector<36x256xbf16>
    %cst_998 = arith.constant dense<0.000000e+00> : vector<8x256xf32>
    %1472 = tpu.matmul %1469, %1471, %cst_998 {dimension_numbers = #tpu.dot_dimension_numbers<[1], [0], [0], [1], [0, 0, 1, 1], [], []>} : vector<8x36xbf16>, vector<36x256xbf16>, vector<8x256xf32> -> vector<8x256xf32>
    %1473 = arith.addf %1467, %1472 : vector<8x256xf32>
    %cst_999 = arith.constant 0.000000e+00 : f32
    %1474 = vector.broadcast %cst_999 : f32 to vector<8x256xf32>
    %1475 = arith.maximumf %1473, %1474 : vector<8x256xf32>
    %c0_1000 = arith.constant 0 : index
    %c0_1001 = arith.constant 0 : index
    %c12_1002 = arith.constant 12 : index
    %c0_1003 = arith.constant 0 : index
    %1476 = vector.load %arg9[%c0_1000, %c0_1001, %c12_1002, %c0_1003] : memref<1x8x16x256xf32, #tpu.memory_space<vmem>>, vector<1x8x1x256xf32>
    %1477 = vector.shape_cast %1476 : vector<1x8x1x256xf32> to vector<8x256xf32>
    %1478 = vector.shape_cast %1475 : vector<8x256xf32> to vector<1x8x1x256xf32>
    tpu.vector_store %arg9[%c0_1000, %c0_1001, %c12_1002, %c0_1003], %1478 {strides = array<i32>} : memref<1x8x16x256xf32, #tpu.memory_space<vmem>>, vector<1x8x1x256xf32>,
    %c0_1004 = arith.constant 0 : index
    %c0_1005 = arith.constant 0 : index
    %c0_1006 = arith.constant 0 : index
    %1479 = vector.load %arg6[%c0_1004, %c0_1005, %c0_1006] : memref<3x8x36xbf16, #tpu.memory_space<vmem>>, vector<1x8x36xbf16>
    %1480 = vector.shape_cast %1479 : vector<1x8x36xbf16> to vector<8x36xbf16>
    %c13_1007 = arith.constant 13 : index
    %c0_1008 = arith.constant 0 : index
    %c0_1009 = arith.constant 0 : index
    %1481 = vector.load %arg10[%c13_1007, %c0_1008, %c0_1009] : memref<18x36x256xbf16, #tpu.memory_space<vmem>>, vector<1x36x256xbf16>
    %1482 = vector.shape_cast %1481 : vector<1x36x256xbf16> to vector<36x256xbf16>
    %cst_1010 = arith.constant dense<0.000000e+00> : vector<8x256xf32>
    %1483 = tpu.matmul %1480, %1482, %cst_1010 {dimension_numbers = #tpu.dot_dimension_numbers<[1], [0], [0], [1], [0, 0, 1, 1], [], []>} : vector<8x36xbf16>, vector<36x256xbf16>, vector<8x256xf32> -> vector<8x256xf32>
    %1484 = arith.addf %1179, %1483 : vector<8x256xf32>
    %c1_1011 = arith.constant 1 : index
    %c0_1012 = arith.constant 0 : index
    %c0_1013 = arith.constant 0 : index
    %1485 = vector.load %arg6[%c1_1011, %c0_1012, %c0_1013] : memref<3x8x36xbf16, #tpu.memory_space<vmem>>, vector<1x8x36xbf16>
    %1486 = vector.shape_cast %1485 : vector<1x8x36xbf16> to vector<8x36xbf16>
    %c14_1014 = arith.constant 14 : index
    %c0_1015 = arith.constant 0 : index
    %c0_1016 = arith.constant 0 : index
    %1487 = vector.load %arg10[%c14_1014, %c0_1015, %c0_1016] : memref<18x36x256xbf16, #tpu.memory_space<vmem>>, vector<1x36x256xbf16>
    %1488 = vector.shape_cast %1487 : vector<1x36x256xbf16> to vector<36x256xbf16>
    %cst_1017 = arith.constant dense<0.000000e+00> : vector<8x256xf32>
    %1489 = tpu.matmul %1486, %1488, %cst_1017 {dimension_numbers = #tpu.dot_dimension_numbers<[1], [0], [0], [1], [0, 0, 1, 1], [], []>} : vector<8x36xbf16>, vector<36x256xbf16>, vector<8x256xf32> -> vector<8x256xf32>
    %1490 = arith.addf %1484, %1489 : vector<8x256xf32>
    %c2_1018 = arith.constant 2 : index
    %c0_1019 = arith.constant 0 : index
    %c0_1020 = arith.constant 0 : index
    %1491 = vector.load %arg6[%c2_1018, %c0_1019, %c0_1020] : memref<3x8x36xbf16, #tpu.memory_space<vmem>>, vector<1x8x36xbf16>
    %1492 = vector.shape_cast %1491 : vector<1x8x36xbf16> to vector<8x36xbf16>
    %c15_1021 = arith.constant 15 : index
    %c0_1022 = arith.constant 0 : index
    %c0_1023 = arith.constant 0 : index
    %1493 = vector.load %arg10[%c15_1021, %c0_1022, %c0_1023] : memref<18x36x256xbf16, #tpu.memory_space<vmem>>, vector<1x36x256xbf16>
    %1494 = vector.shape_cast %1493 : vector<1x36x256xbf16> to vector<36x256xbf16>
    %cst_1024 = arith.constant dense<0.000000e+00> : vector<8x256xf32>
    %1495 = tpu.matmul %1492, %1494, %cst_1024 {dimension_numbers = #tpu.dot_dimension_numbers<[1], [0], [0], [1], [0, 0, 1, 1], [], []>} : vector<8x36xbf16>, vector<36x256xbf16>, vector<8x256xf32> -> vector<8x256xf32>
    %1496 = arith.addf %1490, %1495 : vector<8x256xf32>
    %cst_1025 = arith.constant 0.000000e+00 : f32
    %1497 = vector.broadcast %cst_1025 : f32 to vector<8x256xf32>
    %1498 = arith.maximumf %1496, %1497 : vector<8x256xf32>
    %c0_1026 = arith.constant 0 : index
    %c0_1027 = arith.constant 0 : index
    %c13_1028 = arith.constant 13 : index
    %c0_1029 = arith.constant 0 : index
    %1499 = vector.load %arg9[%c0_1026, %c0_1027, %c13_1028, %c0_1029] : memref<1x8x16x256xf32, #tpu.memory_space<vmem>>, vector<1x8x1x256xf32>
    %1500 = vector.shape_cast %1499 : vector<1x8x1x256xf32> to vector<8x256xf32>
    %1501 = vector.shape_cast %1498 : vector<8x256xf32> to vector<1x8x1x256xf32>
    tpu.vector_store %arg9[%c0_1026, %c0_1027, %c13_1028, %c0_1029], %1501 {strides = array<i32>} : memref<1x8x16x256xf32, #tpu.memory_space<vmem>>, vector<1x8x1x256xf32>,
    %c0_1030 = arith.constant 0 : index
    %c0_1031 = arith.constant 0 : index
    %c0_1032 = arith.constant 0 : index
    %1502 = vector.load %arg6[%c0_1030, %c0_1031, %c0_1032] : memref<3x8x36xbf16, #tpu.memory_space<vmem>>, vector<1x8x36xbf16>
    %1503 = vector.shape_cast %1502 : vector<1x8x36xbf16> to vector<8x36xbf16>
    %c14_1033 = arith.constant 14 : index
    %c0_1034 = arith.constant 0 : index
    %c0_1035 = arith.constant 0 : index
    %1504 = vector.load %arg10[%c14_1033, %c0_1034, %c0_1035] : memref<18x36x256xbf16, #tpu.memory_space<vmem>>, vector<1x36x256xbf16>
    %1505 = vector.shape_cast %1504 : vector<1x36x256xbf16> to vector<36x256xbf16>
    %cst_1036 = arith.constant dense<0.000000e+00> : vector<8x256xf32>
    %1506 = tpu.matmul %1503, %1505, %cst_1036 {dimension_numbers = #tpu.dot_dimension_numbers<[1], [0], [0], [1], [0, 0, 1, 1], [], []>} : vector<8x36xbf16>, vector<36x256xbf16>, vector<8x256xf32> -> vector<8x256xf32>
    %1507 = arith.addf %1179, %1506 : vector<8x256xf32>
    %c1_1037 = arith.constant 1 : index
    %c0_1038 = arith.constant 0 : index
    %c0_1039 = arith.constant 0 : index
    %1508 = vector.load %arg6[%c1_1037, %c0_1038, %c0_1039] : memref<3x8x36xbf16, #tpu.memory_space<vmem>>, vector<1x8x36xbf16>
    %1509 = vector.shape_cast %1508 : vector<1x8x36xbf16> to vector<8x36xbf16>
    %c15_1040 = arith.constant 15 : index
    %c0_1041 = arith.constant 0 : index
    %c0_1042 = arith.constant 0 : index
    %1510 = vector.load %arg10[%c15_1040, %c0_1041, %c0_1042] : memref<18x36x256xbf16, #tpu.memory_space<vmem>>, vector<1x36x256xbf16>
    %1511 = vector.shape_cast %1510 : vector<1x36x256xbf16> to vector<36x256xbf16>
    %cst_1043 = arith.constant dense<0.000000e+00> : vector<8x256xf32>
    %1512 = tpu.matmul %1509, %1511, %cst_1043 {dimension_numbers = #tpu.dot_dimension_numbers<[1], [0], [0], [1], [0, 0, 1, 1], [], []>} : vector<8x36xbf16>, vector<36x256xbf16>, vector<8x256xf32> -> vector<8x256xf32>
    %1513 = arith.addf %1507, %1512 : vector<8x256xf32>
    %c2_1044 = arith.constant 2 : index
    %c0_1045 = arith.constant 0 : index
    %c0_1046 = arith.constant 0 : index
    %1514 = vector.load %arg6[%c2_1044, %c0_1045, %c0_1046] : memref<3x8x36xbf16, #tpu.memory_space<vmem>>, vector<1x8x36xbf16>
    %1515 = vector.shape_cast %1514 : vector<1x8x36xbf16> to vector<8x36xbf16>
    %c16_1047 = arith.constant 16 : index
    %c0_1048 = arith.constant 0 : index
    %c0_1049 = arith.constant 0 : index
    %1516 = vector.load %arg10[%c16_1047, %c0_1048, %c0_1049] : memref<18x36x256xbf16, #tpu.memory_space<vmem>>, vector<1x36x256xbf16>
    %1517 = vector.shape_cast %1516 : vector<1x36x256xbf16> to vector<36x256xbf16>
    %cst_1050 = arith.constant dense<0.000000e+00> : vector<8x256xf32>
    %1518 = tpu.matmul %1515, %1517, %cst_1050 {dimension_numbers = #tpu.dot_dimension_numbers<[1], [0], [0], [1], [0, 0, 1, 1], [], []>} : vector<8x36xbf16>, vector<36x256xbf16>, vector<8x256xf32> -> vector<8x256xf32>
    %1519 = arith.addf %1513, %1518 : vector<8x256xf32>
    %cst_1051 = arith.constant 0.000000e+00 : f32
    %1520 = vector.broadcast %cst_1051 : f32 to vector<8x256xf32>
    %1521 = arith.maximumf %1519, %1520 : vector<8x256xf32>
    %c0_1052 = arith.constant 0 : index
    %c0_1053 = arith.constant 0 : index
    %c14_1054 = arith.constant 14 : index
    %c0_1055 = arith.constant 0 : index
    %1522 = vector.load %arg9[%c0_1052, %c0_1053, %c14_1054, %c0_1055] : memref<1x8x16x256xf32, #tpu.memory_space<vmem>>, vector<1x8x1x256xf32>
    %1523 = vector.shape_cast %1522 : vector<1x8x1x256xf32> to vector<8x256xf32>
    %1524 = vector.shape_cast %1521 : vector<8x256xf32> to vector<1x8x1x256xf32>
    tpu.vector_store %arg9[%c0_1052, %c0_1053, %c14_1054, %c0_1055], %1524 {strides = array<i32>} : memref<1x8x16x256xf32, #tpu.memory_space<vmem>>, vector<1x8x1x256xf32>,
    %c0_1056 = arith.constant 0 : index
    %c0_1057 = arith.constant 0 : index
    %c0_1058 = arith.constant 0 : index
    %1525 = vector.load %arg6[%c0_1056, %c0_1057, %c0_1058] : memref<3x8x36xbf16, #tpu.memory_space<vmem>>, vector<1x8x36xbf16>
    %1526 = vector.shape_cast %1525 : vector<1x8x36xbf16> to vector<8x36xbf16>
    %c15_1059 = arith.constant 15 : index
    %c0_1060 = arith.constant 0 : index
    %c0_1061 = arith.constant 0 : index
    %1527 = vector.load %arg10[%c15_1059, %c0_1060, %c0_1061] : memref<18x36x256xbf16, #tpu.memory_space<vmem>>, vector<1x36x256xbf16>
    %1528 = vector.shape_cast %1527 : vector<1x36x256xbf16> to vector<36x256xbf16>
    %cst_1062 = arith.constant dense<0.000000e+00> : vector<8x256xf32>
    %1529 = tpu.matmul %1526, %1528, %cst_1062 {dimension_numbers = #tpu.dot_dimension_numbers<[1], [0], [0], [1], [0, 0, 1, 1], [], []>} : vector<8x36xbf16>, vector<36x256xbf16>, vector<8x256xf32> -> vector<8x256xf32>
    %1530 = arith.addf %1179, %1529 : vector<8x256xf32>
    %c1_1063 = arith.constant 1 : index
    %c0_1064 = arith.constant 0 : index
    %c0_1065 = arith.constant 0 : index
    %1531 = vector.load %arg6[%c1_1063, %c0_1064, %c0_1065] : memref<3x8x36xbf16, #tpu.memory_space<vmem>>, vector<1x8x36xbf16>
    %1532 = vector.shape_cast %1531 : vector<1x8x36xbf16> to vector<8x36xbf16>
    %c16_1066 = arith.constant 16 : index
    %c0_1067 = arith.constant 0 : index
    %c0_1068 = arith.constant 0 : index
    %1533 = vector.load %arg10[%c16_1066, %c0_1067, %c0_1068] : memref<18x36x256xbf16, #tpu.memory_space<vmem>>, vector<1x36x256xbf16>
    %1534 = vector.shape_cast %1533 : vector<1x36x256xbf16> to vector<36x256xbf16>
    %cst_1069 = arith.constant dense<0.000000e+00> : vector<8x256xf32>
    %1535 = tpu.matmul %1532, %1534, %cst_1069 {dimension_numbers = #tpu.dot_dimension_numbers<[1], [0], [0], [1], [0, 0, 1, 1], [], []>} : vector<8x36xbf16>, vector<36x256xbf16>, vector<8x256xf32> -> vector<8x256xf32>
    %1536 = arith.addf %1530, %1535 : vector<8x256xf32>
    %c2_1070 = arith.constant 2 : index
    %c0_1071 = arith.constant 0 : index
    %c0_1072 = arith.constant 0 : index
    %1537 = vector.load %arg6[%c2_1070, %c0_1071, %c0_1072] : memref<3x8x36xbf16, #tpu.memory_space<vmem>>, vector<1x8x36xbf16>
    %1538 = vector.shape_cast %1537 : vector<1x8x36xbf16> to vector<8x36xbf16>
    %c17_1073 = arith.constant 17 : index
    %c0_1074 = arith.constant 0 : index
    %c0_1075 = arith.constant 0 : index
    %1539 = vector.load %arg10[%c17_1073, %c0_1074, %c0_1075] : memref<18x36x256xbf16, #tpu.memory_space<vmem>>, vector<1x36x256xbf16>
    %1540 = vector.shape_cast %1539 : vector<1x36x256xbf16> to vector<36x256xbf16>
    %cst_1076 = arith.constant dense<0.000000e+00> : vector<8x256xf32>
    %1541 = tpu.matmul %1538, %1540, %cst_1076 {dimension_numbers = #tpu.dot_dimension_numbers<[1], [0], [0], [1], [0, 0, 1, 1], [], []>} : vector<8x36xbf16>, vector<36x256xbf16>, vector<8x256xf32> -> vector<8x256xf32>
    %1542 = arith.addf %1536, %1541 : vector<8x256xf32>
    %cst_1077 = arith.constant 0.000000e+00 : f32
    %1543 = vector.broadcast %cst_1077 : f32 to vector<8x256xf32>
    %1544 = arith.maximumf %1542, %1543 : vector<8x256xf32>
    %c0_1078 = arith.constant 0 : index
    %c0_1079 = arith.constant 0 : index
    %c15_1080 = arith.constant 15 : index
    %c0_1081 = arith.constant 0 : index
    %1545 = vector.load %arg9[%c0_1078, %c0_1079, %c15_1080, %c0_1081] : memref<1x8x16x256xf32, #tpu.memory_space<vmem>>, vector<1x8x1x256xf32>
    %1546 = vector.shape_cast %1545 : vector<1x8x1x256xf32> to vector<8x256xf32>
    %1547 = vector.shape_cast %1544 : vector<8x256xf32> to vector<1x8x1x256xf32>
    tpu.vector_store %arg9[%c0_1078, %c0_1079, %c15_1080, %c0_1081], %1547 {strides = array<i32>} : memref<1x8x16x256xf32, #tpu.memory_space<vmem>>, vector<1x8x1x256xf32>,
    return
  }
  func.func @transform_0(%arg0: i32, %arg1: i32, %arg2: memref<16xi32, #tpu.memory_space<smem>>) -> i32 {
    %c0_i32 = arith.constant 0 : i32
    %c0_i32_0 = arith.constant 0 : i32
    return %c0_i32 : i32
  }
  func.func @transform_1(%arg0: i32, %arg1: i32, %arg2: memref<16xi32, #tpu.memory_space<smem>>) -> (i32, i32, i32, i32) {
    %c0_i32 = arith.constant 0 : i32
    %c0_i32_0 = arith.constant 0 : i32
    %c0_i32_1 = arith.constant 0 : i32
    %c0_i32_2 = arith.constant 0 : i32
    return %arg0, %c0_i32, %c0_i32_0, %c0_i32_1 : i32, i32, i32, i32
  }
  func.func @transform_2(%arg0: i32, %arg1: i32, %arg2: memref<16xi32, #tpu.memory_space<smem>>) -> (i32, i32) {
    %c0_i32 = arith.constant 0 : i32
    %c0_i32_0 = arith.constant 0 : i32
    %c0_i32_1 = arith.constant 0 : i32
    return %c0_i32, %c0_i32_0 : i32, i32
  }
  func.func @transform_3(%arg0: i32, %arg1: i32, %arg2: memref<16xi32, #tpu.memory_space<smem>>) -> (i32, i32, i32) {
    %c0_i32 = arith.constant 0 : i32
    %c0_i32_0 = arith.constant 0 : i32
    %c0_i32_1 = arith.constant 0 : i32
    %c0_i32_2 = arith.constant 0 : i32
    return %c0_i32, %c0_i32_0, %c0_i32_1 : i32, i32, i32
  }
  func.func @transform_4(%arg0: i32, %arg1: i32, %arg2: memref<16xi32, #tpu.memory_space<smem>>) -> (i32, i32) {
    %c0_i32 = arith.constant 0 : i32
    %c0_i32_0 = arith.constant 0 : i32
    %c0_i32_1 = arith.constant 0 : i32
    return %c0_i32, %c0_i32_0 : i32, i32
  }
  func.func @transform_5(%arg0: i32, %arg1: i32, %arg2: memref<16xi32, #tpu.memory_space<smem>>) -> (i32, i32) {
    %c0_i32 = arith.constant 0 : i32
    %c0_i32_0 = arith.constant 0 : i32
    %c0_i32_1 = arith.constant 0 : i32
    return %c0_i32, %c0_i32_0 : i32, i32
  }
  func.func @transform_6(%arg0: i32, %arg1: i32, %arg2: memref<16xi32, #tpu.memory_space<smem>>) -> (i32, i32, i32, i32) {
    %c0_i32 = arith.constant 0 : i32
    %c0_i32_0 = arith.constant 0 : i32
    %c0_i32_1 = arith.constant 0 : i32
    return %arg0, %c0_i32, %arg1, %c0_i32_0 : i32, i32, i32, i32
  }
}

</mosaic_0001>

<bundles_post_ra>
// kernel: upsampling_function_forward.1
= control target key start
LH: loop header
LB: loop body
LE: loop exit
PB: predicated region body
PF: predicated region fallthrough
CT: control target
= control target key end

     0   :  { %s15843_s0 = inlined_call_operand.vmem [shape: s32[16], index: 0, kind: input, shape index: {}]   ;;  %s15844_s1 = inlined_call_operand.vmem [shape: f32[16], index: 1, kind: input, shape index: {}]   ;;  %s15845_s2 = inlined_call_operand.vmem [shape: bf16[2,8,4,64], index: 2, kind: input, shape index: {}]   ;;  %s15846_s3 = inlined_call_operand.vmem [shape: bf16[64,256], index: 3, kind: input, shape index: {}]   ;;  %s15847_s4 = inlined_call_operand.vmem [shape: bf16[3,8,36], index: 4, kind: input, shape index: {}]   ;;  %s15848_s5 = inlined_call_operand.vmem [shape: f32[8,1], index: 5, kind: input, shape index: {}]   ;;  %s15849_s6 = inlined_call_operand.vmem [shape: f32[9,256], index: 6, kind: input, shape index: {}]   ;;  %s15850_s7 = inlined_call_operand.vmem [shape: f32[2,8,16,256], index: 7, kind: output, shape index: {}]  }
   0x1   :  { %s12_s26 = sshll.u32 %s15843_s0, 4  ;;  %s13_s26 = int_to_ptr.vmem [resolvable:$true] %s12_s26 }
   0x2   :  { %s12110_s27 = scalar_lea.vmem %s13_s26, 16  ;;  %p12115_p1 = scmp.lt.s32.totalorder %s13_s26, %s13_s26 }
   0x3   :  { %p12111_p0 = scmp.ne.s32.totalorder %s13_s26, %s12110_s27  ;;  %p12116_p2 = scmp.lt.s32.totalorder %s12110_s27, %s12110_s27 }
   0x5   :  { %p12117_p3 = por %p12116_p2, %p12115_p1 }
   0x7   :  { %p12118_p4 = pnand %p12117_p3, %p12111_p0 }
   0x9   :  { %12121 = shalt.err (!%p12118_p4)  }
   0xa   :  { %s12167_s28 = smov [#allocation4]  }
   0xb   :  { %15 = dma.vmem_to_smem %s13_s26, 16, %s12167_s28, [#allocation3] }
   0xc   :  { %12149 = dma.done.wait [#allocation3], 16 }
   0xd   :  { %12150 = vsyncadd [#allocation3], 4294967280 }
   0xe   :  { %17 = sfence }
   0xf   :  { %18 = vsyncpa [#allocation6], 0  ;;  %s12222_s29 = smov 0   ;;  %s12224_s30 = smov 0  }
  0x10   :  { %s12226_s8 = smov 0  }
  0x11 LB: > { %s10762_s0 = sadd.s32 4294967295, %s12165_s8   ;;  %s36_s9 = sadd.s32 1, %s12161_s30  ;;  %s12165_s8 = sphi %s12226_s8, %s24_s8   ;;  %s12161_s30 = sphi %s12224_s30, %s15859_s30   ;;  %s12157_s29 = sphi %s12222_s29, %s15858_s29  }
  0x12   : > { %p38_p5 = scmp.ge.s32.totalorder %s36_s9, 2  ;;  %p10764_p6 = scmp.ge.s32.totalorder %s12165_s8, 1 }
  0x13   : > { %p200_p7 = scmp.lt.s32.totalorder %s12165_s8, 3  ;;  %p12247_p9 = scmp.eq.s32.totalorder %s10762_s0, 0 }
  0x14   : > { %s15861_s9 = smov (%p38_p5, %s36_s9), 0  ;;  %s213_s14 = sshll.u32 %s15844_s1, 4  ;;  %s214_s14 = int_to_ptr.vmem [resolvable:$true] %s213_s14 }
  0x15   : > { %p12243_p8 = pnand %p10764_p6, %p200_p7  ;;  %s12122_s15 = scalar_lea.vmem %s214_s14, 16 }
  0x16   : > { %p12123_p12 = scmp.ne.s32.totalorder %s214_s14, %s12122_s15  ;;  %p12130_p2 = scmp.lt.s32.totalorder %s214_s14, %s214_s14 }
  0x17   : > { %p11887_p10 = pneg %p12243_p8  ;;  %p12131_p3 = scmp.lt.s32.totalorder %s12122_s15, %s12122_s15 }
  0x19   : > { %p11888_p11 = pnand %p12247_p9, %p11887_p10  ;;  %p12132_p4 = por %p12131_p3, %p12130_p2 }
  0x1b   : > { %p12124_p13 = pneg %p11888_p11 }
  0x1d   : > { %p12125_p0 = pnand %p12124_p13, %p12123_p12 }
  0x1f   : > { %p12126_p1 = pneg %p12125_p0 }
  0x21   : > { %p12133_p5 = pnand %p12132_p4, %p12126_p1 }
  0x23   : > { %12136 = shalt.err (!%p12133_p5)
}
  0x24   : > { %s12168_s16 = smov [#allocation5]   ;;  %246 = sbr.rel (%p12243_p8) target bundleno = 1243 (0x4db), region = 44 }
  0x25   : > { %11890 = dma.vmem_to_smem (!%p11888_p11), %s214_s14, 16, %s12168_s16, [#allocation6]  }
  0x2b   : > { %12152 = dma.done.wait (%p12247_p9), [#allocation6], 16  }
  0x2c   : > { %12154 = vsyncadd (%p12247_p9), [#allocation6], 4294967280 }
  0x2d   : > { %252 = sfence }
  0x2e   : > { %v11930_v0 = vld [vmem:[%s15846_s3 + $0x4] ss:$8 sps:$4 sm:$0xff]   ;;  %p282_p6 = scmp.lt.s32.totalorder %s12157_s29, 1  ;;  %v11932_v1 = vld [vmem:[%s15846_s3] ss:$8 sps:$4 sm:$0xff]   ;;  %v12169_v2 = vmov 0  }
  0x2f   : > { %941 = vmatprep.mubr.bf16.mxu0 %v12169_v2  ;;  %s311_s21 = sld [smem:[#allocation4]]  ;;  %5364 = vmatprep.mubr.bf16.mxu1 %v12169_v2  ;;  %v11933_v3 = vld [vmem:[%s15846_s3 + $0x14] ss:$8 sps:$4 sm:$0xff]   ;;  %v11935_v4 = vld [vmem:[%s15846_s3 + $0x10] ss:$8 sps:$4 sm:$0xff]   ;;  %s12294_s13 = sld [smem:[#allocation4 + $0x1]] }
  0x30   : > { %909 = vmatprep.subr.bf16.mxu0 %v11930_v0  ;;  %s15863_s29 = smov (!%p282_p6, %s12157_s29), 1  ;;  %11929 = vset.pattern.permute.xlu0 %v12169_v2  ;;  %v11936_v5 = vld [vmem:[%s15846_s3 + $0x24] ss:$8 sps:$4 sm:$0xff]   ;;  %s12292_s12 = sld [smem:[#allocation5]]  ;;  %v11938_v6 = vld [vmem:[%s15846_s3 + $0x20] ss:$8 sps:$4 sm:$0xff]  }
  0x31   : > { %910 = vmatpush1.bf16.msra.mxu0 %v11932_v1  ;;  %s11633_s28 = sshll.u32 %s15863_s29, 4  ;;  %s12299_s17 = sld [smem:[#allocation5 + $0x1]]  ;;  %v11939_v7 = vld [vmem:[%s15846_s3 + $0x34] ss:$8 sps:$4 sm:$0xff]   ;;  %v11941_v15 = vld [vmem:[%s15846_s3 + $0x30] ss:$8 sps:$4 sm:$0xff]  }
  0x32   : > { %911 = vmatprep.subr.bf16.mxu0 %v11933_v3  ;;  %s12290_s11 = scalar_lea.vmem %s15845_s2, %s11633_s28  ;;  %s12305_s22 = sld [smem:[#allocation4 + $0x2]]  ;;  %vm827_vm0 = vcmask 1043456   ;;  %vm893_vm1 = vcmask 523264   ;;  %vm5241_vm10 = vcmask 1041408   ;;  %vm5237_vm11 = vcmask 293888  }
  0x33   : > { %s12309_s23 = sld [smem:[#allocation4 + $0x3]]  ;;  %s12314_s26 = sld [smem:[#allocation4 + $0x4]] }
  0x34   : > { %s12318_s28 = sld [smem:[#allocation5 + $0x4]]  ;;  %s12321_s10 = sld [smem:[#allocation4 + $0x5]] }
  0x35   : > { %912 = vmatpush1.bf16.msra.mxu0 %v11935_v4  ;;  %s10773_s16 = sshll.u32 %s311_s21, 1  ;;  %s12307_s21 = sld [smem:[#allocation5 + $0x2]] }
  0x36   : > { %913 = vmatprep.subr.bf16.mxu0 %v11936_v5  ;;  %s314_s20 = scalar_lea.vmem %s12290_s11, %s10773_s16  ;;  %v323_v18 = vstv %s12292_s12  ;;  %s10781_s27 = sshll.u32 %s12294_s13, 1 }
  0x37   : > { %v315_v8 = vld [vmem:[%s314_s20] sm:$0x3]  ;;  %v10775_v9 = vld [vmem:[%s314_s20 + $0x2] sm:$0x3]  ;;  %s369_s0 = scalar_lea.vmem %s12290_s11, %s10781_s27  ;;  %s12325_s13 = sld [smem:[#allocation5 + $0x3]]  ;;  %v378_v27 = vstv %s12299_s17 }
  0x38   : > { %v342_v10 = vld [vmem:[%s314_s20] sm:$0x3]  ;;  %v316_v11 = vunpack.c.l.bf16 %v315_v8  ;;  %v321_v12 = vunpack.c.l.bf16 %v10775_v9  ;;  %v10778_v14 = vld [vmem:[%s314_s20 + $0x2] sm:$0x3]  ;;  %s10786_s14 = sshll.u32 %s12305_s22, 1  ;;  %s12333_s20 = sld [smem:[#allocation5 + $0x5]] }
  0x39   : > { %v343_v13 = vunpack.c.l.bf16 %v342_v10  ;;  %914 = vmatpush1.bf16.msra.mxu0 %v11938_v6  ;;  %v348_v16 = vunpack.c.l.bf16 %v10778_v14  ;;  %v370_v21 = vld [vmem:[%s369_s0] sm:$0x3]  ;;  %v10783_v22 = vld [vmem:[%s369_s0 + $0x2] sm:$0x3]  ;;  %s397_s12 = scalar_lea.vmem %s12290_s11, %s10786_s14  ;;  %s10791_s15 = sshll.u32 %s12309_s23, 1 }
  0x3a   : > { %915 = vmatprep.subr.bf16.mxu0 %v11939_v7  ;;  %v322_v17 = vsub.f32 %v321_v12, %v316_v11  ;;  %v371_v24 = vunpack.c.l.bf16 %v370_v21  ;;  %v376_v25 = vunpack.c.l.bf16 %v10783_v22  ;;  %v398_v28 = vld [vmem:[%s397_s12] sm:$0x3]  ;;  %v10788_v29 = vld [vmem:[%s397_s12 + $0x2] sm:$0x3]  ;;  %s425_s16 = scalar_lea.vmem %s12290_s11, %s10791_s15  ;;  %s10796_s18 = sshll.u32 %s12314_s26, 1  ;;  %v462_v51 = vstv %s12318_s28 }
  0x3b   : > { %v349_v19 = vsub.f32 %v348_v16, %v343_v13  ;;  %v399_v32 = vunpack.c.l.bf16 %v398_v28  ;;  %v404_v33 = vunpack.c.l.bf16 %v10788_v29  ;;  %v406_v34 = vstv %s12307_s21  ;;  %v426_v35 = vld [vmem:[%s425_s16] sm:$0x3]  ;;  %v10793_v36 = vld [vmem:[%s425_s16 + $0x2] sm:$0x3]  ;;  %s453_s19 = scalar_lea.vmem %s12290_s11, %s10796_s18  ;;  %s10801_s17 = sshll.u32 %s12321_s10, 1 }
  0x3c   : > { %v324_v20 = vmul.f32 %v323_v18, %v322_v17  ;;  %v377_v31 = vsub.f32 %v376_v25, %v371_v24  ;;  %v454_v39 = vld [vmem:[%s453_s19] sm:$0x3]  ;;  %v10798_v40 = vld [vmem:[%s453_s19 + $0x2] sm:$0x3]  ;;  %s481_s22 = scalar_lea.vmem %s12290_s11, %s10801_s17  ;;  %s10804_s23 = sld [smem:[#allocation4 + $0x6]]  ;;  %v427_v46 = vunpack.c.l.bf16 %v426_v35  ;;  %v432_v47 = vunpack.c.l.bf16 %v10793_v36 }
  0x3d   : > { %916 = vmatpush1.bf16.msra.mxu0 %v11941_v15  ;;  %v351_v23 = vmul.f32 %v349_v19, %v323_v18  ;;  %v405_v38 = vsub.f32 %v404_v33, %v399_v32  ;;  %v455_v42 = vunpack.c.l.bf16 %v454_v39  ;;  %v460_v43 = vunpack.c.l.bf16 %v10798_v40  ;;  %v482_v48 = vld [vmem:[%s481_s22] sm:$0x3]  ;;  %v10803_v49 = vld [vmem:[%s481_s22 + $0x2] sm:$0x3]  ;;  %s10805_s21 = sld [smem:[#allocation5 + $0x6]]  ;;  %s10814_s26 = sld [smem:[#allocation4 + $0x8]] }
  0x3e   : > { %v325_v26 = vadd.f32 %v324_v20, %v316_v11  ;;  %v379_v37 = vmul.f32 %v378_v27, %v377_v31  ;;  %v483_v54 = vunpack.c.l.bf16 %v482_v48  ;;  %v488_v55 = vunpack.c.l.bf16 %v10803_v49  ;;  %s10809_s27 = sld [smem:[#allocation4 + $0x7]]  ;;  %s10819_s28 = sld [smem:[#allocation4 + $0x9]] }
  0x3f   : > { %v352_v30 = vadd.f32 %v351_v23, %v343_v13  ;;  %v407_v44 = vmul.f32 %v406_v34, %v405_v38  ;;  %v461_v50 = vsub.f32 %v460_v43, %v455_v42  ;;  %v433_v58 = vsub.f32 %v432_v47, %v427_v46  ;;  %s10824_s0 = sld [smem:[#allocation4 + $0xa]]  ;;  %s12349_s10 = sld [smem:[#allocation5 + $0x8]] }
  0x40   : > { %v327_v41 = vmul.f32 0.0, %v325_v26  ;;  %v380_v52 = vadd.f32 %v379_v37, %v371_v24  ;;  %v434_v60 = vstv %s12325_s13  ;;  %v489_v62 = vsub.f32 %v488_v55, %v483_v54  ;;  %s12351_s12 = sld [smem:[#allocation5 + $0xa]]  ;;  %s10810_s13 = sld [smem:[#allocation5 + $0x7]] }
  0x41   : > { %v804_v45 = vcombine.low %v352_v30, %v352_v30  ;;  %v408_v53 = vadd.f32 %v407_v44, %v399_v32  ;;  %v463_v59 = vmul.f32 %v462_v51, %v461_v50  ;;  %v490_v0 = vstv %s12333_s20  ;;  %s10820_s19 = sld [smem:[#allocation5 + $0x9]] }
  0x42   : > { %s10806_s24 = sshll.u32 %s10804_s23, 1  ;;  %v435_v4 = vmul.f32 %v434_v60, %v433_v58  ;;  %v491_v9 = vmul.f32 %v490_v0, %v489_v62 }
  0x43   : > { %v807_v56 = vcombine.low %v408_v53, %v408_v53  ;;  %v828_v57 = vsel %vm827_vm0, %v327_v41, %v804_v45  ;;  %s509_s25 = scalar_lea.vmem %s12290_s11, %s10806_s24  ;;  %v464_v5 = vadd.f32 %v463_v59, %v455_v42  ;;  %v518_v8 = vstv %s10805_s21  ;;  %s10816_s14 = sshll.u32 %s10814_s26, 1 }
  0x44   : > { %v510_v1 = vld [vmem:[%s509_s25] sm:$0x3]  ;;  %v10808_v3 = vld [vmem:[%s509_s25 + $0x2] sm:$0x3]  ;;  %v436_v11 = vadd.f32 %v435_v4, %v427_v46  ;;  %v492_v14 = vadd.f32 %v491_v9, %v483_v54  ;;  %s10811_s15 = sshll.u32 %s10809_s27, 1  ;;  %s565_s18 = scalar_lea.vmem %s12290_s11, %s10816_s14 }
  0x45   : > { %v829_v61 = vsel %vm827_vm0, %v380_v52, %v807_v56  ;;  %v511_v6 = vunpack.c.l.bf16 %v510_v1  ;;  %v516_v7 = vunpack.c.l.bf16 %v10808_v3  ;;  %v810_v13 = vcombine.low %v464_v5, %v464_v5  ;;  %s537_s16 = scalar_lea.vmem %s12290_s11, %s10811_s15  ;;  %v566_v22 = vld [vmem:[%s565_s18] sm:$0x3]  ;;  %v10818_v26 = vld [vmem:[%s565_s18 + $0x2] sm:$0x3]  ;;  %s10821_s20 = sshll.u32 %s10819_s28, 1 }
  0x46   : > { %v840_v63 = vpack.c.bf16 %v829_v61, %v828_v57  ;;  %v538_v20 = vld [vmem:[%s537_s16] sm:$0x3]  ;;  %v10813_v21 = vld [vmem:[%s537_s16 + $0x2] sm:$0x3]  ;;  %v567_v25 = vunpack.c.l.bf16 %v566_v22  ;;  %v572_v27 = vunpack.c.l.bf16 %v10818_v26  ;;  %s593_s17 = scalar_lea.vmem %s12290_s11, %s10821_s20  ;;  %s10826_s22 = sshll.u32 %s10824_s0, 1  ;;  %v574_v29 = vstv %s12349_s10 }
  0x47   : > { %v517_v10 = vsub.f32 %v516_v7, %v511_v6  ;;  %v830_v17 = vsel %vm827_vm0, %v436_v11, %v810_v13  ;;  %v539_v23 = vunpack.c.l.bf16 %v538_v20  ;;  %v544_v24 = vunpack.c.l.bf16 %v10813_v21  ;;  %v594_v30 = vld [vmem:[%s593_s17] sm:$0x3]  ;;  %v10823_v31 = vld [vmem:[%s593_s17 + $0x2] sm:$0x3]  ;;  %s621_s23 = scalar_lea.vmem %s12290_s11, %s10826_s22  ;;  %s12170_s21 = smov 16  }
  0x48   : > { %10867 = vmatmul.mubr.msk.bf16.vlgmr.msra.gmra.mrb[0].mxu0 %vm893_vm1, %v840_v63  ;;  %v546_v32 = vstv %s10810_s13  ;;  %v573_v33 = vsub.f32 %v572_v27, %v567_v25  ;;  %v595_v34 = vunpack.c.l.bf16 %v594_v30  ;;  %v600_v35 = vunpack.c.l.bf16 %v10823_v31  ;;  %v622_v36 = vld [vmem:[%s621_s23] sm:$0x3]  ;;  %v10828_v37 = vld [vmem:[%s621_s23 + $0x2] sm:$0x3]  ;;  %s12171_s24 = smov 1   ;;  %s12172_s25 = smov 17  }
  0x49   : > { %951 = vmatprep.mubr.bf16.mxu0 %v12169_v2  ;;  %v519_v12 = vmul.f32 %v518_v8, %v517_v10  ;;  %v545_v28 = vsub.f32 %v544_v24, %v539_v23  ;;  %v623_v39 = vunpack.c.l.bf16 %v622_v36  ;;  %v628_v40 = vunpack.c.l.bf16 %v10828_v37  ;;  %s12173_s26 = smov 15   ;;  %s12174_s27 = smov 127  }
  0x4a   : > { %v575_v41 = vmul.f32 %v574_v29, %v573_v33  ;;  %v601_v42 = vsub.f32 %v600_v35, %v595_v34  ;;  %v630_v43 = vstv %s12351_s12  ;;  %v602_v44 = vstv %s10820_s19  ;;  %s12175_s28 = smov 112   ;;  %s10834_s0 = sld [smem:[#allocation4 + $0xc]] }
  0x4b   : > { %v520_v15 = vadd.f32 %v519_v12, %v511_v6  ;;  %v547_v38 = vmul.f32 %v546_v32, %v545_v28  ;;  %v629_v45 = vsub.f32 %v628_v40, %v623_v39  ;;  %s10829_s10 = sld [smem:[#allocation4 + $0xb]]  ;;  %s10839_s14 = sld [smem:[#allocation4 + $0xd]] }
  0x4c   : > { %v576_v46 = vadd.f32 %v575_v41, %v567_v25  ;;  %v603_v47 = vmul.f32 %v602_v44, %v601_v42  ;;  %s12403_s12 = sld [smem:[#allocation4 + $0xe]]  ;;  %s15851_s13 = smov 113  }
  0x4d   : > { %v813_v16 = vcombine.low %v520_v15, %v520_v15  ;;  %v548_v48 = vadd.f32 %v547_v38, %v539_v23  ;;  %v631_v49 = vmul.f32 %v630_v43, %v629_v45  ;;  %s12409_s15 = sld [smem:[#allocation5 + $0xc]]  ;;  %s12412_s19 = sld [smem:[#allocation5 + $0xe]] }
  0x4e   : > { %v816_v50 = vcombine.low %v576_v46, %v576_v46  ;;  %v604_v51 = vadd.f32 %v603_v47, %v595_v34  ;;  %s12177_s20 = smov 111   ;;  %s12416_s17 = sld [smem:[#allocation5 + $0xb]] }
  0x4f   : > { %v831_v18 = vsel %vm827_vm0, %v492_v14, %v813_v16  ;;  %v632_v52 = vadd.f32 %v631_v49, %v623_v39 }
  0x50   : > { %v841_v19 = vpack.c.bf16 %v831_v18, %v830_v17  ;;  %v832_v54 = vsel %vm827_vm0, %v548_v48, %v816_v50  ;;  %s10836_s16 = sshll.u32 %s10834_s0, 1  ;;  %s12421_s0 = sld [smem:[#allocation5 + $0xd]] }
  0x51   : > { %v819_v53 = vcombine.low %v632_v52, %v632_v52  ;;  %s677_s18 = scalar_lea.vmem %s12290_s11, %s10836_s16  ;;  %s10831_s22 = sshll.u32 %s10829_s10, 1 }
  0x52   : > { %10868 = vmatmul.mubr.msk.bf16.gmra.mrb[4].mxu0 %vm893_vm1, %v841_v19  ;;  %v678_v1 = vld [vmem:[%s677_s18] sm:$0x3]  ;;  %s649_s23 = scalar_lea.vmem %s12290_s11, %s10831_s22  ;;  %v10838_v4 = vld [vmem:[%s677_s18 + $0x2] sm:$0x3]  ;;  %s10841_s16 = sshll.u32 %s10839_s14, 1 }
  0x53   : > { %961 = vmatprep.mubr.bf16.mxu0 %v12169_v2  ;;  %v833_v55 = vsel %vm827_vm0, %v604_v51, %v819_v53  ;;  %v679_v3 = vunpack.c.l.bf16 %v678_v1  ;;  %v650_v6 = vld [vmem:[%s649_s23] sm:$0x3]  ;;  %v10833_v7 = vld [vmem:[%s649_s23 + $0x2] sm:$0x3]  ;;  %v684_v8 = vunpack.c.l.bf16 %v10838_v4  ;;  %s705_s10 = scalar_lea.vmem %s12290_s11, %s10841_s16  ;;  %v686_v12 = vstv %s12409_s15  ;;  %s10849_s14 = sld [smem:[#allocation4 + $0xf]] }
  0x54   : > { %v842_v56 = vpack.c.bf16 %v833_v55, %v832_v54  ;;  %v651_v9 = vunpack.c.l.bf16 %v650_v6  ;;  %v656_v10 = vunpack.c.l.bf16 %v10833_v7  ;;  %v706_v13 = vld [vmem:[%s705_s10] sm:$0x3]  ;;  %v10843_v14 = vld [vmem:[%s705_s10 + $0x2] sm:$0x3]  ;;  %v658_v21 = vstv %s12416_s17 }
  0x55   : > { %v685_v11 = vsub.f32 %v684_v8, %v679_v3  ;;  %v707_v17 = vunpack.c.l.bf16 %v706_v13  ;;  %v712_v18 = vunpack.c.l.bf16 %v10843_v14  ;;  %v742_v28 = vstv %s12412_s19  ;;  %s15855_s19 = smov 113   ;;  %v10872_v13 = vld [vmem:[%s15849_s6 + $0x1] ss:$8 sm:$0x3] }
  0x56   : > { %v657_v16 = vsub.f32 %v656_v10, %v651_v9  ;;  %v714_v27 = vstv %s12421_s0  ;;  %v994_v8 = vlaneseq }
  0x57   : > { %v687_v22 = vmul.f32 %v686_v12, %v685_v11  ;;  %v713_v26 = vsub.f32 %v712_v18, %v707_v17 }
  0x58   : > { %v659_v25 = vmul.f32 %v658_v21, %v657_v16  ;;  %v12534_v10 = vand.u32 127, %v994_v8  ;;  %v10874_v21 = vld [vmem:[%s15849_s6 + $0x3] ss:$8 sm:$0x3]  ;;  %vm15267_vm12 = vcmp.lt.s32.totalorder %v994_v8, 256 }
  0x59   : > { %v688_v29 = vadd.f32 %v687_v22, %v679_v3  ;;  %v715_v31 = vmul.f32 %v714_v27, %v713_v26 }
  0x5a   : > { %10869 = vmatmul.mubr.msk.bf16.gmra.mrb[8].mxu0 %vm893_vm1, %v842_v56  ;;  %v660_v32 = vadd.f32 %v659_v25, %v651_v9  ;;  %v12529_v9 = vshrl.u32 %v994_v8, 7  ;;  %vm1017_vm2 = vcmp.lt.s32.totalorder %v12534_v10, 16  ;;  %vm1061_vm3 = vcmp.lt.s32.totalorder %v12534_v10, 1 }
  0x5b   : > { %971 = vmatprep.mubr.bf16.mxu0 %v12169_v2  ;;  %v822_v34 = vcombine.low %v688_v29, %v688_v29  ;;  %v716_v35 = vadd.f32 %v715_v31, %v707_v17  ;;  %vm996_vm4 = vcmp.lt.s32.totalorder %v12534_v10, 17  ;;  %vm1039_vm5 = vcmp.lt.s32.totalorder %v12534_v10, 15 }
  0x5c   : > { %v12539_v11 = vsub.s32 0, %v12529_v9  ;;  %v12542_v12 = vsub.s32 1, %v12529_v9  ;;  %vm1083_vm6 = vcmp.lt.s32.totalorder %v12534_v10, 127  ;;  %vm1127_vm7 = vcmp.lt.s32.totalorder %v12534_v10, 112 }
  0x5d   : > { %v834_v38 = vsel %vm827_vm0, %v660_v32, %v822_v34  ;;  %vm1105_vm8 = vcmp.lt.s32.totalorder %v12534_v10, 113  ;;  %vm1149_vm9 = vcmp.lt.s32.totalorder %v12534_v10, 111 }
  0x5e   : > { %v1026_v17 = vrot.slane %v10872_v13, %v12539_v11  ;;  %v1030_v18 = vrot.slane %v10872_v13, %v12542_v12  ;;  %v1070_v27 = vrot.slane %v10874_v21, %v12539_v11  ;;  %v1074_v29 = vrot.slane %v10874_v21, %v12542_v12  ;;  %v10877_v13 = vld [vmem:[%s15849_s6 + $0x7] ss:$8 sm:$0x3] }
 0x11b   : > { %v12363_v57 = vpop.f32.mrb[0].mxu0 }
 0x11c   : > { %1013 = vrot.lane.b32.xlu0 %v12363_v57, %s12170_s21  ;;  %v12367_v58 = vpop.f32.mrb[1].mxu0  ;;  %v12424_v5 = vrot.slane %v12363_v57, 4 }
 0x11d   : > { %1015 = vrot.lane.b32.xlu1 %v12367_v58, %s12170_s21  ;;  %v12371_v59 = vpop.f32.mrb[2].mxu0  ;;  %v12433_v15 = vrot.slane %v12367_v58, 4 }
 0x11e   : > { %v12373_v60 = vpop.f32.mrb[3].mxu0  ;;  %v12509_v6 = vrot.slane %v12371_v59, 4 }
 0x11f   : > { %v12512_v7 = vrot.slane %v12373_v60, 4 }
 0x120   : > { %1057 = vrot.lane.b32.xlu0 %v12363_v57, %s12171_s24 }
 0x121   : > { %1059 = vrot.lane.b32.xlu1 %v12367_v58, %s12171_s24 }
 0x124   : > { %990 = vrot.lane.b32.xlu0 %v12363_v57, %s12172_s25 }
 0x125   : > { %992 = vrot.lane.b32.xlu1 %v12367_v58, %s12172_s25  ;;  %v12383_v61 = vpop.f32.mrb[4].mxu0 }
 0x126   : > { %v12387_v62 = vpop.f32.mrb[5].mxu0 }
 0x127   : > { %v12391_v63 = vpop.f32.mrb[6].mxu0 }
 0x128   : > { %1035 = vrot.lane.b32.xlu0 %v12363_v57, %s12173_s26  ;;  %v12393_v0 = vpop.f32.mrb[7].mxu0 }
 0x129   : > { %1037 = vrot.lane.b32.xlu1 %v12367_v58, %s12173_s26 }
 0x12c   : > { %1079 = vrot.lane.b32.xlu0 %v12363_v57, %s12174_s27 }
 0x12d   : > { %1081 = vrot.lane.b32.xlu1 %v12367_v58, %s12174_s27 }
 0x130   : > { %1123 = vrot.lane.b32.xlu0 %v12363_v57, %s12175_s28 }
 0x131   : > { %1125 = vrot.lane.b32.xlu1 %v12367_v58, %s12175_s28 }
 0x134   : > { %1101 = vrot.lane.b32.xlu0 %v12363_v57, %s15851_s13 }
 0x135   : > { %1103 = vrot.lane.b32.xlu1 %v12367_v58, %s15851_s13  ;;  %s10846_s13 = sshll.u32 %s12403_s12, 1  ;;  %s10850_s12 = sld [smem:[#allocation5 + $0xf]] }
 0x136   : > { %s733_s18 = scalar_lea.vmem %s12290_s11, %s10846_s13  ;;  %s10851_s13 = sshll.u32 %s10849_s14, 1 }
 0x137   : > { %v734_v19 = vld [vmem:[%s733_s18] sm:$0x3]  ;;  %v10848_v20 = vld [vmem:[%s733_s18 + $0x2] sm:$0x3]  ;;  %s761_s15 = scalar_lea.vmem %s12290_s11, %s10851_s13  ;;  %s11634_s13 = sshll.u32 %s15863_s29, 8 }
 0x138   : > { %1145 = vrot.lane.b32.xlu0 %v12363_v57, %s12177_s20  ;;  %v735_v23 = vunpack.c.l.bf16 %v734_v19  ;;  %v740_v24 = vunpack.c.l.bf16 %v10848_v20  ;;  %v790_v41 = vld [vmem:[%s761_s15] sm:$0x3]  ;;  %v10858_v42 = vld [vmem:[%s761_s15 + $0x2] sm:$0x3] }
 0x139   : > { %1147 = vrot.lane.b32.xlu1 %v12367_v58, %s12177_s20  ;;  %v791_v43 = vunpack.c.l.bf16 %v790_v41  ;;  %v796_v44 = vunpack.c.l.bf16 %v10858_v42  ;;  %v762_v46 = vld [vmem:[%s761_s15] sm:$0x3]  ;;  %v10853_v47 = vld [vmem:[%s761_s15 + $0x2] sm:$0x3] }
 0x13a   : > { %v741_v30 = vsub.f32 %v740_v24, %v735_v23  ;;  %v763_v49 = vunpack.c.l.bf16 %v762_v46  ;;  %v768_v50 = vunpack.c.l.bf16 %v10853_v47  ;;  %v10875_v42 = vld [vmem:[%s15849_s6 + $0x5] ss:$8 sm:$0x3] }
 0x13b   : > { %v797_v45 = vsub.f32 %v796_v44, %v791_v43  ;;  %v770_v48 = vstv %s10850_s12 }
 0x13c   : > { %1262 = vrot.lane.b32.xlu0 %v12424_v5, %s12170_s21  ;;  %v743_v33 = vmul.f32 %v742_v28, %v741_v30  ;;  %v769_v52 = vsub.f32 %v768_v50, %v763_v49  ;;  %v10873_v28 = vld [vmem:[%s15849_s6 + $0x2] ss:$8 sm:$0x3] }
 0x13d   : > { %1302 = vrot.lane.b32.xlu1 %v12424_v5, %s12171_s24  ;;  %v799_v51 = vmul.f32 %v797_v45, %v770_v48 }
 0x13e   : > { %v744_v36 = vadd.f32 %v743_v33, %v735_v23  ;;  %v771_v54 = vmul.f32 %v770_v48, %v769_v52  ;;  %v999_v23 = vld [vmem:[%s15849_s6] ss:$8 sm:$0x3] }
 0x13f   : > { %v800_v53 = vadd.f32 %v799_v51, %v791_v43  ;;  %v1004_v30 = vrot.slane %v999_v23, %v12539_v11  ;;  %v1008_v31 = vrot.slane %v999_v23, %v12542_v12  ;;  %v1092_v51 = vrot.slane %v10875_v42, %v12539_v11 }
 0x140   : > { %1242 = vrot.lane.b32.xlu0 %v12424_v5, %s12172_s25  ;;  %v825_v37 = vcombine.low %v744_v36, %v744_v36  ;;  %v772_v56 = vadd.f32 %v771_v54, %v763_v49  ;;  %v1048_v36 = vrot.slane %v10873_v28, %v12539_v11  ;;  %v1096_v54 = vrot.slane %v10875_v42, %v12542_v12 }
 0x141   : > { %1304 = vrot.lane.b32.xlu1 %v12433_v15, %s12171_s24  ;;  %v802_v55 = vmul.f32 0.0, %v800_v53 }
 0x142   : > { %v835_v39 = vsel %vm827_vm0, %v716_v35, %v825_v37  ;;  %v1052_v37 = vrot.slane %v10873_v28, %v12542_v12 }
 0x143   : > { %v843_v40 = vpack.c.bf16 %v835_v39, %v834_v38  ;;  %v837_v1 = vcombine.low %v802_v55, %v802_v55 }
 0x144   : > { %1282 = vrot.lane.b32.xlu0 %v12424_v5, %s12173_s26 }
 0x145   : > { %1244 = vrot.lane.b32.xlu1 %v12433_v15, %s12172_s25  ;;  %10870 = vmatmul.mubr.msk.bf16.gmra.mrb[12].mxu0 %vm893_vm1, %v843_v40  ;;  %v839_v3 = vsel %vm827_vm0, %v772_v56, %v837_v1 }
 0x146   : > { %981 = vmatprep.mubr.bf16.mxu0 %v12169_v2  ;;  %v844_v4 = vpack.c.bf16 %v839_v3, %v839_v3 }
 0x148   : > { %1322 = vrot.lane.b32.xlu0 %v12424_v5, %s12174_s27 }
 0x149   : > { %1284 = vrot.lane.b32.xlu1 %v12433_v15, %s12173_s26 }
 0x14c   : > { %1362 = vrot.lane.b32.xlu0 %v12424_v5, %s12175_s28 }
 0x14d   : > { %1324 = vrot.lane.b32.xlu1 %v12433_v15, %s12174_s27  ;;  %10871 = vmatmul.mubr.msk.bf16.gmra.mrb[16].mxu0 %vm893_vm1, %v844_v4 }
 0x14e   : > { %5280 = vmatprep.mubr.bf16.mxu0 %v12169_v2 }
 0x150   : > { %1342 = vrot.lane.b32.xlu0 %v12424_v5, %s15855_s19 }
 0x151   : > { %1364 = vrot.lane.b32.xlu1 %v12433_v15, %s12175_s28 }
 0x154   : > { %1382 = vrot.lane.b32.xlu0 %v12424_v5, %s12177_s20 }
 0x155   : > { %1344 = vrot.lane.b32.xlu1 %v12433_v15, %s15855_s19 }
 0x158   : > { %1492 = vrot.lane.b32.xlu0 %v12371_v59, %s12170_s21 }
 0x159   : > { %1384 = vrot.lane.b32.xlu1 %v12433_v15, %s12177_s20 }
 0x15c   : > { %1532 = vrot.lane.b32.xlu0 %v12371_v59, %s12171_s24 }
 0x15d   : > { %1494 = vrot.lane.b32.xlu1 %v12373_v60, %s12170_s21 }
 0x160   : > { %1472 = vrot.lane.b32.xlu0 %v12371_v59, %s12172_s25 }
 0x161   : > { %1534 = vrot.lane.b32.xlu1 %v12373_v60, %s12171_s24 }
 0x164   : > { %1512 = vrot.lane.b32.xlu0 %v12371_v59, %s12173_s26 }
 0x165   : > { %1474 = vrot.lane.b32.xlu1 %v12373_v60, %s12172_s25 }
 0x168   : > { %1552 = vrot.lane.b32.xlu0 %v12371_v59, %s12174_s27 }
 0x169   : > { %1514 = vrot.lane.b32.xlu1 %v12373_v60, %s12173_s26 }
 0x16c   : > { %1592 = vrot.lane.b32.xlu0 %v12371_v59, %s12175_s28 }
 0x16d   : > { %1554 = vrot.lane.b32.xlu1 %v12373_v60, %s12174_s27 }
 0x170   : > { %1572 = vrot.lane.b32.xlu0 %v12371_v59, %s15855_s19 }
 0x171   : > { %1594 = vrot.lane.b32.xlu1 %v12373_v60, %s12175_s28 }
 0x174   : > { %1612 = vrot.lane.b32.xlu0 %v12371_v59, %s12177_s20 }
 0x175   : > { %1574 = vrot.lane.b32.xlu1 %v12373_v60, %s15855_s19 }
 0x178   : > { %1264 = vrot.lane.b32.xlu0 %v12433_v15, %s12170_s21 }
 0x179   : > { %1614 = vrot.lane.b32.xlu1 %v12373_v60, %s12177_s20 }
 0x17c   : > { %1728 = vrot.lane.b32.xlu0 %v12509_v6, %s12170_s21 }
 0x17d   : > { %1730 = vrot.lane.b32.xlu1 %v12512_v7, %s12170_s21 }
 0x180   : > { %1768 = vrot.lane.b32.xlu0 %v12509_v6, %s12171_s24 }
 0x181   : > { %1770 = vrot.lane.b32.xlu1 %v12512_v7, %s12171_s24 }
 0x184   : > { %1708 = vrot.lane.b32.xlu0 %v12509_v6, %s12172_s25 }
 0x185   : > { %1710 = vrot.lane.b32.xlu1 %v12512_v7, %s12172_s25 }
 0x188   : > { %1748 = vrot.lane.b32.xlu0 %v12509_v6, %s12173_s26 }
 0x189   : > { %1750 = vrot.lane.b32.xlu1 %v12512_v7, %s12173_s26 }
 0x18c   : > { %1788 = vrot.lane.b32.xlu0 %v12509_v6, %s12174_s27 }
 0x18d   : > { %1790 = vrot.lane.b32.xlu1 %v12512_v7, %s12174_s27 }
 0x18e   : > { %v1014_v14 = vpop.permute.xlu0 %1013 }
 0x18f   : > { %v1016_v16 = vpop.permute.xlu1 %1015 }
 0x190   : > { %1828 = vrot.lane.b32.xlu0 %v12509_v6, %s12175_s28  ;;  %v1018_v19 = vsel %vm1017_vm2, %v1014_v14, %v1016_v16  ;;  %v1019_v20 = vsel %vm1017_vm2, %v1016_v16, %v1014_v14  ;;  %v12613_v14 = vpop.f32.mrb[8].mxu0 }
 0x191   : > { %1830 = vrot.lane.b32.xlu1 %v12512_v7, %s12175_s28  ;;  %v1033_v25 = vmul.f32 %v1026_v17, %v1019_v20  ;;  %v1034_v26 = vmul.f32 %v1030_v18, %v1018_v19  ;;  %v12617_v19 = vpop.f32.mrb[9].mxu0 }
 0x192   : > { %v1058_v22 = vpop.permute.xlu0 %1057  ;;  %v12629_v23 = vpop.f32.mrb[10].mxu0 }
 0x193   : > { %v1060_v24 = vpop.permute.xlu1 %1059  ;;  %v1169_v38 = vrot.slane %v1033_v25, 4  ;;  %v1170_v39 = vrot.slane %v1034_v26, 4  ;;  %v1136_v26 = vrot.slane %v10877_v13, %v12539_v11  ;;  %v12635_v28 = vpop.f32.mrb[11].mxu0 }
 0x194   : > { %1808 = vrot.lane.b32.xlu0 %v12509_v6, %s15855_s19  ;;  %v1062_v32 = vsel %vm1061_vm3, %v1058_v22, %v1060_v24  ;;  %v1063_v33 = vsel %vm1061_vm3, %v1060_v24, %v1058_v22  ;;  %v10876_v22 = vld [vmem:[%s15849_s6 + $0x6] ss:$8 sm:$0x3] }
 0x195   : > { %1810 = vrot.lane.b32.xlu1 %v12512_v7, %s15855_s19  ;;  %v1077_v43 = vmul.f32 %v1070_v27, %v1063_v33  ;;  %v1078_v44 = vmul.f32 %v1074_v29, %v1062_v32  ;;  %v1140_v27 = vrot.slane %v10877_v13, %v12542_v12 }
 0x196   : > { %v991_v34 = vpop.permute.xlu0 %990 }
 0x197   : > { %v993_v35 = vpop.permute.xlu1 %992  ;;  %v1175_v55 = vrot.slane %v1077_v43, 4  ;;  %v1176_v56 = vrot.slane %v1078_v44, 4  ;;  %v10878_v43 = vld [vmem:[%s15849_s6 + $0x10] ss:$8 sm:$0x3] }
 0x198   : > { %v997_v40 = vsel %vm996_vm4, %v991_v34, %v993_v35  ;;  %v998_v41 = vsel %vm996_vm4, %v993_v35, %v991_v34  ;;  %1848 = vrot.lane.b32.xlu0 %v12509_v6, %s12177_s20  ;;  %v1114_v35 = vrot.slane %v10876_v22, %v12539_v11 }
 0x199   : > { %v1011_v45 = vmul.f32 %v1004_v30, %v998_v41  ;;  %v1012_v46 = vmul.f32 %v1008_v31, %v997_v40  ;;  %1850 = vrot.lane.b32.xlu1 %v12512_v7, %s12177_s20 }
 0x19a   : > { %v1036_v47 = vpop.permute.xlu0 %1035 }
 0x19b   : > { %v1191_v48 = vsel %vm827_vm0, %v1011_v45, %v1169_v38  ;;  %v1192_v49 = vsel %vm827_vm0, %v1012_v46, %v1170_v39  ;;  %v1038_v50 = vpop.permute.xlu1 %1037  ;;  %v1118_v38 = vrot.slane %v10876_v22, %v12542_v12  ;;  %v1158_v46 = vrot.slane %v10878_v43, %v12539_v11  ;;  %v10886_v22 = vld [vmem:[%s15849_s6 + $0x3] ss:$8 sm:$0x3] }
 0x19c   : > { %v1040_v52 = vsel %vm1039_vm5, %v1036_v47, %v1038_v50  ;;  %v1041_v53 = vsel %vm1039_vm5, %v1038_v50, %v1036_v47  ;;  %1958 = vrot.lane.b32.xlu0 %v12383_v61, %s12170_s21  ;;  %v1162_v47 = vrot.slane %v10878_v43, %v12542_v12  ;;  %v12715_v43 = vrot.slane %v12387_v62, 4 }
 0x19d   : > { %v1055_v1 = vmul.f32 %v1048_v36, %v1041_v53  ;;  %v1056_v3 = vmul.f32 %v1052_v37, %v1040_v52  ;;  %1960 = vrot.lane.b32.xlu1 %v12387_v62, %s12170_s21 }
 0x19e   : > { %v1080_v4 = vpop.permute.xlu0 %1079 }
 0x19f   : > { %v1193_v16 = vsel %vm827_vm0, %v1055_v1, %v1175_v55  ;;  %v1194_v17 = vsel %vm827_vm0, %v1056_v3, %v1176_v56  ;;  %v1082_v18 = vpop.permute.xlu1 %1081 }
 0x1a0   : > { %v1084_v20 = vsel %vm1083_vm6, %v1080_v4, %v1082_v18  ;;  %v1085_v21 = vsel %vm1083_vm6, %v1082_v18, %v1080_v4  ;;  %1998 = vrot.lane.b32.xlu0 %v12383_v61, %s12171_s24  ;;  %v12038_v30 = vpack.c.bf16 %v1193_v16, %v1191_v48  ;;  %v12039_v31 = vpack.c.bf16 %v1194_v17, %v1192_v49 }
 0x1a1   : > { %v1099_v24 = vmul.f32 %v1092_v51, %v1084_v20  ;;  %v1100_v25 = vmul.f32 %v1096_v54, %v1085_v21  ;;  %2000 = vrot.lane.b32.xlu1 %v12387_v62, %s12171_s24 }
 0x1a2   : > { %v1124_v29 = vpop.permute.xlu0 %1123  ;;  %5248 = vmatprep.subr.bf16.mxu0 %v12039_v31 }
 0x1a3   : > { %v1181_v32 = vrot.slane %v1099_v24, 4  ;;  %v1182_v33 = vrot.slane %v1100_v25, 4  ;;  %v1126_v34 = vpop.permute.xlu1 %1125  ;;  %5249 = vmatpush1.bf16.msra.mxu0 %v12038_v30  ;;  %v1313_v25 = vrot.slane %v10886_v22, %v12539_v11 }
 0x1a4   : > { %v1128_v36 = vsel %vm1127_vm7, %v1124_v29, %v1126_v34  ;;  %v1129_v37 = vsel %vm1127_vm7, %v1126_v34, %v1124_v29  ;;  %1938 = vrot.lane.b32.xlu0 %v12383_v61, %s12172_s25 }
 0x1a5   : > { %v1195_v39 = vsel %vm827_vm0, %v12363_v57, %v1181_v32  ;;  %v1196_v40 = vsel %vm827_vm0, %v12367_v58, %v1182_v33  ;;  %v1143_v41 = vmul.f32 %v1136_v26, %v1128_v36  ;;  %v1144_v42 = vmul.f32 %v1140_v27, %v1129_v37  ;;  %1940 = vrot.lane.b32.xlu1 %v12387_v62, %s12172_s25  ;;  %v10885_v27 = vld [vmem:[%s15849_s6 + $0x2] ss:$8 sm:$0x3]  ;;  %v10887_v36 = vld [vmem:[%s15849_s6 + $0x5] ss:$8 sm:$0x3] }
 0x1a6   : > { %v1102_v44 = vpop.permute.xlu0 %1101  ;;  %v1317_v26 = vrot.slane %v10886_v22, %v12542_v12  ;;  %v1293_v34 = vrot.slane %v10885_v27, %v12539_v11  ;;  %v10888_v22 = vld [vmem:[%s15849_s6 + $0x6] ss:$8 sm:$0x3] }
 0x1a7   : > { %v1104_v45 = vpop.permute.xlu1 %1103  ;;  %v1187_v48 = vrot.slane %v1143_v41, 4  ;;  %v1188_v49 = vrot.slane %v1144_v42, 4  ;;  %v12712_v41 = vrot.slane %v12383_v61, 4 }
 0x1a8   : > { %v1106_v57 = vsel %vm1105_vm8, %v1102_v44, %v1104_v45  ;;  %v1107_v58 = vsel %vm1105_vm8, %v1104_v45, %v1102_v44  ;;  %1978 = vrot.lane.b32.xlu0 %v12383_v61, %s12173_s26 }
 0x1a9   : > { %v1121_v50 = vmul.f32 %v1114_v35, %v1106_v57  ;;  %v1122_v51 = vmul.f32 %v1118_v38, %v1107_v58  ;;  %1980 = vrot.lane.b32.xlu1 %v12387_v62, %s12173_s26  ;;  %v1297_v35 = vrot.slane %v10885_v27, %v12542_v12  ;;  %v1333_v57 = vrot.slane %v10887_v36, %v12539_v11 }
 0x1aa   : > { %v1146_v52 = vpop.permute.xlu0 %1145 }
 0x1ab   : > { %v1197_v53 = vsel %vm827_vm0, %v1121_v50, %v1187_v48  ;;  %v1198_v54 = vsel %vm827_vm0, %v1122_v51, %v1188_v49  ;;  %v1148_v55 = vpop.permute.xlu1 %1147  ;;  %v5206_v48 = vld [vmem:[%s15847_s4] sm:$0xf] }
 0x1ac   : > { %v1150_v56 = vsel %vm1149_vm9, %v1146_v52, %v1148_v55  ;;  %v1151_v1 = vsel %vm1149_vm9, %v1148_v55, %v1146_v52  ;;  %2018 = vrot.lane.b32.xlu0 %v12383_v61, %s12174_s27  ;;  %v12040_v16 = vpack.c.bf16 %v1197_v53, %v1195_v39  ;;  %v12041_v17 = vpack.c.bf16 %v1198_v54, %v1196_v40  ;;  %v10889_v54 = vld [vmem:[%s15849_s6 + $0x7] ss:$8 sm:$0x3] }
 0x1ad   : > { %v1165_v3 = vmul.f32 %v1158_v46, %v1150_v56  ;;  %v1166_v4 = vmul.f32 %v1162_v47, %v1151_v1  ;;  %2020 = vrot.lane.b32.xlu1 %v12387_v62, %s12174_s27  ;;  %v1337_v47 = vrot.slane %v10887_v36, %v12542_v12 }
 0x1ae   : > { %v12676_v13 = vpop.permute.xlu0 %1262  ;;  %5250 = vmatprep.subr.bf16.mxu0 %v12041_v17 }
 0x1af   : > { %v11639_v18 = vpack.c.bf16 %v1166_v4, %v1165_v3  ;;  %v1303_v20 = vpop.permute.xlu1 %1302  ;;  %5251 = vmatpush1.bf16.msra.mxu0 %v12040_v16 }
 0x1b0   : > { %2058 = vrot.lane.b32.xlu0 %v12383_v61, %s12175_s28 }
 0x1b1   : > { %1235 = vst [vmem:[#allocation2 + $0x20] sm:$0x33] %v11639_v18  ;;  %2060 = vrot.lane.b32.xlu1 %v12387_v62, %s12175_s28  ;;  %v1373_v18 = vrot.slane %v10889_v54, %v12539_v11 }
 0x1b2   : > { %v12682_v21 = vpop.permute.xlu0 %1242 }
 0x1b3   : > { %v1305_v24 = vpop.permute.xlu1 %1304 }
 0x1b4   : > { %2038 = vrot.lane.b32.xlu0 %v12383_v61, %s15855_s19  ;;  %v1306_v29 = vsel %vm1061_vm3, %v1303_v20, %v1305_v24  ;;  %v1307_v30 = vsel %vm1061_vm3, %v1305_v24, %v1303_v20  ;;  %v1377_v20 = vrot.slane %v10889_v54, %v12542_v12 }
 0x1b5   : > { %2040 = vrot.lane.b32.xlu1 %v12387_v62, %s15855_s19  ;;  %v1320_v37 = vmul.f32 %v1313_v25, %v1307_v30  ;;  %v1321_v38 = vmul.f32 %v1317_v26, %v1306_v29 }
 0x1b6   : > { %v1283_v31 = vpop.permute.xlu0 %1282 }
 0x1b7   : > { %v12700_v32 = vpop.permute.xlu1 %1244  ;;  %v1410_v49 = vrot.slane %v1320_v37, 4  ;;  %v1411_v50 = vrot.slane %v1321_v38, 4  ;;  %v10890_v38 = vld [vmem:[%s15849_s6 + $0x10] ss:$8 sm:$0x3] }
 0x1b8   : > { %2078 = vrot.lane.b32.xlu0 %v12383_v61, %s12177_s20  ;;  %v5211_v33 = vld [vmem:[#allocation2 + $0x20] sm:$0x33] }
 0x1b9   : > { %2080 = vrot.lane.b32.xlu1 %v12387_v62, %s12177_s20  ;;  %v11093_v39 = vcombine.high %v5211_v33, %v5211_v33  ;;  %v11092_v40 = vcombine.low %v5211_v33, %v5211_v33  ;;  %v1357_v33 = vrot.slane %v10888_v22, %v12542_v12 }
 0x1ba   : > { %v1323_v42 = vpop.permute.xlu0 %1322 }
 0x1bb   : > { %11094 = vmatprep.subr.msk.bf16.mxu0 %vm5241_vm10, %v11093_v39  ;;  %v1285_v44 = vpop.permute.xlu1 %1284  ;;  %v5243_v45 = vsel %vm5241_vm10, %v11092_v40, 0 }
 0x1bc   : > { %v1286_v58 = vsel %vm1039_vm5, %v1283_v31, %v1285_v44  ;;  %v1287_v46 = vsel %vm1039_vm5, %v1285_v44, %v1283_v31  ;;  %2194 = vrot.lane.b32.xlu0 %v12712_v41, %s12170_s21  ;;  %5253 = vmatpush1.bf16.msra.mxu0 %v5243_v45  ;;  %v1353_v31 = vrot.slane %v10888_v22, %v12539_v11 }
 0x1bd   : > { %v1300_v51 = vmul.f32 %v1293_v34, %v1287_v46  ;;  %v1301_v52 = vmul.f32 %v1297_v35, %v1286_v58  ;;  %2196 = vrot.lane.b32.xlu1 %v12715_v43, %s12170_s21  ;;  %v1397_v44 = vrot.slane %v10890_v38, %v12542_v12 }
 0x1be   : > { %v1363_v53 = vpop.permute.xlu0 %1362 }
 0x1bf   : > { %v12736_v55 = vsel %vm827_vm0, %v1300_v51, %v1410_v49  ;;  %v12739_v56 = vsel %vm827_vm0, %v1301_v52, %v1411_v50  ;;  %v1325_v1 = vpop.permute.xlu1 %1324  ;;  %11095 = vmatmul.mubr.msk.bf16.vlgmr.msra.gmra.mrb[20].mxu0 %vm5237_vm11, %v5206_v48 }
 0x1c0   : > { %v1326_v3 = vsel %vm1083_vm6, %v1323_v42, %v1325_v1  ;;  %v1327_v4 = vsel %vm1083_vm6, %v1325_v1, %v1323_v42  ;;  %2234 = vrot.lane.b32.xlu0 %v12712_v41, %s12171_s24  ;;  %5955 = vmatprep.mubr.bf16.mxu0 %v12169_v2  ;;  %v10896_v1 = vld [vmem:[%s15849_s6 + $0x1] ss:$8 sm:$0x3] }
 0x1c1   : > { %v1340_v16 = vmul.f32 %v1333_v57, %v1326_v3  ;;  %v1341_v17 = vmul.f32 %v1337_v47, %v1327_v4  ;;  %2236 = vrot.lane.b32.xlu1 %v12715_v43, %s12171_s24 }
 0x1c2   : > { %v1343_v24 = vpop.permute.xlu0 %1342 }
 0x1c3   : > { %v1416_v25 = vrot.slane %v1340_v16, 4  ;;  %v1417_v26 = vrot.slane %v1341_v17, 4  ;;  %v1365_v27 = vpop.permute.xlu1 %1364  ;;  %v1503_v17 = vrot.slane %v10896_v1, %v12539_v11 }
 0x1c4   : > { %v1366_v29 = vsel %vm1127_vm7, %v1363_v53, %v1365_v27  ;;  %v1367_v30 = vsel %vm1127_vm7, %v1365_v27, %v1363_v53  ;;  %2174 = vrot.lane.b32.xlu0 %v12712_v41, %s12172_s25 }
 0x1c5   : > { %v12766_v34 = vsel %vm827_vm0, %v12424_v5, %v1416_v25  ;;  %v12770_v35 = vsel %vm827_vm0, %v12433_v15, %v1417_v26  ;;  %v1380_v36 = vmul.f32 %v1373_v18, %v1366_v29  ;;  %v1381_v37 = vmul.f32 %v1377_v20, %v1367_v30  ;;  %2176 = vrot.lane.b32.xlu1 %v12715_v43, %s12172_s25  ;;  %v10898_v25 = vld [vmem:[%s15849_s6 + $0x3] ss:$8 sm:$0x3]  ;;  %v1478_v26 = vld [vmem:[%s15849_s6] ss:$8 sm:$0x3] }
 0x1c6   : > { %v1383_v39 = vpop.permute.xlu0 %1382  ;;  %v1393_v15 = vrot.slane %v10890_v38, %v12539_v11  ;;  %v1507_v18 = vrot.slane %v10896_v1, %v12542_v12  ;;  %v1487_v38 = vrot.slane %v1478_v26, %v12542_v12 }
 0x1c7   : > { %v1345_v40 = vpop.permute.xlu1 %1344  ;;  %v1422_v45 = vrot.slane %v1380_v36, 4  ;;  %v1423_v57 = vrot.slane %v1381_v37, 4  ;;  %v1547_v36 = vrot.slane %v10898_v25, %v12542_v12  ;;  %v1483_v37 = vrot.slane %v1478_v26, %v12539_v11 }
 0x1c8   : > { %v1346_v42 = vsel %vm1105_vm8, %v1343_v24, %v1345_v40  ;;  %v1347_v5 = vsel %vm1105_vm8, %v1345_v40, %v1343_v24  ;;  %2214 = vrot.lane.b32.xlu0 %v12712_v41, %s12173_s26 }
 0x1c9   : > { %v1360_v58 = vmul.f32 %v1353_v31, %v1346_v42  ;;  %v1361_v46 = vmul.f32 %v1357_v33, %v1347_v5  ;;  %2216 = vrot.lane.b32.xlu1 %v12715_v43, %s12173_s26  ;;  %v10897_v31 = vld [vmem:[%s15849_s6 + $0x2] ss:$8 sm:$0x3]  ;;  %v1543_v33 = vrot.slane %v10898_v25, %v12539_v11 }
 0x1ca   : > { %v1493_v47 = vpop.permute.xlu0 %1492 }
 0x1cb   : > { %v12788_v48 = vsel %vm827_vm0, %v1360_v58, %v1422_v45  ;;  %v12791_v49 = vsel %vm827_vm0, %v1361_v46, %v1423_v57  ;;  %v1385_v50 = vpop.permute.xlu1 %1384 }
 0x1cc   : > { %v1386_v51 = vsel %vm1149_vm9, %v1383_v39, %v1385_v50  ;;  %v1387_v52 = vsel %vm1149_vm9, %v1385_v50, %v1383_v39  ;;  %2254 = vrot.lane.b32.xlu0 %v12712_v41, %s12174_s27 }
 0x1cd   : > { %v1400_v53 = vmul.f32 %v1393_v15, %v1386_v51  ;;  %v1401_v54 = vmul.f32 %v1397_v44, %v1387_v52  ;;  %2256 = vrot.lane.b32.xlu1 %v12715_v43, %s12174_s27  ;;  %v1523_v15 = vrot.slane %v10897_v31, %v12539_v11  ;;  %v1527_v44 = vrot.slane %v10897_v31, %v12542_v12 }
 0x1ce   : > { %v1533_v3 = vpop.permute.xlu0 %1532 }
 0x1cf   : > { %v11644_v4 = vpack.c.bf16 %v1401_v54, %v1400_v53  ;;  %v1495_v16 = vpop.permute.xlu1 %1494 }
 0x1d0   : > { %2294 = vrot.lane.b32.xlu0 %v12712_v41, %s12175_s28  ;;  %v1496_v20 = vsel %vm1017_vm2, %v1493_v47, %v1495_v16  ;;  %v1497_v22 = vsel %vm1017_vm2, %v1495_v16, %v1493_v47  ;;  %v10899_v47 = vld [vmem:[%s15849_s6 + $0x5] ss:$8 sm:$0x3] }
 0x1d1   : > { %1471 = vst [vmem:[#allocation2 + $0x48] sm:$0x33] %v11644_v4  ;;  %2296 = vrot.lane.b32.xlu1 %v12715_v43, %s12175_s28  ;;  %v1510_v29 = vmul.f32 %v1503_v17, %v1497_v22  ;;  %v1511_v30 = vmul.f32 %v1507_v18, %v1496_v20  ;;  %v1563_v16 = vrot.slane %v10899_v47, %v12539_v11 }
 0x1d2   : > { %v1473_v24 = vpop.permute.xlu0 %1472  ;;  %v1567_v20 = vrot.slane %v10899_v47, %v12542_v12 }
 0x1d3   : > { %v1535_v27 = vpop.permute.xlu1 %1534  ;;  %v1634_v45 = vrot.slane %v1510_v29, 4  ;;  %v1635_v57 = vrot.slane %v1511_v30, 4  ;;  %v10901_v29 = vld [vmem:[%s15849_s6 + $0x7] ss:$8 sm:$0x3] }
 0x1d4   : > { %2274 = vrot.lane.b32.xlu0 %v12712_v41, %s15855_s19  ;;  %v1536_v39 = vsel %vm1061_vm3, %v1533_v3, %v1535_v27  ;;  %v1537_v40 = vsel %vm1061_vm3, %v1535_v27, %v1533_v3 }
 0x1d5   : > { %2276 = vrot.lane.b32.xlu1 %v12715_v43, %s15855_s19  ;;  %v1550_v50 = vmul.f32 %v1543_v33, %v1537_v40  ;;  %v1551_v51 = vmul.f32 %v1547_v36, %v1536_v39 }
 0x1d6   : > { %v1513_v42 = vpop.permute.xlu0 %1512 }
 0x1d7   : > { %v1475_v5 = vpop.permute.xlu1 %1474  ;;  %v1640_v22 = vrot.slane %v1550_v50, 4  ;;  %v1248_v50 = vld [vmem:[%s15849_s6] ss:$8 sm:$0x3] }
 0x1d8   : > { %v1476_v58 = vsel %vm996_vm4, %v1473_v24, %v1475_v5  ;;  %v1477_v46 = vsel %vm996_vm4, %v1475_v5, %v1473_v24  ;;  %2314 = vrot.lane.b32.xlu0 %v12712_v41, %s12177_s20  ;;  %v1641_v24 = vrot.slane %v1551_v51, 4  ;;  %v1607_v5 = vrot.slane %v10901_v29, %v12542_v12 }
 0x1d9   : > { %v1490_v52 = vmul.f32 %v1483_v37, %v1477_v46  ;;  %v1491_v53 = vmul.f32 %v1487_v38, %v1476_v58  ;;  %2316 = vrot.lane.b32.xlu1 %v12715_v43, %s12177_s20  ;;  %v10900_v38 = vld [vmem:[%s15849_s6 + $0x6] ss:$8 sm:$0x3] }
 0x1da   : > { %v1553_v54 = vpop.permute.xlu0 %1552  ;;  %v1583_v47 = vrot.slane %v10900_v38, %v12539_v11 }
 0x1db   : > { %v1656_v1 = vsel %vm827_vm0, %v1490_v52, %v1634_v45  ;;  %v1657_v3 = vsel %vm827_vm0, %v1491_v53, %v1635_v57  ;;  %v1515_v4 = vpop.permute.xlu1 %1514  ;;  %v1587_v53 = vrot.slane %v10900_v38, %v12542_v12 }
 0x1dc   : > { %v1516_v17 = vsel %vm1039_vm5, %v1513_v42, %v1515_v4  ;;  %v1517_v18 = vsel %vm1039_vm5, %v1515_v4, %v1513_v42  ;;  %2424 = vrot.lane.b32.xlu0 %v12391_v63, %s12170_s21  ;;  %v1603_v42 = vrot.slane %v10901_v29, %v12539_v11 }
 0x1dd   : > { %v1530_v25 = vmul.f32 %v1523_v15, %v1517_v18  ;;  %v1531_v26 = vmul.f32 %v1527_v44, %v1516_v17  ;;  %2426 = vrot.lane.b32.xlu1 %v12393_v0, %s12170_s21  ;;  %v10902_v17 = vld [vmem:[%s15849_s6 + $0x10] ss:$8 sm:$0x3] }
 0x1de   : > { %v1593_v27 = vpop.permute.xlu0 %1592 }
 0x1df   : > { %v1658_v30 = vsel %vm827_vm0, %v1530_v25, %v1640_v22  ;;  %v1659_v31 = vsel %vm827_vm0, %v1531_v26, %v1641_v24  ;;  %v1555_v33 = vpop.permute.xlu1 %1554  ;;  %v1257_v22 = vrot.slane %v1248_v50, %v12542_v12 }
 0x1e0   : > { %v1556_v36 = vsel %vm1083_vm6, %v1553_v54, %v1555_v33  ;;  %v1557_v37 = vsel %vm1083_vm6, %v1555_v33, %v1553_v54  ;;  %2464 = vrot.lane.b32.xlu0 %v12391_v63, %s12171_s24  ;;  %v12878_v44 = vpack.c.bf16 %v1658_v30, %v1656_v1  ;;  %v12880_v45 = vpack.c.bf16 %v1659_v31, %v1657_v3  ;;  %v10884_v54 = vld [vmem:[%s15849_s6 + $0x1] ss:$8 sm:$0x3] }
 0x1e1   : > { %v1570_v39 = vmul.f32 %v1563_v16, %v1556_v36  ;;  %v1571_v40 = vmul.f32 %v1567_v20, %v1557_v37  ;;  %2466 = vrot.lane.b32.xlu1 %v12393_v0, %s12171_s24  ;;  %v1253_v20 = vrot.slane %v1248_v50, %v12539_v11  ;;  %v1273_v24 = vrot.slane %v10884_v54, %v12539_v11 }
 0x1e2   : > { %v1573_v15 = vpop.permute.xlu0 %1572  ;;  %5923 = vmatprep.subr.bf16.mxu0 %v12880_v45  ;;  %v1277_v26 = vrot.slane %v10884_v54, %v12542_v12  ;;  %v1246_v36 = vsel %vm996_vm4, %v12682_v21, %v12700_v32  ;;  %v1247_v37 = vsel %vm996_vm4, %v12700_v32, %v12682_v21  ;;  %v10908_v32 = vld [vmem:[%s15849_s6 + $0x1] ss:$8 sm:$0x3] }
 0x1e3   : > { %v1646_v57 = vrot.slane %v1570_v39, 4  ;;  %v1647_v58 = vrot.slane %v1571_v40, 4  ;;  %v1595_v46 = vpop.permute.xlu1 %1594  ;;  %5924 = vmatpush1.bf16.msra.mxu0 %v12878_v44  ;;  %v1627_v39 = vrot.slane %v10902_v17, %v12542_v12  ;;  %v1261_v50 = vmul.f32 %v1257_v22, %v1246_v36 }
 0x1e4   : > { %v1596_v51 = vsel %vm1127_vm7, %v1593_v27, %v1595_v46  ;;  %v1597_v52 = vsel %vm1127_vm7, %v1595_v46, %v1593_v27  ;;  %2404 = vrot.lane.b32.xlu0 %v12391_v63, %s12172_s25  ;;  %v1623_v27 = vrot.slane %v10902_v17, %v12539_v11  ;;  %v1739_v17 = vrot.slane %v10908_v32, %v12539_v11 }
 0x1e5   : > { %v1660_v1 = vsel %vm827_vm0, %v12371_v59, %v1646_v57  ;;  %v1661_v3 = vsel %vm827_vm0, %v12373_v60, %v1647_v58  ;;  %v1610_v4 = vmul.f32 %v1603_v42, %v1596_v51  ;;  %v1611_v16 = vmul.f32 %v1607_v5, %v1597_v52  ;;  %2406 = vrot.lane.b32.xlu1 %v12393_v0, %s12172_s25 }
 0x1e6   : > { %v1613_v18 = vpop.permute.xlu0 %1612 }
 0x1e7   : > { %v1575_v59 = vpop.permute.xlu1 %1574  ;;  %v1652_v29 = vrot.slane %v1610_v4, 4  ;;  %v1653_v30 = vrot.slane %v1611_v16, 4 }
 0x1e8   : > { %v1576_v60 = vsel %vm1105_vm8, %v1573_v15, %v1575_v59  ;;  %v1577_v25 = vsel %vm1105_vm8, %v1575_v59, %v1573_v15  ;;  %2444 = vrot.lane.b32.xlu0 %v12391_v63, %s12173_s26 }
 0x1e9   : > { %v1590_v31 = vmul.f32 %v1583_v47, %v1576_v60  ;;  %v1591_v33 = vmul.f32 %v1587_v53, %v1577_v25  ;;  %2446 = vrot.lane.b32.xlu1 %v12393_v0, %s12173_s26  ;;  %v1260_v47 = vmul.f32 %v1253_v20, %v1247_v37  ;;  %v1743_v60 = vrot.slane %v10908_v32, %v12542_v12 }
 0x1ea   : > { %v1265_v38 = vpop.permute.xlu0 %1264 }
 0x1eb   : > { %v1662_v40 = vsel %vm827_vm0, %v1590_v31, %v1652_v29  ;;  %v1663_v42 = vsel %vm827_vm0, %v1591_v33, %v1653_v30  ;;  %v1266_v5 = vsel %vm1017_vm2, %v12676_v13, %v1265_v38  ;;  %v1267_v15 = vsel %vm1017_vm2, %v1265_v38, %v12676_v13  ;;  %v1615_v57 = vpop.permute.xlu1 %1614  ;;  %v10909_v30 = vld [vmem:[%s15849_s6 + $0x2] ss:$8 sm:$0x3] }
 0x1ec   : > { %v1280_v58 = vmul.f32 %v1273_v24, %v1267_v15  ;;  %v1281_v46 = vmul.f32 %v1277_v26, %v1266_v5  ;;  %v1616_v21 = vsel %vm1149_vm9, %v1613_v18, %v1615_v57  ;;  %2484 = vrot.lane.b32.xlu0 %v12391_v63, %s12174_s27  ;;  %v1617_v51 = vsel %vm1149_vm9, %v1615_v57, %v1613_v18 }
 0x1ed   : > { %v1630_v52 = vmul.f32 %v1623_v27, %v1616_v21  ;;  %2486 = vrot.lane.b32.xlu1 %v12393_v0, %s12174_s27  ;;  %v1631_v54 = vmul.f32 %v1627_v39, %v1617_v51  ;;  %v12948_v16 = vpack.c.bf16 %v1662_v40, %v1660_v1  ;;  %v12951_v24 = vpack.c.bf16 %v1663_v42, %v1661_v3  ;;  %v10910_v3 = vld [vmem:[%s15849_s6 + $0x3] ss:$8 sm:$0x3]  ;;  %v1714_v27 = vld [vmem:[%s15849_s6] ss:$8 sm:$0x3] }
 0x1ee   : > { %v1404_v13 = vrot.slane %v1280_v58, 4  ;;  %v1405_v53 = vrot.slane %v1281_v46, 4  ;;  %v1729_v4 = vpop.permute.xlu0 %1728  ;;  %v1779_v38 = vrot.slane %v10910_v3, %v12539_v11  ;;  %v1783_v39 = vrot.slane %v10910_v3, %v12542_v12  ;;  %v5297_v40 = vld [vmem:[#allocation2 + $0x48] sm:$0x33] }
 0x1ef   : > { %v1731_v59 = vpop.permute.xlu1 %1730  ;;  %v11649_v18 = vpack.c.bf16 %v1631_v54, %v1630_v52  ;;  %5925 = vmatprep.subr.bf16.mxu0 %v12951_v24  ;;  %v1719_v42 = vrot.slane %v1714_v27, %v12539_v11  ;;  %v12995_v5 = vrot.slane %v12391_v63, 4  ;;  %v1759_v46 = vrot.slane %v10909_v30, %v12539_v11 }
 0x1f0   : > { %v1426_v20 = vsel %vm827_vm0, %v1260_v47, %v1404_v13  ;;  %v1427_v22 = vsel %vm827_vm0, %v1261_v50, %v1405_v53  ;;  %2524 = vrot.lane.b32.xlu0 %v12391_v63, %s12175_s28  ;;  %v1732_v25 = vsel %vm1017_vm2, %v1729_v4, %v1731_v59  ;;  %v1733_v1 = vsel %vm1017_vm2, %v1731_v59, %v1729_v4 }
 0x1f1   : > { %2526 = vrot.lane.b32.xlu1 %v12393_v0, %s12175_s28  ;;  %1701 = vst [vmem:[#allocation2 + $0x70] sm:$0x33] %v11649_v18  ;;  %5926 = vmatpush1.bf16.msra.mxu0 %v12948_v16  ;;  %v12976_v31 = vpack.c.bf16 %v12739_v56, %v1427_v22  ;;  %v12979_v33 = vpack.c.bf16 %v12736_v55, %v1426_v20 }
 0x1f2   : > { %v1769_v26 = vpop.permute.xlu0 %1768  ;;  %v1746_v36 = vmul.f32 %v1739_v17, %v1733_v1  ;;  %v1747_v37 = vmul.f32 %v1743_v60, %v1732_v25  ;;  %v1723_v56 = vrot.slane %v1714_v27, %v12542_v12  ;;  %v12992_v55 = vpack.c.bf16 %v12791_v49, %v12770_v35  ;;  %v10911_v35 = vld [vmem:[%s15849_s6 + $0x5] ss:$8 sm:$0x3] }
 0x1f3   : > { %v1771_v29 = vpop.permute.xlu1 %1770  ;;  %5332 = vmatprep.subr.bf16.mxu1 %v12976_v31  ;;  %v1763_v32 = vrot.slane %v10909_v30, %v12542_v12  ;;  %v13010_v49 = vpack.c.bf16 %v12788_v48, %v12766_v34  ;;  %v11102_v47 = vcombine.high %v5297_v40, %v5297_v40  ;;  %v11101_v50 = vcombine.low %v5297_v40, %v5297_v40 }
 0x1f4   : > { %2504 = vrot.lane.b32.xlu0 %v12391_v63, %s15855_s19  ;;  %v1772_v15 = vsel %vm1061_vm3, %v1769_v26, %v1771_v29  ;;  %v1773_v57 = vsel %vm1061_vm3, %v1771_v29, %v1769_v26  ;;  %5333 = vmatpush1.bf16.msra.mxu1 %v12979_v33  ;;  %v1870_v51 = vrot.slane %v1746_v36, 4  ;;  %v1871_v52 = vrot.slane %v1747_v37, 4  ;;  %v10913_v37 = vld [vmem:[%s15849_s6 + $0x7] ss:$8 sm:$0x3] }
 0x1f5   : > { %2506 = vrot.lane.b32.xlu1 %v12393_v0, %s15855_s19  ;;  %5334 = vmatprep.subr.bf16.mxu1 %v12992_v55  ;;  %v1786_v54 = vmul.f32 %v1779_v38, %v1773_v57  ;;  %v1787_v4 = vmul.f32 %v1783_v39, %v1772_v15  ;;  %v13021_v48 = vrot.slane %v12393_v0, 4  ;;  %v1799_v60 = vrot.slane %v10911_v35, %v12539_v11  ;;  %v11096_v57 = vld [vmem:[%s15847_s4 + $0x4] sm:$0xf] }
 0x1f6   : > { %v1709_v58 = vpop.permute.xlu0 %1708  ;;  %v1803_v26 = vrot.slane %v10911_v35, %v12542_v12  ;;  %v5327_v27 = vsel %vm5241_vm10, %v11101_v50, 0  ;;  %v10912_v35 = vld [vmem:[%s15849_s6 + $0x6] ss:$8 sm:$0x3] }
 0x1f7   : > { %v1711_v21 = vpop.permute.xlu1 %1710  ;;  %v1876_v38 = vrot.slane %v1786_v54, 4  ;;  %v1877_v39 = vrot.slane %v1787_v4, 4  ;;  %v1819_v4 = vrot.slane %v10912_v35, %v12539_v11 }
 0x1f8   : > { %v1712_v13 = vsel %vm996_vm4, %v1709_v58, %v1711_v21  ;;  %v1713_v53 = vsel %vm996_vm4, %v1711_v21, %v1709_v58  ;;  %2544 = vrot.lane.b32.xlu0 %v12391_v63, %s12177_s20  ;;  %v5888_v34 = vld [vmem:[#allocation2 + $0x70] sm:$0x33]  ;;  %5335 = vmatpush1.bf16.msra.mxu1 %v13010_v49 }
 0x1f9   : > { %v1726_v17 = vmul.f32 %v1719_v42, %v1713_v53  ;;  %v1727_v59 = vmul.f32 %v1723_v56, %v1712_v13  ;;  %2546 = vrot.lane.b32.xlu1 %v12393_v0, %s12177_s20  ;;  %v11160_v22 = vcombine.high %v5888_v34, %v5888_v34  ;;  %v11159_v18 = vcombine.low %v5888_v34, %v5888_v34  ;;  %v5883_v56 = vld [vmem:[%s15847_s4] sm:$0xf] }
 0x1fa   : > { %v1749_v20 = vpop.permute.xlu0 %1748  ;;  %11103 = vmatprep.subr.msk.bf16.mxu1 %vm5241_vm10, %v11102_v47  ;;  %v1843_v53 = vrot.slane %v10913_v37, %v12542_v12 }
 0x1fb   : > { %v1892_v25 = vsel %vm827_vm0, %v1726_v17, %v1870_v51  ;;  %v1893_v1 = vsel %vm827_vm0, %v1727_v59, %v1871_v52  ;;  %v1751_v3 = vpop.permute.xlu1 %1750  ;;  %11161 = vmatprep.subr.msk.bf16.mxu0 %vm5241_vm10, %v11160_v22  ;;  %v5918_v36 = vsel %vm5241_vm10, %v11159_v18, 0  ;;  %v5381_v51 = vld [vmem:[#allocation2 + $0x70] sm:$0x33]  ;;  %v1823_v18 = vrot.slane %v10912_v35, %v12542_v12 }
 0x1fc   : > { %v1752_v29 = vsel %vm1039_vm5, %v1749_v20, %v1751_v3  ;;  %v1753_v30 = vsel %vm1039_vm5, %v1751_v3, %v1749_v20  ;;  %2660 = vrot.lane.b32.xlu0 %v12995_v5, %s12170_s21  ;;  %5928 = vmatpush1.bf16.msra.mxu0 %v5918_v36 }
 0x1fd   : > { %v1766_v40 = vmul.f32 %v1759_v46, %v1753_v30  ;;  %v1767_v42 = vmul.f32 %v1763_v32, %v1752_v29  ;;  %2662 = vrot.lane.b32.xlu1 %v13021_v48, %s12170_s21  ;;  %5337 = vmatpush1.bf16.msra.mxu1 %v5327_v27  ;;  %v1839_v32 = vrot.slane %v10913_v37, %v12539_v11 }
 0x1fe   : > { %v1789_v15 = vpop.permute.xlu0 %1788  ;;  %5416 = vmatprep.subr.bf16.mxu1 %v12880_v45 }
 0x1ff   : > { %v1894_v58 = vsel %vm827_vm0, %v1766_v40, %v1876_v38  ;;  %v1895_v21 = vsel %vm827_vm0, %v1767_v42, %v1877_v39  ;;  %v1791_v46 = vpop.permute.xlu1 %1790  ;;  %11162 = vmatmul.mubr.msk.bf16.vlgmr.msra.gmra.mrb[24].mxu0 %vm5237_vm11, %v5883_v56 }
 0x200   : > { %v1792_v47 = vsel %vm1083_vm6, %v1789_v15, %v1791_v46  ;;  %v1793_v50 = vsel %vm1083_vm6, %v1791_v46, %v1789_v15  ;;  %2700 = vrot.lane.b32.xlu0 %v12995_v5, %s12171_s24  ;;  %11104 = vmatmul.mubr.msk.bf16.vlgmr.msra.gmra.mrb[0].mxu1 %vm5237_vm11, %v11096_v57  ;;  %v13069_v17 = vpack.c.bf16 %v1894_v58, %v1892_v25  ;;  %v11105_v46 = vld [vmem:[%s15847_s4 + $0x8] sm:$0xf] }
 0x201   : > { %v1806_v52 = vmul.f32 %v1799_v60, %v1792_v47  ;;  %v1807_v13 = vmul.f32 %v1803_v26, %v1793_v50  ;;  %2702 = vrot.lane.b32.xlu1 %v13021_v48, %s12171_s24  ;;  %5417 = vmatpush1.bf16.msra.mxu1 %v12878_v44  ;;  %v13071_v59 = vpack.c.bf16 %v1895_v21, %v1893_v1  ;;  %v10914_v1 = vld [vmem:[%s15849_s6 + $0x10] ss:$8 sm:$0x3] }
 0x202   : > { %v1829_v54 = vpop.permute.xlu0 %1828  ;;  %5448 = vmatprep.mubr.bf16.mxu1 %v12169_v2  ;;  %5418 = vmatprep.subr.bf16.mxu1 %v12951_v24  ;;  %v11111_v60 = vcombine.high %v5381_v51, %v5381_v51  ;;  %v11110_v26 = vcombine.low %v5381_v51, %v5381_v51  ;;  %v1859_v39 = vrot.slane %v10914_v1, %v12539_v11 }
 0x203   : > { %v1882_v34 = vrot.slane %v1806_v52, 4  ;;  %v1883_v20 = vrot.slane %v1807_v13, 4  ;;  %v1831_v22 = vpop.permute.xlu1 %1830  ;;  %6038 = vmatprep.mubr.bf16.mxu0 %v12169_v2  ;;  %6006 = vmatprep.subr.bf16.mxu0 %v13071_v59  ;;  %v1863_v40 = vrot.slane %v10914_v1, %v12542_v12  ;;  %v10920_v52 = vld [vmem:[%s15849_s6 + $0x1] ss:$8 sm:$0x3] }
 0x204   : > { %v1832_v3 = vsel %vm1127_vm7, %v1829_v54, %v1831_v22  ;;  %v1833_v25 = vsel %vm1127_vm7, %v1831_v22, %v1829_v54  ;;  %2640 = vrot.lane.b32.xlu0 %v12995_v5, %s12172_s25  ;;  %6007 = vmatpush1.bf16.msra.mxu0 %v13069_v17  ;;  %v5411_v42 = vsel %vm5241_vm10, %v11110_v26, 0  ;;  %v1969_v22 = vrot.slane %v10920_v52, %v12539_v11 }
 0x205   : > { %v1896_v27 = vsel %vm827_vm0, %v12509_v6, %v1882_v34  ;;  %v1897_v29 = vsel %vm827_vm0, %v12512_v7, %v1883_v20  ;;  %v1846_v30 = vmul.f32 %v1839_v32, %v1832_v3  ;;  %v1847_v36 = vmul.f32 %v1843_v53, %v1833_v25  ;;  %2642 = vrot.lane.b32.xlu1 %v13021_v48, %s12172_s25  ;;  %v5553_v34 = vld [vmem:[#allocation2 + $0x48] sm:$0x33]  ;;  %v10922_v25 = vld [vmem:[%s15849_s6 + $0x3] ss:$8 sm:$0x3] }
 0x206   : > { %v1809_v37 = vpop.permute.xlu0 %1808  ;;  %5419 = vmatpush1.bf16.msra.mxu1 %v12948_v16  ;;  %v11126_v1 = vcombine.high %v5553_v34, %v5553_v34  ;;  %v11125_v26 = vcombine.low %v5553_v34, %v5553_v34 }
 0x207   : > { %v1811_v38 = vpop.permute.xlu1 %1810  ;;  %11112 = vmatprep.subr.msk.bf16.mxu1 %vm5241_vm10, %v11111_v60  ;;  %v1888_v56 = vrot.slane %v1846_v30, 4  ;;  %v1889_v15 = vrot.slane %v1847_v36, 4 }
 0x208   : > { %v1812_v6 = vsel %vm1105_vm8, %v1809_v37, %v1811_v38  ;;  %v1813_v7 = vsel %vm1105_vm8, %v1811_v38, %v1809_v37  ;;  %2680 = vrot.lane.b32.xlu0 %v12995_v5, %s12173_s26  ;;  %v2009_v37 = vrot.slane %v10922_v25, %v12539_v11  ;;  %v2013_v38 = vrot.slane %v10922_v25, %v12542_v12 }
 0x209   : > { %v1826_v57 = vmul.f32 %v1819_v4, %v1812_v6  ;;  %v1827_v58 = vmul.f32 %v1823_v18, %v1813_v7  ;;  %2682 = vrot.lane.b32.xlu1 %v13021_v48, %s12173_s26  ;;  %v1973_v18 = vrot.slane %v10920_v52, %v12542_v12  ;;  %v10921_v6 = vld [vmem:[%s15849_s6 + $0x2] ss:$8 sm:$0x3] }
 0x20a   : > { %v1849_v21 = vpop.permute.xlu0 %1848  ;;  %5421 = vmatpush1.bf16.msra.mxu1 %v5411_v42  ;;  %v5583_v42 = vsel %vm5241_vm10, %v11125_v26, 0 }
 0x20b   : > { %v1898_v32 = vsel %vm827_vm0, %v1826_v57, %v1888_v56  ;;  %v1899_v35 = vsel %vm827_vm0, %v1827_v58, %v1889_v15  ;;  %v1851_v47 = vpop.permute.xlu1 %1850  ;;  %5588 = vmatprep.subr.bf16.mxu1 %v12976_v31  ;;  %v5548_v15 = vld [vmem:[%s15847_s4] sm:$0xf] }
 0x20c   : > { %v1852_v50 = vsel %vm1149_vm9, %v1849_v21, %v1851_v47  ;;  %v1853_v51 = vsel %vm1149_vm9, %v1851_v47, %v1849_v21  ;;  %2720 = vrot.lane.b32.xlu0 %v12995_v5, %s12174_s27  ;;  %v13126_v54 = vpack.c.bf16 %v1898_v32, %v1896_v27  ;;  %v13128_v4 = vpack.c.bf16 %v1899_v35, %v1897_v29  ;;  %v10923_v35 = vld [vmem:[%s15849_s6 + $0x5] ss:$8 sm:$0x3] }
 0x20d   : > { %v1866_v13 = vmul.f32 %v1859_v39, %v1852_v50  ;;  %v1867_v53 = vmul.f32 %v1863_v40, %v1853_v51  ;;  %2722 = vrot.lane.b32.xlu1 %v13021_v48, %s12174_s27  ;;  %11113 = vmatmul.mubr.msk.bf16.vlgmr.msra.gmra.mrb[0].mxu1 %vm5237_vm11, %v11105_v46  ;;  %v1989_v46 = vrot.slane %v10921_v6, %v12539_v11 }
 0x20e   : > { %v1959_v31 = vpop.permute.xlu0 %1958  ;;  %5589 = vmatpush1.bf16.msra.mxu1 %v12979_v33  ;;  %5620 = vmatprep.mubr.bf16.mxu1 %v12169_v2  ;;  %v1993_v32 = vrot.slane %v10921_v6, %v12542_v12  ;;  %v2033_v25 = vrot.slane %v10923_v35, %v12542_v12 }
 0x20f   : > { %v11654_v20 = vpack.c.bf16 %v1867_v53, %v1866_v13  ;;  %v1961_v60 = vpop.permute.xlu1 %1960  ;;  %5590 = vmatprep.subr.bf16.mxu1 %v12992_v55  ;;  %6008 = vmatprep.subr.bf16.mxu0 %v13128_v4  ;;  %v1944_v55 = vld [vmem:[%s15849_s6] ss:$8 sm:$0x3] }
 0x210   : > { %v1962_v3 = vsel %vm1017_vm2, %v1959_v31, %v1961_v60  ;;  %v1963_v33 = vsel %vm1017_vm2, %v1961_v60, %v1959_v31  ;;  %2760 = vrot.lane.b32.xlu0 %v12995_v5, %s12175_s28  ;;  %6009 = vmatpush1.bf16.msra.mxu0 %v13126_v54  ;;  %v1949_v39 = vrot.slane %v1944_v55, %v12539_v11 }
 0x211   : > { %1937 = vst [vmem:[#allocation2 + $0x98] sm:$0x33] %v11654_v20  ;;  %2762 = vrot.lane.b32.xlu1 %v13021_v48, %s12175_s28  ;;  %v1976_v29 = vmul.f32 %v1969_v22, %v1963_v33  ;;  %v1977_v30 = vmul.f32 %v1973_v18, %v1962_v3  ;;  %v1953_v40 = vrot.slane %v1944_v55, %v12542_v12  ;;  %v5636_v55 = vld [vmem:[#allocation2 + $0x70] sm:$0x33] }
 0x212   : > { %v1999_v27 = vpop.permute.xlu0 %1998  ;;  %5591 = vmatpush1.bf16.msra.mxu1 %v13010_v49  ;;  %v2029_v22 = vrot.slane %v10923_v35, %v12539_v11  ;;  %v11134_v6 = vcombine.low %v5636_v55, %v5636_v55 }
 0x213   : > { %v2001_v36 = vpop.permute.xlu1 %2000  ;;  %11127 = vmatprep.subr.msk.bf16.mxu1 %vm5241_vm10, %v11126_v1  ;;  %v2100_v57 = vrot.slane %v1976_v29, 4  ;;  %v2101_v58 = vrot.slane %v1977_v30, 4  ;;  %v11163_v29 = vld [vmem:[%s15847_s4 + $0x4] sm:$0xf] }
 0x214   : > { %2740 = vrot.lane.b32.xlu0 %v12995_v5, %s15855_s19  ;;  %v2002_v49 = vsel %vm1061_vm3, %v1999_v27, %v2001_v36  ;;  %v2003_v7 = vsel %vm1061_vm3, %v2001_v36, %v1999_v27  ;;  %v10925_v27 = vld [vmem:[%s15849_s6 + $0x7] ss:$8 sm:$0x3] }
 0x215   : > { %2742 = vrot.lane.b32.xlu1 %v13021_v48, %s15855_s19  ;;  %v2016_v47 = vmul.f32 %v2009_v37, %v2003_v7  ;;  %v2017_v50 = vmul.f32 %v2013_v38, %v2002_v49 }
 0x216   : > { %v1939_v56 = vpop.permute.xlu0 %1938  ;;  %5593 = vmatpush1.bf16.msra.mxu1 %v5583_v42 }
 0x217   : > { %v1941_v21 = vpop.permute.xlu1 %1940  ;;  %5671 = vmatprep.subr.bf16.mxu1 %v12880_v45  ;;  %v2107_v30 = vrot.slane %v2017_v50, 4  ;;  %v5666_v50 = vsel %vm5241_vm10, %v11134_v6, 0 }
 0x218   : > { %v1942_v51 = vsel %vm996_vm4, %v1939_v56, %v1941_v21  ;;  %v1943_v52 = vsel %vm996_vm4, %v1941_v21, %v1939_v56  ;;  %2780 = vrot.lane.b32.xlu0 %v12995_v5, %s12177_s20  ;;  %v5971_v13 = vld [vmem:[#allocation2 + $0x98] sm:$0x33]  ;;  %v13209_v49 = vpop.f32.mrb[12].mxu0  ;;  %v2069_v56 = vrot.slane %v10925_v27, %v12539_v11 }
 0x219   : > { %v1956_v53 = vmul.f32 %v1949_v39, %v1943_v52  ;;  %v1957_v31 = vmul.f32 %v1953_v40, %v1942_v51  ;;  %2782 = vrot.lane.b32.xlu1 %v13021_v48, %s12177_s20  ;;  %v11169_v45 = vcombine.high %v5971_v13, %v5971_v13  ;;  %v11168_v34 = vcombine.low %v5971_v13, %v5971_v13 }
 0x21a   : > { %v1979_v20 = vpop.permute.xlu0 %1978  ;;  %11128 = vmatmul.mubr.msk.bf16.vlgmr.msra.gmra.mrb[4].mxu1 %vm5237_vm11, %v5548_v15  ;;  %v11135_v39 = vcombine.high %v5636_v55, %v5636_v55  ;;  %v13216_v15 = vpop.f32.mrb[13].mxu0 }
 0x21b   : > { %v2122_v18 = vsel %vm827_vm0, %v1956_v53, %v2100_v57  ;;  %v2123_v60 = vsel %vm827_vm0, %v1957_v31, %v2101_v58  ;;  %11170 = vmatprep.subr.msk.bf16.mxu0 %vm5241_vm10, %v11169_v45  ;;  %v1981_v3 = vpop.permute.xlu1 %1980  ;;  %v6001_v33 = vsel %vm5241_vm10, %v11168_v34, 0  ;;  %5672 = vmatpush1.bf16.msra.mxu1 %v12878_v44  ;;  %v2106_v44 = vrot.slane %v2016_v47, 4  ;;  %v10924_v58 = vld [vmem:[%s15849_s6 + $0x6] ss:$8 sm:$0x3] }
 0x21c   : > { %v1982_v1 = vsel %vm1039_vm5, %v1979_v20, %v1981_v3  ;;  %v1983_v26 = vsel %vm1039_vm5, %v1981_v3, %v1979_v20  ;;  %2890 = vrot.lane.b32.xlu0 %v12613_v14, %s12170_s21  ;;  %6011 = vmatpush1.bf16.msra.mxu0 %v6001_v33  ;;  %v2049_v31 = vrot.slane %v10924_v58, %v12539_v11  ;;  %v11129_v34 = vld [vmem:[%s15847_s4 + $0x4] sm:$0xf] }
 0x21d   : > { %v1996_v36 = vmul.f32 %v1989_v46, %v1983_v26  ;;  %v1997_v37 = vmul.f32 %v1993_v32, %v1982_v1  ;;  %2892 = vrot.lane.b32.xlu1 %v12617_v19, %s12170_s21  ;;  %5673 = vmatprep.subr.bf16.mxu1 %v12951_v24  ;;  %v2073_v32 = vrot.slane %v10925_v27, %v12542_v12 }
 0x21e   : > { %v2019_v38 = vpop.permute.xlu0 %2018  ;;  %5703 = vmatprep.mubr.bf16.mxu1 %v12169_v2 }
 0x21f   : > { %v2124_v7 = vsel %vm827_vm0, %v1996_v36, %v2106_v44  ;;  %v2125_v40 = vsel %vm827_vm0, %v1997_v37, %v2107_v30  ;;  %v2021_v42 = vpop.permute.xlu1 %2020  ;;  %5674 = vmatpush1.bf16.msra.mxu1 %v12948_v16  ;;  %11171 = vmatmul.mubr.msk.bf16.vlgmr.msra.gmra.mrb[24].mxu0 %vm5237_vm11, %v11163_v29  ;;  %v13228_v16 = vpop.f32.mrb[14].mxu0 }
 0x220   : > { %v2022_v24 = vsel %vm1083_vm6, %v2019_v38, %v2021_v42  ;;  %v2023_v57 = vsel %vm1083_vm6, %v2021_v42, %v2019_v38  ;;  %2930 = vrot.lane.b32.xlu0 %v12613_v14, %s12171_s24  ;;  %11136 = vmatprep.subr.msk.bf16.mxu1 %vm5241_vm10, %v11135_v39  ;;  %v13234_v35 = vpop.f32.mrb[15].mxu0  ;;  %v13237_v51 = vpack.c.bf16 %v2125_v40, %v2123_v60 }
 0x221   : > { %v2036_v21 = vmul.f32 %v2029_v22, %v2022_v24  ;;  %v2037_v46 = vmul.f32 %v2033_v25, %v2023_v57  ;;  %2932 = vrot.lane.b32.xlu1 %v12617_v19, %s12171_s24  ;;  %6121 = vmatprep.mubr.bf16.mxu0 %v12169_v2  ;;  %v13240_v45 = vpack.c.bf16 %v2124_v7, %v2122_v18  ;;  %v10926_v18 = vld [vmem:[%s15849_s6 + $0x10] ss:$8 sm:$0x3] }
 0x222   : > { %v2059_v47 = vpop.permute.xlu0 %2058  ;;  %v2053_v60 = vrot.slane %v10924_v58, %v12542_v12  ;;  %6089 = vmatprep.subr.bf16.mxu0 %v13237_v51  ;;  %v2089_v27 = vrot.slane %v10926_v18, %v12539_v11  ;;  %v2093_v44 = vrot.slane %v10926_v18, %v12542_v12  ;;  %v10932_v58 = vld [vmem:[%s15849_s6 + $0x1] ss:$8 sm:$0x3] }
 0x223   : > { %v2112_v52 = vrot.slane %v2036_v21, 4  ;;  %v2113_v13 = vrot.slane %v2037_v46, 4  ;;  %v2061_v53 = vpop.permute.xlu1 %2060  ;;  %5676 = vmatpush1.bf16.msra.mxu1 %v5666_v50  ;;  %6090 = vmatpush1.bf16.msra.mxu0 %v13240_v45 }
 0x224   : > { %v2062_v20 = vsel %vm1127_vm7, %v2059_v47, %v2061_v53  ;;  %v2063_v22 = vsel %vm1127_vm7, %v2061_v53, %v2059_v47  ;;  %2870 = vrot.lane.b32.xlu0 %v12613_v14, %s12172_s25  ;;  %5754 = vmatprep.subr.bf16.mxu1 %v13071_v59  ;;  %v2205_v53 = vrot.slane %v10932_v58, %v12539_v11 }
 0x225   : > { %v2126_v3 = vsel %vm827_vm0, %v12383_v61, %v2112_v52  ;;  %v2127_v33 = vsel %vm827_vm0, %v12387_v62, %v2113_v13  ;;  %v2076_v25 = vmul.f32 %v2069_v56, %v2062_v20  ;;  %v2077_v55 = vmul.f32 %v2073_v32, %v2063_v22  ;;  %2872 = vrot.lane.b32.xlu1 %v12617_v19, %s12172_s25  ;;  %v5719_v61 = vld [vmem:[#allocation2 + $0x98] sm:$0x33] }
 0x226   : > { %v2039_v1 = vpop.permute.xlu0 %2038  ;;  %11137 = vmatmul.mubr.msk.bf16.vlgmr.msra.gmra.mrb[4].mxu1 %vm5237_vm11, %v11129_v34  ;;  %v11144_v6 = vcombine.high %v5719_v61, %v5719_v61  ;;  %v11143_v7 = vcombine.low %v5719_v61, %v5719_v61  ;;  %v11138_v34 = vld [vmem:[%s15847_s4 + $0x8] sm:$0xf]  ;;  %v2209_v20 = vrot.slane %v10932_v58, %v12542_v12 }
 0x227   : > { %v2041_v26 = vpop.permute.xlu1 %2040  ;;  %5755 = vmatpush1.bf16.msra.mxu1 %v13069_v17  ;;  %v2118_v30 = vrot.slane %v2076_v25, 4  ;;  %v2119_v36 = vrot.slane %v2077_v55, 4  ;;  %5786 = vmatprep.mubr.bf16.mxu1 %v12169_v2 }
 0x228   : > { %v2042_v62 = vsel %vm1105_vm8, %v2039_v1, %v2041_v26  ;;  %v2043_v29 = vsel %vm1105_vm8, %v2041_v26, %v2039_v1  ;;  %2910 = vrot.lane.b32.xlu0 %v12613_v14, %s12173_s26  ;;  %5756 = vmatprep.subr.bf16.mxu1 %v13128_v4  ;;  %v5749_v47 = vsel %vm5241_vm10, %v11143_v7, 0  ;;  %v6223_v1 = vld [vmem:[#allocation2 + $0x98] sm:$0x33] }
 0x229   : > { %v2056_v37 = vmul.f32 %v2049_v31, %v2042_v62  ;;  %v2057_v38 = vmul.f32 %v2053_v60, %v2043_v29  ;;  %2912 = vrot.lane.b32.xlu1 %v12617_v19, %s12173_s26  ;;  %v10934_v60 = vld [vmem:[%s15849_s6 + $0x3] ss:$8 sm:$0x3]  ;;  %v10933_v62 = vld [vmem:[%s15849_s6 + $0x2] ss:$8 sm:$0x3] }
 0x22a   : > { %v2079_v39 = vpop.permute.xlu0 %2078  ;;  %v2229_v7 = vrot.slane %v10933_v62, %v12542_v12 }
 0x22b   : > { %v2128_v40 = vsel %vm827_vm0, %v2056_v37, %v2118_v30  ;;  %v2129_v42 = vsel %vm827_vm0, %v2057_v38, %v2119_v36  ;;  %v2081_v56 = vpop.permute.xlu1 %2080  ;;  %5757 = vmatpush1.bf16.msra.mxu1 %v13126_v54  ;;  %v11194_v36 = vcombine.high %v6223_v1, %v6223_v1  ;;  %v11193_v37 = vcombine.low %v6223_v1, %v6223_v1  ;;  %v10937_v1 = vld [vmem:[%s15849_s6 + $0x7] ss:$8 sm:$0x3] }
 0x22c   : > { %v2082_v24 = vsel %vm1149_vm9, %v2079_v39, %v2081_v56  ;;  %v2083_v57 = vsel %vm1149_vm9, %v2081_v56, %v2079_v39  ;;  %2950 = vrot.lane.b32.xlu0 %v12613_v14, %s12174_s27  ;;  %11145 = vmatprep.subr.msk.bf16.mxu1 %vm5241_vm10, %v11144_v6  ;;  %v13294_v50 = vpack.c.bf16 %v2128_v40, %v2126_v3  ;;  %v10935_v40 = vld [vmem:[%s15849_s6 + $0x5] ss:$8 sm:$0x3] }
 0x22d   : > { %v2096_v21 = vmul.f32 %v2089_v27, %v2082_v24  ;;  %v2097_v46 = vmul.f32 %v2093_v44, %v2083_v57  ;;  %2952 = vrot.lane.b32.xlu1 %v12617_v19, %s12174_s27  ;;  %v13296_v52 = vpack.c.bf16 %v2129_v42, %v2127_v33  ;;  %v2180_v33 = vld [vmem:[%s15849_s6] ss:$8 sm:$0x3]  ;;  %v2249_v27 = vrot.slane %v10934_v60, %v12542_v12 }
 0x22e   : > { %v2195_v32 = vpop.permute.xlu0 %2194  ;;  %v2185_v29 = vrot.slane %v2180_v33, %v12539_v11  ;;  %v2189_v44 = vrot.slane %v2180_v33, %v12542_v12  ;;  %v2225_v6 = vrot.slane %v10933_v62, %v12539_v11  ;;  %v6218_v33 = vld [vmem:[%s15847_s4] sm:$0xf] }
 0x22f   : > { %v11659_v13 = vpack.c.bf16 %v2097_v46, %v2096_v21  ;;  %v2197_v31 = vpop.permute.xlu1 %2196  ;;  %5759 = vmatpush1.bf16.msra.mxu1 %v5749_v47  ;;  %6091 = vmatprep.subr.bf16.mxu0 %v13296_v52  ;;  %v13355_v47 = vrot.slane %v12613_v14, 4 }
 0x230   : > { %v2199_v22 = vsel %vm1017_vm2, %v2197_v31, %v2195_v32  ;;  %2990 = vrot.lane.b32.xlu0 %v12613_v14, %s12175_s28  ;;  %6258 = vmatprep.subr.bf16.mxu1 %v13071_v59  ;;  %v2198_v18 = vsel %vm1017_vm2, %v2195_v32, %v2197_v31  ;;  %v2245_v59 = vrot.slane %v10934_v60, %v12539_v11 }
 0x231   : > { %2167 = vst [vmem:[#allocation2 + $0xc0] sm:$0x33] %v11659_v13  ;;  %2992 = vrot.lane.b32.xlu1 %v12617_v19, %s12175_s28  ;;  %6092 = vmatpush1.bf16.msra.mxu0 %v13294_v50  ;;  %v2212_v25 = vmul.f32 %v2205_v53, %v2199_v22  ;;  %v2213_v26 = vmul.f32 %v2209_v20, %v2198_v18  ;;  %v13358_v13 = vrot.slane %v12617_v19, 4 }
 0x232   : > { %v2235_v3 = vpop.permute.xlu0 %2234  ;;  %11146 = vmatmul.mubr.msk.bf16.vlgmr.msra.gmra.mrb[4].mxu1 %vm5237_vm11, %v11138_v34  ;;  %v2265_v31 = vrot.slane %v10935_v40, %v12539_v11  ;;  %v6253_v34 = vsel %vm5241_vm10, %v11193_v37, 0  ;;  %v10936_v37 = vld [vmem:[%s15849_s6 + $0x6] ss:$8 sm:$0x3] }
 0x233   : > { %v2237_v55 = vpop.permute.xlu1 %2236  ;;  %6259 = vmatpush1.bf16.msra.mxu1 %v13069_v17  ;;  %6290 = vmatprep.mubr.bf16.mxu1 %v12169_v2  ;;  %v2336_v38 = vrot.slane %v2212_v25, 4  ;;  %v2337_v42 = vrot.slane %v2213_v26, 4 }
 0x234   : > { %v2239_v61 = vsel %vm1061_vm3, %v2237_v55, %v2235_v3  ;;  %2970 = vrot.lane.b32.xlu0 %v12613_v14, %s15855_s19  ;;  %6260 = vmatprep.subr.bf16.mxu1 %v13128_v4  ;;  %v2238_v17 = vsel %vm1061_vm3, %v2235_v3, %v2237_v55  ;;  %v2269_v3 = vrot.slane %v10935_v40, %v12542_v12  ;;  %v11172_v55 = vld [vmem:[%s15847_s4 + $0x8] sm:$0xf] }
 0x235   : > { %2972 = vrot.lane.b32.xlu1 %v12617_v19, %s15855_s19  ;;  %v2252_v39 = vmul.f32 %v2245_v59, %v2239_v61  ;;  %v2253_v56 = vmul.f32 %v2249_v27, %v2238_v17  ;;  %v2309_v40 = vrot.slane %v10937_v1, %v12542_v12 }
 0x236   : > { %v2175_v30 = vpop.permute.xlu0 %2174 }
 0x237   : > { %v2177_v4 = vpop.permute.xlu1 %2176  ;;  %6261 = vmatpush1.bf16.msra.mxu1 %v13126_v54  ;;  %v2342_v26 = vrot.slane %v2252_v39, 4  ;;  %v2343_v27 = vrot.slane %v2253_v56, 4  ;;  %v2285_v56 = vrot.slane %v10936_v37, %v12539_v11 }
 0x238   : > { %v2178_v24 = vsel %vm996_vm4, %v2175_v30, %v2177_v4  ;;  %v2179_v57 = vsel %vm996_vm4, %v2177_v4, %v2175_v30  ;;  %3010 = vrot.lane.b32.xlu0 %v12613_v14, %s12177_s20  ;;  %v6054_v58 = vld [vmem:[#allocation2 + $0xc0] sm:$0x33]  ;;  %11195 = vmatprep.subr.msk.bf16.mxu1 %vm5241_vm10, %v11194_v36  ;;  %v2305_v36 = vrot.slane %v10937_v1, %v12539_v11 }
 0x239   : > { %v2192_v21 = vmul.f32 %v2185_v29, %v2179_v57  ;;  %v2193_v54 = vmul.f32 %v2189_v44, %v2178_v24  ;;  %3012 = vrot.lane.b32.xlu1 %v12617_v19, %s12177_s20  ;;  %v11178_v46 = vcombine.high %v6054_v58, %v6054_v58  ;;  %v11177_v32 = vcombine.low %v6054_v58, %v6054_v58  ;;  %v6558_v4 = vld [vmem:[#allocation2 + $0xc0] sm:$0x33] }
 0x23a   : > { %v2215_v53 = vpop.permute.xlu0 %2214  ;;  %v2289_v24 = vrot.slane %v10936_v37, %v12542_v12  ;;  %v11197_v1 = vld [vmem:[%s15847_s4 + $0x4] sm:$0xf] }
 0x23b   : > { %v13363_v20 = vsel %vm827_vm0, %v2192_v21, %v2336_v38  ;;  %v13366_v22 = vsel %vm827_vm0, %v2193_v54, %v2337_v42  ;;  %11179 = vmatprep.subr.msk.bf16.mxu0 %vm5241_vm10, %v11178_v46  ;;  %v2217_v60 = vpop.permute.xlu1 %2216  ;;  %v6084_v18 = vsel %vm5241_vm10, %v11177_v32, 0  ;;  %6263 = vmatpush1.bf16.msra.mxu1 %v6253_v34  ;;  %v6306_v38 = vld [vmem:[#allocation2 + $0xc0] sm:$0x33]  ;;  %v11228_v54 = vcombine.high %v6558_v4, %v6558_v4 }
 0x23c   : > { %v2218_v25 = vsel %vm1039_vm5, %v2215_v53, %v2217_v60  ;;  %v2219_v59 = vsel %vm1039_vm5, %v2217_v60, %v2215_v53  ;;  %3126 = vrot.lane.b32.xlu0 %v13355_v47, %s12170_s21  ;;  %6094 = vmatpush1.bf16.msra.mxu0 %v6084_v18  ;;  %v11227_v46 = vcombine.low %v6558_v4, %v6558_v4 }
 0x23d   : > { %v2232_v61 = vmul.f32 %v2225_v6, %v2219_v59  ;;  %v2233_v62 = vmul.f32 %v2229_v7, %v2218_v25  ;;  %3128 = vrot.lane.b32.xlu1 %v13358_v13, %s12170_s21  ;;  %6593 = vmatprep.subr.bf16.mxu0 %v13237_v51  ;;  %v11203_v53 = vcombine.high %v6306_v38, %v6306_v38 }
 0x23e   : > { %v2255_v17 = vpop.permute.xlu0 %2254  ;;  %6341 = vmatprep.subr.bf16.mxu1 %v13237_v51  ;;  %11196 = vmatmul.mubr.msk.bf16.vlgmr.msra.gmra.mrb[8].mxu1 %vm5237_vm11, %v6218_v33  ;;  %v6588_v59 = vsel %vm5241_vm10, %v11227_v46, 0 }
 0x23f   : > { %v2360_v29 = vsel %vm827_vm0, %v2232_v61, %v2342_v26  ;;  %v2361_v44 = vsel %vm827_vm0, %v2233_v62, %v2343_v27  ;;  %v2257_v30 = vpop.permute.xlu1 %2256  ;;  %11180 = vmatmul.mubr.msk.bf16.vlgmr.msra.gmra.mrb[24].mxu0 %vm5237_vm11, %v11172_v55  ;;  %6342 = vmatpush1.bf16.msra.mxu1 %v13240_v45 }
 0x240   : > { %v2258_v51 = vsel %vm1083_vm6, %v2255_v17, %v2257_v30  ;;  %v2259_v39 = vsel %vm1083_vm6, %v2257_v30, %v2255_v17  ;;  %3166 = vrot.lane.b32.xlu0 %v13355_v47, %s12171_s24  ;;  %6594 = vmatpush1.bf16.msra.mxu0 %v13240_v45  ;;  %v11202_v45 = vcombine.low %v6306_v38, %v6306_v38 }
 0x241   : > { %v2272_v6 = vmul.f32 %v2265_v31, %v2258_v51  ;;  %v2273_v7 = vmul.f32 %v2269_v3, %v2259_v39  ;;  %3168 = vrot.lane.b32.xlu1 %v13358_v13, %s12171_s24  ;;  %6595 = vmatprep.subr.bf16.mxu0 %v13296_v52  ;;  %v10938_v31 = vld [vmem:[%s15849_s6 + $0x10] ss:$8 sm:$0x3]  ;;  %v13451_v61 = vpack.c.bf16 %v2360_v29, %v13363_v20  ;;  %v10944_v39 = vld [vmem:[%s15849_s6 + $0x1] ss:$8 sm:$0x3] }
 0x242   : > { %v2295_v42 = vpop.permute.xlu0 %2294  ;;  %6343 = vmatprep.subr.bf16.mxu1 %v13296_v52  ;;  %6625 = vmatprep.mubr.bf16.mxu0 %v12169_v2  ;;  %v2329_v55 = vrot.slane %v10938_v31, %v12542_v12 }
 0x243   : > { %v2348_v57 = vrot.slane %v2272_v6, 4  ;;  %v2349_v58 = vrot.slane %v2273_v7, 4  ;;  %v2297_v21 = vpop.permute.xlu1 %2296  ;;  %6344 = vmatpush1.bf16.msra.mxu1 %v13294_v50  ;;  %6373 = vmatprep.mubr.bf16.mxu1 %v12169_v2 }
 0x244   : > { %v2298_v32 = vsel %vm1127_vm7, %v2295_v42, %v2297_v21  ;;  %v2299_v52 = vsel %vm1127_vm7, %v2297_v21, %v2295_v42  ;;  %3106 = vrot.lane.b32.xlu0 %v13355_v47, %s12172_s25  ;;  %6596 = vmatpush1.bf16.msra.mxu0 %v13294_v50  ;;  %v6336_v50 = vsel %vm5241_vm10, %v11202_v45, 0  ;;  %v10946_v21 = vld [vmem:[%s15849_s6 + $0x3] ss:$8 sm:$0x3] }
 0x245   : > { %v2362_v34 = vsel %vm827_vm0, %v12712_v41, %v2348_v57  ;;  %v2363_v60 = vsel %vm827_vm0, %v12715_v43, %v2349_v58  ;;  %v2312_v18 = vmul.f32 %v2305_v36, %v2298_v32  ;;  %v2313_v3 = vmul.f32 %v2309_v40, %v2299_v52  ;;  %3108 = vrot.lane.b32.xlu1 %v13358_v13, %s12172_s25  ;;  %v2410_v32 = vld [vmem:[%s15849_s6] ss:$8 sm:$0x3] }
 0x246   : > { %v2275_v33 = vpop.permute.xlu0 %2274  ;;  %11229 = vmatprep.subr.msk.bf16.mxu0 %vm5241_vm10, %v11228_v54  ;;  %11204 = vmatprep.subr.msk.bf16.mxu1 %vm5241_vm10, %v11203_v53  ;;  %v2325_v41 = vrot.slane %v10938_v31, %v12539_v11  ;;  %v13439_v43 = vpack.c.bf16 %v2361_v44, %v13366_v22  ;;  %v6553_v22 = vld [vmem:[%s15847_s4] sm:$0xf]  ;;  %v2439_v57 = vrot.slane %v10944_v39, %v12542_v12 }
 0x247   : > { %v2277_v25 = vpop.permute.xlu1 %2276  ;;  %6346 = vmatpush1.bf16.msra.mxu1 %v6336_v50  ;;  %v2354_v62 = vrot.slane %v2312_v18, 4  ;;  %v2355_v17 = vrot.slane %v2313_v3, 4  ;;  %v2475_v53 = vrot.slane %v10946_v21, %v12539_v11  ;;  %v10945_v3 = vld [vmem:[%s15849_s6 + $0x2] ss:$8 sm:$0x3]  ;;  %v2415_v50 = vrot.slane %v2410_v32, %v12539_v11 }
 0x248   : > { %v2278_v26 = vsel %vm1105_vm8, %v2275_v33, %v2277_v25  ;;  %v2279_v27 = vsel %vm1105_vm8, %v2277_v25, %v2275_v33  ;;  %3146 = vrot.lane.b32.xlu0 %v13355_v47, %s12173_s26  ;;  %6598 = vmatpush1.bf16.msra.mxu0 %v6588_v59  ;;  %v2419_v25 = vrot.slane %v2410_v32, %v12542_v12  ;;  %v10949_v32 = vld [vmem:[%s15849_s6 + $0x7] ss:$8 sm:$0x3] }
 0x249   : > { %v2292_v44 = vmul.f32 %v2285_v56, %v2278_v26  ;;  %v2293_v30 = vmul.f32 %v2289_v24, %v2279_v27  ;;  %3148 = vrot.lane.b32.xlu1 %v13358_v13, %s12173_s26  ;;  %6676 = vmatprep.subr.bf16.mxu0 %v13439_v43  ;;  %v2435_v24 = vrot.slane %v10944_v39, %v12539_v11 }
 0x24a   : > { %v2315_v36 = vpop.permute.xlu0 %2314  ;;  %6424 = vmatprep.subr.bf16.mxu1 %v13439_v43  ;;  %11205 = vmatmul.mubr.msk.bf16.vlgmr.msra.gmra.mrb[8].mxu1 %vm5237_vm11, %v11197_v1  ;;  %v2455_v26 = vrot.slane %v10945_v3, %v12539_v11  ;;  %v2459_v27 = vrot.slane %v10945_v3, %v12542_v12 }
 0x24b   : > { %v2364_v20 = vsel %vm827_vm0, %v2292_v44, %v2354_v62  ;;  %v2365_v29 = vsel %vm827_vm0, %v2293_v30, %v2355_v17  ;;  %v2317_v37 = vpop.permute.xlu1 %2316  ;;  %11230 = vmatmul.mubr.msk.bf16.vlgmr.msra.gmra.mrb[28].mxu0 %vm5237_vm11, %v6553_v22  ;;  %6425 = vmatpush1.bf16.msra.mxu1 %v13451_v61  ;;  %v10947_v22 = vld [vmem:[%s15849_s6 + $0x5] ss:$8 sm:$0x3] }
 0x24c   : > { %v2318_v38 = vsel %vm1149_vm9, %v2315_v36, %v2317_v37  ;;  %v2319_v51 = vsel %vm1149_vm9, %v2317_v37, %v2315_v36  ;;  %3186 = vrot.lane.b32.xlu0 %v13355_v47, %s12174_s27  ;;  %6677 = vmatpush1.bf16.msra.mxu0 %v13451_v61  ;;  %v13478_v40 = vpack.c.bf16 %v2364_v20, %v2362_v34 }
 0x24d   : > { %v2332_v4 = vmul.f32 %v2325_v41, %v2318_v38  ;;  %v2333_v6 = vmul.f32 %v2329_v55, %v2319_v51  ;;  %3188 = vrot.lane.b32.xlu1 %v13358_v13, %s12174_s27  ;;  %6456 = vmatprep.mubr.bf16.mxu1 %v12169_v2  ;;  %v13480_v42 = vpack.c.bf16 %v2365_v29, %v2363_v60 }
 0x24e   : > { %v2425_v7 = vpop.permute.xlu0 %2424  ;;  %6708 = vmatprep.mubr.bf16.mxu0 %v12169_v2  ;;  %v2479_v60 = vrot.slane %v10946_v21, %v12542_v12 }
 0x24f   : > { %v11664_v56 = vpack.c.bf16 %v2333_v6, %v2332_v4  ;;  %v2427_v45 = vpop.permute.xlu1 %2426  ;;  %6426 = vmatprep.subr.bf16.mxu1 %v13480_v42  ;;  %6678 = vmatprep.subr.bf16.mxu0 %v13480_v42 }
 0x250   : > { %v2429_v58 = vsel %vm1017_vm2, %v2427_v45, %v2425_v7  ;;  %3226 = vrot.lane.b32.xlu0 %v13355_v47, %s12175_s28  ;;  %v2428_v54 = vsel %vm1017_vm2, %v2425_v7, %v2427_v45  ;;  %6427 = vmatpush1.bf16.msra.mxu1 %v13478_v40  ;;  %v2495_v7 = vrot.slane %v10947_v22, %v12539_v11 }
 0x251   : > { %2403 = vst [vmem:[#allocation2 + $0xe8] sm:$0x33] %v11664_v56  ;;  %3228 = vrot.lane.b32.xlu1 %v13358_v13, %s12175_s28  ;;  %6679 = vmatpush1.bf16.msra.mxu0 %v13478_v40  ;;  %v2442_v52 = vmul.f32 %v2435_v24, %v2429_v58  ;;  %v2443_v34 = vmul.f32 %v2439_v57, %v2428_v54 }
 0x252   : > { %v2465_v46 = vpop.permute.xlu0 %2464  ;;  %v2499_v58 = vrot.slane %v10947_v22, %v12542_v12  ;;  %v2539_v22 = vrot.slane %v10949_v32, %v12542_v12 }
 0x253   : > { %v2467_v31 = vpop.permute.xlu1 %2466  ;;  %v2566_v41 = vrot.slane %v2442_v52, 4  ;;  %v2567_v62 = vrot.slane %v2443_v34, 4 }
 0x254   : > { %v2469_v18 = vsel %vm1061_vm3, %v2467_v31, %v2465_v46  ;;  %3206 = vrot.lane.b32.xlu0 %v13355_v47, %s15855_s19  ;;  %v2468_v33 = vsel %vm1061_vm3, %v2465_v46, %v2467_v31 }
 0x255   : > { %3208 = vrot.lane.b32.xlu1 %v13358_v13, %s15855_s19  ;;  %v2482_v55 = vmul.f32 %v2475_v53, %v2469_v18  ;;  %v2483_v17 = vmul.f32 %v2479_v60, %v2468_v33  ;;  %v11206_v60 = vld [vmem:[%s15847_s4 + $0x8] sm:$0xf] }
 0x256   : > { %v2405_v59 = vpop.permute.xlu0 %2404 }
 0x257   : > { %v2407_v1 = vpop.permute.xlu1 %2406  ;;  %v2572_v56 = vrot.slane %v2482_v55, 4  ;;  %v2573_v52 = vrot.slane %v2483_v17, 4 }
 0x258   : > { %v2408_v44 = vsel %vm996_vm4, %v2405_v59, %v2407_v1  ;;  %v2409_v30 = vsel %vm996_vm4, %v2407_v1, %v2405_v59  ;;  %3246 = vrot.lane.b32.xlu0 %v13355_v47, %s12177_s20  ;;  %v6389_v36 = vld [vmem:[#allocation2 + $0xe8] sm:$0x33]  ;;  %v10948_v59 = vld [vmem:[%s15849_s6 + $0x6] ss:$8 sm:$0x3] }
 0x259   : > { %v6641_v20 = vld [vmem:[#allocation2 + $0xe8] sm:$0x33]  ;;  %v2422_v29 = vmul.f32 %v2415_v50, %v2409_v30  ;;  %v2423_v37 = vmul.f32 %v2419_v25, %v2408_v44  ;;  %3248 = vrot.lane.b32.xlu1 %v13358_v13, %s12177_s20  ;;  %v11212_v38 = vcombine.high %v6389_v36, %v6389_v36  ;;  %v11211_v4 = vcombine.low %v6389_v36, %v6389_v36  ;;  %v11231_v1 = vld [vmem:[%s15847_s4 + $0x4] sm:$0xf] }
 0x25a   : > { %v11237_v51 = vcombine.high %v6641_v20, %v6641_v20  ;;  %v2445_v39 = vpop.permute.xlu0 %2444  ;;  %v11236_v6 = vcombine.low %v6641_v20, %v6641_v20  ;;  %v2535_v25 = vrot.slane %v10949_v32, %v12539_v11  ;;  %v2515_v17 = vrot.slane %v10948_v59, %v12539_v11 }
 0x25b   : > { %v2588_v24 = vsel %vm827_vm0, %v2422_v29, %v2566_v41  ;;  %v2589_v45 = vsel %vm827_vm0, %v2423_v37, %v2567_v62  ;;  %11213 = vmatprep.subr.msk.bf16.mxu1 %vm5241_vm10, %v11212_v38  ;;  %v2447_v57 = vpop.permute.xlu1 %2446  ;;  %v6419_v46 = vsel %vm5241_vm10, %v11211_v4, 0  ;;  %v2519_v44 = vrot.slane %v10948_v59, %v12542_v12 }
 0x25c   : > { %11238 = vmatprep.subr.msk.bf16.mxu0 %vm5241_vm10, %v11237_v51  ;;  %v2448_v21 = vsel %vm1039_vm5, %v2445_v39, %v2447_v57  ;;  %v2449_v54 = vsel %vm1039_vm5, %v2447_v57, %v2445_v39  ;;  %3356 = vrot.lane.b32.xlu0 %v12629_v23, %s12170_s21  ;;  %v6671_v34 = vsel %vm5241_vm10, %v11236_v6, 0  ;;  %v10950_v39 = vld [vmem:[%s15849_s6 + $0x10] ss:$8 sm:$0x3] }
 0x25d   : > { %v2462_v53 = vmul.f32 %v2455_v26, %v2449_v54  ;;  %v2463_v31 = vmul.f32 %v2459_v27, %v2448_v21  ;;  %6429 = vmatpush1.bf16.msra.mxu1 %v6419_v46  ;;  %3358 = vrot.lane.b32.xlu1 %v12635_v28, %s12170_s21  ;;  %v2555_v57 = vrot.slane %v10950_v39, %v12539_v11 }
 0x25e   : > { %6681 = vmatpush1.bf16.msra.mxu0 %v6671_v34  ;;  %6928 = vmatprep.subr.bf16.mxu1 %v13439_v43  ;;  %v2485_v18 = vpop.permute.xlu0 %2484  ;;  %v6893_v43 = vld [vmem:[#allocation2 + $0xe8] sm:$0x33] }
 0x25f   : > { %v2590_v3 = vsel %vm827_vm0, %v2462_v53, %v2572_v56  ;;  %v2591_v33 = vsel %vm827_vm0, %v2463_v31, %v2573_v52  ;;  %v2487_v50 = vpop.permute.xlu1 %2486  ;;  %v11261_v51 = vcombine.low %v6893_v43, %v6893_v43  ;;  %v6888_v52 = vld [vmem:[%s15847_s4] sm:$0xf] }
 0x260   : > { %v2488_v41 = vsel %vm1083_vm6, %v2485_v18, %v2487_v50  ;;  %v2489_v55 = vsel %vm1083_vm6, %v2487_v50, %v2485_v18  ;;  %3396 = vrot.lane.b32.xlu0 %v12629_v23, %s12171_s24  ;;  %11214 = vmatmul.mubr.msk.bf16.vlgmr.msra.gmra.mrb[8].mxu1 %vm5237_vm11, %v11206_v60  ;;  %v13577_v30 = vpack.c.bf16 %v2591_v33, %v2589_v45  ;;  %v10956_v33 = vld [vmem:[%s15849_s6 + $0x1] ss:$8 sm:$0x3] }
 0x261   : > { %v2502_v26 = vmul.f32 %v2495_v7, %v2488_v41  ;;  %v2503_v27 = vmul.f32 %v2499_v58, %v2489_v55  ;;  %6929 = vmatpush1.bf16.msra.mxu1 %v13451_v61  ;;  %3398 = vrot.lane.b32.xlu1 %v12635_v28, %s12171_s24  ;;  %v11262_v61 = vcombine.high %v6893_v43, %v6893_v43 }
 0x262   : > { %6930 = vmatprep.subr.bf16.mxu1 %v13480_v42  ;;  %v2525_v62 = vpop.permute.xlu0 %2524  ;;  %6960 = vmatprep.mubr.bf16.mxu1 %v12169_v2  ;;  %v13580_v37 = vpack.c.bf16 %v2590_v3, %v2588_v24  ;;  %v2559_v58 = vrot.slane %v10950_v39, %v12542_v12  ;;  %v10957_v39 = vld [vmem:[%s15849_s6 + $0x2] ss:$8 sm:$0x3] }
 0x263   : > { %v2578_v36 = vrot.slane %v2502_v26, 4  ;;  %v2579_v20 = vrot.slane %v2503_v27, 4  ;;  %v2527_v29 = vpop.permute.xlu1 %2526  ;;  %11239 = vmatmul.mubr.msk.bf16.vlgmr.msra.gmra.mrb[28].mxu0 %vm5237_vm11, %v11231_v1  ;;  %6759 = vmatprep.subr.bf16.mxu0 %v13577_v30  ;;  %v2671_v1 = vrot.slane %v10956_v33, %v12539_v11  ;;  %v2675_v27 = vrot.slane %v10956_v33, %v12542_v12 }
 0x264   : > { %v2528_v42 = vsel %vm1127_vm7, %v2525_v62, %v2527_v29  ;;  %v2529_v38 = vsel %vm1127_vm7, %v2527_v29, %v2525_v62  ;;  %3336 = vrot.lane.b32.xlu0 %v12629_v23, %s12172_s25  ;;  %6760 = vmatpush1.bf16.msra.mxu0 %v13580_v37  ;;  %v10958_v62 = vld [vmem:[%s15849_s6 + $0x3] ss:$8 sm:$0x3] }
 0x265   : > { %v2592_v4 = vsel %vm827_vm0, %v12391_v63, %v2578_v36  ;;  %v2593_v6 = vsel %vm827_vm0, %v12393_v0, %v2579_v20  ;;  %v2542_v7 = vmul.f32 %v2535_v25, %v2528_v42  ;;  %v2543_v56 = vmul.f32 %v2539_v22, %v2529_v38  ;;  %6931 = vmatpush1.bf16.msra.mxu1 %v13478_v40  ;;  %v2646_v36 = vld [vmem:[%s15849_s6] ss:$8 sm:$0x3] }
 0x266   : > { %3338 = vrot.lane.b32.xlu1 %v12635_v28, %s12172_s25  ;;  %11263 = vmatprep.subr.msk.bf16.mxu1 %vm5241_vm10, %v11262_v61  ;;  %v2505_v24 = vpop.permute.xlu0 %2504  ;;  %v6923_v40 = vsel %vm5241_vm10, %v11261_v51, 0  ;;  %v2711_v29 = vrot.slane %v10958_v62, %v12539_v11  ;;  %v2715_v38 = vrot.slane %v10958_v62, %v12542_v12 }
 0x267   : > { %v2507_v45 = vpop.permute.xlu1 %2506  ;;  %6791 = vmatprep.mubr.bf16.mxu0 %v12169_v2  ;;  %v2584_v21 = vrot.slane %v2542_v7, 4  ;;  %v2585_v54 = vrot.slane %v2543_v56, 4  ;;  %v2655_v7 = vrot.slane %v2646_v36, %v12542_v12  ;;  %v13672_v56 = vrot.slane %v12629_v23, 4 }
 0x268   : > { %v2508_v63 = vsel %vm1105_vm8, %v2505_v24, %v2507_v45  ;;  %v2509_v0 = vsel %vm1105_vm8, %v2507_v45, %v2505_v24  ;;  %3376 = vrot.lane.b32.xlu0 %v12629_v23, %s12173_s26 }
 0x269   : > { %v2522_v46 = vmul.f32 %v2515_v17, %v2508_v63  ;;  %v2523_v32 = vmul.f32 %v2519_v44, %v2509_v0  ;;  %6933 = vmatpush1.bf16.msra.mxu1 %v6923_v40  ;;  %v2691_v0 = vrot.slane %v10957_v39, %v12539_v11  ;;  %v2695_v40 = vrot.slane %v10957_v39, %v12542_v12 }
 0x26a   : > { %3378 = vrot.lane.b32.xlu1 %v12635_v28, %s12173_s26  ;;  %v2545_v53 = vpop.permute.xlu0 %2544  ;;  %7011 = vmatprep.subr.bf16.mxu1 %v13577_v30 }
 0x26b   : > { %v2594_v31 = vsel %vm827_vm0, %v2522_v46, %v2584_v21  ;;  %v2595_v34 = vsel %vm827_vm0, %v2523_v32, %v2585_v54  ;;  %v2547_v60 = vpop.permute.xlu1 %2546 }
 0x26c   : > { %v2548_v18 = vsel %vm1149_vm9, %v2545_v53, %v2547_v60  ;;  %v2549_v3 = vsel %vm1149_vm9, %v2547_v60, %v2545_v53  ;;  %3416 = vrot.lane.b32.xlu0 %v12629_v23, %s12174_s27  ;;  %11264 = vmatmul.mubr.msk.bf16.vlgmr.msra.gmra.mrb[12].mxu1 %vm5237_vm11, %v6888_v52  ;;  %v13634_v41 = vpack.c.bf16 %v2594_v31, %v2592_v4 }
 0x26d   : > { %v2562_v50 = vmul.f32 %v2555_v57, %v2548_v18  ;;  %v2563_v25 = vmul.f32 %v2559_v58, %v2549_v3  ;;  %7012 = vmatpush1.bf16.msra.mxu1 %v13580_v37  ;;  %7043 = vmatprep.mubr.bf16.mxu1 %v12169_v2  ;;  %v13636_v55 = vpack.c.bf16 %v2595_v34, %v2593_v6  ;;  %v10959_v58 = vld [vmem:[%s15849_s6 + $0x5] ss:$8 sm:$0x3]  ;;  %v13688_v3 = vrot.slane %v12635_v28, 4 }
 0x26e   : > { %3418 = vrot.lane.b32.xlu1 %v12635_v28, %s12174_s27  ;;  %v2661_v59 = vpop.permute.xlu0 %2660  ;;  %v2651_v6 = vrot.slane %v2646_v36, %v12539_v11  ;;  %v10961_v36 = vld [vmem:[%s15849_s6 + $0x7] ss:$8 sm:$0x3] }
 0x26f   : > { %v11669_v43 = vpack.c.bf16 %v2563_v25, %v2562_v50  ;;  %v2663_v26 = vpop.permute.xlu1 %2662  ;;  %6761 = vmatprep.subr.bf16.mxu0 %v13636_v55  ;;  %7013 = vmatprep.subr.bf16.mxu1 %v13636_v55 }
 0x270   : > { %v2665_v22 = vsel %vm1017_vm2, %v2663_v26, %v2661_v59  ;;  %3456 = vrot.lane.b32.xlu0 %v12629_v23, %s12175_s28  ;;  %v2664_v17 = vsel %vm1017_vm2, %v2661_v59, %v2663_v26  ;;  %6762 = vmatpush1.bf16.msra.mxu0 %v13634_v41  ;;  %v2731_v59 = vrot.slane %v10959_v58, %v12539_v11 }
 0x271   : > { %2633 = vst [vmem:[#allocation2 + $0x110] sm:$0x33] %v11669_v43  ;;  %7014 = vmatpush1.bf16.msra.mxu1 %v13634_v41  ;;  %v2678_v20 = vmul.f32 %v2671_v1, %v2665_v22  ;;  %v2679_v42 = vmul.f32 %v2675_v27, %v2664_v17  ;;  %v2735_v22 = vrot.slane %v10959_v58, %v12542_v12 }
 0x272   : > { %3458 = vrot.lane.b32.xlu1 %v12635_v28, %s12175_s28  ;;  %v2701_v44 = vpop.permute.xlu0 %2700  ;;  %v2775_v58 = vrot.slane %v10961_v36, %v12542_v12 }
 0x273   : > { %v2703_v61 = vpop.permute.xlu1 %2702  ;;  %v2802_v45 = vrot.slane %v2678_v20, 4  ;;  %v2803_v21 = vrot.slane %v2679_v42, 4 }
 0x274   : > { %v2705_v51 = vsel %vm1061_vm3, %v2703_v61, %v2701_v44  ;;  %3436 = vrot.lane.b32.xlu0 %v12629_v23, %s15855_s19  ;;  %v2704_v4 = vsel %vm1061_vm3, %v2701_v44, %v2703_v61 }
 0x275   : > { %v2718_v57 = vmul.f32 %v2711_v29, %v2705_v51  ;;  %v2719_v54 = vmul.f32 %v2715_v38, %v2704_v4  ;;  %v11240_v38 = vld [vmem:[%s15847_s4 + $0x8] sm:$0xf] }
 0x276   : > { %3438 = vrot.lane.b32.xlu1 %v12635_v28, %s15855_s19  ;;  %v2641_v24 = vpop.permute.xlu0 %2640 }
 0x277   : > { %v2643_v63 = vpop.permute.xlu1 %2642  ;;  %v2808_v43 = vrot.slane %v2718_v57, 4  ;;  %v2809_v20 = vrot.slane %v2719_v54, 4 }
 0x278   : > { %v2644_v46 = vsel %vm996_vm4, %v2641_v24, %v2643_v63  ;;  %v2645_v32 = vsel %vm996_vm4, %v2643_v63, %v2641_v24  ;;  %3476 = vrot.lane.b32.xlu0 %v12629_v23, %s12177_s20  ;;  %v6724_v52 = vld [vmem:[#allocation2 + $0x110] sm:$0x33]  ;;  %v10960_v24 = vld [vmem:[%s15849_s6 + $0x6] ss:$8 sm:$0x3] }
 0x279   : > { %v6976_v53 = vld [vmem:[#allocation2 + $0x110] sm:$0x33]  ;;  %v2658_v31 = vmul.f32 %v2651_v6, %v2645_v32  ;;  %v2659_v34 = vmul.f32 %v2655_v7, %v2644_v46  ;;  %v11246_v60 = vcombine.high %v6724_v52, %v6724_v52  ;;  %v11245_v50 = vcombine.low %v6724_v52, %v6724_v52 }
 0x27a   : > { %v11271_v18 = vcombine.high %v6976_v53, %v6976_v53  ;;  %3478 = vrot.lane.b32.xlu1 %v12635_v28, %s12177_s20  ;;  %v2681_v33 = vpop.permute.xlu0 %2680  ;;  %v11270_v25 = vcombine.low %v6976_v53, %v6976_v53  ;;  %v2771_v7 = vrot.slane %v10961_v36, %v12539_v11  ;;  %v7228_v63 = vld [vmem:[#allocation2 + $0x110] sm:$0x33]  ;;  %v2751_v54 = vrot.slane %v10960_v24, %v12539_v11 }
 0x27b   : > { %v2824_v1 = vsel %vm827_vm0, %v2658_v31, %v2802_v45  ;;  %v2825_v26 = vsel %vm827_vm0, %v2659_v34, %v2803_v21  ;;  %11247 = vmatprep.subr.msk.bf16.mxu0 %vm5241_vm10, %v11246_v60  ;;  %v2683_v27 = vpop.permute.xlu1 %2682  ;;  %v6754_v44 = vsel %vm5241_vm10, %v11245_v50, 0  ;;  %v2755_v46 = vrot.slane %v10960_v24, %v12542_v12 }
 0x27c   : > { %11272 = vmatprep.subr.msk.bf16.mxu1 %vm5241_vm10, %v11271_v18  ;;  %v2684_v62 = vsel %vm1039_vm5, %v2681_v33, %v2683_v27  ;;  %v2685_v17 = vsel %vm1039_vm5, %v2683_v27, %v2681_v33  ;;  %3592 = vrot.lane.b32.xlu0 %v13672_v56, %s12170_s21  ;;  %v7006_v42 = vsel %vm5241_vm10, %v11270_v25, 0  ;;  %v11295_v18 = vcombine.low %v7228_v63, %v7228_v63  ;;  %v10962_v33 = vld [vmem:[%s15849_s6 + $0x10] ss:$8 sm:$0x3] }
 0x27d   : > { %v2698_v29 = vmul.f32 %v2691_v0, %v2685_v17  ;;  %v2699_v61 = vmul.f32 %v2695_v40, %v2684_v62  ;;  %6764 = vmatpush1.bf16.msra.mxu0 %v6754_v44  ;;  %7016 = vmatpush1.bf16.msra.mxu1 %v7006_v42  ;;  %v2791_v27 = vrot.slane %v10962_v33, %v12539_v11 }
 0x27e   : > { %3594 = vrot.lane.b32.xlu1 %v13688_v3, %s12170_s21  ;;  %v2721_v51 = vpop.permute.xlu0 %2720  ;;  %7263 = vmatprep.subr.bf16.mxu0 %v13577_v30  ;;  %v11265_v30 = vld [vmem:[%s15847_s4 + $0x4] sm:$0xf] }
 0x27f   : > { %v2826_v39 = vsel %vm827_vm0, %v2698_v29, %v2808_v43  ;;  %v2827_v4 = vsel %vm827_vm0, %v2699_v61, %v2809_v20  ;;  %v2723_v6 = vpop.permute.xlu1 %2722  ;;  %v7223_v20 = vld [vmem:[%s15847_s4] sm:$0xf] }
 0x280   : > { %v2724_v45 = vsel %vm1083_vm6, %v2721_v51, %v2723_v6  ;;  %v2725_v57 = vsel %vm1083_vm6, %v2723_v6, %v2721_v51  ;;  %3632 = vrot.lane.b32.xlu0 %v13672_v56, %s12171_s24  ;;  %11248 = vmatmul.mubr.msk.bf16.vlgmr.msra.gmra.mrb[28].mxu0 %vm5237_vm11, %v11240_v38  ;;  %v13739_v32 = vpack.c.bf16 %v2827_v4, %v2825_v26  ;;  %v10968_v4 = vld [vmem:[%s15849_s6 + $0x1] ss:$8 sm:$0x3] }
 0x281   : > { %v2738_v0 = vmul.f32 %v2731_v59, %v2724_v45  ;;  %v2739_v40 = vmul.f32 %v2735_v22, %v2725_v57  ;;  %7264 = vmatpush1.bf16.msra.mxu0 %v13580_v37  ;;  %7295 = vmatprep.mubr.bf16.mxu0 %v12169_v2  ;;  %v11296_v37 = vcombine.high %v7228_v63, %v7228_v63 }
 0x282   : > { %3634 = vrot.lane.b32.xlu1 %v13688_v3, %s12171_s24  ;;  %v2761_v21 = vpop.permute.xlu0 %2760  ;;  %7265 = vmatprep.subr.bf16.mxu0 %v13636_v55  ;;  %v13741_v34 = vpack.c.bf16 %v2826_v39, %v2824_v1  ;;  %v2795_v22 = vrot.slane %v10962_v33, %v12542_v12  ;;  %v10969_v33 = vld [vmem:[%s15849_s6 + $0x2] ss:$8 sm:$0x3] }
 0x283   : > { %v2814_v52 = vrot.slane %v2738_v0, 4  ;;  %v2815_v53 = vrot.slane %v2739_v40, 4  ;;  %v2763_v31 = vpop.permute.xlu1 %2762  ;;  %11273 = vmatmul.mubr.msk.bf16.vlgmr.msra.gmra.mrb[12].mxu1 %vm5237_vm11, %v11265_v30  ;;  %7094 = vmatprep.subr.bf16.mxu1 %v13739_v32  ;;  %v2901_v30 = vrot.slane %v10968_v4, %v12539_v11  ;;  %v2905_v40 = vrot.slane %v10968_v4, %v12542_v12 }
 0x284   : > { %v2764_v60 = vsel %vm1127_vm7, %v2761_v21, %v2763_v31  ;;  %v2765_v55 = vsel %vm1127_vm7, %v2763_v31, %v2761_v21  ;;  %3572 = vrot.lane.b32.xlu0 %v13672_v56, %s12172_s25  ;;  %7095 = vmatpush1.bf16.msra.mxu1 %v13741_v34  ;;  %v10970_v21 = vld [vmem:[%s15849_s6 + $0x3] ss:$8 sm:$0x3] }
 0x285   : > { %v2828_v50 = vsel %vm827_vm0, %v12995_v5, %v2814_v52  ;;  %v2829_v25 = vsel %vm827_vm0, %v13021_v48, %v2815_v53  ;;  %v2778_v59 = vmul.f32 %v2771_v7, %v2764_v60  ;;  %v2779_v43 = vmul.f32 %v2775_v58, %v2765_v55  ;;  %7266 = vmatpush1.bf16.msra.mxu0 %v13634_v41  ;;  %v2876_v52 = vld [vmem:[%s15849_s6] ss:$8 sm:$0x3] }
 0x286   : > { %3574 = vrot.lane.b32.xlu1 %v13688_v3, %s12172_s25  ;;  %v2741_v1 = vpop.permute.xlu0 %2740  ;;  %11297 = vmatprep.subr.msk.bf16.mxu0 %vm5241_vm10, %v11296_v37  ;;  %v7258_v41 = vsel %vm5241_vm10, %v11295_v18, 0  ;;  %v2941_v31 = vrot.slane %v10970_v21, %v12539_v11  ;;  %v2945_v55 = vrot.slane %v10970_v21, %v12542_v12 }
 0x287   : > { %v2743_v26 = vpop.permute.xlu1 %2742  ;;  %7126 = vmatprep.mubr.bf16.mxu1 %v12169_v2  ;;  %v2820_v62 = vrot.slane %v2778_v59, 4  ;;  %v2821_v17 = vrot.slane %v2779_v43, 4  ;;  %v2885_v59 = vrot.slane %v2876_v52, %v12542_v12 }
 0x288   : > { %v2744_v5 = vsel %vm1105_vm8, %v2741_v1, %v2743_v26  ;;  %v2745_v48 = vsel %vm1105_vm8, %v2743_v26, %v2741_v1  ;;  %3612 = vrot.lane.b32.xlu0 %v13672_v56, %s12173_s26 }
 0x289   : > { %v2758_v44 = vmul.f32 %v2751_v54, %v2744_v5  ;;  %v2759_v36 = vmul.f32 %v2755_v46, %v2745_v48  ;;  %7268 = vmatpush1.bf16.msra.mxu0 %v7258_v41  ;;  %v2921_v5 = vrot.slane %v10969_v33, %v12539_v11  ;;  %v2925_v48 = vrot.slane %v10969_v33, %v12542_v12  ;;  %v10971_v41 = vld [vmem:[%s15849_s6 + $0x5] ss:$8 sm:$0x3] }
 0x28a   : > { %3614 = vrot.lane.b32.xlu1 %v13688_v3, %s12173_s26  ;;  %v2781_v29 = vpop.permute.xlu0 %2780  ;;  %7346 = vmatprep.subr.bf16.mxu0 %v13739_v32 }
 0x28b   : > { %v2830_v61 = vsel %vm827_vm0, %v2758_v44, %v2820_v62  ;;  %v2831_v42 = vsel %vm827_vm0, %v2759_v36, %v2821_v17  ;;  %v2783_v38 = vpop.permute.xlu1 %2782 }
 0x28c   : > { %v2784_v51 = vsel %vm1149_vm9, %v2781_v29, %v2783_v38  ;;  %v2785_v39 = vsel %vm1149_vm9, %v2783_v38, %v2781_v29  ;;  %3652 = vrot.lane.b32.xlu0 %v13672_v56, %s12174_s27  ;;  %11298 = vmatmul.mubr.msk.bf16.vlgmr.msra.gmra.mrb[32].mxu0 %vm5237_vm11, %v7223_v20  ;;  %v13795_v45 = vpack.c.bf16 %v2830_v61, %v2828_v50 }
 0x28d   : > { %v2798_v6 = vmul.f32 %v2791_v27, %v2784_v51  ;;  %v2799_v7 = vmul.f32 %v2795_v22, %v2785_v39  ;;  %7347 = vmatpush1.bf16.msra.mxu0 %v13741_v34  ;;  %7378 = vmatprep.mubr.bf16.mxu0 %v12169_v2  ;;  %v13797_v57 = vpack.c.bf16 %v2831_v42, %v2829_v25 }
 0x28e   : > { %3654 = vrot.lane.b32.xlu1 %v13688_v3, %s12174_s27  ;;  %v2891_v24 = vpop.permute.xlu0 %2890  ;;  %v2881_v25 = vrot.slane %v2876_v52, %v12539_v11 }
 0x28f   : > { %v11674_v63 = vpack.c.bf16 %v2799_v7, %v2798_v6  ;;  %v2893_v0 = vpop.permute.xlu1 %2892  ;;  %7096 = vmatprep.subr.bf16.mxu1 %v13797_v57  ;;  %7348 = vmatprep.subr.bf16.mxu0 %v13797_v57  ;;  %v2961_v6 = vrot.slane %v10971_v41, %v12539_v11 }
 0x290   : > { %v2895_v58 = vsel %vm1017_vm2, %v2893_v0, %v2891_v24  ;;  %3692 = vrot.lane.b32.xlu0 %v13672_v56, %s12175_s28  ;;  %v2894_v54 = vsel %vm1017_vm2, %v2891_v24, %v2893_v0  ;;  %7097 = vmatpush1.bf16.msra.mxu1 %v13795_v45  ;;  %v2965_v0 = vrot.slane %v10971_v41, %v12542_v12 }
 0x291   : > { %2869 = vst [vmem:[#allocation2 + $0x138] sm:$0x33] %v11674_v63  ;;  %7349 = vmatpush1.bf16.msra.mxu0 %v13795_v45  ;;  %v2908_v53 = vmul.f32 %v2901_v30, %v2895_v58  ;;  %v2909_v60 = vmul.f32 %v2905_v40, %v2894_v54  ;;  %v13853_v40 = vpop.f32.mrb[16].mxu0 }
 0x292   : > { %3694 = vrot.lane.b32.xlu1 %v13688_v3, %s12175_s28  ;;  %v2931_v46 = vpop.permute.xlu0 %2930  ;;  %v13865_v52 = vpop.f32.mrb[17].mxu0 }
 0x293   : > { %v2933_v37 = vpop.permute.xlu1 %2932  ;;  %v3032_v1 = vrot.slane %v2908_v53, 4  ;;  %v3033_v22 = vrot.slane %v2909_v60, 4 }
 0x294   : > { %v2935_v18 = vsel %vm1061_vm3, %v2933_v37, %v2931_v46  ;;  %3672 = vrot.lane.b32.xlu0 %v13672_v56, %s15855_s19  ;;  %v2934_v50 = vsel %vm1061_vm3, %v2931_v46, %v2933_v37  ;;  %v10973_v46 = vld [vmem:[%s15849_s6 + $0x7] ss:$8 sm:$0x3] }
 0x295   : > { %v2948_v26 = vmul.f32 %v2941_v31, %v2935_v18  ;;  %v2949_v62 = vmul.f32 %v2945_v55, %v2934_v50  ;;  %v11274_v55 = vld [vmem:[%s15847_s4 + $0x8] sm:$0xf]  ;;  %v987_v18 = vpop.f32.mrb[18].mxu0 }
 0x296   : > { %3674 = vrot.lane.b32.xlu1 %v13688_v3, %s15855_s19  ;;  %v2871_v43 = vpop.permute.xlu0 %2870  ;;  %v988_v50 = vpop.f32.mrb[19].mxu0 }
 0x297   : > { %v2873_v27 = vpop.permute.xlu1 %2872  ;;  %v3038_v7 = vrot.slane %v2948_v26, 4  ;;  %v3039_v53 = vrot.slane %v2949_v62, 4  ;;  %v10972_v26 = vld [vmem:[%s15849_s6 + $0x6] ss:$8 sm:$0x3]  ;;  %v3005_v62 = vrot.slane %v10973_v46, %v12542_v12 }
 0x298   : > { %v2874_v17 = vsel %vm996_vm4, %v2871_v43, %v2873_v27  ;;  %v2875_v44 = vsel %vm996_vm4, %v2873_v27, %v2871_v43  ;;  %3712 = vrot.lane.b32.xlu0 %v13672_v56, %s12177_s20  ;;  %v7059_v36 = vld [vmem:[#allocation2 + $0x138] sm:$0x33] }
 0x299   : > { %v7311_v20 = vld [vmem:[#allocation2 + $0x138] sm:$0x33]  ;;  %v2888_v29 = vmul.f32 %v2881_v25, %v2875_v44  ;;  %v2889_v61 = vmul.f32 %v2885_v59, %v2874_v17  ;;  %v11280_v42 = vcombine.high %v7059_v36, %v7059_v36  ;;  %v11279_v39 = vcombine.low %v7059_v36, %v7059_v36 }
 0x29a   : > { %v11305_v38 = vcombine.high %v7311_v20, %v7311_v20  ;;  %3714 = vrot.lane.b32.xlu1 %v13688_v3, %s12177_s20  ;;  %v2911_v51 = vpop.permute.xlu0 %2910  ;;  %v11304_v4 = vcombine.low %v7311_v20, %v7311_v20  ;;  %v2981_v44 = vrot.slane %v10972_v26, %v12539_v11  ;;  %v2985_v36 = vrot.slane %v10972_v26, %v12542_v12 }
 0x29b   : > { %v3054_v24 = vsel %vm827_vm0, %v2888_v29, %v3032_v1  ;;  %v3055_v63 = vsel %vm827_vm0, %v2889_v61, %v3033_v22  ;;  %11281 = vmatprep.subr.msk.bf16.mxu1 %vm5241_vm10, %v11280_v42  ;;  %v2913_v30 = vpop.permute.xlu1 %2912  ;;  %v7089_v54 = vsel %vm5241_vm10, %v11279_v39, 0  ;;  %v3001_v1 = vrot.slane %v10973_v46, %v12539_v11 }
 0x29c   : > { %11306 = vmatprep.subr.msk.bf16.mxu0 %vm5241_vm10, %v11305_v38  ;;  %v2914_v58 = vsel %vm1039_vm5, %v2911_v51, %v2913_v30  ;;  %v2915_v21 = vsel %vm1039_vm5, %v2913_v30, %v2911_v51  ;;  %3822 = vrot.lane.b32.xlu0 %v13209_v49, %s12170_s21  ;;  %v7341_v60 = vsel %vm5241_vm10, %v11304_v4, 0  ;;  %v10974_v4 = vld [vmem:[%s15849_s6 + $0x10] ss:$8 sm:$0x3] }
 0x29d   : > { %v2928_v31 = vmul.f32 %v2921_v5, %v2915_v21  ;;  %v2929_v37 = vmul.f32 %v2925_v48, %v2914_v58  ;;  %7099 = vmatpush1.bf16.msra.mxu1 %v7089_v54  ;;  %7351 = vmatpush1.bf16.msra.mxu0 %v7341_v60  ;;  %v7563_v48 = vld [vmem:[#allocation2 + $0x138] sm:$0x33]  ;;  %v3021_v58 = vrot.slane %v10974_v4, %v12539_v11 }
 0x29e   : > { %3824 = vrot.lane.b32.xlu1 %v13216_v15, %s12170_s21  ;;  %v2951_v33 = vpop.permute.xlu0 %2950  ;;  %7598 = vmatprep.subr.bf16.mxu1 %v13739_v32  ;;  %v11299_v32 = vld [vmem:[%s15847_s4 + $0x4] sm:$0xf]  ;;  %v11329_v39 = vcombine.low %v7563_v48, %v7563_v48  ;;  %v3025_v21 = vrot.slane %v10974_v4, %v12542_v12  ;;  %v10981_v4 = vld [vmem:[%s15849_s6 + $0x2] ss:$8 sm:$0x3] }
 0x29f   : > { %v3056_v25 = vsel %vm827_vm0, %v2928_v31, %v3038_v7  ;;  %v3057_v59 = vsel %vm827_vm0, %v2929_v37, %v3039_v53  ;;  %v2953_v43 = vpop.permute.xlu1 %2952  ;;  %v7558_v37 = vld [vmem:[%s15847_s4] sm:$0xf] }
 0x2a0   : > { %v2954_v27 = vsel %vm1083_vm6, %v2951_v33, %v2953_v43  ;;  %v2955_v5 = vsel %vm1083_vm6, %v2953_v43, %v2951_v33  ;;  %3862 = vrot.lane.b32.xlu0 %v13209_v49, %s12171_s24  ;;  %11282 = vmatmul.mubr.msk.bf16.vlgmr.msra.gmra.mrb[12].mxu1 %vm5237_vm11, %v11274_v55  ;;  %v13898_v20 = vpack.c.bf16 %v3057_v59, %v3055_v63  ;;  %v10980_v59 = vld [vmem:[%s15849_s6 + $0x1] ss:$8 sm:$0x3] }
 0x2a1   : > { %v2968_v41 = vmul.f32 %v2961_v6, %v2954_v27  ;;  %v2969_v22 = vmul.f32 %v2965_v0, %v2955_v5  ;;  %7599 = vmatpush1.bf16.msra.mxu1 %v13741_v34  ;;  %7630 = vmatprep.mubr.bf16.mxu1 %v12169_v2  ;;  %v11330_v34 = vcombine.high %v7563_v48, %v7563_v48 }
 0x2a2   : > { %3864 = vrot.lane.b32.xlu1 %v13216_v15, %s12171_s24  ;;  %7600 = vmatprep.subr.bf16.mxu1 %v13797_v57  ;;  %v2991_v17 = vpop.permute.xlu0 %2990  ;;  %v13900_v38 = vpack.c.bf16 %v3056_v25, %v3054_v24 }
 0x2a3   : > { %v3044_v29 = vrot.slane %v2968_v41, 4  ;;  %v3045_v61 = vrot.slane %v2969_v22, 4  ;;  %v2993_v42 = vpop.permute.xlu1 %2992  ;;  %11307 = vmatmul.mubr.msk.bf16.vlgmr.msra.gmra.mrb[32].mxu0 %vm5237_vm11, %v11299_v32  ;;  %7429 = vmatprep.subr.bf16.mxu0 %v13898_v20  ;;  %v3137_v32 = vrot.slane %v10980_v59, %v12539_v11  ;;  %v3141_v22 = vrot.slane %v10980_v59, %v12542_v12 }
 0x2a4   : > { %v2994_v51 = vsel %vm1127_vm7, %v2991_v17, %v2993_v42  ;;  %v2995_v57 = vsel %vm1127_vm7, %v2993_v42, %v2991_v17  ;;  %3802 = vrot.lane.b32.xlu0 %v13209_v49, %s12172_s25  ;;  %7430 = vmatpush1.bf16.msra.mxu0 %v13900_v38  ;;  %v10982_v17 = vld [vmem:[%s15849_s6 + $0x3] ss:$8 sm:$0x3] }
 0x2a5   : > { %v3058_v6 = vsel %vm827_vm0, %v12613_v14, %v3044_v29  ;;  %v3059_v7 = vsel %vm827_vm0, %v12617_v19, %v3045_v61  ;;  %v3008_v24 = vmul.f32 %v3001_v1, %v2994_v51  ;;  %v3009_v63 = vmul.f32 %v3005_v62, %v2995_v57  ;;  %7601 = vmatpush1.bf16.msra.mxu1 %v13795_v45  ;;  %v3112_v29 = vld [vmem:[%s15849_s6] ss:$8 sm:$0x3] }
 0x2a6   : > { %3804 = vrot.lane.b32.xlu1 %v13216_v15, %s12172_s25  ;;  %11331 = vmatprep.subr.msk.bf16.mxu1 %vm5241_vm10, %v11330_v34  ;;  %v2971_v30 = vpop.permute.xlu0 %2970  ;;  %v7593_v45 = vsel %vm5241_vm10, %v11329_v39, 0  ;;  %v3177_v42 = vrot.slane %v10982_v17, %v12539_v11  ;;  %v3181_v57 = vrot.slane %v10982_v17, %v12542_v12 }
 0x2a7   : > { %v2973_v0 = vpop.permute.xlu1 %2972  ;;  %7461 = vmatprep.mubr.bf16.mxu0 %v12169_v2  ;;  %v3050_v54 = vrot.slane %v3008_v24, 4  ;;  %v3051_v46 = vrot.slane %v3009_v63, 4  ;;  %v3121_v24 = vrot.slane %v3112_v29, %v12542_v12  ;;  %v13992_v63 = vrot.slane %v13209_v49, 4 }
 0x2a8   : > { %v2974_v14 = vsel %vm1105_vm8, %v2971_v30, %v2973_v0  ;;  %v2975_v19 = vsel %vm1105_vm8, %v2973_v0, %v2971_v30  ;;  %3842 = vrot.lane.b32.xlu0 %v13209_v49, %s12173_s26 }
 0x2a9   : > { %v2988_v53 = vmul.f32 %v2981_v44, %v2974_v14  ;;  %v2989_v31 = vmul.f32 %v2985_v36, %v2975_v19  ;;  %7603 = vmatpush1.bf16.msra.mxu1 %v7593_v45  ;;  %v3157_v19 = vrot.slane %v10981_v4, %v12539_v11  ;;  %v3161_v45 = vrot.slane %v10981_v4, %v12542_v12 }
 0x2aa   : > { %3844 = vrot.lane.b32.xlu1 %v13216_v15, %s12173_s26  ;;  %v3011_v60 = vpop.permute.xlu0 %3010  ;;  %7681 = vmatprep.subr.bf16.mxu1 %v13898_v20 }
 0x2ab   : > { %v3060_v55 = vsel %vm827_vm0, %v2988_v53, %v3050_v54  ;;  %v3061_v18 = vsel %vm827_vm0, %v2989_v31, %v3051_v46  ;;  %v3013_v33 = vpop.permute.xlu1 %3012 }
 0x2ac   : > { %v3014_v50 = vsel %vm1149_vm9, %v3011_v60, %v3013_v33  ;;  %v3015_v25 = vsel %vm1149_vm9, %v3013_v33, %v3011_v60  ;;  %3882 = vrot.lane.b32.xlu0 %v13209_v49, %s12174_s27  ;;  %11332 = vmatmul.mubr.msk.bf16.vlgmr.msra.gmra.mrb[16].mxu1 %vm5237_vm11, %v7558_v37  ;;  %v13954_v27 = vpack.c.bf16 %v3060_v55, %v3058_v6 }
 0x2ad   : > { %v3028_v43 = vmul.f32 %v3021_v58, %v3014_v50  ;;  %v3029_v1 = vmul.f32 %v3025_v21, %v3015_v25  ;;  %7682 = vmatpush1.bf16.msra.mxu1 %v13900_v38  ;;  %7713 = vmatprep.mubr.bf16.mxu1 %v12169_v2  ;;  %v13956_v5 = vpack.c.bf16 %v3061_v18, %v3059_v7  ;;  %v10983_v21 = vld [vmem:[%s15849_s6 + $0x5] ss:$8 sm:$0x3]  ;;  %v14008_v25 = vrot.slane %v13216_v15, 4 }
 0x2ae   : > { %3884 = vrot.lane.b32.xlu1 %v13216_v15, %s12174_s27  ;;  %v3127_v26 = vpop.permute.xlu0 %3126  ;;  %v3117_v7 = vrot.slane %v3112_v29, %v12539_v11  ;;  %v10985_v29 = vld [vmem:[%s15849_s6 + $0x7] ss:$8 sm:$0x3] }
 0x2af   : > { %v11679_v48 = vpack.c.bf16 %v3029_v1, %v3028_v43  ;;  %v3129_v41 = vpop.permute.xlu1 %3128  ;;  %7431 = vmatprep.subr.bf16.mxu0 %v13956_v5  ;;  %7683 = vmatprep.subr.bf16.mxu1 %v13956_v5 }
 0x2b0   : > { %v3131_v62 = vsel %vm1017_vm2, %v3129_v41, %v3127_v26  ;;  %3922 = vrot.lane.b32.xlu0 %v13209_v49, %s12175_s28  ;;  %v3130_v44 = vsel %vm1017_vm2, %v3127_v26, %v3129_v41  ;;  %7432 = vmatpush1.bf16.msra.mxu0 %v13954_v27  ;;  %v3197_v26 = vrot.slane %v10983_v21, %v12539_v11 }
 0x2b1   : > { %3099 = vst [vmem:[#allocation2 + $0x160] sm:$0x33] %v11679_v48  ;;  %7684 = vmatpush1.bf16.msra.mxu1 %v13954_v27  ;;  %v3144_v61 = vmul.f32 %v3137_v32, %v3131_v62  ;;  %v3145_v51 = vmul.f32 %v3141_v22, %v3130_v44  ;;  %v3201_v62 = vrot.slane %v10983_v21, %v12542_v12 }
 0x2b2   : > { %3924 = vrot.lane.b32.xlu1 %v13216_v15, %s12175_s28  ;;  %v3167_v36 = vpop.permute.xlu0 %3166  ;;  %v3241_v21 = vrot.slane %v10985_v29, %v12542_v12 }
 0x2b3   : > { %v3169_v34 = vpop.permute.xlu1 %3168  ;;  %v3268_v0 = vrot.slane %v3144_v61, 4  ;;  %v3269_v54 = vrot.slane %v3145_v51, 4 }
 0x2b4   : > { %v3171_v39 = vsel %vm1061_vm3, %v3169_v34, %v3167_v36  ;;  %3902 = vrot.lane.b32.xlu0 %v13209_v49, %s15855_s19  ;;  %v3170_v6 = vsel %vm1061_vm3, %v3167_v36, %v3169_v34 }
 0x2b5   : > { %v3184_v58 = vmul.f32 %v3177_v42, %v3171_v39  ;;  %v3185_v46 = vmul.f32 %v3181_v57, %v3170_v6  ;;  %v11308_v57 = vld [vmem:[%s15847_s4 + $0x8] sm:$0xf] }
 0x2b6   : > { %3904 = vrot.lane.b32.xlu1 %v13216_v15, %s15855_s19  ;;  %v3107_v30 = vpop.permute.xlu0 %3106 }
 0x2b7   : > { %v3109_v14 = vpop.permute.xlu1 %3108  ;;  %v3274_v48 = vrot.slane %v3184_v58, 4  ;;  %v3275_v61 = vrot.slane %v3185_v46, 4 }
 0x2b8   : > { %v3110_v53 = vsel %vm996_vm4, %v3107_v30, %v3109_v14  ;;  %v3111_v31 = vsel %vm996_vm4, %v3109_v14, %v3107_v30  ;;  %3942 = vrot.lane.b32.xlu0 %v13209_v49, %s12177_s20  ;;  %v7394_v37 = vld [vmem:[#allocation2 + $0x160] sm:$0x33]  ;;  %v10984_v30 = vld [vmem:[%s15849_s6 + $0x6] ss:$8 sm:$0x3] }
 0x2b9   : > { %v7646_v60 = vld [vmem:[#allocation2 + $0x160] sm:$0x33]  ;;  %v3124_v55 = vmul.f32 %v3117_v7, %v3111_v31  ;;  %v3125_v18 = vmul.f32 %v3121_v24, %v3110_v53  ;;  %v11314_v33 = vcombine.high %v7394_v37, %v7394_v37  ;;  %v11313_v43 = vcombine.low %v7394_v37, %v7394_v37 }
 0x2ba   : > { %v11339_v50 = vcombine.high %v7646_v60, %v7646_v60  ;;  %3944 = vrot.lane.b32.xlu1 %v13216_v15, %s12177_s20  ;;  %v3147_v59 = vpop.permute.xlu0 %3146  ;;  %v11338_v1 = vcombine.low %v7646_v60, %v7646_v60  ;;  %v3237_v24 = vrot.slane %v10985_v29, %v12539_v11  ;;  %v7898_v14 = vld [vmem:[#allocation2 + $0x160] sm:$0x33]  ;;  %v3217_v46 = vrot.slane %v10984_v30, %v12539_v11 }
 0x2bb   : > { %v3290_v32 = vsel %vm827_vm0, %v3124_v55, %v3268_v0  ;;  %v3291_v41 = vsel %vm827_vm0, %v3125_v18, %v3269_v54  ;;  %11315 = vmatprep.subr.msk.bf16.mxu0 %vm5241_vm10, %v11314_v33  ;;  %v3149_v22 = vpop.permute.xlu1 %3148  ;;  %v7424_v36 = vsel %vm5241_vm10, %v11313_v43, 0  ;;  %v3221_v53 = vrot.slane %v10984_v30, %v12542_v12 }
 0x2bc   : > { %11340 = vmatprep.subr.msk.bf16.mxu1 %vm5241_vm10, %v11339_v50  ;;  %v3150_v17 = vsel %vm1039_vm5, %v3147_v59, %v3149_v22  ;;  %v3151_v44 = vsel %vm1039_vm5, %v3149_v22, %v3147_v59  ;;  %4058 = vrot.lane.b32.xlu0 %v13992_v63, %s12170_s21  ;;  %v7676_v51 = vsel %vm5241_vm10, %v11338_v1, 0  ;;  %v11363_v50 = vcombine.low %v7898_v14, %v7898_v14  ;;  %v10986_v59 = vld [vmem:[%s15849_s6 + $0x10] ss:$8 sm:$0x3] }
 0x2bd   : > { %v3164_v42 = vmul.f32 %v3157_v19, %v3151_v44  ;;  %v3165_v34 = vmul.f32 %v3161_v45, %v3150_v17  ;;  %7434 = vmatpush1.bf16.msra.mxu0 %v7424_v36  ;;  %7686 = vmatpush1.bf16.msra.mxu1 %v7676_v51  ;;  %v3257_v22 = vrot.slane %v10986_v59, %v12539_v11 }
 0x2be   : > { %4060 = vrot.lane.b32.xlu1 %v14008_v25, %s12170_s21  ;;  %v3187_v39 = vpop.permute.xlu0 %3186  ;;  %7933 = vmatprep.subr.bf16.mxu0 %v13898_v20  ;;  %v11333_v20 = vld [vmem:[%s15847_s4 + $0x4] sm:$0xf] }
 0x2bf   : > { %v3292_v4 = vsel %vm827_vm0, %v3164_v42, %v3274_v48  ;;  %v3293_v6 = vsel %vm827_vm0, %v3165_v34, %v3275_v61  ;;  %v3189_v7 = vpop.permute.xlu1 %3188  ;;  %v7893_v61 = vld [vmem:[%s15847_s4] sm:$0xf] }
 0x2c0   : > { %v3190_v0 = vsel %vm1083_vm6, %v3187_v39, %v3189_v7  ;;  %v3191_v58 = vsel %vm1083_vm6, %v3189_v7, %v3187_v39  ;;  %4098 = vrot.lane.b32.xlu0 %v13992_v63, %s12171_s24  ;;  %11316 = vmatmul.mubr.msk.bf16.vlgmr.msra.gmra.mrb[32].mxu0 %vm5237_vm11, %v11308_v57  ;;  %v14059_v31 = vpack.c.bf16 %v3293_v6, %v3291_v41 }
 0x2c1   : > { %v3204_v19 = vmul.f32 %v3197_v26, %v3190_v0  ;;  %v3205_v45 = vmul.f32 %v3201_v62, %v3191_v58  ;;  %7934 = vmatpush1.bf16.msra.mxu0 %v13900_v38  ;;  %7965 = vmatprep.mubr.bf16.mxu0 %v12169_v2  ;;  %v11364_v38 = vcombine.high %v7898_v14, %v7898_v14 }
 0x2c2   : > { %4100 = vrot.lane.b32.xlu1 %v14008_v25, %s12171_s24  ;;  %v3227_v54 = vpop.permute.xlu0 %3226  ;;  %7935 = vmatprep.subr.bf16.mxu0 %v13956_v5  ;;  %v14061_v18 = vpack.c.bf16 %v3292_v4, %v3290_v32  ;;  %v3261_v62 = vrot.slane %v10986_v59, %v12542_v12 }
 0x2c3   : > { %v3280_v37 = vrot.slane %v3204_v19, 4  ;;  %v3281_v60 = vrot.slane %v3205_v45, 4  ;;  %v3229_v55 = vpop.permute.xlu1 %3228  ;;  %11341 = vmatmul.mubr.msk.bf16.vlgmr.msra.gmra.mrb[16].mxu1 %vm5237_vm11, %v11333_v20  ;;  %7764 = vmatprep.subr.bf16.mxu1 %v14059_v31 }
 0x2c4   : > { %v3230_v33 = vsel %vm1127_vm7, %v3227_v54, %v3229_v55  ;;  %v3231_v5 = vsel %vm1127_vm7, %v3229_v55, %v3227_v54  ;;  %4038 = vrot.lane.b32.xlu0 %v13992_v63, %s12172_s25  ;;  %7765 = vmatpush1.bf16.msra.mxu1 %v14061_v18 }
 0x2c5   : > { %v3294_v43 = vsel %vm827_vm0, %v13355_v47, %v3280_v37  ;;  %v3295_v1 = vsel %vm827_vm0, %v13358_v13, %v3281_v60  ;;  %v3244_v26 = vmul.f32 %v3237_v24, %v3230_v33  ;;  %v3245_v48 = vmul.f32 %v3241_v21, %v3231_v5  ;;  %7936 = vmatpush1.bf16.msra.mxu0 %v13954_v27  ;;  %v10992_v24 = vld [vmem:[%s15849_s6 + $0x1] ss:$8 sm:$0x3]  ;;  %v3342_v60 = vld [vmem:[%s15849_s6] ss:$8 sm:$0x3] }
 0x2c6   : > { %4040 = vrot.lane.b32.xlu1 %v14008_v25, %s12172_s25  ;;  %v3207_v32 = vpop.permute.xlu0 %3206  ;;  %11365 = vmatprep.subr.msk.bf16.mxu0 %vm5241_vm10, %v11364_v38  ;;  %v7928_v27 = vsel %vm5241_vm10, %v11363_v50, 0  ;;  %v3367_v19 = vrot.slane %v10992_v24, %v12539_v11  ;;  %v3371_v45 = vrot.slane %v10992_v24, %v12542_v12  ;;  %v10993_v50 = vld [vmem:[%s15849_s6 + $0x2] ss:$8 sm:$0x3] }
 0x2c7   : > { %v3209_v41 = vpop.permute.xlu1 %3208  ;;  %7796 = vmatprep.mubr.bf16.mxu1 %v12169_v2  ;;  %v3286_v17 = vrot.slane %v3244_v26, 4  ;;  %v3287_v44 = vrot.slane %v3245_v48, 4  ;;  %v3347_v26 = vrot.slane %v3342_v60, %v12539_v11  ;;  %v3351_v48 = vrot.slane %v3342_v60, %v12542_v12 }
 0x2c8   : > { %v3210_v47 = vsel %vm1105_vm8, %v3207_v32, %v3209_v41  ;;  %v3211_v13 = vsel %vm1105_vm8, %v3209_v41, %v3207_v32  ;;  %4078 = vrot.lane.b32.xlu0 %v13992_v63, %s12173_s26  ;;  %v3387_v32 = vrot.slane %v10993_v50, %v12539_v11  ;;  %v3391_v41 = vrot.slane %v10993_v50, %v12542_v12 }
 0x2c9   : > { %v3224_v36 = vmul.f32 %v3217_v46, %v3210_v47  ;;  %v3225_v29 = vmul.f32 %v3221_v53, %v3211_v13  ;;  %7938 = vmatpush1.bf16.msra.mxu0 %v7928_v27  ;;  %v10994_v46 = vld [vmem:[%s15849_s6 + $0x3] ss:$8 sm:$0x3] }
 0x2ca   : > { %4080 = vrot.lane.b32.xlu1 %v14008_v25, %s12173_s26  ;;  %v3247_v42 = vpop.permute.xlu0 %3246  ;;  %8016 = vmatprep.subr.bf16.mxu0 %v14059_v31  ;;  %v3407_v33 = vrot.slane %v10994_v46, %v12539_v11  ;;  %v3411_v5 = vrot.slane %v10994_v46, %v12542_v12  ;;  %v11342_v46 = vld [vmem:[%s15847_s4 + $0x8] sm:$0xf] }
 0x2cb   : > { %v3296_v34 = vsel %vm827_vm0, %v3224_v36, %v3286_v17  ;;  %v3297_v51 = vsel %vm827_vm0, %v3225_v29, %v3287_v44  ;;  %v3249_v57 = vpop.permute.xlu1 %3248 }
 0x2cc   : > { %v3250_v39 = vsel %vm1149_vm9, %v3247_v42, %v3249_v57  ;;  %v3251_v4 = vsel %vm1149_vm9, %v3249_v57, %v3247_v42  ;;  %4118 = vrot.lane.b32.xlu0 %v13992_v63, %s12174_s27  ;;  %11366 = vmatmul.mubr.msk.bf16.vlgmr.msra.gmra.mrb[36].mxu0 %vm5237_vm11, %v7893_v61  ;;  %v14115_v0 = vpack.c.bf16 %v3296_v34, %v3294_v43 }
 0x2cd   : > { %v3264_v6 = vmul.f32 %v3257_v22, %v3250_v39  ;;  %v3265_v7 = vmul.f32 %v3261_v62, %v3251_v4  ;;  %8017 = vmatpush1.bf16.msra.mxu0 %v14061_v18  ;;  %8048 = vmatprep.mubr.bf16.mxu0 %v12169_v2  ;;  %v14117_v58 = vpack.c.bf16 %v3297_v51, %v3295_v1  ;;  %v10995_v22 = vld [vmem:[%s15849_s6 + $0x5] ss:$8 sm:$0x3] }
 0x2ce   : > { %4120 = vrot.lane.b32.xlu1 %v14008_v25, %s12174_s27  ;;  %v3357_v30 = vpop.permute.xlu0 %3356  ;;  %v3431_v24 = vrot.slane %v10995_v22, %v12542_v12 }
 0x2cf   : > { %v11684_v14 = vpack.c.bf16 %v3265_v7, %v3264_v6  ;;  %v3359_v20 = vpop.permute.xlu1 %3358  ;;  %7766 = vmatprep.subr.bf16.mxu1 %v14117_v58  ;;  %8018 = vmatprep.subr.bf16.mxu0 %v14117_v58  ;;  %v3427_v7 = vrot.slane %v10995_v22, %v12539_v11 }
 0x2d0   : > { %4158 = vrot.lane.b32.xlu0 %v13992_v63, %s12175_s28  ;;  %v3360_v21 = vsel %vm1017_vm2, %v3357_v30, %v3359_v20  ;;  %v3361_v54 = vsel %vm1017_vm2, %v3359_v20, %v3357_v30  ;;  %7767 = vmatpush1.bf16.msra.mxu1 %v14115_v0 }
 0x2d1   : > { %3335 = vst [vmem:[#allocation2 + $0x188] sm:$0x33] %v11684_v14  ;;  %8019 = vmatpush1.bf16.msra.mxu0 %v14115_v0  ;;  %v3374_v55 = vmul.f32 %v3367_v19, %v3361_v54  ;;  %v3375_v38 = vmul.f32 %v3371_v45, %v3360_v21 }
 0x2d2   : > { %4160 = vrot.lane.b32.xlu1 %v14008_v25, %s12175_s28  ;;  %v3397_v53 = vpop.permute.xlu0 %3396 }
 0x2d3   : > { %v3399_v37 = vpop.permute.xlu1 %3398  ;;  %v3498_v47 = vrot.slane %v3374_v55, 4  ;;  %v3499_v13 = vrot.slane %v3375_v38, 4 }
 0x2d4   : > { %4138 = vrot.lane.b32.xlu0 %v13992_v63, %s15855_s19  ;;  %v3400_v59 = vsel %vm1061_vm3, %v3397_v53, %v3399_v37  ;;  %v3401_v43 = vsel %vm1061_vm3, %v3399_v37, %v3397_v53  ;;  %v10997_v53 = vld [vmem:[%s15849_s6 + $0x7] ss:$8 sm:$0x3] }
 0x2d5   : > { %v3414_v27 = vmul.f32 %v3407_v33, %v3401_v43  ;;  %v3415_v62 = vmul.f32 %v3411_v5, %v3400_v59  ;;  %v3467_v43 = vrot.slane %v10997_v53, %v12539_v11 }
 0x2d6   : > { %4140 = vrot.lane.b32.xlu1 %v14008_v25, %s15855_s19  ;;  %v3337_v1 = vpop.permute.xlu0 %3336 }
 0x2d7   : > { %v3504_v37 = vrot.slane %v3414_v27, 4  ;;  %v3505_v60 = vrot.slane %v3415_v62, 4 }
 0x2d8   : > { %v3339_v17 = vpop.permute.xlu1 %3338  ;;  %4178 = vrot.lane.b32.xlu0 %v13992_v63, %s12177_s20  ;;  %v7729_v44 = vld [vmem:[#allocation2 + $0x188] sm:$0x33] }
 0x2d9   : > { %v7981_v36 = vld [vmem:[#allocation2 + $0x188] sm:$0x33]  ;;  %v3340_v29 = vsel %vm996_vm4, %v3337_v1, %v3339_v17  ;;  %v3341_v61 = vsel %vm996_vm4, %v3339_v17, %v3337_v1  ;;  %v11348_v42 = vcombine.high %v7729_v44, %v7729_v44  ;;  %v11347_v4 = vcombine.low %v7729_v44, %v7729_v44  ;;  %v10996_v1 = vld [vmem:[%s15849_s6 + $0x6] ss:$8 sm:$0x3] }
 0x2da   : > { %v11373_v34 = vcombine.high %v7981_v36, %v7981_v36  ;;  %v3354_v51 = vmul.f32 %v3347_v26, %v3341_v61  ;;  %v3355_v57 = vmul.f32 %v3351_v48, %v3340_v29  ;;  %4180 = vrot.lane.b32.xlu1 %v14008_v25, %s12177_s20  ;;  %v3377_v39 = vpop.permute.xlu0 %3376  ;;  %v11372_v6 = vcombine.low %v7981_v36, %v7981_v36 }
 0x2db   : > { %11349 = vmatprep.subr.msk.bf16.mxu1 %vm5241_vm10, %v11348_v42  ;;  %v7759_v19 = vsel %vm5241_vm10, %v11347_v4, 0  ;;  %v3447_v27 = vrot.slane %v10996_v1, %v12539_v11  ;;  %v3451_v29 = vrot.slane %v10996_v1, %v12542_v12 }
 0x2dc   : > { %11374 = vmatprep.subr.msk.bf16.mxu0 %vm5241_vm10, %v11373_v34  ;;  %v3520_v30 = vsel %vm827_vm0, %v3354_v51, %v3498_v47  ;;  %v3521_v14 = vsel %vm827_vm0, %v3355_v57, %v3499_v13  ;;  %v3379_v20 = vpop.permute.xlu1 %3378  ;;  %4288 = vrot.lane.b32.xlu0 %v13228_v16, %s12170_s21  ;;  %v8011_v45 = vsel %vm5241_vm10, %v11372_v6, 0  ;;  %v3471_v13 = vrot.slane %v10997_v53, %v12542_v12 }
 0x2dd   : > { %v3380_v21 = vsel %vm1039_vm5, %v3377_v39, %v3379_v20  ;;  %v3381_v54 = vsel %vm1039_vm5, %v3379_v20, %v3377_v39  ;;  %7769 = vmatpush1.bf16.msra.mxu1 %v7759_v19  ;;  %8021 = vmatpush1.bf16.msra.mxu0 %v8011_v45  ;;  %v8228_v20 = vld [vmem:[%s15847_s4] sm:$0xf] }
 0x2de   : > { %v3394_v55 = vmul.f32 %v3387_v32, %v3381_v54  ;;  %v3395_v38 = vmul.f32 %v3391_v41, %v3380_v21  ;;  %4290 = vrot.lane.b32.xlu1 %v13234_v35, %s12170_s21  ;;  %8268 = vmatprep.subr.bf16.mxu1 %v14059_v31  ;;  %v3417_v33 = vpop.permute.xlu0 %3416  ;;  %v11367_v31 = vld [vmem:[%s15847_s4 + $0x4] sm:$0xf]  ;;  %v8233_v32 = vld [vmem:[#allocation2 + $0x188] sm:$0x33] }
 0x2df   : > { %v11398_v34 = vcombine.high %v8233_v32, %v8233_v32 }
 0x2e0   : > { %v3522_v5 = vsel %vm827_vm0, %v3394_v55, %v3504_v37  ;;  %v3523_v50 = vsel %vm827_vm0, %v3395_v38, %v3505_v60  ;;  %v3419_v59 = vpop.permute.xlu1 %3418  ;;  %4328 = vrot.lane.b32.xlu0 %v13228_v16, %s12171_s24  ;;  %11350 = vmatmul.mubr.msk.bf16.vlgmr.msra.gmra.mrb[16].mxu1 %vm5237_vm11, %v11342_v46 }
 0x2e1   : > { %v3420_v26 = vsel %vm1083_vm6, %v3417_v33, %v3419_v59  ;;  %v3421_v48 = vsel %vm1083_vm6, %v3419_v59, %v3417_v33  ;;  %8269 = vmatpush1.bf16.msra.mxu1 %v14061_v18  ;;  %8300 = vmatprep.mubr.bf16.mxu1 %v12169_v2  ;;  %v14213_v62 = vpack.c.bf16 %v3522_v5, %v3520_v30  ;;  %v11004_v33 = vld [vmem:[%s15849_s6 + $0x1] ss:$8 sm:$0x3] }
 0x2e2   : > { %v3434_v41 = vmul.f32 %v3427_v7, %v3420_v26  ;;  %v3435_v22 = vmul.f32 %v3431_v24, %v3421_v48  ;;  %4330 = vrot.lane.b32.xlu1 %v13234_v35, %s12171_s24  ;;  %8270 = vmatprep.subr.bf16.mxu1 %v14117_v58  ;;  %v3457_v47 = vpop.permute.xlu0 %3456  ;;  %v14215_v17 = vpack.c.bf16 %v3523_v50, %v3521_v14  ;;  %v10998_v7 = vld [vmem:[%s15849_s6 + $0x10] ss:$8 sm:$0x3] }
 0x2e3   : > { %11375 = vmatmul.mubr.msk.bf16.vlgmr.msra.gmra.mrb[36].mxu0 %vm5237_vm11, %v11367_v31  ;;  %v11397_v58 = vcombine.low %v8233_v32, %v8233_v32  ;;  %v3487_v30 = vrot.slane %v10998_v7, %v12539_v11  ;;  %v3491_v14 = vrot.slane %v10998_v7, %v12542_v12  ;;  %v3603_v26 = vrot.slane %v11004_v33, %v12539_v11 }
 0x2e4   : > { %v3510_v18 = vrot.slane %v3434_v41, 4  ;;  %v3511_v44 = vrot.slane %v3435_v22, 4  ;;  %v3459_v36 = vpop.permute.xlu1 %3458  ;;  %4268 = vrot.lane.b32.xlu0 %v13228_v16, %s12172_s25  ;;  %8131 = vmatprep.mubr.bf16.mxu0 %v12169_v2  ;;  %v3607_v32 = vrot.slane %v11004_v33, %v12542_v12  ;;  %v11006_v22 = vld [vmem:[%s15849_s6 + $0x3] ss:$8 sm:$0x3] }
 0x2e5   : > { %v3460_v61 = vsel %vm1127_vm7, %v3457_v47, %v3459_v36  ;;  %v3461_v42 = vsel %vm1127_vm7, %v3459_v36, %v3457_v47  ;;  %8271 = vmatpush1.bf16.msra.mxu1 %v14115_v0  ;;  %8099 = vmatprep.subr.bf16.mxu0 %v14215_v17 }
 0x2e6   : > { %v3524_v51 = vsel %vm827_vm0, %v12629_v23, %v3510_v18  ;;  %v3525_v57 = vsel %vm827_vm0, %v12635_v28, %v3511_v44  ;;  %v3474_v39 = vmul.f32 %v3467_v43, %v3460_v61  ;;  %v3475_v4 = vmul.f32 %v3471_v13, %v3461_v42  ;;  %4270 = vrot.lane.b32.xlu1 %v13234_v35, %s12172_s25  ;;  %v3437_v6 = vpop.permute.xlu0 %3436  ;;  %v11005_v42 = vld [vmem:[%s15849_s6 + $0x2] ss:$8 sm:$0x3] }
 0x2e7   : > { %11399 = vmatprep.subr.msk.bf16.mxu1 %vm5241_vm10, %v11398_v34  ;;  %8100 = vmatpush1.bf16.msra.mxu0 %v14213_v62  ;;  %v8263_v23 = vsel %vm5241_vm10, %v11397_v58, 0  ;;  %v3643_v44 = vrot.slane %v11006_v22, %v12539_v11  ;;  %v3647_v58 = vrot.slane %v11006_v22, %v12542_v12 }
 0x2e8   : > { %v3439_v0 = vpop.permute.xlu1 %3438  ;;  %4308 = vrot.lane.b32.xlu0 %v13228_v16, %s12173_s26  ;;  %v3516_v19 = vrot.slane %v3474_v39, 4  ;;  %v3517_v45 = vrot.slane %v3475_v4, 4  ;;  %v14310_v4 = vrot.slane %v13228_v16, 4 }
 0x2e9   : > { %v3440_v28 = vsel %vm1105_vm8, %v3437_v6, %v3439_v0  ;;  %v3441_v24 = vsel %vm1105_vm8, %v3439_v0, %v3437_v6  ;;  %8273 = vmatpush1.bf16.msra.mxu1 %v8263_v23  ;;  %v3623_v23 = vrot.slane %v11005_v42, %v12539_v11 }
 0x2ea   : > { %v3454_v21 = vmul.f32 %v3447_v27, %v3440_v28  ;;  %v3455_v54 = vmul.f32 %v3451_v29, %v3441_v24  ;;  %4310 = vrot.lane.b32.xlu1 %v13234_v35, %s12173_s26  ;;  %v3477_v46 = vpop.permute.xlu0 %3476  ;;  %8351 = vmatprep.subr.bf16.mxu1 %v14215_v17  ;;  %v3578_v27 = vld [vmem:[%s15849_s6] ss:$8 sm:$0x3]  ;;  %v3627_v28 = vrot.slane %v11005_v42, %v12542_v12  ;;  %v11007_v24 = vld [vmem:[%s15849_s6 + $0x5] ss:$8 sm:$0x3] }
 0x2eb   : > { %v3587_v39 = vrot.slane %v3578_v27, %v12542_v12 }
 0x2ec   : > { %v3526_v53 = vsel %vm827_vm0, %v3454_v21, %v3516_v19  ;;  %v3527_v37 = vsel %vm827_vm0, %v3455_v54, %v3517_v45  ;;  %v3479_v60 = vpop.permute.xlu1 %3478  ;;  %4348 = vrot.lane.b32.xlu0 %v13228_v16, %s12174_s27  ;;  %11400 = vmatmul.mubr.msk.bf16.vlgmr.msra.gmra.mrb[20].mxu1 %vm5237_vm11, %v8228_v20 }
 0x2ed   : > { %v3480_v55 = vsel %vm1149_vm9, %v3477_v46, %v3479_v60  ;;  %v3481_v38 = vsel %vm1149_vm9, %v3479_v60, %v3477_v46  ;;  %8352 = vmatpush1.bf16.msra.mxu1 %v14213_v62  ;;  %8383 = vmatprep.mubr.bf16.mxu1 %v12169_v2  ;;  %v14270_v43 = vpack.c.bf16 %v3526_v53, %v3524_v51 }
 0x2ee   : > { %v3494_v5 = vmul.f32 %v3487_v30, %v3480_v55  ;;  %v3495_v50 = vmul.f32 %v3491_v14, %v3481_v38  ;;  %4350 = vrot.lane.b32.xlu1 %v13234_v35, %s12174_s27  ;;  %v3593_v59 = vpop.permute.xlu0 %3592  ;;  %v14272_v1 = vpack.c.bf16 %v3527_v37, %v3525_v57  ;;  %v3583_v57 = vrot.slane %v3578_v27, %v12539_v11 }
 0x2ef   : > { %v14326_v55 = vrot.slane %v13234_v35, 4 }
 0x2f0   : > { %v11689_v31 = vpack.c.bf16 %v3495_v50, %v3494_v5  ;;  %v3595_v48 = vpop.permute.xlu1 %3594  ;;  %4388 = vrot.lane.b32.xlu0 %v13228_v16, %s12175_s28  ;;  %8101 = vmatprep.subr.bf16.mxu0 %v14272_v1  ;;  %v3663_v5 = vrot.slane %v11007_v24, %v12539_v11 }
 0x2f1   : > { %v3597_v41 = vsel %vm1017_vm2, %v3595_v48, %v3593_v59  ;;  %8353 = vmatprep.subr.bf16.mxu1 %v14272_v1  ;;  %v3596_v47 = vsel %vm1017_vm2, %v3593_v59, %v3595_v48  ;;  %8102 = vmatpush1.bf16.msra.mxu0 %v14270_v43  ;;  %v3667_v48 = vrot.slane %v11007_v24, %v12542_v12 }
 0x2f2   : > { %3565 = vst [vmem:[#allocation2 + $0x1b0] sm:$0x33] %v11689_v31  ;;  %4390 = vrot.lane.b32.xlu1 %v13234_v35, %s12175_s28  ;;  %v3633_v13 = vpop.permute.xlu0 %3632  ;;  %8354 = vmatpush1.bf16.msra.mxu1 %v14270_v43  ;;  %v3610_v18 = vmul.f32 %v3603_v26, %v3597_v41  ;;  %v3611_v29 = vmul.f32 %v3607_v32, %v3596_v47  ;;  %v11009_v47 = vld [vmem:[%s15849_s6 + $0x7] ss:$8 sm:$0x3] }
 0x2f4   : > { %v3635_v36 = vpop.permute.xlu1 %3634  ;;  %4368 = vrot.lane.b32.xlu0 %v13228_v16, %s15855_s19  ;;  %v3734_v6 = vrot.slane %v3610_v18, 4  ;;  %v3735_v30 = vrot.slane %v3611_v29, 4  ;;  %v11376_v29 = vld [vmem:[%s15847_s4 + $0x8] sm:$0xf] }
 0x2f5   : > { %v3637_v61 = vsel %vm1061_vm3, %v3635_v36, %v3633_v13  ;;  %v3636_v34 = vsel %vm1061_vm3, %v3633_v13, %v3635_v36 }
 0x2f6   : > { %4370 = vrot.lane.b32.xlu1 %v13234_v35, %s15855_s19  ;;  %v3573_v51 = vpop.permute.xlu0 %3572  ;;  %v3650_v7 = vmul.f32 %v3643_v44, %v3637_v61  ;;  %v3651_v14 = vmul.f32 %v3647_v58, %v3636_v34  ;;  %v3703_v34 = vrot.slane %v11009_v47, %v12539_v11 }
 0x2f8   : > { %v3575_v0 = vpop.permute.xlu1 %3574  ;;  %4408 = vrot.lane.b32.xlu0 %v13228_v16, %s12177_s20  ;;  %v3740_v50 = vrot.slane %v3650_v7, 4  ;;  %v3741_v13 = vrot.slane %v3651_v14, 4 }
 0x2f9   : > { %v3576_v20 = vsel %vm996_vm4, %v3573_v51, %v3575_v0  ;;  %v3577_v19 = vsel %vm996_vm4, %v3575_v0, %v3573_v51  ;;  %v8064_v45 = vld [vmem:[#allocation2 + $0x1b0] sm:$0x33]  ;;  %v11008_v51 = vld [vmem:[%s15849_s6 + $0x6] ss:$8 sm:$0x3] }
 0x2fa   : > { %v8316_v21 = vld [vmem:[#allocation2 + $0x1b0] sm:$0x33]  ;;  %v3590_v54 = vmul.f32 %v3583_v57, %v3577_v19  ;;  %v3591_v46 = vmul.f32 %v3587_v39, %v3576_v20  ;;  %4410 = vrot.lane.b32.xlu1 %v13234_v35, %s12177_s20  ;;  %v3613_v53 = vpop.permute.xlu0 %3612  ;;  %v11382_v37 = vcombine.high %v8064_v45, %v8064_v45  ;;  %v11381_v38 = vcombine.low %v8064_v45, %v8064_v45 }
 0x2fb   : > { %v11407_v60 = vcombine.high %v8316_v21, %v8316_v21  ;;  %v11406_v33 = vcombine.low %v8316_v21, %v8316_v21  ;;  %v3683_v24 = vrot.slane %v11008_v51, %v12539_v11 }
 0x2fc   : > { %v3756_v59 = vsel %vm827_vm0, %v3590_v54, %v3734_v6  ;;  %v3757_v31 = vsel %vm827_vm0, %v3591_v46, %v3735_v30  ;;  %11383 = vmatprep.subr.msk.bf16.mxu0 %vm5241_vm10, %v11382_v37  ;;  %v3615_v26 = vpop.permute.xlu1 %3614  ;;  %4524 = vrot.lane.b32.xlu0 %v14310_v4, %s12170_s21  ;;  %v8094_v22 = vsel %vm5241_vm10, %v11381_v38, 0  ;;  %v11401_v6 = vld [vmem:[%s15847_s4 + $0x4] sm:$0xf]  ;;  %v3687_v30 = vrot.slane %v11008_v51, %v12542_v12 }
 0x2fd   : > { %11408 = vmatprep.subr.msk.bf16.mxu1 %vm5241_vm10, %v11407_v60  ;;  %v3616_v32 = vsel %vm1039_vm5, %v3613_v53, %v3615_v26  ;;  %v3617_v41 = vsel %vm1039_vm5, %v3615_v26, %v3613_v53  ;;  %8104 = vmatpush1.bf16.msra.mxu0 %v8094_v22  ;;  %v8346_v44 = vsel %vm5241_vm10, %v11406_v33, 0  ;;  %v11010_v53 = vld [vmem:[%s15849_s6 + $0x10] ss:$8 sm:$0x3] }
 0x2fe   : > { %v3630_v27 = vmul.f32 %v3623_v23, %v3617_v41  ;;  %v3631_v18 = vmul.f32 %v3627_v28, %v3616_v32  ;;  %4526 = vrot.lane.b32.xlu1 %v14326_v55, %s12170_s21  ;;  %v3653_v36 = vpop.permute.xlu0 %3652  ;;  %8356 = vmatpush1.bf16.msra.mxu1 %v8346_v44  ;;  %v3707_v28 = vrot.slane %v11009_v47, %v12542_v12 }
 0x2ff   : > { %8603 = vmatprep.subr.bf16.mxu0 %v14215_v17  ;;  %v8568_v17 = vld [vmem:[#allocation2 + $0x1b0] sm:$0x33] }
 0x300   : > { %v3758_v58 = vsel %vm827_vm0, %v3630_v27, %v3740_v50  ;;  %v3759_v61 = vsel %vm827_vm0, %v3631_v18, %v3741_v13  ;;  %v3655_v42 = vpop.permute.xlu1 %3654  ;;  %4564 = vrot.lane.b32.xlu0 %v14310_v4, %s12171_s24  ;;  %11384 = vmatmul.mubr.msk.bf16.vlgmr.msra.gmra.mrb[36].mxu0 %vm5237_vm11, %v11376_v29  ;;  %v11431_v46 = vcombine.low %v8568_v17, %v8568_v17  ;;  %v14398_v50 = vpop.f32.mrb[0].mxu1  ;;  %v8563_v18 = vld [vmem:[%s15847_s4] sm:$0xf] }
 0x301   : > { %v3656_v57 = vsel %vm1083_vm6, %v3653_v36, %v3655_v42  ;;  %v3657_v39 = vsel %vm1083_vm6, %v3655_v42, %v3653_v36  ;;  %8604 = vmatpush1.bf16.msra.mxu0 %v14213_v62  ;;  %v14374_v14 = vpack.c.bf16 %v3759_v61, %v3757_v31  ;;  %8635 = vmatprep.mubr.bf16.mxu0 %v12169_v2 }
 0x302   : > { %v3670_v7 = vmul.f32 %v3663_v5, %v3656_v57  ;;  %v3671_v0 = vmul.f32 %v3667_v48, %v3657_v39  ;;  %4566 = vrot.lane.b32.xlu1 %v14326_v55, %s12171_s24  ;;  %v3693_v23 = vpop.permute.xlu0 %3692  ;;  %8605 = vmatprep.subr.bf16.mxu0 %v14272_v1  ;;  %v11432_v62 = vcombine.high %v8568_v17, %v8568_v17  ;;  %v8598_v26 = vsel %vm5241_vm10, %v11431_v46, 0 }
 0x303   : > { %v14377_v21 = vpack.c.bf16 %v3758_v58, %v3756_v59  ;;  %11409 = vmatmul.mubr.msk.bf16.vlgmr.msra.gmra.mrb[20].mxu1 %vm5237_vm11, %v11401_v6  ;;  %8434 = vmatprep.subr.bf16.mxu1 %v14374_v14  ;;  %v3723_v31 = vrot.slane %v11010_v53, %v12539_v11  ;;  %v3727_v48 = vrot.slane %v11010_v53, %v12542_v12 }
 0x304   : > { %v3746_v20 = vrot.slane %v3670_v7, 4  ;;  %v3747_v19 = vrot.slane %v3671_v0, 4  ;;  %v3695_v45 = vpop.permute.xlu1 %3694  ;;  %4504 = vrot.lane.b32.xlu0 %v14310_v4, %s12172_s25  ;;  %8466 = vmatprep.mubr.bf16.mxu1 %v12169_v2 }
 0x305   : > { %v3696_v54 = vsel %vm1127_vm7, %v3693_v23, %v3695_v45  ;;  %v3697_v1 = vsel %vm1127_vm7, %v3695_v45, %v3693_v23  ;;  %8606 = vmatpush1.bf16.msra.mxu0 %v14270_v43  ;;  %8435 = vmatpush1.bf16.msra.mxu1 %v14377_v21  ;;  %v3808_v45 = vld [vmem:[%s15849_s6] ss:$8 sm:$0x3] }
 0x306   : > { %v3760_v37 = vsel %vm827_vm0, %v13672_v56, %v3746_v20  ;;  %v3761_v60 = vsel %vm827_vm0, %v13688_v3, %v3747_v19  ;;  %v3710_v38 = vmul.f32 %v3703_v34, %v3696_v54  ;;  %v3711_v33 = vmul.f32 %v3707_v28, %v3697_v1  ;;  %v3673_v5 = vpop.permute.xlu0 %3672  ;;  %4506 = vrot.lane.b32.xlu1 %v14326_v55, %s12172_s25  ;;  %v14403_v56 = vpop.f32.mrb[1].mxu1  ;;  %v11016_v34 = vld [vmem:[%s15849_s6 + $0x1] ss:$8 sm:$0x3] }
 0x307   : > { %11433 = vmatprep.subr.msk.bf16.mxu0 %vm5241_vm10, %v11432_v62  ;;  %v5454_v32 = vpop.f32.mrb[2].mxu1  ;;  %v3833_v0 = vrot.slane %v11016_v34, %v12539_v11  ;;  %v3837_v28 = vrot.slane %v11016_v34, %v12542_v12 }
 0x308   : > { %v3675_v59 = vpop.permute.xlu1 %3674  ;;  %4544 = vrot.lane.b32.xlu0 %v14310_v4, %s12173_s26  ;;  %v3752_v41 = vrot.slane %v3710_v38, 4  ;;  %v3753_v22 = vrot.slane %v3711_v33, 4  ;;  %v5455_v44 = vpop.f32.mrb[3].mxu1  ;;  %v11019_v32 = vld [vmem:[%s15849_s6 + $0x5] ss:$8 sm:$0x3] }
 0x309   : > { %v3676_v3 = vsel %vm1105_vm8, %v3673_v5, %v3675_v59  ;;  %v3677_v43 = vsel %vm1105_vm8, %v3675_v59, %v3673_v5  ;;  %8608 = vmatpush1.bf16.msra.mxu0 %v8598_v26  ;;  %v3813_v5 = vrot.slane %v3808_v45, %v12539_v11  ;;  %v3817_v59 = vrot.slane %v3808_v45, %v12542_v12 }
 0x30a   : > { %v3690_v47 = vmul.f32 %v3683_v24, %v3676_v3  ;;  %v3691_v13 = vmul.f32 %v3687_v30, %v3677_v43  ;;  %v3713_v27 = vpop.permute.xlu0 %3712  ;;  %4546 = vrot.lane.b32.xlu1 %v14326_v55, %s12173_s26  ;;  %8686 = vmatprep.subr.bf16.mxu0 %v14374_v14  ;;  %v11018_v30 = vld [vmem:[%s15849_s6 + $0x3] ss:$8 sm:$0x3] }
 0x30b   : > { %v3873_v54 = vrot.slane %v11018_v30, %v12539_v11  ;;  %v3877_v53 = vrot.slane %v11018_v30, %v12542_v12 }
 0x30c   : > { %v3762_v36 = vsel %vm827_vm0, %v3690_v47, %v3752_v41  ;;  %v3763_v29 = vsel %vm827_vm0, %v3691_v13, %v3753_v22  ;;  %v3715_v58 = vpop.permute.xlu1 %3714  ;;  %4584 = vrot.lane.b32.xlu0 %v14310_v4, %s12174_s27  ;;  %11434 = vmatmul.mubr.msk.bf16.vlgmr.msra.gmra.mrb[40].mxu0 %vm5237_vm11, %v8563_v18 }
 0x30d   : > { %v3716_v61 = vsel %vm1149_vm9, %v3713_v27, %v3715_v58  ;;  %v3717_v42 = vsel %vm1149_vm9, %v3715_v58, %v3713_v27  ;;  %8687 = vmatpush1.bf16.msra.mxu0 %v14377_v21  ;;  %8718 = vmatprep.mubr.bf16.mxu0 %v12169_v2  ;;  %v14435_v17 = vpack.c.bf16 %v3762_v36, %v3760_v37 }
 0x30e   : > { %v3730_v51 = vmul.f32 %v3723_v31, %v3716_v61  ;;  %v3731_v57 = vmul.f32 %v3727_v48, %v3717_v42  ;;  %v3823_v39 = vpop.permute.xlu0 %3822  ;;  %4586 = vrot.lane.b32.xlu1 %v14326_v55, %s12174_s27  ;;  %v14437_v6 = vpack.c.bf16 %v3763_v29, %v3761_v60  ;;  %v11017_v60 = vld [vmem:[%s15849_s6 + $0x2] ss:$8 sm:$0x3] }
 0x30f   : > { %v3853_v26 = vrot.slane %v11017_v60, %v12539_v11  ;;  %v3857_v48 = vrot.slane %v11017_v60, %v12542_v12 }
 0x310   : > { %v11694_v7 = vpack.c.bf16 %v3731_v57, %v3730_v51  ;;  %v3825_v23 = vpop.permute.xlu1 %3824  ;;  %4624 = vrot.lane.b32.xlu0 %v14310_v4, %s12175_s28  ;;  %8436 = vmatprep.subr.bf16.mxu1 %v14437_v6  ;;  %v3893_v51 = vrot.slane %v11019_v32, %v12539_v11 }
 0x311   : > { %v3827_v24 = vsel %vm1017_vm2, %v3825_v23, %v3823_v39  ;;  %v3826_v20 = vsel %vm1017_vm2, %v3823_v39, %v3825_v23  ;;  %8688 = vmatprep.subr.bf16.mxu0 %v14437_v6  ;;  %8437 = vmatpush1.bf16.msra.mxu1 %v14435_v17  ;;  %v3897_v23 = vrot.slane %v11019_v32, %v12542_v12 }
 0x312   : > { %3801 = vst [vmem:[#allocation2 + $0x1d8] sm:$0x33] %v11694_v7  ;;  %v3863_v19 = vpop.permute.xlu0 %3862  ;;  %4626 = vrot.lane.b32.xlu1 %v14326_v55, %s12175_s28  ;;  %8689 = vmatpush1.bf16.msra.mxu0 %v14435_v17  ;;  %v3840_v62 = vmul.f32 %v3833_v0, %v3827_v24  ;;  %v3841_v46 = vmul.f32 %v3837_v28, %v3826_v20  ;;  %v11021_v20 = vld [vmem:[%s15849_s6 + $0x7] ss:$8 sm:$0x3] }
 0x314   : > { %v3865_v1 = vpop.permute.xlu1 %3864  ;;  %4604 = vrot.lane.b32.xlu0 %v14310_v4, %s15855_s19  ;;  %v3964_v31 = vrot.slane %v3840_v62, 4  ;;  %v3965_v41 = vrot.slane %v3841_v46, 4  ;;  %v11410_v46 = vld [vmem:[%s15847_s4 + $0x8] sm:$0xf] }
 0x315   : > { %v3867_v37 = vsel %vm1061_vm3, %v3865_v1, %v3863_v19  ;;  %v3866_v38 = vsel %vm1061_vm3, %v3863_v19, %v3865_v1 }
 0x316   : > { %v3803_v33 = vpop.permute.xlu0 %3802  ;;  %4606 = vrot.lane.b32.xlu1 %v14326_v55, %s15855_s19  ;;  %v3880_v3 = vmul.f32 %v3873_v54, %v3867_v37  ;;  %v3881_v22 = vmul.f32 %v3877_v53, %v3866_v38  ;;  %v14509_v53 = vpop.f32.mrb[4].mxu1 }
 0x318   : > { %v3805_v43 = vpop.permute.xlu1 %3804  ;;  %4644 = vrot.lane.b32.xlu0 %v14310_v4, %s12177_s20  ;;  %v3970_v57 = vrot.slane %v3880_v3, 4  ;;  %v3971_v19 = vrot.slane %v3881_v22, 4 }
 0x319   : > { %v3806_v47 = vsel %vm996_vm4, %v3803_v33, %v3805_v43  ;;  %v3807_v13 = vsel %vm996_vm4, %v3805_v43, %v3803_v33  ;;  %v8399_v27 = vld [vmem:[#allocation2 + $0x1d8] sm:$0x33]  ;;  %v3933_v33 = vrot.slane %v11021_v20, %v12539_v11  ;;  %v14528_v43 = vpop.f32.mrb[5].mxu1 }
 0x31a   : > { %v8651_v18 = vld [vmem:[#allocation2 + $0x1d8] sm:$0x33]  ;;  %v3820_v44 = vmul.f32 %v3813_v5, %v3807_v13  ;;  %v3821_v36 = vmul.f32 %v3817_v59, %v3806_v47  ;;  %v3843_v29 = vpop.permute.xlu0 %3842  ;;  %v11416_v58 = vcombine.high %v8399_v27, %v8399_v27  ;;  %4646 = vrot.lane.b32.xlu1 %v14326_v55, %s12177_s20  ;;  %v11415_v42 = vcombine.low %v8399_v27, %v8399_v27  ;;  %v11020_v5 = vld [vmem:[%s15849_s6 + $0x6] ss:$8 sm:$0x3]  ;;  %v5792_v22 = vpop.f32.mrb[6].mxu1 }
 0x31b   : > { %v11441_v61 = vcombine.high %v8651_v18, %v8651_v18  ;;  %v11440_v34 = vcombine.low %v8651_v18, %v8651_v18  ;;  %v8903_v3 = vld [vmem:[#allocation2 + $0x1d8] sm:$0x33]  ;;  %v3913_v47 = vrot.slane %v11020_v5, %v12539_v11  ;;  %v3917_v13 = vrot.slane %v11020_v5, %v12542_v12  ;;  %v5793_v18 = vpop.f32.mrb[7].mxu1 }
 0x31c   : > { %v3986_v39 = vsel %vm827_vm0, %v3820_v44, %v3964_v31  ;;  %v3987_v7 = vsel %vm827_vm0, %v3821_v36, %v3965_v41  ;;  %11417 = vmatprep.subr.msk.bf16.mxu1 %vm5241_vm10, %v11416_v58  ;;  %v3845_v0 = vpop.permute.xlu1 %3844  ;;  %4754 = vrot.lane.b32.xlu0 %v13853_v40, %s12170_s21  ;;  %v8429_v30 = vsel %vm5241_vm10, %v11415_v42, 0  ;;  %v3937_v41 = vrot.slane %v11021_v20, %v12542_v12 }
 0x31d   : > { %11442 = vmatprep.subr.msk.bf16.mxu0 %vm5241_vm10, %v11441_v61  ;;  %v3846_v28 = vsel %vm1039_vm5, %v3843_v29, %v3845_v0  ;;  %v3847_v24 = vsel %vm1039_vm5, %v3845_v0, %v3843_v29  ;;  %8439 = vmatpush1.bf16.msra.mxu1 %v8429_v30  ;;  %v8681_v54 = vsel %vm5241_vm10, %v11440_v34, 0  ;;  %v11466_v29 = vcombine.high %v8903_v3, %v8903_v3  ;;  %v11022_v34 = vld [vmem:[%s15849_s6 + $0x10] ss:$8 sm:$0x3] }
 0x31e   : > { %v3860_v45 = vmul.f32 %v3853_v26, %v3847_v24  ;;  %v3861_v62 = vmul.f32 %v3857_v48, %v3846_v28  ;;  %v3883_v1 = vpop.permute.xlu0 %3882  ;;  %8691 = vmatpush1.bf16.msra.mxu0 %v8681_v54  ;;  %4756 = vrot.lane.b32.xlu1 %v13865_v52, %s12170_s21  ;;  %v11465_v42 = vcombine.low %v8903_v3, %v8903_v3  ;;  %v8898_v54 = vld [vmem:[%s15847_s4] sm:$0xf] }
 0x31f   : > { %8938 = vmatprep.subr.bf16.mxu1 %v14374_v14  ;;  %v11435_v14 = vld [vmem:[%s15847_s4 + $0x4] sm:$0xf]  ;;  %v3953_v28 = vrot.slane %v11022_v34, %v12539_v11  ;;  %v3957_v24 = vrot.slane %v11022_v34, %v12542_v12  ;;  %v11029_v34 = vld [vmem:[%s15849_s6 + $0x2] ss:$8 sm:$0x3] }
 0x320   : > { %v3988_v37 = vsel %vm827_vm0, %v3860_v45, %v3970_v57  ;;  %v3989_v60 = vsel %vm827_vm0, %v3861_v62, %v3971_v19  ;;  %v3885_v38 = vpop.permute.xlu1 %3884  ;;  %4794 = vrot.lane.b32.xlu0 %v13853_v40, %s12171_s24  ;;  %11418 = vmatmul.mubr.msk.bf16.vlgmr.msra.gmra.mrb[20].mxu1 %vm5237_vm11, %v11410_v46 }
 0x321   : > { %v3886_v59 = vsel %vm1083_vm6, %v3883_v1, %v3885_v38  ;;  %v3887_v31 = vsel %vm1083_vm6, %v3885_v38, %v3883_v1  ;;  %8939 = vmatpush1.bf16.msra.mxu1 %v14377_v21  ;;  %8970 = vmatprep.mubr.bf16.mxu1 %v12169_v2  ;;  %v14538_v27 = vpack.c.bf16 %v3989_v60, %v3987_v7 }
 0x322   : > { %v3900_v26 = vmul.f32 %v3893_v51, %v3886_v59  ;;  %v3901_v48 = vmul.f32 %v3897_v23, %v3887_v31  ;;  %v3923_v32 = vpop.permute.xlu0 %3922  ;;  %4796 = vrot.lane.b32.xlu1 %v13865_v52, %s12171_s24  ;;  %8940 = vmatprep.subr.bf16.mxu1 %v14437_v6  ;;  %v14540_v58 = vpack.c.bf16 %v3988_v37, %v3986_v39 }
 0x323   : > { %11443 = vmatmul.mubr.msk.bf16.vlgmr.msra.gmra.mrb[40].mxu0 %vm5237_vm11, %v11435_v14  ;;  %8769 = vmatprep.subr.bf16.mxu0 %v14538_v27 }
 0x324   : > { %v3976_v44 = vrot.slane %v3900_v26, 4  ;;  %v3977_v21 = vrot.slane %v3901_v48, 4  ;;  %v3925_v36 = vpop.permute.xlu1 %3924  ;;  %4734 = vrot.lane.b32.xlu0 %v13853_v40, %s12172_s25  ;;  %8770 = vmatpush1.bf16.msra.mxu0 %v14540_v58 }
 0x325   : > { %v3926_v61 = vsel %vm1127_vm7, %v3923_v32, %v3925_v36  ;;  %v3927_v6 = vsel %vm1127_vm7, %v3925_v36, %v3923_v32  ;;  %8941 = vmatpush1.bf16.msra.mxu1 %v14435_v17  ;;  %8801 = vmatprep.mubr.bf16.mxu0 %v12169_v2  ;;  %v8933_v17 = vsel %vm5241_vm10, %v11465_v42, 0 }
 0x326   : > { %v3990_v51 = vsel %vm827_vm0, %v13209_v49, %v3976_v44  ;;  %v3991_v57 = vsel %vm827_vm0, %v13216_v15, %v3977_v21  ;;  %v3940_v39 = vmul.f32 %v3933_v33, %v3926_v61  ;;  %v3941_v7 = vmul.f32 %v3937_v41, %v3927_v6  ;;  %v3903_v0 = vpop.permute.xlu0 %3902  ;;  %4736 = vrot.lane.b32.xlu1 %v13865_v52, %s12172_s25  ;;  %v11028_v33 = vld [vmem:[%s15849_s6 + $0x1] ss:$8 sm:$0x3]  ;;  %v4044_v44 = vld [vmem:[%s15849_s6] ss:$8 sm:$0x3] }
 0x327   : > { %11467 = vmatprep.subr.msk.bf16.mxu1 %vm5241_vm10, %v11466_v29  ;;  %v4069_v48 = vrot.slane %v11028_v33, %v12539_v11  ;;  %v4073_v41 = vrot.slane %v11028_v33, %v12542_v12 }
 0x328   : > { %v3905_v23 = vpop.permute.xlu1 %3904  ;;  %4774 = vrot.lane.b32.xlu0 %v13853_v40, %s12173_s26  ;;  %v3982_v30 = vrot.slane %v3940_v39, 4  ;;  %v3983_v20 = vrot.slane %v3941_v7, 4  ;;  %v4049_v39 = vrot.slane %v4044_v44, %v12539_v11  ;;  %v4053_v7 = vrot.slane %v4044_v44, %v12542_v12 }
 0x329   : > { %v3906_v49 = vsel %vm1105_vm8, %v3903_v0, %v3905_v23  ;;  %v3907_v15 = vsel %vm1105_vm8, %v3905_v23, %v3903_v0  ;;  %8943 = vmatpush1.bf16.msra.mxu1 %v8933_v17  ;;  %v14632_v0 = vrot.slane %v13853_v40, 4  ;;  %v4093_v17 = vrot.slane %v11029_v34, %v12542_v12 }
 0x32a   : > { %v3920_v19 = vmul.f32 %v3913_v47, %v3906_v49  ;;  %v3921_v45 = vmul.f32 %v3917_v13, %v3907_v15  ;;  %v3943_v62 = vpop.permute.xlu0 %3942  ;;  %4776 = vrot.lane.b32.xlu1 %v13865_v52, %s12173_s26  ;;  %9021 = vmatprep.subr.bf16.mxu1 %v14538_v27  ;;  %v11030_v47 = vld [vmem:[%s15849_s6 + $0x3] ss:$8 sm:$0x3]  ;;  %v4089_v15 = vrot.slane %v11029_v34, %v12539_v11 }
 0x32b   : > { %v4109_v36 = vrot.slane %v11030_v47, %v12539_v11  ;;  %v4113_v6 = vrot.slane %v11030_v47, %v12542_v12 }
 0x32c   : > { %v3992_v1 = vsel %vm827_vm0, %v3920_v19, %v3982_v30  ;;  %v3993_v46 = vsel %vm827_vm0, %v3921_v45, %v3983_v20  ;;  %v3945_v37 = vpop.permute.xlu1 %3944  ;;  %4814 = vrot.lane.b32.xlu0 %v13853_v40, %s12174_s27  ;;  %11468 = vmatmul.mubr.msk.bf16.vlgmr.msra.gmra.mrb[24].mxu1 %vm5237_vm11, %v8898_v54  ;;  %v14641_v30 = vpop.f32.mrb[20].mxu0 }
 0x32d   : > { %v3946_v60 = vsel %vm1149_vm9, %v3943_v62, %v3945_v37  ;;  %v3947_v38 = vsel %vm1149_vm9, %v3945_v37, %v3943_v62  ;;  %9022 = vmatpush1.bf16.msra.mxu1 %v14540_v58  ;;  %9053 = vmatprep.mubr.bf16.mxu1 %v12169_v2  ;;  %v14594_v3 = vpack.c.bf16 %v3992_v1, %v3990_v51 }
 0x32e   : > { %v3960_v5 = vmul.f32 %v3953_v28, %v3946_v60  ;;  %v3961_v59 = vmul.f32 %v3957_v24, %v3947_v38  ;;  %v4059_v31 = vpop.permute.xlu0 %4058  ;;  %4816 = vrot.lane.b32.xlu1 %v13865_v52, %s12174_s27  ;;  %v14596_v14 = vpack.c.bf16 %v3993_v46, %v3991_v57  ;;  %v11031_v24 = vld [vmem:[%s15849_s6 + $0x5] ss:$8 sm:$0x3] }
 0x330   : > { %v11699_v26 = vpack.c.bf16 %v3961_v59, %v3960_v5  ;;  %v4061_v32 = vpop.permute.xlu1 %4060  ;;  %4854 = vrot.lane.b32.xlu0 %v13853_v40, %s12175_s28  ;;  %8771 = vmatprep.subr.bf16.mxu0 %v14596_v14  ;;  %v14649_v5 = vpop.f32.mrb[21].mxu0  ;;  %v14652_v59 = vrot.slane %v13865_v52, 4 }
 0x331   : > { %v4063_v22 = vsel %vm1017_vm2, %v4061_v32, %v4059_v31  ;;  %v4062_v13 = vsel %vm1017_vm2, %v4059_v31, %v4061_v32  ;;  %9023 = vmatprep.subr.bf16.mxu1 %v14596_v14  ;;  %8772 = vmatpush1.bf16.msra.mxu0 %v14594_v3  ;;  %v5286_v32 = vpop.f32.mrb[22].mxu0 }
 0x332   : > { %4031 = vst [vmem:[#allocation2 + $0x200] sm:$0x33] %v11699_v26  ;;  %v4099_v18 = vpop.permute.xlu0 %4098  ;;  %4856 = vrot.lane.b32.xlu1 %v13865_v52, %s12175_s28  ;;  %9024 = vmatpush1.bf16.msra.mxu1 %v14594_v3  ;;  %v4076_v21 = vmul.f32 %v4069_v48, %v4063_v22  ;;  %v4077_v61 = vmul.f32 %v4073_v41, %v4062_v13  ;;  %v5287_v44 = vpop.f32.mrb[23].mxu0 }
 0x333   : > { %v4129_v48 = vrot.slane %v11031_v24, %v12539_v11 }
 0x334   : > { %v4101_v29 = vpop.permute.xlu1 %4100  ;;  %4834 = vrot.lane.b32.xlu0 %v13853_v40, %s15855_s19  ;;  %v4200_v23 = vrot.slane %v4076_v21, 4  ;;  %v4201_v20 = vrot.slane %v4077_v61, 4  ;;  %v11033_v61 = vld [vmem:[%s15849_s6 + $0x7] ss:$8 sm:$0x3] }
 0x335   : > { %v4103_v42 = vsel %vm1061_vm3, %v4101_v29, %v4099_v18  ;;  %v4102_v51 = vsel %vm1061_vm3, %v4099_v18, %v4101_v29  ;;  %v4133_v18 = vrot.slane %v11031_v24, %v12542_v12 }
 0x336   : > { %v4039_v57 = vpop.permute.xlu0 %4038  ;;  %4836 = vrot.lane.b32.xlu1 %v13865_v52, %s15855_s19  ;;  %v4116_v28 = vmul.f32 %v4109_v36, %v4103_v42  ;;  %v4117_v19 = vmul.f32 %v4113_v6, %v4102_v51 }
 0x338   : > { %v4041_v49 = vpop.permute.xlu1 %4040  ;;  %4874 = vrot.lane.b32.xlu0 %v13853_v40, %s12177_s20  ;;  %v4206_v41 = vrot.slane %v4116_v28, 4  ;;  %v4207_v6 = vrot.slane %v4117_v19, 4 }
 0x339   : > { %v4042_v45 = vsel %vm996_vm4, %v4039_v57, %v4041_v49  ;;  %v4043_v62 = vsel %vm996_vm4, %v4041_v49, %v4039_v57  ;;  %v8734_v54 = vld [vmem:[#allocation2 + $0x200] sm:$0x33]  ;;  %v4169_v49 = vrot.slane %v11033_v61, %v12539_v11 }
 0x33a   : > { %v8986_v1 = vld [vmem:[#allocation2 + $0x200] sm:$0x33]  ;;  %v4056_v46 = vmul.f32 %v4049_v39, %v4043_v62  ;;  %v4057_v37 = vmul.f32 %v4053_v7, %v4042_v45  ;;  %v4079_v60 = vpop.permute.xlu0 %4078  ;;  %v11450_v38 = vcombine.high %v8734_v54, %v8734_v54  ;;  %4876 = vrot.lane.b32.xlu1 %v13865_v52, %s12177_s20  ;;  %v11449_v31 = vcombine.low %v8734_v54, %v8734_v54  ;;  %v11444_v39 = vld [vmem:[%s15847_s4 + $0x8] sm:$0xf] }
 0x33b   : > { %v11475_v33 = vcombine.high %v8986_v1, %v8986_v1  ;;  %v11474_v26 = vcombine.low %v8986_v1, %v8986_v1  ;;  %v4173_v54 = vrot.slane %v11033_v61, %v12542_v12 }
 0x33c   : > { %v4222_v22 = vsel %vm827_vm0, %v4056_v46, %v4200_v23  ;;  %v4223_v47 = vsel %vm827_vm0, %v4057_v37, %v4201_v20  ;;  %11451 = vmatprep.subr.msk.bf16.mxu0 %vm5241_vm10, %v11450_v38  ;;  %v4081_v13 = vpop.permute.xlu1 %4080  ;;  %4990 = vrot.lane.b32.xlu0 %v14632_v0, %s12170_s21  ;;  %v8764_v29 = vsel %vm5241_vm10, %v11449_v31, 0  ;;  %v9238_v20 = vld [vmem:[#allocation2 + $0x200] sm:$0x33] }
 0x33d   : > { %11476 = vmatprep.subr.msk.bf16.mxu1 %vm5241_vm10, %v11475_v33  ;;  %v4082_v21 = vsel %vm1039_vm5, %v4079_v60, %v4081_v13  ;;  %v4083_v36 = vsel %vm1039_vm5, %v4081_v13, %v4079_v60  ;;  %8774 = vmatpush1.bf16.msra.mxu0 %v8764_v29  ;;  %v9016_v51 = vsel %vm5241_vm10, %v11474_v26, 0  ;;  %v14708_v26 = vpop.f32.mrb[24].mxu0  ;;  %v11499_v32 = vcombine.low %v9238_v20, %v9238_v20 }
 0x33e   : > { %v4096_v42 = vmul.f32 %v4089_v15, %v4083_v36  ;;  %v4097_v34 = vmul.f32 %v4093_v17, %v4082_v21  ;;  %v4119_v57 = vpop.permute.xlu0 %4118  ;;  %9026 = vmatpush1.bf16.msra.mxu1 %v9016_v51  ;;  %4992 = vrot.lane.b32.xlu1 %v14652_v59, %s12170_s21  ;;  %v11032_v15 = vld [vmem:[%s15849_s6 + $0x6] ss:$8 sm:$0x3] }
 0x33f   : > { %9273 = vmatprep.subr.bf16.mxu0 %v14538_v27  ;;  %v11469_v27 = vld [vmem:[%s15847_s4 + $0x4] sm:$0xf]  ;;  %v4149_v1 = vrot.slane %v11032_v15, %v12539_v11  ;;  %v4153_v46 = vrot.slane %v11032_v15, %v12542_v12  ;;  %v9268_v51 = vsel %vm5241_vm10, %v11499_v32, 0 }
 0x340   : > { %v4224_v7 = vsel %vm827_vm0, %v4096_v42, %v4206_v41  ;;  %v4225_v23 = vsel %vm827_vm0, %v4097_v34, %v4207_v6  ;;  %v4121_v28 = vpop.permute.xlu1 %4120  ;;  %5030 = vrot.lane.b32.xlu0 %v14632_v0, %s12171_s24  ;;  %11452 = vmatmul.mubr.msk.bf16.vlgmr.msra.gmra.mrb[40].mxu0 %vm5237_vm11, %v11444_v39  ;;  %v11034_v41 = vld [vmem:[%s15849_s6 + $0x10] ss:$8 sm:$0x3] }
 0x341   : > { %v4122_v17 = vsel %vm1083_vm6, %v4119_v57, %v4121_v28  ;;  %v4123_v24 = vsel %vm1083_vm6, %v4121_v28, %v4119_v57  ;;  %9274 = vmatpush1.bf16.msra.mxu0 %v14540_v58  ;;  %9305 = vmatprep.mubr.bf16.mxu0 %v12169_v2  ;;  %v14703_v37 = vpack.c.bf16 %v4225_v23, %v4223_v47  ;;  %v14722_v47 = vpop.f32.mrb[25].mxu0 }
 0x342   : > { %v4136_v19 = vmul.f32 %v4129_v48, %v4122_v17  ;;  %v4137_v45 = vmul.f32 %v4133_v18, %v4123_v24  ;;  %v4159_v62 = vpop.permute.xlu0 %4158  ;;  %5032 = vrot.lane.b32.xlu1 %v14652_v59, %s12171_s24  ;;  %9275 = vmatprep.subr.bf16.mxu0 %v14596_v14  ;;  %v11500_v58 = vcombine.high %v9238_v20, %v9238_v20  ;;  %v6127_v6 = vpop.f32.mrb[26].mxu0  ;;  %v9233_v17 = vld [vmem:[%s15847_s4] sm:$0xf] }
 0x343   : > { %v14705_v31 = vpack.c.bf16 %v4224_v7, %v4222_v22  ;;  %11477 = vmatmul.mubr.msk.bf16.vlgmr.msra.gmra.mrb[24].mxu1 %vm5237_vm11, %v11469_v27  ;;  %9104 = vmatprep.subr.bf16.mxu1 %v14703_v37  ;;  %v14720_v22 = vpop.f32.mrb[8].mxu1  ;;  %v4193_v57 = vrot.slane %v11034_v41, %v12542_v12 }
 0x344   : > { %v4212_v60 = vrot.slane %v4136_v19, 4  ;;  %v4213_v38 = vrot.slane %v4137_v45, 4  ;;  %v4161_v33 = vpop.permute.xlu1 %4160  ;;  %4970 = vrot.lane.b32.xlu0 %v14632_v0, %s12172_s25  ;;  %v14729_v29 = vpop.f32.mrb[9].mxu1  ;;  %9136 = vmatprep.mubr.bf16.mxu1 %v12169_v2 }
 0x345   : > { %v4162_v48 = vsel %vm1127_vm7, %v4159_v62, %v4161_v33  ;;  %v4163_v14 = vsel %vm1127_vm7, %v4161_v33, %v4159_v62  ;;  %9276 = vmatpush1.bf16.msra.mxu0 %v14594_v3  ;;  %v6462_v61 = vpop.f32.mrb[10].mxu1  ;;  %9105 = vmatpush1.bf16.msra.mxu1 %v14705_v31  ;;  %v11040_v62 = vld [vmem:[%s15849_s6 + $0x1] ss:$8 sm:$0x3] }
 0x346   : > { %v4226_v13 = vsel %vm827_vm0, %v13992_v63, %v4212_v60  ;;  %v4227_v18 = vsel %vm827_vm0, %v14008_v25, %v4213_v38  ;;  %v4176_v44 = vmul.f32 %v4169_v49, %v4162_v48  ;;  %v4177_v21 = vmul.f32 %v4173_v54, %v4163_v14  ;;  %v4139_v36 = vpop.permute.xlu0 %4138  ;;  %4972 = vrot.lane.b32.xlu1 %v14652_v59, %s12172_s25  ;;  %v6128_v25 = vpop.f32.mrb[27].mxu0 }
 0x347   : > { %11501 = vmatprep.subr.msk.bf16.mxu0 %vm5241_vm10, %v11500_v58  ;;  %v4189_v63 = vrot.slane %v11034_v41, %v12539_v11  ;;  %v6463_v39 = vpop.f32.mrb[11].mxu1  ;;  %v4299_v58 = vrot.slane %v11040_v62, %v12539_v11  ;;  %v4303_v14 = vrot.slane %v11040_v62, %v12542_v12  ;;  %v11042_v41 = vld [vmem:[%s15849_s6 + $0x3] ss:$8 sm:$0x3] }
 0x348   : > { %v4141_v42 = vpop.permute.xlu1 %4140  ;;  %5010 = vrot.lane.b32.xlu0 %v14632_v0, %s12173_s26  ;;  %v4218_v7 = vrot.slane %v4176_v44, 4  ;;  %v4219_v23 = vrot.slane %v4177_v21, 4  ;;  %v4274_v44 = vld [vmem:[%s15849_s6] ss:$8 sm:$0x3] }
 0x349   : > { %v4142_v3 = vsel %vm1105_vm8, %v4139_v36, %v4141_v42  ;;  %v4143_v34 = vsel %vm1105_vm8, %v4141_v42, %v4139_v36  ;;  %9278 = vmatpush1.bf16.msra.mxu0 %v9268_v51  ;;  %v4339_v36 = vrot.slane %v11042_v41, %v12539_v11  ;;  %v4343_v42 = vrot.slane %v11042_v41, %v12542_v12  ;;  %v11041_v25 = vld [vmem:[%s15849_s6 + $0x2] ss:$8 sm:$0x3] }
 0x34a   : > { %v4156_v28 = vmul.f32 %v4149_v1, %v4142_v3  ;;  %v4157_v49 = vmul.f32 %v4153_v46, %v4143_v34  ;;  %v4179_v15 = vpop.permute.xlu0 %4178  ;;  %5012 = vrot.lane.b32.xlu1 %v14652_v59, %s12173_s26  ;;  %9356 = vmatprep.subr.bf16.mxu0 %v14703_v37  ;;  %v4279_v51 = vrot.slane %v4274_v44, %v12539_v11 }
 0x34c   : > { %v4228_v24 = vsel %vm827_vm0, %v4156_v28, %v4218_v7  ;;  %v4229_v20 = vsel %vm827_vm0, %v4157_v49, %v4219_v23  ;;  %v4181_v27 = vpop.permute.xlu1 %4180  ;;  %5050 = vrot.lane.b32.xlu0 %v14632_v0, %s12174_s27  ;;  %11502 = vmatmul.mubr.msk.bf16.vlgmr.msra.gmra.mrb[44].mxu0 %vm5237_vm11, %v9233_v17  ;;  %v4319_v28 = vrot.slane %v11041_v25, %v12539_v11 }
 0x34d   : > { %v4182_v19 = vsel %vm1149_vm9, %v4179_v15, %v4181_v27  ;;  %v4183_v45 = vsel %vm1149_vm9, %v4181_v27, %v4179_v15  ;;  %9357 = vmatpush1.bf16.msra.mxu0 %v14705_v31  ;;  %9388 = vmatprep.mubr.bf16.mxu0 %v12169_v2  ;;  %v14767_v60 = vpack.c.bf16 %v4228_v24, %v4226_v13  ;;  %v11043_v15 = vld [vmem:[%s15849_s6 + $0x5] ss:$8 sm:$0x3] }
 0x34e   : > { %v4196_v54 = vmul.f32 %v4189_v63, %v4182_v19  ;;  %v4197_v1 = vmul.f32 %v4193_v57, %v4183_v45  ;;  %v4289_v46 = vpop.permute.xlu0 %4288  ;;  %5052 = vrot.lane.b32.xlu1 %v14652_v59, %s12174_s27  ;;  %v14769_v38 = vpack.c.bf16 %v4229_v20, %v4227_v18  ;;  %v4283_v57 = vrot.slane %v4274_v44, %v12542_v12 }
 0x34f   : > { %v4323_v49 = vrot.slane %v11041_v25, %v12542_v12 }
 0x350   : > { %v11704_v33 = vpack.c.bf16 %v4197_v1, %v4196_v54  ;;  %v4291_v48 = vpop.permute.xlu1 %4290  ;;  %5090 = vrot.lane.b32.xlu0 %v14632_v0, %s12175_s28  ;;  %9106 = vmatprep.subr.bf16.mxu1 %v14769_v38 }
 0x351   : > { %v4293_v32 = vsel %vm1017_vm2, %v4291_v48, %v4289_v46  ;;  %v4292_v13 = vsel %vm1017_vm2, %v4289_v46, %v4291_v48  ;;  %9358 = vmatprep.subr.bf16.mxu0 %v14769_v38  ;;  %9107 = vmatpush1.bf16.msra.mxu1 %v14767_v60 }
 0x352   : > { %4267 = vst [vmem:[#allocation2 + $0x228] sm:$0x33] %v11704_v33  ;;  %v4329_v18 = vpop.permute.xlu0 %4328  ;;  %5092 = vrot.lane.b32.xlu1 %v14652_v59, %s12175_s28  ;;  %9359 = vmatpush1.bf16.msra.mxu0 %v14767_v60  ;;  %v4306_v21 = vmul.f32 %v4299_v58, %v4293_v32  ;;  %v4307_v6 = vmul.f32 %v4303_v14, %v4292_v13  ;;  %v5200_v58 = vld [vmem:[%s15848_s5] sm:$0xff] }
 0x353   : > { %v4359_v32 = vrot.slane %v11043_v15, %v12539_v11 }
 0x354   : > { %v4331_v61 = vpop.permute.xlu1 %4330  ;;  %5070 = vrot.lane.b32.xlu0 %v14632_v0, %s15855_s19  ;;  %v4430_v39 = vrot.slane %v4306_v21, 4  ;;  %v4431_v17 = vrot.slane %v4307_v6, 4  ;;  %v4363_v21 = vrot.slane %v11043_v15, %v12542_v12 }
 0x355   : > { %v4333_v63 = vsel %vm1061_vm3, %v4331_v61, %v4329_v18  ;;  %v4332_v3 = vsel %vm1061_vm3, %v4329_v18, %v4331_v61 }
 0x356   : > { %v4269_v34 = vpop.permute.xlu0 %4268  ;;  %5072 = vrot.lane.b32.xlu1 %v14652_v59, %s15855_s19  ;;  %v4346_v7 = vmul.f32 %v4339_v36, %v4333_v63  ;;  %v4347_v24 = vmul.f32 %v4343_v42, %v4332_v3  ;;  %v11478_v42 = vld [vmem:[%s15847_s4 + $0x8] sm:$0xf]  ;;  %s15300_s19 = scalar_lea.vmem %s15850_s7, %s11634_s13 }
 0x358   : > { %v4271_v23 = vpop.permute.xlu1 %4270  ;;  %5110 = vrot.lane.b32.xlu0 %v14632_v0, %s12177_s20  ;;  %v4436_v41 = vrot.slane %v4346_v7, 4  ;;  %v4437_v63 = vrot.slane %v4347_v24, 4 }
 0x359   : > { %v4272_v20 = vsel %vm996_vm4, %v4269_v34, %v4271_v23  ;;  %v4273_v27 = vsel %vm996_vm4, %v4271_v23, %v4269_v34  ;;  %v9069_v19 = vld [vmem:[#allocation2 + $0x228] sm:$0x33] }
 0x35a   : > { %v9321_v45 = vld [vmem:[#allocation2 + $0x228] sm:$0x33]  ;;  %v4286_v62 = vmul.f32 %v4279_v51, %v4273_v27  ;;  %v4287_v54 = vmul.f32 %v4283_v57, %v4272_v20  ;;  %v4309_v1 = vpop.permute.xlu0 %4308  ;;  %v11484_v46 = vcombine.high %v9069_v19, %v9069_v19  ;;  %5112 = vrot.lane.b32.xlu1 %v14652_v59, %s12177_s20  ;;  %v11483_v48 = vcombine.low %v9069_v19, %v9069_v19  ;;  %v11045_v57 = vld [vmem:[%s15849_s6 + $0x7] ss:$8 sm:$0x3] }
 0x35b   : > { %v11509_v33 = vcombine.high %v9321_v45, %v9321_v45  ;;  %v11508_v14 = vcombine.low %v9321_v45, %v9321_v45  ;;  %v4403_v19 = vrot.slane %v11045_v57, %v12542_v12  ;;  %v9573_v45 = vld [vmem:[#allocation2 + $0x228] sm:$0x33] }
 0x35c   : > { %v4452_v13 = vsel %vm827_vm0, %v4286_v62, %v4430_v39  ;;  %v4453_v18 = vsel %vm827_vm0, %v4287_v54, %v4431_v17  ;;  %11485 = vmatprep.subr.msk.bf16.mxu1 %vm5241_vm10, %v11484_v46  ;;  %v4311_v44 = vpop.permute.xlu1 %4310  ;;  %5203 = vperm.xlu0 %11929, %v5200_v58   ;;  %v9099_v6 = vsel %vm5241_vm10, %v11483_v48, 0  ;;  %v4399_v17 = vrot.slane %v11045_v57, %v12539_v11  ;;  %v9568_v57 = vld [vmem:[%s15847_s4] sm:$0xf] }
 0x35d   : > { %11510 = vmatprep.subr.msk.bf16.mxu0 %vm5241_vm10, %v11509_v33  ;;  %v4312_v36 = vsel %vm1039_vm5, %v4309_v1, %v4311_v44  ;;  %v4313_v61 = vsel %vm1039_vm5, %v4311_v44, %v4309_v1  ;;  %9109 = vmatpush1.bf16.msra.mxu1 %v9099_v6  ;;  %v9351_v34 = vsel %vm5241_vm10, %v11508_v14, 0  ;;  %v11534_v14 = vcombine.high %v9573_v45, %v9573_v45 }
 0x35e   : > { %v4326_v25 = vmul.f32 %v4319_v28, %v4313_v61  ;;  %v4327_v3 = vmul.f32 %v4323_v49, %v4312_v36  ;;  %v4349_v51 = vpop.permute.xlu0 %4348  ;;  %9361 = vmatpush1.bf16.msra.mxu0 %v9351_v34  ;;  %9608 = vmatprep.subr.bf16.mxu1 %v14703_v37  ;;  %v11503_v28 = vld [vmem:[%s15847_s4 + $0x4] sm:$0xf] }
 0x35f   : > { %v11044_v37 = vld [vmem:[%s15849_s6 + $0x6] ss:$8 sm:$0x3] }
 0x360   : > { %v4454_v39 = vsel %vm827_vm0, %v4326_v25, %v4436_v41  ;;  %v4455_v7 = vsel %vm827_vm0, %v4327_v3, %v4437_v63  ;;  %v4351_v23 = vpop.permute.xlu1 %4350  ;;  %11486 = vmatmul.mubr.msk.bf16.vlgmr.msra.gmra.mrb[24].mxu1 %vm5237_vm11, %v11478_v42  ;;  %v4379_v58 = vrot.slane %v11044_v37, %v12539_v11  ;;  %v11046_v41 = vld [vmem:[%s15849_s6 + $0x10] ss:$8 sm:$0x3] }
 0x361   : > { %v4352_v49 = vsel %vm1083_vm6, %v4349_v51, %v4351_v23  ;;  %v4353_v15 = vsel %vm1083_vm6, %v4351_v23, %v4349_v51  ;;  %9609 = vmatpush1.bf16.msra.mxu1 %v14705_v31  ;;  %9640 = vmatprep.mubr.bf16.mxu1 %v12169_v2  ;;  %v14859_v62 = vpack.c.bf16 %v4454_v39, %v4452_v13 }
 0x362   : > { %v4366_v24 = vmul.f32 %v4359_v32, %v4352_v49  ;;  %v4367_v20 = vmul.f32 %v4363_v21, %v4353_v15  ;;  %v4389_v27 = vpop.permute.xlu0 %4388  ;;  %9610 = vmatprep.subr.bf16.mxu1 %v14769_v38  ;;  %v14861_v54 = vpack.c.bf16 %v4455_v7, %v4453_v18  ;;  %11511 = vmatmul.mubr.msk.bf16.vlgmr.msra.gmra.mrb[44].mxu0 %vm5237_vm11, %v11503_v28 }
 0x363   : > { %v4383_v31 = vrot.slane %v11044_v37, %v12542_v12  ;;  %9471 = vmatprep.mubr.bf16.mxu0 %v12169_v2  ;;  %v11533_v32 = vcombine.low %v9573_v45, %v9573_v45  ;;  %v4419_v6 = vrot.slane %v11046_v41, %v12539_v11  ;;  %v4423_v63 = vrot.slane %v11046_v41, %v12542_v12  ;;  %v11052_v37 = vld [vmem:[%s15849_s6 + $0x1] ss:$8 sm:$0x3]  ;;  %v4510_v41 = vld [vmem:[%s15849_s6] ss:$8 sm:$0x3] }
 0x364   : > { %v4442_v1 = vrot.slane %v4366_v24, 4  ;;  %v4443_v46 = vrot.slane %v4367_v20, 4  ;;  %v4391_v33 = vpop.permute.xlu1 %4390  ;;  %9439 = vmatprep.subr.bf16.mxu0 %v14861_v54 }
 0x365   : > { %v4392_v48 = vsel %vm1127_vm7, %v4389_v27, %v4391_v33  ;;  %v4393_v38 = vsel %vm1127_vm7, %v4391_v33, %v4389_v27  ;;  %9611 = vmatpush1.bf16.msra.mxu1 %v14767_v60  ;;  %9440 = vmatpush1.bf16.msra.mxu0 %v14859_v62 }
 0x366   : > { %v4456_v13 = vsel %vm827_vm0, %v13228_v16, %v4442_v1  ;;  %v4457_v18 = vsel %vm827_vm0, %v13234_v35, %v4443_v46  ;;  %v4406_v44 = vmul.f32 %v4399_v17, %v4392_v48  ;;  %v4407_v21 = vmul.f32 %v4403_v19, %v4393_v38  ;;  %v4369_v36 = vpop.permute.xlu0 %4368  ;;  %11535 = vmatprep.subr.msk.bf16.mxu1 %vm5241_vm10, %v11534_v14  ;;  %v14922_v48 = vpop.f32.mrb[28].mxu0 }
 0x367   : > { %v9603_v35 = vsel %vm5241_vm10, %v11533_v32, 0  ;;  %v4535_v1 = vrot.slane %v11052_v37, %v12539_v11  ;;  %v4539_v46 = vrot.slane %v11052_v37, %v12542_v12 }
 0x368   : > { %v4371_v61 = vpop.permute.xlu1 %4370  ;;  %v4448_v25 = vrot.slane %v4406_v44, 4  ;;  %v4449_v60 = vrot.slane %v4407_v21, 4 }
 0x369   : > { %v4372_v42 = vsel %vm1105_vm8, %v4369_v36, %v4371_v61  ;;  %v4373_v16 = vsel %vm1105_vm8, %v4371_v61, %v4369_v36  ;;  %9613 = vmatpush1.bf16.msra.mxu1 %v9603_v35  ;;  %v11053_v61 = vld [vmem:[%s15849_s6 + $0x2] ss:$8 sm:$0x3] }
 0x36a   : > { %v4386_v3 = vmul.f32 %v4379_v58, %v4372_v42  ;;  %v4387_v34 = vmul.f32 %v4383_v31, %v4373_v16  ;;  %v4409_v51 = vpop.permute.xlu0 %4408  ;;  %9691 = vmatprep.subr.bf16.mxu1 %v14861_v54  ;;  %v11054_v31 = vld [vmem:[%s15849_s6 + $0x3] ss:$8 sm:$0x3] }
 0x36b   : > { %v4575_v21 = vrot.slane %v11054_v31, %v12539_v11  ;;  %v4579_v36 = vrot.slane %v11054_v31, %v12542_v12 }
 0x36c   : > { %v4458_v39 = vsel %vm827_vm0, %v4386_v3, %v4448_v25  ;;  %v4459_v7 = vsel %vm827_vm0, %v4387_v34, %v4449_v60  ;;  %v4411_v23 = vpop.permute.xlu1 %4410  ;;  %11536 = vmatmul.mubr.msk.bf16.vlgmr.msra.gmra.mrb[28].mxu1 %vm5237_vm11, %v9568_v57  ;;  %v4515_v25 = vrot.slane %v4510_v41, %v12539_v11  ;;  %v4519_v60 = vrot.slane %v4510_v41, %v12542_v12 }
 0x36d   : > { %v4412_v28 = vsel %vm1149_vm9, %v4409_v51, %v4411_v23  ;;  %v4413_v49 = vsel %vm1149_vm9, %v4411_v23, %v4409_v51  ;;  %9692 = vmatpush1.bf16.msra.mxu1 %v14859_v62  ;;  %9723 = vmatprep.mubr.bf16.mxu1 %v12169_v2  ;;  %v14905_v20 = vpack.c.bf16 %v4458_v39, %v4456_v13  ;;  %v14929_v13 = vpop.f32.mrb[29].mxu0  ;;  %v11055_v51 = vld [vmem:[%s15849_s6 + $0x5] ss:$8 sm:$0x3] }
 0x36e   : > { %v4426_v15 = vmul.f32 %v4419_v6, %v4412_v28  ;;  %v4427_v17 = vmul.f32 %v4423_v63, %v4413_v49  ;;  %v4525_v24 = vpop.permute.xlu0 %4524  ;;  %v14907_v27 = vpack.c.bf16 %v4459_v7, %v4457_v18  ;;  %v6797_v6 = vpop.f32.mrb[30].mxu0  ;;  %v4555_v3 = vrot.slane %v11053_v61, %v12539_v11 }
 0x36f   : > { %v6798_v35 = vpop.f32.mrb[31].mxu0  ;;  %v4559_v34 = vrot.slane %v11053_v61, %v12542_v12  ;;  %v4595_v41 = vrot.slane %v11055_v51, %v12539_v11 }
 0x370   : > { %v11709_v19 = vpack.c.bf16 %v4427_v17, %v4426_v15  ;;  %v4527_v45 = vpop.permute.xlu1 %4526  ;;  %9441 = vmatprep.subr.bf16.mxu0 %v14907_v27  ;;  %9693 = vmatprep.subr.bf16.mxu1 %v14907_v27 }
 0x371   : > { %v4528_v33 = vsel %vm1017_vm2, %v4525_v24, %v4527_v45  ;;  %v4529_v58 = vsel %vm1017_vm2, %v4527_v45, %v4525_v24  ;;  %9442 = vmatpush1.bf16.msra.mxu0 %v14905_v20  ;;  %9694 = vmatpush1.bf16.msra.mxu1 %v14905_v20 }
 0x372   : > { %4497 = vst [vmem:[#allocation2 + $0x250] sm:$0x33] %v11709_v19  ;;  %v4565_v38 = vpop.permute.xlu0 %4564  ;;  %v4542_v18 = vmul.f32 %v4535_v1, %v4529_v58  ;;  %v4543_v44 = vmul.f32 %v4539_v46, %v4528_v33 }
 0x373   : > { %v14924_v14 = vpop.f32.mrb[12].mxu1 }
 0x374   : > { %v4567_v32 = vpop.permute.xlu1 %4566  ;;  %v14947_v57 = vpop.f32.mrb[13].mxu1  ;;  %v4666_v39 = vrot.slane %v4542_v18, 4  ;;  %v4667_v7 = vrot.slane %v4543_v44, 4  ;;  %v4599_v18 = vrot.slane %v11055_v51, %v12542_v12 }
 0x375   : > { %v4568_v42 = vsel %vm1061_vm3, %v4565_v38, %v4567_v32  ;;  %v4569_v16 = vsel %vm1061_vm3, %v4567_v32, %v4565_v38  ;;  %v7132_v1 = vpop.f32.mrb[14].mxu1 }
 0x376   : > { %v4505_v63 = vpop.permute.xlu0 %4504  ;;  %v4582_v23 = vmul.f32 %v4575_v21, %v4569_v16  ;;  %v4583_v28 = vmul.f32 %v4579_v36, %v4568_v42  ;;  %v7133_v32 = vpop.f32.mrb[15].mxu1  ;;  %v11512_v42 = vld [vmem:[%s15847_s4 + $0x8] sm:$0xf] }
 0x378   : > { %v4507_v49 = vpop.permute.xlu1 %4506  ;;  %v4673_v51 = vrot.slane %v4583_v28, 4 }
 0x379   : > { %v9404_v15 = vld [vmem:[#allocation2 + $0x250] sm:$0x33]  ;;  %v4508_v37 = vsel %vm996_vm4, %v4505_v63, %v4507_v49  ;;  %v4509_v24 = vsel %vm996_vm4, %v4507_v49, %v4505_v63  ;;  %v11057_v63 = vld [vmem:[%s15849_s6 + $0x7] ss:$8 sm:$0x3] }
 0x37a   : > { %v9656_v17 = vld [vmem:[#allocation2 + $0x250] sm:$0x33]  ;;  %v11518_v19 = vcombine.high %v9404_v15, %v9404_v15  ;;  %v4522_v46 = vmul.f32 %v4515_v25, %v4509_v24  ;;  %v4523_v33 = vmul.f32 %v4519_v60, %v4508_v37  ;;  %v4545_v58 = vpop.permute.xlu0 %4544  ;;  %v11517_v31 = vcombine.low %v9404_v15, %v9404_v15  ;;  %v11537_v25 = vld [vmem:[%s15847_s4 + $0x4] sm:$0xf] }
 0x37b   : > { %v11543_v45 = vcombine.high %v9656_v17, %v9656_v17  ;;  %v11542_v38 = vcombine.low %v9656_v17, %v9656_v17  ;;  %v4672_v60 = vrot.slane %v4582_v23, 4  ;;  %v4635_v24 = vrot.slane %v11057_v63, %v12539_v11 }
 0x37c   : > { %11519 = vmatprep.subr.msk.bf16.mxu0 %vm5241_vm10, %v11518_v19  ;;  %v4688_v44 = vsel %vm827_vm0, %v4522_v46, %v4666_v39  ;;  %v4689_v21 = vsel %vm827_vm0, %v4523_v33, %v4667_v7  ;;  %v4547_v36 = vpop.permute.xlu1 %4546  ;;  %v9434_v61 = vsel %vm5241_vm10, %v11517_v31, 0  ;;  %v11056_v19 = vld [vmem:[%s15849_s6 + $0x6] ss:$8 sm:$0x3]  ;;  %v4639_v1 = vrot.slane %v11057_v63, %v12542_v12 }
 0x37d   : > { %11544 = vmatprep.subr.msk.bf16.mxu1 %vm5241_vm10, %v11543_v45  ;;  %v9686_v6 = vsel %vm5241_vm10, %v11542_v38, 0  ;;  %v4548_v16 = vsel %vm1039_vm5, %v4545_v58, %v4547_v36  ;;  %v4549_v35 = vsel %vm1039_vm5, %v4547_v36, %v4545_v58  ;;  %9444 = vmatpush1.bf16.msra.mxu0 %v9434_v61  ;;  %v4615_v46 = vrot.slane %v11056_v19, %v12539_v11 }
 0x37e   : > { %9696 = vmatpush1.bf16.msra.mxu1 %v9686_v6  ;;  %v4562_v39 = vmul.f32 %v4555_v3, %v4549_v35  ;;  %v4563_v7 = vmul.f32 %v4559_v34, %v4548_v16  ;;  %v4585_v49 = vpop.permute.xlu0 %4584  ;;  %9943 = vmatprep.subr.bf16.mxu0 %v14861_v54  ;;  %v9908_v34 = vld [vmem:[#allocation2 + $0x250] sm:$0x33] }
 0x37f   : > { %v11568_v32 = vcombine.high %v9908_v34, %v9908_v34  ;;  %v11567_v36 = vcombine.low %v9908_v34, %v9908_v34  ;;  %v11058_v16 = vld [vmem:[%s15849_s6 + $0x10] ss:$8 sm:$0x3] }
 0x380   : > { %v4690_v15 = vsel %vm827_vm0, %v4562_v39, %v4672_v60  ;;  %v4691_v17 = vsel %vm827_vm0, %v4563_v7, %v4673_v51  ;;  %v4587_v37 = vpop.permute.xlu1 %4586  ;;  %11520 = vmatmul.mubr.msk.bf16.vlgmr.msra.gmra.mrb[44].mxu0 %vm5237_vm11, %v11512_v42  ;;  %v4655_v63 = vrot.slane %v11058_v16, %v12539_v11  ;;  %v9903_v60 = vld [vmem:[%s15847_s4] sm:$0xf] }
 0x381   : > { %11545 = vmatmul.mubr.msk.bf16.vlgmr.msra.gmra.mrb[28].mxu1 %vm5237_vm11, %v11537_v25  ;;  %v4588_v3 = vsel %vm1083_vm6, %v4585_v49, %v4587_v37  ;;  %v4589_v54 = vsel %vm1083_vm6, %v4587_v37, %v4585_v49  ;;  %9944 = vmatpush1.bf16.msra.mxu0 %v14859_v62  ;;  %v14993_v33 = vpack.c.bf16 %v4690_v15, %v4688_v44  ;;  %v9938_v35 = vsel %vm5241_vm10, %v11567_v36, 0  ;;  %v11066_v36 = vld [vmem:[%s15849_s6 + $0x3] ss:$8 sm:$0x3] }
 0x382   : > { %9975 = vmatprep.mubr.bf16.mxu0 %v12169_v2  ;;  %v4602_v23 = vmul.f32 %v4595_v41, %v4588_v3  ;;  %v4603_v28 = vmul.f32 %v4599_v18, %v4589_v54  ;;  %v4625_v45 = vpop.permute.xlu0 %4624  ;;  %9945 = vmatprep.subr.bf16.mxu0 %v14907_v27  ;;  %v14995_v58 = vpack.c.bf16 %v4691_v17, %v4689_v21  ;;  %v11064_v54 = vld [vmem:[%s15849_s6 + $0x1] ss:$8 sm:$0x3] }
 0x383   : > { %9806 = vmatprep.mubr.bf16.mxu1 %v12169_v2  ;;  %v4619_v18 = vrot.slane %v11056_v19, %v12542_v12  ;;  %v4659_v25 = vrot.slane %v11058_v16, %v12542_v12 }
 0x384   : > { %v4678_v31 = vrot.slane %v4602_v23, 4  ;;  %v4679_v62 = vrot.slane %v4603_v28, 4  ;;  %v4627_v38 = vpop.permute.xlu1 %4626  ;;  %9774 = vmatprep.subr.bf16.mxu1 %v14995_v58 }
 0x385   : > { %v4628_v41 = vsel %vm1127_vm7, %v4625_v45, %v4627_v38  ;;  %v4629_v27 = vsel %vm1127_vm7, %v4627_v38, %v4625_v45  ;;  %9946 = vmatpush1.bf16.msra.mxu0 %v14905_v20  ;;  %9775 = vmatpush1.bf16.msra.mxu1 %v14993_v33  ;;  %v4769_v38 = vrot.slane %v11064_v54, %v12542_v12 }
 0x386   : > { %v4692_v44 = vsel %vm827_vm0, %v14310_v4, %v4678_v31  ;;  %v4693_v21 = vsel %vm827_vm0, %v14326_v55, %v4679_v62  ;;  %v4642_v61 = vmul.f32 %v4635_v24, %v4628_v41  ;;  %v4643_v6 = vmul.f32 %v4639_v1, %v4629_v27  ;;  %v4605_v42 = vpop.permute.xlu0 %4604  ;;  %11569 = vmatprep.subr.msk.bf16.mxu0 %vm5241_vm10, %v11568_v32 }
 0x387   : > { %v4765_v31 = vrot.slane %v11064_v54, %v12539_v11 }
 0x388   : > { %v4607_v20 = vpop.permute.xlu1 %4606  ;;  %v4684_v51 = vrot.slane %v4642_v61, 4  ;;  %v4685_v39 = vrot.slane %v4643_v6, 4  ;;  %v4805_v6 = vrot.slane %v11066_v36, %v12539_v11 }
 0x389   : > { %v4608_v4 = vsel %vm1105_vm8, %v4605_v42, %v4607_v20  ;;  %v4609_v55 = vsel %vm1105_vm8, %v4607_v20, %v4605_v42  ;;  %9948 = vmatpush1.bf16.msra.mxu0 %v9938_v35  ;;  %v4809_v35 = vrot.slane %v11066_v36, %v12542_v12 }
 0x38a   : > { %v4622_v7 = vmul.f32 %v4615_v46, %v4608_v4  ;;  %v4623_v49 = vmul.f32 %v4619_v18, %v4609_v55  ;;  %v4645_v15 = vpop.permute.xlu0 %4644  ;;  %10026 = vmatprep.subr.bf16.mxu0 %v14995_v58  ;;  %v11065_v55 = vld [vmem:[%s15849_s6 + $0x2] ss:$8 sm:$0x3] }
 0x38c   : > { %v4694_v17 = vsel %vm827_vm0, %v4622_v7, %v4684_v51  ;;  %v4695_v37 = vsel %vm827_vm0, %v4623_v49, %v4685_v39  ;;  %v4647_v24 = vpop.permute.xlu1 %4646  ;;  %11570 = vmatmul.mubr.msk.bf16.vlgmr.msra.gmra.mrb[48].mxu0 %vm5237_vm11, %v9903_v60 }
 0x38d   : > { %v4648_v19 = vsel %vm1149_vm9, %v4645_v15, %v4647_v24  ;;  %v4649_v3 = vsel %vm1149_vm9, %v4647_v24, %v4645_v15  ;;  %10027 = vmatpush1.bf16.msra.mxu0 %v14993_v33  ;;  %10058 = vmatprep.mubr.bf16.mxu0 %v12169_v2  ;;  %v15036_v45 = vpack.c.bf16 %v4694_v17, %v4692_v44  ;;  %v4740_v44 = vld [vmem:[%s15849_s6] ss:$8 sm:$0x3]  ;;  %v11067_v24 = vld [vmem:[%s15849_s6 + $0x5] ss:$8 sm:$0x3] }
 0x38e   : > { %v4662_v34 = vmul.f32 %v4655_v63, %v4648_v19  ;;  %v4663_v23 = vmul.f32 %v4659_v25, %v4649_v3  ;;  %v4755_v28 = vpop.permute.xlu0 %4754  ;;  %v15038_v1 = vpack.c.bf16 %v4695_v37, %v4693_v21  ;;  %v4745_v51 = vrot.slane %v4740_v44, %v12539_v11 }
 0x38f   : > { %v4749_v39 = vrot.slane %v4740_v44, %v12542_v12  ;;  %v4785_v17 = vrot.slane %v11065_v55, %v12539_v11  ;;  %v4789_v37 = vrot.slane %v11065_v55, %v12542_v12  ;;  %v11546_v55 = vld [vmem:[%s15847_s4 + $0x8] sm:$0xf] }
 0x390   : > { %v11714_v46 = vpack.c.bf16 %v4663_v23, %v4662_v34  ;;  %v4757_v62 = vpop.permute.xlu1 %4756  ;;  %9776 = vmatprep.subr.bf16.mxu1 %v15038_v1  ;;  %10028 = vmatprep.subr.bf16.mxu0 %v15038_v1 }
 0x391   : > { %v4759_v32 = vsel %vm1017_vm2, %v4757_v62, %v4755_v28  ;;  %v4758_v41 = vsel %vm1017_vm2, %v4755_v28, %v4757_v62  ;;  %9777 = vmatpush1.bf16.msra.mxu1 %v15036_v45  ;;  %10029 = vmatpush1.bf16.msra.mxu0 %v15036_v45 }
 0x392   : > { %4733 = vst [vmem:[#allocation2 + $0x278] sm:$0x33] %v11714_v46  ;;  %v4795_v27 = vpop.permute.xlu0 %4794  ;;  %v4772_v61 = vmul.f32 %v4765_v31, %v4759_v32  ;;  %v4773_v20 = vmul.f32 %v4769_v38, %v4758_v41 }
 0x393   : > { %v15053_v18 = vpop.f32.mrb[32].mxu0 }
 0x394   : > { %v15058_v21 = vpop.f32.mrb[33].mxu0  ;;  %v4797_v42 = vpop.permute.xlu1 %4796  ;;  %v4896_v7 = vrot.slane %v4772_v61, 4  ;;  %v4897_v19 = vrot.slane %v4773_v20, 4 }
 0x395   : > { %v7467_v16 = vpop.f32.mrb[34].mxu0  ;;  %v4799_v4 = vsel %vm1061_vm3, %v4797_v42, %v4795_v27  ;;  %v4798_v25 = vsel %vm1061_vm3, %v4795_v27, %v4797_v42  ;;  %v4825_v27 = vrot.slane %v11067_v24, %v12539_v11 }
 0x396   : > { %v7468_v63 = vpop.f32.mrb[35].mxu0  ;;  %v4735_v60 = vpop.permute.xlu0 %4734  ;;  %v4812_v49 = vmul.f32 %v4805_v6, %v4799_v4  ;;  %v4813_v3 = vmul.f32 %v4809_v35, %v4798_v25  ;;  %v4829_v16 = vrot.slane %v11067_v24, %v12542_v12 }
 0x398   : > { %v4737_v15 = vpop.permute.xlu1 %4736  ;;  %v4902_v44 = vrot.slane %v4812_v49, 4  ;;  %v4903_v63 = vrot.slane %v4813_v3, 4 }
 0x399   : > { %v4738_v54 = vsel %vm996_vm4, %v4735_v60, %v4737_v15  ;;  %v4739_v34 = vsel %vm996_vm4, %v4737_v15, %v4735_v60  ;;  %v9739_v23 = vld [vmem:[#allocation2 + $0x278] sm:$0x33] }
 0x39a   : > { %v9991_v28 = vld [vmem:[#allocation2 + $0x278] sm:$0x33]  ;;  %v4752_v46 = vmul.f32 %v4745_v51, %v4739_v34  ;;  %v4753_v31 = vmul.f32 %v4749_v39, %v4738_v54  ;;  %v4775_v62 = vpop.permute.xlu0 %4774  ;;  %v11552_v38 = vcombine.high %v9739_v23, %v9739_v23  ;;  %v11551_v36 = vcombine.low %v9739_v23, %v9739_v23 }
 0x39b   : > { %v11577_v32 = vcombine.high %v9991_v28, %v9991_v28  ;;  %v11576_v41 = vcombine.low %v9991_v28, %v9991_v28 }
 0x39c   : > { %v4918_v61 = vsel %vm827_vm0, %v4752_v46, %v4896_v7  ;;  %v4919_v6 = vsel %vm827_vm0, %v4753_v31, %v4897_v19  ;;  %11553 = vmatprep.subr.msk.bf16.mxu1 %vm5241_vm10, %v11552_v38  ;;  %v4777_v42 = vpop.permute.xlu1 %4776  ;;  %v9769_v4 = vsel %vm5241_vm10, %v11551_v36, 0  ;;  %v11069_v7 = vld [vmem:[%s15849_s6 + $0x7] ss:$8 sm:$0x3]  ;;  %v10243_v46 = vld [vmem:[#allocation2 + $0x278] sm:$0x33] }
 0x39d   : > { %11578 = vmatprep.subr.msk.bf16.mxu0 %vm5241_vm10, %v11577_v32  ;;  %v4778_v20 = vsel %vm1039_vm5, %v4775_v62, %v4777_v42  ;;  %v4779_v35 = vsel %vm1039_vm5, %v4777_v42, %v4775_v62  ;;  %9779 = vmatpush1.bf16.msra.mxu1 %v9769_v4  ;;  %v10021_v51 = vsel %vm5241_vm10, %v11576_v41, 0  ;;  %v4865_v3 = vrot.slane %v11069_v7, %v12539_v11 }
 0x39e   : > { %v4792_v25 = vmul.f32 %v4785_v17, %v4779_v35  ;;  %v4793_v60 = vmul.f32 %v4789_v37, %v4778_v20  ;;  %v4815_v39 = vpop.permute.xlu0 %4814  ;;  %10031 = vmatpush1.bf16.msra.mxu0 %v10021_v51  ;;  %10278 = vmatprep.subr.bf16.mxu1 %v14995_v58  ;;  %v11571_v17 = vld [vmem:[%s15847_s4 + $0x4] sm:$0xf]  ;;  %v4869_v28 = vrot.slane %v11069_v7, %v12542_v12 }
 0x39f   : > { %v11068_v58 = vld [vmem:[%s15849_s6 + $0x6] ss:$8 sm:$0x3] }
 0x3a0   : > { %v4920_v49 = vsel %vm827_vm0, %v4792_v25, %v4902_v44  ;;  %v4921_v15 = vsel %vm827_vm0, %v4793_v60, %v4903_v63  ;;  %v4817_v24 = vpop.permute.xlu1 %4816  ;;  %11554 = vmatmul.mubr.msk.bf16.vlgmr.msra.gmra.mrb[28].mxu1 %vm5237_vm11, %v11546_v55  ;;  %v4845_v41 = vrot.slane %v11068_v58, %v12539_v11 }
 0x3a1   : > { %v4818_v37 = vsel %vm1083_vm6, %v4815_v39, %v4817_v24  ;;  %v4819_v19 = vsel %vm1083_vm6, %v4817_v24, %v4815_v39  ;;  %10279 = vmatpush1.bf16.msra.mxu1 %v14993_v33  ;;  %10310 = vmatprep.mubr.bf16.mxu1 %v12169_v2  ;;  %v12102_v31 = vpack.c.bf16 %v4920_v49, %v4918_v61 }
 0x3a2   : > { %v4832_v54 = vmul.f32 %v4825_v27, %v4818_v37  ;;  %v4833_v34 = vmul.f32 %v4829_v16, %v4819_v19  ;;  %v4855_v23 = vpop.permute.xlu0 %4854  ;;  %10280 = vmatprep.subr.bf16.mxu1 %v15038_v1  ;;  %v12103_v62 = vpack.c.bf16 %v4921_v15, %v4919_v6  ;;  %11579 = vmatmul.mubr.msk.bf16.vlgmr.msra.gmra.mrb[48].mxu0 %vm5237_vm11, %v11571_v17  ;;  %v11070_v6 = vld [vmem:[%s15849_s6 + $0x10] ss:$8 sm:$0x3]  ;;  %v10238_v15 = vld [vmem:[%s15847_s4] sm:$0xf] }
 0x3a3   : > { %v4849_v27 = vrot.slane %v11068_v58, %v12542_v12  ;;  %10141 = vmatprep.mubr.bf16.mxu0 %v12169_v2  ;;  %v11602_v1 = vcombine.high %v10243_v46, %v10243_v46  ;;  %v11601_v61 = vcombine.low %v10243_v46, %v10243_v46  ;;  %v4885_v63 = vrot.slane %v11070_v6, %v12539_v11  ;;  %v11076_v58 = vld [vmem:[%s15849_s6 + $0x1] ss:$8 sm:$0x3] }
 0x3a4   : > { %v4908_v38 = vrot.slane %v4832_v54, 4  ;;  %v4909_v32 = vrot.slane %v4833_v34, 4  ;;  %v4857_v36 = vpop.permute.xlu1 %4856  ;;  %10109 = vmatprep.subr.bf16.mxu0 %v12103_v62 }
 0x3a5   : > { %v4858_v33 = vsel %vm1127_vm7, %v4855_v23, %v4857_v36  ;;  %v4859_v44 = vsel %vm1127_vm7, %v4857_v36, %v4855_v23  ;;  %10281 = vmatpush1.bf16.msra.mxu1 %v15036_v45  ;;  %10110 = vmatpush1.bf16.msra.mxu0 %v12102_v31  ;;  %v10273_v60 = vsel %vm5241_vm10, %v11601_v61, 0  ;;  %v5005_v36 = vrot.slane %v11076_v58, %v12542_v12 }
 0x3a6   : > { %v4922_v42 = vsel %vm827_vm0, %v13853_v40, %v4908_v38  ;;  %v4923_v16 = vsel %vm827_vm0, %v13865_v52, %v4909_v32  ;;  %v4872_v20 = vmul.f32 %v4865_v3, %v4858_v33  ;;  %v4873_v35 = vmul.f32 %v4869_v28, %v4859_v44  ;;  %v4835_v4 = vpop.permute.xlu0 %4834  ;;  %11603 = vmatprep.subr.msk.bf16.mxu1 %vm5241_vm10, %v11602_v1  ;;  %v4976_v1 = vld [vmem:[%s15849_s6] ss:$8 sm:$0x3] }
 0x3a7   : > { %v4889_v52 = vrot.slane %v11070_v6, %v12542_v12  ;;  %v5001_v38 = vrot.slane %v11076_v58, %v12539_v11 }
 0x3a8   : > { %v4837_v55 = vpop.permute.xlu1 %4836  ;;  %v4914_v51 = vrot.slane %v4872_v20, 4  ;;  %v4915_v39 = vrot.slane %v4873_v35, 4 }
 0x3a9   : > { %v4838_v25 = vsel %vm1105_vm8, %v4835_v4, %v4837_v55  ;;  %v4839_v40 = vsel %vm1105_vm8, %v4837_v55, %v4835_v4  ;;  %10283 = vmatpush1.bf16.msra.mxu1 %v10273_v60 }
 0x3aa   : > { %v4852_v45 = vmul.f32 %v4845_v41, %v4838_v25  ;;  %v4853_v7 = vmul.f32 %v4849_v27, %v4839_v40  ;;  %v4875_v49 = vpop.permute.xlu0 %4874  ;;  %10361 = vmatprep.subr.bf16.mxu1 %v12103_v62  ;;  %v11078_v27 = vld [vmem:[%s15849_s6 + $0x3] ss:$8 sm:$0x3] }
 0x3ab   : > { %v5045_v4 = vrot.slane %v11078_v27, %v12542_v12 }
 0x3ac   : > { %v4924_v24 = vsel %vm827_vm0, %v4852_v45, %v4914_v51  ;;  %v4925_v17 = vsel %vm827_vm0, %v4853_v7, %v4915_v39  ;;  %v4877_v37 = vpop.permute.xlu1 %4876  ;;  %11604 = vmatmul.mubr.msk.bf16.vlgmr.msra.gmra.mrb[32].mxu1 %vm5237_vm11, %v10238_v15  ;;  %v4985_v51 = vrot.slane %v4976_v1, %v12542_v12 }
 0x3ad   : > { %v4878_v19 = vsel %vm1149_vm9, %v4875_v49, %v4877_v37  ;;  %v4879_v3 = vsel %vm1149_vm9, %v4877_v37, %v4875_v49  ;;  %10362 = vmatpush1.bf16.msra.mxu1 %v12102_v31  ;;  %10393 = vmatprep.mubr.bf16.mxu1 %v12169_v2  ;;  %v12104_v28 = vpack.c.bf16 %v4924_v24, %v4922_v42  ;;  %v11079_v24 = vld [vmem:[%s15849_s6 + $0x5] ss:$8 sm:$0x3] }
 0x3ae   : > { %v4892_v54 = vmul.f32 %v4885_v63, %v4878_v19  ;;  %v4893_v34 = vmul.f32 %v4889_v52, %v4879_v3  ;;  %v4991_v23 = vpop.permute.xlu0 %4990  ;;  %v12105_v46 = vpack.c.bf16 %v4925_v17, %v4923_v16  ;;  %v5041_v42 = vrot.slane %v11078_v27, %v12539_v11  ;;  %v11077_v63 = vld [vmem:[%s15849_s6 + $0x2] ss:$8 sm:$0x3] }
 0x3af   : > { %v4981_v52 = vrot.slane %v4976_v1, %v12539_v11  ;;  %v5021_v49 = vrot.slane %v11077_v63, %v12539_v11  ;;  %v5025_v15 = vrot.slane %v11077_v63, %v12542_v12  ;;  %v5065_v1 = vrot.slane %v11079_v24, %v12542_v12 }
 0x3b0   : > { %v11719_v62 = vpack.c.bf16 %v4893_v34, %v4892_v54  ;;  %v4993_v32 = vpop.permute.xlu1 %4992  ;;  %10111 = vmatprep.subr.bf16.mxu0 %v12105_v46  ;;  %10363 = vmatprep.subr.bf16.mxu1 %v12105_v46 }
 0x3b1   : > { %v4995_v41 = vsel %vm1017_vm2, %v4993_v32, %v4991_v23  ;;  %v4994_v31 = vsel %vm1017_vm2, %v4991_v23, %v4993_v32  ;;  %10112 = vmatpush1.bf16.msra.mxu0 %v12104_v28  ;;  %10364 = vmatpush1.bf16.msra.mxu1 %v12104_v28 }
 0x3b2   : > { %4963 = vst [vmem:[#allocation2 + $0x2a0] sm:$0x33] %v11719_v62  ;;  %v5031_v33 = vpop.permute.xlu0 %5030  ;;  %v5008_v6 = vmul.f32 %v5001_v38, %v4995_v41  ;;  %v5009_v35 = vmul.f32 %v5005_v36, %v4994_v31  ;;  %v5061_v36 = vrot.slane %v11079_v24, %v12539_v11 }
 0x3b3   : > { %v15164_v44 = vpop.f32.mrb[16].mxu1 }
 0x3b4   : > { %v15169_v61 = vpop.f32.mrb[17].mxu1  ;;  %v5033_v16 = vpop.permute.xlu1 %5032  ;;  %v5132_v39 = vrot.slane %v5008_v6, 4  ;;  %v5133_v17 = vrot.slane %v5009_v35, 4 }
 0x3b5   : > { %v7802_v20 = vpop.f32.mrb[18].mxu1  ;;  %v5035_v55 = vsel %vm1061_vm3, %v5033_v16, %v5031_v33  ;;  %v5034_v40 = vsel %vm1061_vm3, %v5031_v33, %v5033_v16 }
 0x3b6   : > { %v7803_v25 = vpop.f32.mrb[19].mxu1  ;;  %v4971_v60 = vpop.permute.xlu0 %4970  ;;  %v5048_v45 = vmul.f32 %v5041_v42, %v5035_v55  ;;  %v5049_v37 = vmul.f32 %v5045_v4, %v5034_v40  ;;  %v11081_v40 = vld [vmem:[%s15849_s6 + $0x7] ss:$8 sm:$0x3] }
 0x3b7   : > { %v11580_v25 = vld [vmem:[%s15847_s4 + $0x8] sm:$0xf] }
 0x3b8   : > { %v4973_v7 = vpop.permute.xlu1 %4972  ;;  %v5138_v41 = vrot.slane %v5048_v45, 4  ;;  %v5139_v20 = vrot.slane %v5049_v37, 4  ;;  %v5105_v37 = vrot.slane %v11081_v40, %v12542_v12 }
 0x3b9   : > { %v4974_v19 = vsel %vm996_vm4, %v4971_v60, %v4973_v7  ;;  %v4975_v3 = vsel %vm996_vm4, %v4973_v7, %v4971_v60  ;;  %v10074_v58 = vld [vmem:[#allocation2 + $0x2a0] sm:$0x33] }
 0x3ba   : > { %v10326_v54 = vld [vmem:[#allocation2 + $0x2a0] sm:$0x33]  ;;  %v4988_v34 = vmul.f32 %v4981_v52, %v4975_v3  ;;  %v4989_v23 = vmul.f32 %v4985_v51, %v4974_v19  ;;  %v5011_v28 = vpop.permute.xlu0 %5010  ;;  %v11586_v46 = vcombine.high %v10074_v58, %v10074_v58  ;;  %v11585_v38 = vcombine.low %v10074_v58, %v10074_v58  ;;  %v11080_v19 = vld [vmem:[%s15849_s6 + $0x6] ss:$8 sm:$0x3] }
 0x3bb   : > { %v11611_v62 = vcombine.high %v10326_v54, %v10326_v54  ;;  %v11610_v32 = vcombine.low %v10326_v54, %v10326_v54  ;;  %v11605_v60 = vld [vmem:[%s15847_s4 + $0x4] sm:$0xf] }
 0x3bc   : > { %v5154_v27 = vsel %vm827_vm0, %v4988_v34, %v5132_v39  ;;  %v5155_v31 = vsel %vm827_vm0, %v4989_v23, %v5133_v17  ;;  %11587 = vmatprep.subr.msk.bf16.mxu0 %vm5241_vm10, %v11586_v46  ;;  %v5013_v33 = vpop.permute.xlu1 %5012  ;;  %v10104_v16 = vsel %vm5241_vm10, %v11585_v38, 0  ;;  %v5101_v17 = vrot.slane %v11081_v40, %v12539_v11 }
 0x3bd   : > { %11612 = vmatprep.subr.msk.bf16.mxu1 %vm5241_vm10, %v11611_v62  ;;  %v5014_v6 = vsel %vm1039_vm5, %v5011_v28, %v5013_v33  ;;  %v5015_v42 = vsel %vm1039_vm5, %v5013_v33, %v5011_v28  ;;  %10114 = vmatpush1.bf16.msra.mxu0 %v10104_v16  ;;  %v10356_v55 = vsel %vm5241_vm10, %v11610_v32, 0  ;;  %v5081_v62 = vrot.slane %v11080_v19, %v12539_v11 }
 0x3be   : > { %v5028_v35 = vmul.f32 %v5021_v49, %v5015_v42  ;;  %v5029_v4 = vmul.f32 %v5025_v15, %v5014_v6  ;;  %v5051_v63 = vpop.permute.xlu0 %5050  ;;  %10366 = vmatpush1.bf16.msra.mxu1 %v10356_v55  ;;  %v5085_v38 = vrot.slane %v11080_v19, %v12542_v12 }
 0x3c0   : > { %v5156_v52 = vsel %vm827_vm0, %v5028_v35, %v5138_v41  ;;  %v5157_v51 = vsel %vm827_vm0, %v5029_v4, %v5139_v20  ;;  %v5053_v39 = vpop.permute.xlu1 %5052  ;;  %11588 = vmatmul.mubr.msk.bf16.vlgmr.msra.gmra.mrb[48].mxu0 %vm5237_vm11, %v11580_v25 }
 0x3c1   : > { %v5054_v45 = vsel %vm1083_vm6, %v5051_v63, %v5053_v39  ;;  %v5055_v7 = vsel %vm1083_vm6, %v5053_v39, %v5051_v63  ;;  %11613 = vmatmul.mubr.msk.bf16.vlgmr.msra.gmra.mrb[32].mxu1 %vm5237_vm11, %v11605_v60  ;;  %v12106_v3 = vpack.c.bf16 %v5156_v52, %v5154_v27  ;;  %v12107_v58 = vpack.c.bf16 %v5157_v51, %v5155_v31  ;;  %v11082_v31 = vld [vmem:[%s15849_s6 + $0x10] ss:$8 sm:$0x3] }
 0x3c2   : > { %v5068_v49 = vmul.f32 %v5061_v36, %v5054_v45  ;;  %v5069_v15 = vmul.f32 %v5065_v1, %v5055_v7  ;;  %v5091_v24 = vpop.permute.xlu0 %5090  ;;  %10476 = vmatprep.mubr.bf16.mxu1 %v12169_v2  ;;  %v5125_v42 = vrot.slane %v11082_v31, %v12542_v12  ;;  %v12178_v45 = vmov 1966171168  }
 0x3c3   : > { %10444 = vmatprep.subr.bf16.mxu1 %v12107_v58  ;;  %v5466_v7 = vunpack.c.l.s4 %v12178_v45 }
 0x3c4   : > { %v5144_v54 = vrot.slane %v5068_v49, 4  ;;  %v5145_v34 = vrot.slane %v5069_v15, 4  ;;  %v5093_v23 = vpop.permute.xlu1 %5092  ;;  %10445 = vmatpush1.bf16.msra.mxu1 %v12106_v3 }
 0x3c5   : > { %v5094_v28 = vsel %vm1127_vm7, %v5091_v24, %v5093_v23  ;;  %v5095_v46 = vsel %vm1127_vm7, %v5093_v23, %v5091_v24 }
 0x3c6   : > { %v5158_v32 = vsel %vm827_vm0, %v14632_v0, %v5144_v54  ;;  %v5159_v2 = vsel %vm827_vm0, %v14652_v59, %v5145_v34  ;;  %v5108_v36 = vmul.f32 %v5101_v17, %v5094_v28  ;;  %v5109_v41 = vmul.f32 %v5105_v37, %v5095_v46  ;;  %v5071_v27 = vpop.permute.xlu0 %5070 }
 0x3c7   : > { %v5121_v0 = vrot.slane %v11082_v31, %v12539_v11  ;;  %v5467_v37 = vunpack.c.0.s8 %v5466_v7 }
 0x3c8   : > { %v5073_v33 = vpop.permute.xlu1 %5072  ;;  %v5150_v59 = vrot.slane %v5108_v36, 4  ;;  %v5151_v16 = vrot.slane %v5109_v41, 4 }
 0x3c9   : > { %v5074_v1 = vsel %vm1105_vm8, %v5071_v27, %v5073_v33  ;;  %v5075_v6 = vsel %vm1105_vm8, %v5073_v33, %v5071_v27  ;;  %v15260_v3 = vsub.s32 %v5467_v37, %v12529_v9 }
 0x3ca   : > { %v5088_v20 = vmul.f32 %v5081_v62, %v5074_v1  ;;  %v5089_v35 = vmul.f32 %v5085_v38, %v5075_v6  ;;  %v5111_v4 = vpop.permute.xlu0 %5110 }
 0x3cc   : > { %v5160_v55 = vsel %vm827_vm0, %v5088_v20, %v5150_v59  ;;  %v5161_v63 = vsel %vm827_vm0, %v5089_v35, %v5151_v16  ;;  %v5113_v25 = vpop.permute.xlu1 %5112 }
 0x3cd   : > { %v5114_v40 = vsel %vm1149_vm9, %v5111_v4, %v5113_v25  ;;  %v5115_v60 = vsel %vm1149_vm9, %v5113_v25, %v5111_v4  ;;  %v12108_v51 = vpack.c.bf16 %v5160_v55, %v5158_v32  ;;  %v12109_v12 = vpack.c.bf16 %v5161_v63, %v5159_v2 }
 0x3ce   : > { %v5128_v52 = vmul.f32 %v5121_v0, %v5114_v40  ;;  %v5129_v11 = vmul.f32 %v5125_v42, %v5115_v60 }
 0x3cf   : > { %10446 = vmatprep.subr.bf16.mxu1 %v12109_v12 }
 0x3d0   : > { %v11724_v39 = vpack.c.bf16 %v5129_v11, %v5128_v52  ;;  %10447 = vmatpush1.bf16.msra.mxu1 %v12108_v51 }
 0x3d2   : > { %5199 = vst [vmem:[#allocation2 + $0x2c8] sm:$0x33] %v11724_v39 }
 0x3d3   : > { %v15251_v49 = vpop.f32.mrb[36].mxu0 }
 0x3d4   : > { %v15253_v15 = vpop.f32.mrb[37].mxu0 }
 0x3d5   : > { %v8137_v24 = vpop.f32.mrb[38].mxu0 }
 0x3d6   : > { %v8138_v17 = vpop.f32.mrb[39].mxu0 }
 0x3d9   : > { %v15255_v19 = vld [vmem:[#allocation2 + $0x2c8] sm:$0x33] }
 0x3da   : > { %v11620_v10 = vcombine.high %v15255_v19, %v15255_v19  ;;  %v11619_v54 = vcombine.low %v15255_v19, %v15255_v19 }
 0x3db   : > { %v15262_v58 = vpop.permute.xlu0 %5203 }
 0x3dc   : > { %v5289_v23 = vadd.f32 %v14641_v30, %v15262_v58  ;;  %v5290_v28 = vadd.f32 %v14649_v5, %v15262_v58  ;;  %v11729_v9 = vadd.f32 %v14509_v53, %v15262_v58  ;;  %v11730_v46 = vadd.f32 %v14528_v43, %v15262_v58  ;;  %11621 = vmatprep.subr.msk.bf16.mxu1 %vm5241_vm10, %v11620_v10 }
 0x3dd   : > { %v11731_v8 = vadd.f32 %v14708_v26, %v15262_v58  ;;  %v11732_v62 = vadd.f32 %v14722_v47, %v15262_v58  ;;  %v11733_v30 = vadd.f32 %v14720_v22, %v15262_v58  ;;  %v11734_v5 = vadd.f32 %v14729_v29, %v15262_v58 }
 0x3de   : > { %v11726_v53 = vadd.f32 %v14398_v50, %v5289_v23  ;;  %v11728_v38 = vadd.f32 %v14403_v56, %v5290_v28  ;;  %v5797_v43 = vmax.f32 %v11729_v9, 0.0  ;;  %v5798_v32 = vmax.f32 %v11730_v46, 0.0 }
 0x3df   : > { %v6132_v2 = vmax.f32 %v11731_v8, 0.0  ;;  %v6133_v36 = vmax.f32 %v11732_v62, 0.0  ;;  %v6467_v41 = vmax.f32 %v11733_v30, 0.0  ;;  %v6468_v26 = vmax.f32 %v11734_v5, 0.0 }
 0x3e0   : > { %v5459_v27 = vmax.f32 %v11726_v53, 0.0  ;;  %v5460_v31 = vmax.f32 %v11728_v38, 0.0  ;;  %v5801_v33 = vcombine.low %v5797_v43, %v5798_v32  ;;  %v5802_v47 = vcombine.high %v5797_v43, %v5798_v32 }
 0x3e1   : > { %v6136_v1 = vcombine.low %v6132_v2, %v6133_v36  ;;  %v6137_v22 = vcombine.high %v6132_v2, %v6133_v36  ;;  %v6471_v6 = vcombine.low %v6467_v41, %v6468_v26  ;;  %v6472_v0 = vcombine.high %v6467_v41, %v6468_v26 }
 0x3e2   : > { %v5463_v29 = vcombine.low %v5459_v27, %v5460_v31  ;;  %v5464_v42 = vcombine.high %v5459_v27, %v5460_v31  ;;  %v5809_v50 = vrot.slane %v5801_v33, %v15260_v3  ;;  %v5816_v56 = vrot.slane %v5802_v47, %v15260_v3 }
 0x3e3   : > { %v6144_v59 = vrot.slane %v6136_v1, %v15260_v3  ;;  %v6151_v16 = vrot.slane %v6137_v22, %v15260_v3  ;;  %v6479_v20 = vrot.slane %v6471_v6, %v15260_v3  ;;  %v6486_v35 = vrot.slane %v6472_v0, %v15260_v3 }
 0x3e4   : > { %v5471_v4 = vrot.slane %v5463_v29, %v15260_v3  ;;  %v5478_v55 = vrot.slane %v5464_v42, %v15260_v3  ;;  %v5817_v63 = vcombine.high %v5809_v50, %v5809_v50  ;;  %v5818_v25 = vcombine.high %v5816_v56, %v5816_v56 }
 0x3e5   : > { %v5825_v40 = vrot.slane %v5809_v50, %v15260_v3  ;;  %v5832_v60 = vrot.slane %v5816_v56, %v15260_v3  ;;  %v6152_v52 = vcombine.high %v6144_v59, %v6144_v59  ;;  %v6153_v11 = vcombine.high %v6151_v16, %v6151_v16 }
 0x3e6   : > { %v5479_v51 = vcombine.high %v5471_v4, %v5471_v4  ;;  %v5480_v12 = vcombine.high %v5478_v55, %v5478_v55  ;;  %v5487_v39 = vrot.slane %v5471_v4, %v15260_v3  ;;  %v5494_v45 = vrot.slane %v5478_v55, %v15260_v3 }
 0x3e7   : > { %v5839_v7 = vrot.slane %v5817_v63, %v15260_v3  ;;  %v5846_v24 = vrot.slane %v5818_v25, %v15260_v3  ;;  %v5847_v17 = vcombine.high %v5825_v40, %v5825_v40  ;;  %v5848_v37 = vcombine.high %v5832_v60, %v5832_v60  ;;  %11147 = vst.msk [vmem:[%s15300_s19 + $0x1] ss:$8 sm:$0x3] %vm15267_vm12, %v5825_v40 }
 0x3e8   : > { %11151 = vst.msk [vmem:[%s15300_s19 + $0x81] ss:$8 sm:$0x3] %vm15267_vm12, %v5832_v60  ;;  %v5501_v10 = vrot.slane %v5479_v51, %v15260_v3  ;;  %v5508_v23 = vrot.slane %v5480_v12, %v15260_v3  ;;  %v5509_v28 = vcombine.high %v5487_v39, %v5487_v39  ;;  %v5510_v9 = vcombine.high %v5494_v45, %v5494_v45 }
 0x3e9   : > { %5525 = vst.msk [vmem:[%s15300_s19] ss:$8 sm:$0x3] %vm15267_vm12, %v5487_v39  ;;  %11117 = vst.msk [vmem:[%s15300_s19 + $0x80] ss:$8 sm:$0x3] %vm15267_vm12, %v5494_v45  ;;  %v5849_v46 = vcombine.high %v5839_v7, %v5839_v7  ;;  %v5850_v8 = vcombine.high %v5846_v24, %v5846_v24  ;;  %v6160_v62 = vrot.slane %v6144_v59, %v15260_v3 }
 0x3ea   : > { %11148 = vst.msk [vmem:[%s15300_s19 + $0x21] ss:$8 sm:$0x3] %vm15267_vm12, %v5839_v7  ;;  %11149 = vst.msk [vmem:[%s15300_s19 + $0x41] ss:$8 sm:$0x3] %vm15267_vm12, %v5847_v17  ;;  %v6167_v30 = vrot.slane %v6151_v16, %v15260_v3  ;;  %v5511_v5 = vcombine.high %v5501_v10, %v5501_v10  ;;  %v5512_v53 = vcombine.high %v5508_v23, %v5508_v23 }
 0x3eb   : > { %11152 = vst.msk [vmem:[%s15300_s19 + $0xa1] ss:$8 sm:$0x3] %vm15267_vm12, %v5846_v24  ;;  %11153 = vst.msk [vmem:[%s15300_s19 + $0xc1] ss:$8 sm:$0x3] %vm15267_vm12, %v5848_v37  ;;  %v6174_v38 = vrot.slane %v6152_v52, %v15260_v3  ;;  %v6181_v43 = vrot.slane %v6153_v11, %v15260_v3  ;;  %v6182_v32 = vcombine.high %v6160_v62, %v6160_v62 }
 0x3ec   : > { %11114 = vst.msk [vmem:[%s15300_s19 + $0x20] ss:$8 sm:$0x3] %vm15267_vm12, %v5501_v10  ;;  %11115 = vst.msk [vmem:[%s15300_s19 + $0x40] ss:$8 sm:$0x3] %vm15267_vm12, %v5509_v28  ;;  %v6183_v2 = vcombine.high %v6167_v30, %v6167_v30  ;;  %v6487_v36 = vcombine.high %v6479_v20, %v6479_v20  ;;  %v6488_v41 = vcombine.high %v6486_v35, %v6486_v35 }
 0x3ed   : > { %11118 = vst.msk [vmem:[%s15300_s19 + $0xa0] ss:$8 sm:$0x3] %vm15267_vm12, %v5508_v23  ;;  %11119 = vst.msk [vmem:[%s15300_s19 + $0xc0] ss:$8 sm:$0x3] %vm15267_vm12, %v5510_v9  ;;  %v6184_v26 = vcombine.high %v6174_v38, %v6174_v38  ;;  %v6185_v27 = vcombine.high %v6181_v43, %v6181_v43  ;;  %v6495_v31 = vrot.slane %v6479_v20, %v15260_v3 }
 0x3ee   : > { %11150 = vst.msk [vmem:[%s15300_s19 + $0x61] ss:$8 sm:$0x3] %vm15267_vm12, %v5849_v46  ;;  %11154 = vst.msk [vmem:[%s15300_s19 + $0xe1] ss:$8 sm:$0x3] %vm15267_vm12, %v5850_v8  ;;  %v6502_v33 = vrot.slane %v6486_v35, %v15260_v3  ;;  %v6509_v47 = vrot.slane %v6487_v36, %v15260_v3  ;;  %v6516_v1 = vrot.slane %v6488_v41, %v15260_v3 }
 0x3ef   : > { %11181 = vst.msk [vmem:[%s15300_s19 + $0x2] ss:$8 sm:$0x3] %vm15267_vm12, %v6160_v62  ;;  %11185 = vst.msk [vmem:[%s15300_s19 + $0x82] ss:$8 sm:$0x3] %vm15267_vm12, %v6167_v30  ;;  %v11735_v6 = vadd.f32 %v14922_v48, %v15262_v58  ;;  %v6517_v0 = vcombine.high %v6495_v31, %v6495_v31  ;;  %v11737_v19 = vadd.f32 %v14924_v14, %v15262_v58 }
 0x3f0   : > { %11116 = vst.msk [vmem:[%s15300_s19 + $0x60] ss:$8 sm:$0x3] %vm15267_vm12, %v5511_v5  ;;  %11120 = vst.msk [vmem:[%s15300_s19 + $0xe0] ss:$8 sm:$0x3] %vm15267_vm12, %v5512_v53  ;;  %v6518_v29 = vcombine.high %v6502_v33, %v6502_v33  ;;  %v6519_v42 = vcombine.high %v6509_v47, %v6509_v47  ;;  %v6520_v50 = vcombine.high %v6516_v1, %v6516_v1 }
 0x3f1   : > { %11182 = vst.msk [vmem:[%s15300_s19 + $0x22] ss:$8 sm:$0x3] %vm15267_vm12, %v6174_v38  ;;  %11186 = vst.msk [vmem:[%s15300_s19 + $0xa2] ss:$8 sm:$0x3] %vm15267_vm12, %v6181_v43  ;;  %v11738_v59 = vadd.f32 %v14947_v57, %v15262_v58  ;;  %v11739_v16 = vadd.f32 %v15053_v18, %v15262_v58  ;;  %v15429_v20 = vadd.f32 %v15164_v44, %v15262_v58 }
 0x3f2   : > { %11183 = vst.msk [vmem:[%s15300_s19 + $0x42] ss:$8 sm:$0x3] %vm15267_vm12, %v6182_v32  ;;  %11187 = vst.msk [vmem:[%s15300_s19 + $0xc2] ss:$8 sm:$0x3] %vm15267_vm12, %v6183_v2  ;;  %v11740_v35 = vadd.f32 %v15058_v21, %v15262_v58  ;;  %v11742_v4 = vadd.f32 %v15169_v61, %v15262_v58  ;;  %v15444_v18 = vadd.f32 %v15251_v49, %v15262_v58 }
 0x3f3   : > { %v10439_v22 = vsel %vm5241_vm10, %v11619_v54, 0  ;;  %11184 = vst.msk [vmem:[%s15300_s19 + $0x62] ss:$8 sm:$0x3] %vm15267_vm12, %v6184_v26  ;;  %v11614_v48 = vld [vmem:[%s15847_s4 + $0x8] sm:$0xf]  ;;  %v11736_v54 = vadd.f32 %v14929_v13, %v15262_v58 }
 0x3f4   : > { %11188 = vst.msk [vmem:[%s15300_s19 + $0xe2] ss:$8 sm:$0x3] %vm15267_vm12, %v6185_v27  ;;  %11215 = vst.msk [vmem:[%s15300_s19 + $0x3] ss:$8 sm:$0x3] %vm15267_vm12, %v6495_v31  ;;  %10449 = vmatpush1.bf16.msra.mxu1 %v10439_v22 }
 0x3f5   : > { %11219 = vst.msk [vmem:[%s15300_s19 + $0x83] ss:$8 sm:$0x3] %vm15267_vm12, %v6502_v33  ;;  %11216 = vst.msk [vmem:[%s15300_s19 + $0x23] ss:$8 sm:$0x3] %vm15267_vm12, %v6509_v47 }
 0x3f6   : > { %11220 = vst.msk [vmem:[%s15300_s19 + $0xa3] ss:$8 sm:$0x3] %vm15267_vm12, %v6516_v1  ;;  %v6802_v56 = vmax.f32 %v11735_v6, 0.0  ;;  %v7137_v14 = vmax.f32 %v11737_v19, 0.0  ;;  %v6803_v13 = vmax.f32 %v11736_v54, 0.0 }
 0x3f7   : > { %11217 = vst.msk [vmem:[%s15300_s19 + $0x43] ss:$8 sm:$0x3] %vm15267_vm12, %v6517_v0  ;;  %11221 = vst.msk [vmem:[%s15300_s19 + $0xc3] ss:$8 sm:$0x3] %vm15267_vm12, %v6518_v29  ;;  %11622 = vmatmul.mubr.msk.bf16.vlgmr.msra.gmra.mrb[32].mxu1 %vm5237_vm11, %v11614_v48 }
 0x3f8   : > { %11218 = vst.msk [vmem:[%s15300_s19 + $0x63] ss:$8 sm:$0x3] %vm15267_vm12, %v6519_v42  ;;  %11222 = vst.msk [vmem:[%s15300_s19 + $0xe3] ss:$8 sm:$0x3] %vm15267_vm12, %v6520_v50  ;;  %v6806_v44 = vcombine.low %v6802_v56, %v6803_v13  ;;  %v6807_v55 = vcombine.high %v6802_v56, %v6803_v13 }
 0x3f9   : > { %v7138_v57 = vmax.f32 %v11738_v59, 0.0  ;;  %v7472_v63 = vmax.f32 %v11739_v16, 0.0  ;;  %v7807_v25 = vmax.f32 %v15429_v20, 0.0  ;;  %v7473_v52 = vmax.f32 %v11740_v35, 0.0  ;;  %v8468_v51 = vpop.f32.mrb[20].mxu1 }
 0x3fa   : > { %v7808_v11 = vmax.f32 %v11742_v4, 0.0  ;;  %v6814_v12 = vrot.slane %v6806_v44, %v15260_v3  ;;  %v6821_v21 = vrot.slane %v6807_v55, %v15260_v3  ;;  %v8142_v61 = vmax.f32 %v15444_v18, 0.0  ;;  %v15453_v49 = vpop.f32.mrb[21].mxu1 }
 0x3fb   : > { %v7141_v40 = vcombine.low %v7137_v14, %v7138_v57  ;;  %v7142_v60 = vcombine.high %v7137_v14, %v7138_v57  ;;  %v15451_v39 = vadd.f32 %v8468_v51, %v15262_v58  ;;  %v7476_v24 = vcombine.low %v7472_v63, %v7473_v52  ;;  %v8472_v37 = vpop.f32.mrb[22].mxu1 }
 0x3fc   : > { %v7477_v17 = vcombine.high %v7472_v63, %v7473_v52  ;;  %v6822_v10 = vcombine.high %v6814_v12, %v6814_v12  ;;  %v6823_v23 = vcombine.high %v6821_v21, %v6821_v21  ;;  %v6830_v28 = vrot.slane %v6814_v12, %v15260_v3  ;;  %v8473_v46 = vpop.f32.mrb[23].mxu1 }
 0x3fd   : > { %v7149_v45 = vrot.slane %v7141_v40, %v15260_v3  ;;  %v7156_v7 = vrot.slane %v7142_v60, %v15260_v3  ;;  %v6837_v9 = vrot.slane %v6821_v21, %v15260_v3  ;;  %v7484_v33 = vrot.slane %v7476_v24, %v15260_v3 }
 0x3fe   : > { %v6844_v53 = vrot.slane %v6822_v10, %v15260_v3  ;;  %v6851_v38 = vrot.slane %v6823_v23, %v15260_v3  ;;  %v6852_v43 = vcombine.high %v6830_v28, %v6830_v28  ;;  %11249 = vst.msk [vmem:[%s15300_s19 + $0x4] ss:$8 sm:$0x3] %vm15267_vm12, %v6830_v28  ;;  %v7491_v47 = vrot.slane %v7477_v17, %v15260_v3 }
 0x3ff   : > { %v7157_v8 = vcombine.high %v7149_v45, %v7149_v45  ;;  %v7158_v62 = vcombine.high %v7156_v7, %v7156_v7  ;;  %v7165_v30 = vrot.slane %v7149_v45, %v15260_v3  ;;  %v7172_v5 = vrot.slane %v7156_v7, %v15260_v3  ;;  %11253 = vst.msk [vmem:[%s15300_s19 + $0x84] ss:$8 sm:$0x3] %vm15267_vm12, %v6837_v9 }
 0x400   : > { %v6853_v32 = vcombine.high %v6837_v9, %v6837_v9  ;;  %v6854_v27 = vcombine.high %v6844_v53, %v6844_v53  ;;  %v6855_v31 = vcombine.high %v6851_v38, %v6851_v38  ;;  %11250 = vst.msk [vmem:[%s15300_s19 + $0x24] ss:$8 sm:$0x3] %vm15267_vm12, %v6844_v53  ;;  %11251 = vst.msk [vmem:[%s15300_s19 + $0x44] ss:$8 sm:$0x3] %vm15267_vm12, %v6852_v43 }
 0x401   : > { %v7179_v2 = vrot.slane %v7157_v8, %v15260_v3  ;;  %v7186_v36 = vrot.slane %v7158_v62, %v15260_v3  ;;  %v7187_v41 = vcombine.high %v7165_v30, %v7165_v30  ;;  %v7188_v26 = vcombine.high %v7172_v5, %v7172_v5  ;;  %11283 = vst.msk [vmem:[%s15300_s19 + $0x5] ss:$8 sm:$0x3] %vm15267_vm12, %v7165_v30 }
 0x402   : > { %11287 = vst.msk [vmem:[%s15300_s19 + $0x85] ss:$8 sm:$0x3] %vm15267_vm12, %v7172_v5  ;;  %11254 = vst.msk [vmem:[%s15300_s19 + $0xa4] ss:$8 sm:$0x3] %vm15267_vm12, %v6851_v38  ;;  %v7811_v6 = vcombine.low %v7807_v25, %v7808_v11  ;;  %v7812_v0 = vcombine.high %v7807_v25, %v7808_v11  ;;  %v7492_v29 = vcombine.high %v7484_v33, %v7484_v33 }
 0x403   : > { %11255 = vst.msk [vmem:[%s15300_s19 + $0xc4] ss:$8 sm:$0x3] %vm15267_vm12, %v6853_v32  ;;  %v7189_v1 = vcombine.high %v7179_v2, %v7179_v2  ;;  %v7190_v22 = vcombine.high %v7186_v36, %v7186_v36  ;;  %11284 = vst.msk [vmem:[%s15300_s19 + $0x25] ss:$8 sm:$0x3] %vm15267_vm12, %v7179_v2  ;;  %v7493_v48 = vcombine.high %v7491_v47, %v7491_v47 }
 0x404   : > { %11285 = vst.msk [vmem:[%s15300_s19 + $0x45] ss:$8 sm:$0x3] %vm15267_vm12, %v7187_v41  ;;  %11288 = vst.msk [vmem:[%s15300_s19 + $0xa5] ss:$8 sm:$0x3] %vm15267_vm12, %v7186_v36  ;;  %v7500_v19 = vrot.slane %v7484_v33, %v15260_v3  ;;  %v7507_v54 = vrot.slane %v7491_v47, %v15260_v3  ;;  %v7819_v42 = vrot.slane %v7811_v6, %v15260_v3 }
 0x405   : > { %11289 = vst.msk [vmem:[%s15300_s19 + $0xc5] ss:$8 sm:$0x3] %vm15267_vm12, %v7188_v26  ;;  %11252 = vst.msk [vmem:[%s15300_s19 + $0x64] ss:$8 sm:$0x3] %vm15267_vm12, %v6854_v27  ;;  %v7826_v50 = vrot.slane %v7812_v0, %v15260_v3  ;;  %v11744_v59 = vadd.f32 %v15253_v15, %v15262_v58  ;;  %v7514_v14 = vrot.slane %v7492_v29, %v15260_v3 }
 0x406   : > { %11256 = vst.msk [vmem:[%s15300_s19 + $0xe4] ss:$8 sm:$0x3] %vm15267_vm12, %v6855_v31  ;;  %11286 = vst.msk [vmem:[%s15300_s19 + $0x65] ss:$8 sm:$0x3] %vm15267_vm12, %v7189_v1  ;;  %v7521_v13 = vrot.slane %v7493_v48, %v15260_v3  ;;  %v7522_v16 = vcombine.high %v7500_v19, %v7500_v19  ;;  %v7523_v20 = vcombine.high %v7507_v54, %v7507_v54 }
 0x407   : > { %11290 = vst.msk [vmem:[%s15300_s19 + $0xe5] ss:$8 sm:$0x3] %vm15267_vm12, %v7190_v22  ;;  %v8477_v56 = vmax.f32 %v15451_v39, 0.0  ;;  %v7827_v57 = vcombine.high %v7819_v42, %v7819_v42  ;;  %v7828_v35 = vcombine.high %v7826_v50, %v7826_v50  ;;  %v7835_v4 = vrot.slane %v7819_v42, %v15260_v3 }
 0x408   : > { %11317 = vst.msk [vmem:[%s15300_s19 + $0x6] ss:$8 sm:$0x3] %vm15267_vm12, %v7500_v19  ;;  %11321 = vst.msk [vmem:[%s15300_s19 + $0x86] ss:$8 sm:$0x3] %vm15267_vm12, %v7507_v54  ;;  %v7842_v15 = vrot.slane %v7826_v50, %v15260_v3  ;;  %v7524_v44 = vcombine.high %v7514_v14, %v7514_v14  ;;  %v7525_v55 = vcombine.high %v7521_v13, %v7521_v13 }
 0x409   : > { %11318 = vst.msk [vmem:[%s15300_s19 + $0x26] ss:$8 sm:$0x3] %vm15267_vm12, %v7514_v14  ;;  %11319 = vst.msk [vmem:[%s15300_s19 + $0x46] ss:$8 sm:$0x3] %vm15267_vm12, %v7522_v16  ;;  %v11746_v25 = vadd.f32 %v15453_v49, %v15262_v58  ;;  %v7849_v40 = vrot.slane %v7827_v57, %v15260_v3  ;;  %v7856_v60 = vrot.slane %v7828_v35, %v15260_v3 }
 0x40a   : > { %11322 = vst.msk [vmem:[%s15300_s19 + $0xa6] ss:$8 sm:$0x3] %vm15267_vm12, %v7521_v13  ;;  %11323 = vst.msk [vmem:[%s15300_s19 + $0xc6] ss:$8 sm:$0x3] %vm15267_vm12, %v7523_v20  ;;  %v7857_v52 = vcombine.high %v7835_v4, %v7835_v4  ;;  %v7858_v11 = vcombine.high %v7842_v15, %v7842_v15 }
 0x40b   : > { %v8143_v63 = vmax.f32 %v11744_v59, 0.0  ;;  %11351 = vst.msk [vmem:[%s15300_s19 + $0x7] ss:$8 sm:$0x3] %vm15267_vm12, %v7835_v4  ;;  %v8478_v21 = vmax.f32 %v11746_v25, 0.0  ;;  %v7859_v39 = vcombine.high %v7849_v40, %v7849_v40  ;;  %v7860_v49 = vcombine.high %v7856_v60, %v7856_v60 }
 0x40c   : > { %11355 = vst.msk [vmem:[%s15300_s19 + $0x87] ss:$8 sm:$0x3] %vm15267_vm12, %v7842_v15  ;;  %11320 = vst.msk [vmem:[%s15300_s19 + $0x66] ss:$8 sm:$0x3] %vm15267_vm12, %v7524_v44 }
 0x40d   : > { %11324 = vst.msk [vmem:[%s15300_s19 + $0xe6] ss:$8 sm:$0x3] %vm15267_vm12, %v7525_v55  ;;  %v8146_v51 = vcombine.low %v8142_v61, %v8143_v63  ;;  %v8147_v12 = vcombine.high %v8142_v61, %v8143_v63  ;;  %11352 = vst.msk [vmem:[%s15300_s19 + $0x27] ss:$8 sm:$0x3] %vm15267_vm12, %v7849_v40  ;;  %v8481_v61 = vcombine.low %v8477_v56, %v8478_v21 }
 0x40e   : > { %11353 = vst.msk [vmem:[%s15300_s19 + $0x47] ss:$8 sm:$0x3] %vm15267_vm12, %v7857_v52  ;;  %11356 = vst.msk [vmem:[%s15300_s19 + $0xa7] ss:$8 sm:$0x3] %vm15267_vm12, %v7856_v60  ;;  %v8482_v7 = vcombine.high %v8477_v56, %v8478_v21 }
 0x40f   : > { %11357 = vst.msk [vmem:[%s15300_s19 + $0xc7] ss:$8 sm:$0x3] %vm15267_vm12, %v7858_v11  ;;  %v8154_v45 = vrot.slane %v8146_v51, %v15260_v3  ;;  %v8161_v18 = vrot.slane %v8147_v12, %v15260_v3  ;;  %11354 = vst.msk [vmem:[%s15300_s19 + $0x67] ss:$8 sm:$0x3] %vm15267_vm12, %v7859_v39  ;;  %v8489_v23 = vrot.slane %v8481_v61, %v15260_v3 }
 0x410   : > { %11358 = vst.msk [vmem:[%s15300_s19 + $0xe7] ss:$8 sm:$0x3] %vm15267_vm12, %v7860_v49  ;;  %v8496_v28 = vrot.slane %v8482_v7, %v15260_v3 }
 0x411   : > { %v8162_v24 = vcombine.high %v8154_v45, %v8154_v45  ;;  %v8163_v17 = vcombine.high %v8161_v18, %v8161_v18  ;;  %v8170_v37 = vrot.slane %v8154_v45, %v15260_v3  ;;  %v8177_v10 = vrot.slane %v8161_v18, %v15260_v3 }
 0x412   : > { %v8497_v30 = vcombine.high %v8489_v23, %v8489_v23  ;;  %v8498_v5 = vcombine.high %v8496_v28, %v8496_v28  ;;  %v8505_v53 = vrot.slane %v8489_v23, %v15260_v3  ;;  %v8512_v38 = vrot.slane %v8496_v28, %v15260_v3 }
 0x413   : > { %v8184_v9 = vrot.slane %v8162_v24, %v15260_v3  ;;  %v8191_v46 = vrot.slane %v8163_v17, %v15260_v3  ;;  %v8192_v8 = vcombine.high %v8170_v37, %v8170_v37  ;;  %v8193_v62 = vcombine.high %v8177_v10, %v8177_v10  ;;  %11385 = vst.msk [vmem:[%s15300_s19 + $0x10] ss:$8 sm:$0x3] %vm15267_vm12, %v8170_v37  ;;  %v8803_v33 = vpop.f32.mrb[40].mxu0 }
 0x414   : > { %11389 = vst.msk [vmem:[%s15300_s19 + $0x90] ss:$8 sm:$0x3] %vm15267_vm12, %v8177_v10  ;;  %v8519_v2 = vrot.slane %v8497_v30, %v15260_v3  ;;  %v8526_v36 = vrot.slane %v8498_v5, %v15260_v3  ;;  %v8527_v41 = vcombine.high %v8505_v53, %v8505_v53  ;;  %v8528_v26 = vcombine.high %v8512_v38, %v8512_v38  ;;  %v8805_v1 = vpop.f32.mrb[41].mxu0 }
 0x415   : > { %v8194_v43 = vcombine.high %v8184_v9, %v8184_v9  ;;  %v8195_v32 = vcombine.high %v8191_v46, %v8191_v46  ;;  %11386 = vst.msk [vmem:[%s15300_s19 + $0x30] ss:$8 sm:$0x3] %vm15267_vm12, %v8184_v9  ;;  %11387 = vst.msk [vmem:[%s15300_s19 + $0x50] ss:$8 sm:$0x3] %vm15267_vm12, %v8192_v8  ;;  %v11747_v47 = vadd.f32 %v8803_v33, %v15262_v58 }
 0x416   : > { %11390 = vst.msk [vmem:[%s15300_s19 + $0xb0] ss:$8 sm:$0x3] %vm15267_vm12, %v8191_v46  ;;  %11391 = vst.msk [vmem:[%s15300_s19 + $0xd0] ss:$8 sm:$0x3] %vm15267_vm12, %v8193_v62  ;;  %v8529_v27 = vcombine.high %v8519_v2, %v8519_v2  ;;  %v8530_v31 = vcombine.high %v8526_v36, %v8526_v36  ;;  %v11748_v22 = vadd.f32 %v8805_v1, %v15262_v58 }
 0x417   : > { %11419 = vst.msk [vmem:[%s15300_s19 + $0x11] ss:$8 sm:$0x3] %vm15267_vm12, %v8505_v53  ;;  %11423 = vst.msk [vmem:[%s15300_s19 + $0x91] ss:$8 sm:$0x3] %vm15267_vm12, %v8512_v38 }
 0x418   : > { %11388 = vst.msk [vmem:[%s15300_s19 + $0x70] ss:$8 sm:$0x3] %vm15267_vm12, %v8194_v43  ;;  %11392 = vst.msk [vmem:[%s15300_s19 + $0xf0] ss:$8 sm:$0x3] %vm15267_vm12, %v8195_v32 }
 0x419   : > { %11420 = vst.msk [vmem:[%s15300_s19 + $0x31] ss:$8 sm:$0x3] %vm15267_vm12, %v8519_v2  ;;  %11421 = vst.msk [vmem:[%s15300_s19 + $0x51] ss:$8 sm:$0x3] %vm15267_vm12, %v8527_v41 }
 0x41a   : > { %11424 = vst.msk [vmem:[%s15300_s19 + $0xb1] ss:$8 sm:$0x3] %vm15267_vm12, %v8526_v36  ;;  %11425 = vst.msk [vmem:[%s15300_s19 + $0xd1] ss:$8 sm:$0x3] %vm15267_vm12, %v8528_v26 }
 0x41b   : > { %11422 = vst.msk [vmem:[%s15300_s19 + $0x71] ss:$8 sm:$0x3] %vm15267_vm12, %v8529_v27  ;;  %11426 = vst.msk [vmem:[%s15300_s19 + $0xf1] ss:$8 sm:$0x3] %vm15267_vm12, %v8530_v31 }
 0x41c   : > { %v8807_v6 = vpop.f32.mrb[42].mxu0  ;;  %v8812_v0 = vmax.f32 %v11747_v47, 0.0  ;;  %v8813_v48 = vmax.f32 %v11748_v22, 0.0 }
 0x41d   : > { %v8808_v29 = vpop.f32.mrb[43].mxu0 }
 0x41e   : > { %v8816_v19 = vcombine.low %v8812_v0, %v8813_v48  ;;  %v8817_v54 = vcombine.high %v8812_v0, %v8813_v48 }
 0x420   : > { %v8824_v42 = vrot.slane %v8816_v19, %v15260_v3  ;;  %v8831_v50 = vrot.slane %v8817_v54, %v15260_v3 }
 0x422   : > { %v8832_v56 = vcombine.high %v8824_v42, %v8824_v42  ;;  %v8833_v59 = vcombine.high %v8831_v50, %v8831_v50  ;;  %v8840_v14 = vrot.slane %v8824_v42, %v15260_v3  ;;  %v8847_v13 = vrot.slane %v8831_v50, %v15260_v3 }
 0x424   : > { %v8854_v16 = vrot.slane %v8832_v56, %v15260_v3  ;;  %v8861_v20 = vrot.slane %v8833_v59, %v15260_v3  ;;  %v8862_v57 = vcombine.high %v8840_v14, %v8840_v14  ;;  %v8863_v35 = vcombine.high %v8847_v13, %v8847_v13  ;;  %11453 = vst.msk [vmem:[%s15300_s19 + $0x12] ss:$8 sm:$0x3] %vm15267_vm12, %v8840_v14 }
 0x425   : > { %11457 = vst.msk [vmem:[%s15300_s19 + $0x92] ss:$8 sm:$0x3] %vm15267_vm12, %v8847_v13 }
 0x426   : > { %v8864_v4 = vcombine.high %v8854_v16, %v8854_v16  ;;  %v8865_v15 = vcombine.high %v8861_v20, %v8861_v20  ;;  %11454 = vst.msk [vmem:[%s15300_s19 + $0x32] ss:$8 sm:$0x3] %vm15267_vm12, %v8854_v16  ;;  %11455 = vst.msk [vmem:[%s15300_s19 + $0x52] ss:$8 sm:$0x3] %vm15267_vm12, %v8862_v57 }
 0x427   : > { %11458 = vst.msk [vmem:[%s15300_s19 + $0xb2] ss:$8 sm:$0x3] %vm15267_vm12, %v8861_v20  ;;  %11459 = vst.msk [vmem:[%s15300_s19 + $0xd2] ss:$8 sm:$0x3] %vm15267_vm12, %v8863_v35 }
 0x428   : > { %11456 = vst.msk [vmem:[%s15300_s19 + $0x72] ss:$8 sm:$0x3] %vm15267_vm12, %v8864_v4  ;;  %11460 = vst.msk [vmem:[%s15300_s19 + $0xf2] ss:$8 sm:$0x3] %vm15267_vm12, %v8865_v15 }
 0x433   : > { %v9138_v44 = vpop.f32.mrb[24].mxu1 }
 0x434   : > { %v11749_v55 = vadd.f32 %v9138_v44, %v15262_v58  ;;  %v9140_v63 = vpop.f32.mrb[25].mxu1 }
 0x435   : > { %v11750_v25 = vadd.f32 %v9140_v63, %v15262_v58  ;;  %v9142_v40 = vpop.f32.mrb[26].mxu1 }
 0x436   : > { %v9147_v60 = vmax.f32 %v11749_v55, 0.0  ;;  %v9143_v52 = vpop.f32.mrb[27].mxu1 }
 0x437   : > { %v9148_v11 = vmax.f32 %v11750_v25, 0.0 }
 0x439   : > { %v9151_v51 = vcombine.low %v9147_v60, %v9148_v11  ;;  %v9152_v12 = vcombine.high %v9147_v60, %v9148_v11 }
 0x43b   : > { %v9159_v21 = vrot.slane %v9151_v51, %v15260_v3  ;;  %v9166_v39 = vrot.slane %v9152_v12, %v15260_v3 }
 0x43d   : > { %v9167_v49 = vcombine.high %v9159_v21, %v9159_v21  ;;  %v9168_v45 = vcombine.high %v9166_v39, %v9166_v39  ;;  %v9175_v18 = vrot.slane %v9159_v21, %v15260_v3  ;;  %v9182_v61 = vrot.slane %v9166_v39, %v15260_v3 }
 0x43f   : > { %v9189_v7 = vrot.slane %v9167_v49, %v15260_v3  ;;  %v9196_v24 = vrot.slane %v9168_v45, %v15260_v3  ;;  %v9197_v17 = vcombine.high %v9175_v18, %v9175_v18  ;;  %v9198_v37 = vcombine.high %v9182_v61, %v9182_v61  ;;  %11487 = vst.msk [vmem:[%s15300_s19 + $0x13] ss:$8 sm:$0x3] %vm15267_vm12, %v9175_v18 }
 0x440   : > { %11491 = vst.msk [vmem:[%s15300_s19 + $0x93] ss:$8 sm:$0x3] %vm15267_vm12, %v9182_v61 }
 0x441   : > { %v9199_v10 = vcombine.high %v9189_v7, %v9189_v7  ;;  %v9200_v23 = vcombine.high %v9196_v24, %v9196_v24  ;;  %11488 = vst.msk [vmem:[%s15300_s19 + $0x33] ss:$8 sm:$0x3] %vm15267_vm12, %v9189_v7  ;;  %11489 = vst.msk [vmem:[%s15300_s19 + $0x53] ss:$8 sm:$0x3] %vm15267_vm12, %v9197_v17 }
 0x442   : > { %11492 = vst.msk [vmem:[%s15300_s19 + $0xb3] ss:$8 sm:$0x3] %vm15267_vm12, %v9196_v24  ;;  %11493 = vst.msk [vmem:[%s15300_s19 + $0xd3] ss:$8 sm:$0x3] %vm15267_vm12, %v9198_v37 }
 0x443   : > { %11490 = vst.msk [vmem:[%s15300_s19 + $0x73] ss:$8 sm:$0x3] %vm15267_vm12, %v9199_v10  ;;  %11494 = vst.msk [vmem:[%s15300_s19 + $0xf3] ss:$8 sm:$0x3] %vm15267_vm12, %v9200_v23 }
 0x453   : > { %v9473_v28 = vpop.f32.mrb[44].mxu0 }
 0x454   : > { %v11751_v9 = vadd.f32 %v9473_v28, %v15262_v58  ;;  %v9475_v46 = vpop.f32.mrb[45].mxu0 }
 0x455   : > { %v11752_v8 = vadd.f32 %v9475_v46, %v15262_v58  ;;  %v9477_v62 = vpop.f32.mrb[46].mxu0 }
 0x456   : > { %v9482_v30 = vmax.f32 %v11751_v9, 0.0  ;;  %v9478_v5 = vpop.f32.mrb[47].mxu0 }
 0x457   : > { %v9483_v53 = vmax.f32 %v11752_v8, 0.0 }
 0x459   : > { %v9486_v38 = vcombine.low %v9482_v30, %v9483_v53  ;;  %v9487_v43 = vcombine.high %v9482_v30, %v9483_v53 }
 0x45b   : > { %v9494_v32 = vrot.slane %v9486_v38, %v15260_v3  ;;  %v9501_v2 = vrot.slane %v9487_v43, %v15260_v3 }
 0x45d   : > { %v9502_v36 = vcombine.high %v9494_v32, %v9494_v32  ;;  %v9503_v41 = vcombine.high %v9501_v2, %v9501_v2  ;;  %v9510_v26 = vrot.slane %v9494_v32, %v15260_v3  ;;  %v9517_v27 = vrot.slane %v9501_v2, %v15260_v3 }
 0x45f   : > { %v9524_v31 = vrot.slane %v9502_v36, %v15260_v3  ;;  %v9531_v33 = vrot.slane %v9503_v41, %v15260_v3  ;;  %v9532_v47 = vcombine.high %v9510_v26, %v9510_v26  ;;  %v9533_v1 = vcombine.high %v9517_v27, %v9517_v27  ;;  %11521 = vst.msk [vmem:[%s15300_s19 + $0x14] ss:$8 sm:$0x3] %vm15267_vm12, %v9510_v26 }
 0x460   : > { %11525 = vst.msk [vmem:[%s15300_s19 + $0x94] ss:$8 sm:$0x3] %vm15267_vm12, %v9517_v27 }
 0x461   : > { %v9534_v22 = vcombine.high %v9524_v31, %v9524_v31  ;;  %v9535_v6 = vcombine.high %v9531_v33, %v9531_v33  ;;  %11522 = vst.msk [vmem:[%s15300_s19 + $0x34] ss:$8 sm:$0x3] %vm15267_vm12, %v9524_v31  ;;  %11523 = vst.msk [vmem:[%s15300_s19 + $0x54] ss:$8 sm:$0x3] %vm15267_vm12, %v9532_v47 }
 0x462   : > { %11526 = vst.msk [vmem:[%s15300_s19 + $0xb4] ss:$8 sm:$0x3] %vm15267_vm12, %v9531_v33  ;;  %11527 = vst.msk [vmem:[%s15300_s19 + $0xd4] ss:$8 sm:$0x3] %vm15267_vm12, %v9533_v1 }
 0x463   : > { %11524 = vst.msk [vmem:[%s15300_s19 + $0x74] ss:$8 sm:$0x3] %vm15267_vm12, %v9534_v22  ;;  %11528 = vst.msk [vmem:[%s15300_s19 + $0xf4] ss:$8 sm:$0x3] %vm15267_vm12, %v9535_v6 }
 0x473   : > { %v9808_v0 = vpop.f32.mrb[28].mxu1 }
 0x474   : > { %v11753_v29 = vadd.f32 %v9808_v0, %v15262_v58  ;;  %v9810_v48 = vpop.f32.mrb[29].mxu1 }
 0x475   : > { %v11754_v19 = vadd.f32 %v9810_v48, %v15262_v58  ;;  %v9812_v54 = vpop.f32.mrb[30].mxu1 }
 0x476   : > { %v9817_v42 = vmax.f32 %v11753_v29, 0.0  ;;  %v9813_v50 = vpop.f32.mrb[31].mxu1 }
 0x477   : > { %v9818_v56 = vmax.f32 %v11754_v19, 0.0 }
 0x479   : > { %v9821_v59 = vcombine.low %v9817_v42, %v9818_v56  ;;  %v9822_v14 = vcombine.high %v9817_v42, %v9818_v56 }
 0x47b   : > { %v9829_v13 = vrot.slane %v9821_v59, %v15260_v3  ;;  %v9836_v16 = vrot.slane %v9822_v14, %v15260_v3 }
 0x47d   : > { %v9837_v20 = vcombine.high %v9829_v13, %v9829_v13  ;;  %v9838_v57 = vcombine.high %v9836_v16, %v9836_v16  ;;  %v9845_v35 = vrot.slane %v9829_v13, %v15260_v3  ;;  %v9852_v4 = vrot.slane %v9836_v16, %v15260_v3 }
 0x47f   : > { %v9859_v15 = vrot.slane %v9837_v20, %v15260_v3  ;;  %v9866_v44 = vrot.slane %v9838_v57, %v15260_v3  ;;  %v9867_v55 = vcombine.high %v9845_v35, %v9845_v35  ;;  %v9868_v63 = vcombine.high %v9852_v4, %v9852_v4  ;;  %11555 = vst.msk [vmem:[%s15300_s19 + $0x15] ss:$8 sm:$0x3] %vm15267_vm12, %v9845_v35 }
 0x480   : > { %11559 = vst.msk [vmem:[%s15300_s19 + $0x95] ss:$8 sm:$0x3] %vm15267_vm12, %v9852_v4 }
 0x481   : > { %v9869_v25 = vcombine.high %v9859_v15, %v9859_v15  ;;  %v9870_v40 = vcombine.high %v9866_v44, %v9866_v44  ;;  %11556 = vst.msk [vmem:[%s15300_s19 + $0x35] ss:$8 sm:$0x3] %vm15267_vm12, %v9859_v15  ;;  %11557 = vst.msk [vmem:[%s15300_s19 + $0x55] ss:$8 sm:$0x3] %vm15267_vm12, %v9867_v55 }
 0x482   : > { %11560 = vst.msk [vmem:[%s15300_s19 + $0xb5] ss:$8 sm:$0x3] %vm15267_vm12, %v9866_v44  ;;  %11561 = vst.msk [vmem:[%s15300_s19 + $0xd5] ss:$8 sm:$0x3] %vm15267_vm12, %v9868_v63 }
 0x483   : > { %11558 = vst.msk [vmem:[%s15300_s19 + $0x75] ss:$8 sm:$0x3] %vm15267_vm12, %v9869_v25  ;;  %11562 = vst.msk [vmem:[%s15300_s19 + $0xf5] ss:$8 sm:$0x3] %vm15267_vm12, %v9870_v40 }
 0x493   : > { %v10143_v60 = vpop.f32.mrb[48].mxu0 }
 0x494   : > { %v11755_v52 = vadd.f32 %v10143_v60, %v15262_v58  ;;  %v10145_v11 = vpop.f32.mrb[49].mxu0 }
 0x495   : > { %v11756_v51 = vadd.f32 %v10145_v11, %v15262_v58  ;;  %v10147_v12 = vpop.f32.mrb[50].mxu0 }
 0x496   : > { %v10152_v21 = vmax.f32 %v11755_v52, 0.0  ;;  %v10148_v39 = vpop.f32.mrb[51].mxu0 }
 0x497   : > { %v10153_v49 = vmax.f32 %v11756_v51, 0.0 }
 0x499   : > { %v10156_v45 = vcombine.low %v10152_v21, %v10153_v49  ;;  %v10157_v18 = vcombine.high %v10152_v21, %v10153_v49 }
 0x49b   : > { %v10164_v61 = vrot.slane %v10156_v45, %v15260_v3  ;;  %v10171_v7 = vrot.slane %v10157_v18, %v15260_v3 }
 0x49d   : > { %v10172_v24 = vcombine.high %v10164_v61, %v10164_v61  ;;  %v10173_v17 = vcombine.high %v10171_v7, %v10171_v7  ;;  %v10180_v37 = vrot.slane %v10164_v61, %v15260_v3  ;;  %v10187_v10 = vrot.slane %v10171_v7, %v15260_v3 }
 0x49f   : > { %v10194_v23 = vrot.slane %v10172_v24, %v15260_v3  ;;  %v10201_v28 = vrot.slane %v10173_v17, %v15260_v3  ;;  %v10202_v9 = vcombine.high %v10180_v37, %v10180_v37  ;;  %v10203_v46 = vcombine.high %v10187_v10, %v10187_v10  ;;  %11589 = vst.msk [vmem:[%s15300_s19 + $0x16] ss:$8 sm:$0x3] %vm15267_vm12, %v10180_v37 }
 0x4a0   : > { %11593 = vst.msk [vmem:[%s15300_s19 + $0x96] ss:$8 sm:$0x3] %vm15267_vm12, %v10187_v10 }
 0x4a1   : > { %v10204_v8 = vcombine.high %v10194_v23, %v10194_v23  ;;  %v10205_v62 = vcombine.high %v10201_v28, %v10201_v28  ;;  %11590 = vst.msk [vmem:[%s15300_s19 + $0x36] ss:$8 sm:$0x3] %vm15267_vm12, %v10194_v23  ;;  %11591 = vst.msk [vmem:[%s15300_s19 + $0x56] ss:$8 sm:$0x3] %vm15267_vm12, %v10202_v9 }
 0x4a2   : > { %11594 = vst.msk [vmem:[%s15300_s19 + $0xb6] ss:$8 sm:$0x3] %vm15267_vm12, %v10201_v28  ;;  %11595 = vst.msk [vmem:[%s15300_s19 + $0xd6] ss:$8 sm:$0x3] %vm15267_vm12, %v10203_v46 }
 0x4a3   : > { %11592 = vst.msk [vmem:[%s15300_s19 + $0x76] ss:$8 sm:$0x3] %vm15267_vm12, %v10204_v8  ;;  %11596 = vst.msk [vmem:[%s15300_s19 + $0xf6] ss:$8 sm:$0x3] %vm15267_vm12, %v10205_v62 }
 0x4ca   : > { %v10478_v30 = vpop.f32.mrb[32].mxu1 }
 0x4cb   : > { %v11757_v5 = vadd.f32 %v10478_v30, %v15262_v58  ;;  %v10480_v53 = vpop.f32.mrb[33].mxu1 }
 0x4cc   : > { %v11758_v38 = vadd.f32 %v10480_v53, %v15262_v58  ;;  %v10482_v43 = vpop.f32.mrb[34].mxu1 }
 0x4cd   : > { %v10487_v32 = vmax.f32 %v11757_v5, 0.0  ;;  %v10483_v2 = vpop.f32.mrb[35].mxu1 }
 0x4ce   : > { %v10488_v36 = vmax.f32 %v11758_v38, 0.0 }
 0x4d0   : > { %v10491_v41 = vcombine.low %v10487_v32, %v10488_v36  ;;  %v10492_v26 = vcombine.high %v10487_v32, %v10488_v36 }
 0x4d2   : > { %v10499_v27 = vrot.slane %v10491_v41, %v15260_v3  ;;  %v10506_v31 = vrot.slane %v10492_v26, %v15260_v3 }
 0x4d4   : > { %v10507_v33 = vcombine.high %v10499_v27, %v10499_v27  ;;  %v10508_v47 = vcombine.high %v10506_v31, %v10506_v31  ;;  %v10515_v58 = vrot.slane %v10499_v27, %v15260_v3  ;;  %v10522_v1 = vrot.slane %v10506_v31, %v15260_v3 }
 0x4d6   : > { %v10529_v22 = vrot.slane %v10507_v33, %v15260_v3  ;;  %v10536_v6 = vrot.slane %v10508_v47, %v15260_v3  ;;  %v10537_v0 = vcombine.high %v10515_v58, %v10515_v58  ;;  %v10538_v29 = vcombine.high %v10522_v1, %v10522_v1  ;;  %11623 = vst.msk [vmem:[%s15300_s19 + $0x17] ss:$8 sm:$0x3] %vm15267_vm12, %v10515_v58 }
 0x4d7   : > { %11627 = vst.msk [vmem:[%s15300_s19 + $0x97] ss:$8 sm:$0x3] %vm15267_vm12, %v10522_v1 }
 0x4d8   : > { %v10539_v48 = vcombine.high %v10529_v22, %v10529_v22  ;;  %v10540_v19 = vcombine.high %v10536_v6, %v10536_v6  ;;  %11624 = vst.msk [vmem:[%s15300_s19 + $0x37] ss:$8 sm:$0x3] %vm15267_vm12, %v10529_v22  ;;  %11625 = vst.msk [vmem:[%s15300_s19 + $0x57] ss:$8 sm:$0x3] %vm15267_vm12, %v10537_v0 }
 0x4d9   : > { %11628 = vst.msk [vmem:[%s15300_s19 + $0xb7] ss:$8 sm:$0x3] %vm15267_vm12, %v10536_v6  ;;  %11629 = vst.msk [vmem:[%s15300_s19 + $0xd7] ss:$8 sm:$0x3] %vm15267_vm12, %v10538_v29 }
 0x4da   : > { %11626 = vst.msk [vmem:[%s15300_s19 + $0x77] ss:$8 sm:$0x3] %vm15267_vm12, %v10539_v48  ;;  %11630 = vst.msk [vmem:[%s15300_s19 + $0xf7] ss:$8 sm:$0x3] %vm15267_vm12, %v10540_v19 }
 0x4db PF: > { %s24_s8 = sadd.s32 1, %s12165_s8   ;;  %s15858_s29 = smov %s12161_s30 }
 0x4dc   : > { %p21_p7 = scmp.ge.s32.totalorder %s24_s8, 4   ;;  %s15859_s30 = smov %s15861_s9 }
 0x4de   :  { %23 = sbr.rel (!%p21_p7) target bundleno = 17 (0x11), region = 268 }
 0x4e5   :  { %10605 = vsyncpa [#allocation6], 1 }
 0x4e6   :  { %10607 = vsyncpa [#allocation6 + $0x1], 1 }

</bundles_post_ra>
